<compile_context>
chip_gen: v6e
topology: v6e:2x2x1
jax: 0.10.0
libtpu: 0.0.40
codegen_flags: <defaults>
</compile_context>

<pallas_src>
import functools

import jax
import jax.numpy as jnp
from jax.experimental import pallas as pl
from jax.experimental.pallas import tpu as pltpu

_BN_EPS = 1e-5

# ConvTranspose2d(k=4, s=2, p=1): output row oy = 2*a + py draws from the
# zero-padded input row (a + off) with kernel tap ky, for (off, ky) below;
# identically along x with (off, kx).
_TAPS = (((0, 3), (1, 1)),   # output parity 0
         ((1, 2), (2, 0)))   # output parity 1


def _vmem_limit_bytes():
    # ~75% of physical VMEM (~48 MiB on v7x, ~96 MiB on v5e/v6e); safe fallback.
    try:
        cap = int(pltpu.get_tpu_info().vmem_capacity_bytes)
        return max(32 * 1024 * 1024, min((cap * 3) // 4, 112 * 1024 * 1024))
    except Exception:
        return 64 * 1024 * 1024


_VMEM_LIMIT = _vmem_limit_bytes()


def _phase_shifts(w_in):
    # Flattened-row shifts of the 4 taps of each of the 4 phases, for a padded
    # input whose row stride is (w_in + 2).
    shifts = []
    for py in range(2):
        for px in range(2):
            s = []
            for (oy, _) in _TAPS[py]:
                for (ox, _) in _TAPS[px]:
                    s.append(oy * (w_in + 2) + ox)
            shifts.append(tuple(s))
    return tuple(shifts)


# ---------------------------------------------------------------------------
# Pallas kernels
# ---------------------------------------------------------------------------
def _linear_relu_kernel(z_ref, w_ref, b_ref, o_ref):
    # z: (N, L) bf16   w: (L, F) bf16   b: (1, F) f32   ->   o: (N, F) bf16
    y = jnp.dot(z_ref[...], w_ref[...], preferred_element_type=jnp.float32)
    o_ref[...] = jnp.maximum(y + b_ref[...], 0.0).astype(o_ref.dtype)


def _convt_relu_bn_kernel(mask_ref, x_ref, w_ref, b_ref,
                          o_ref, sum_ref, sq_ref, *, mcomp, shifts):
    # One image per grid step.  ConvTranspose2d(4,2,1) as 4 phases x 4 tap
    # matmuls over shifted VMEM slices of the padded, row-flattened input
    # (windows are never materialized in HBM), + bias + ReLU.  Per-channel
    # sum / sum-of-squares (masked to valid output rows) accumulate across the
    # batch grid in resident output blocks for train-mode BatchNorm.
    @pl.when(pl.program_id(0) == 0)
    def _():
        sum_ref[...] = jnp.zeros_like(sum_ref)
        sq_ref[...] = jnp.zeros_like(sq_ref)

    cout = b_ref.shape[1]
    mask = mask_ref[...]                                   # (mcomp, 1) f32
    psum = jnp.zeros_like(sum_ref)
    psq = jnp.zeros_like(sq_ref)
    for p in range(4):
        acc = jnp.zeros((mcomp, cout), jnp.float32)
        for t in range(4):
            acc += jnp.dot(x_ref[0, pl.ds(shifts[p][t], mcomp), :],
                           w_ref[p, t], preferred_element_type=jnp.float32)
        z = jnp.maximum(acc + b_ref[...], 0.0)
        o_ref[0, :, p * cout:(p + 1) * cout] = z.astype(o_ref.dtype)
        zm = z * mask
        psum = psum + jnp.sum(zm, axis=0, keepdims=True)
        psq = psq + jnp.sum(zm * z, axis=0, keepdims=True)
    sum_ref[...] += psum
    sq_ref[...] += psq


def _convt_sigmoid_kernel(x_ref, w_ref, b_ref, o_ref, *, mcomp, shifts):
    # Final layer: Cout = c_img is tiny, so the 16 (phase, tap) windows are
    # lane-packed in VMEM and hit the MXU as ONE block-diagonal matmul.
    cols = [x_ref[0, pl.ds(shifts[p][t], mcomp), :]
            for p in range(4) for t in range(4)]
    lhs = jnp.concatenate(cols, axis=1)                    # (mcomp, 16*Cin)
    y = jnp.dot(lhs, w_ref[...], preferred_element_type=jnp.float32)
    o_ref[0] = jax.nn.sigmoid(y + b_ref[...])


# ---------------------------------------------------------------------------
# pallas_call wrappers
# ---------------------------------------------------------------------------
def _full_vmem_call(kernel, out_shape, *args):
    return pl.pallas_call(
        kernel,
        out_shape=out_shape,
        in_specs=[pl.BlockSpec(memory_space=pltpu.MemorySpace.VMEM)] * len(args),
        out_specs=pl.BlockSpec(memory_space=pltpu.MemorySpace.VMEM),
        compiler_params=pltpu.CompilerParams(vmem_limit_bytes=_VMEM_LIMIT),
    )(*args)


def _pad_flatten(x_nhwc):
    # (N, H, W, C) -> zero-padded, row-flattened (N, (H+3)*(W+2), C).
    n, h, w, c = x_nhwc.shape
    xp = jnp.pad(x_nhwc, ((0, 0), (1, 2), (1, 1), (0, 0)))
    return xp.reshape(n, (h + 3) * (w + 2), c)


def conv_transpose_relu_bn_stats(x_nhwc, w_taps, b):
    """ConvTranspose2d(4,2,1) + bias + ReLU; returns phase-packed activation
    (N, H*(W+2), 4*Cout) bf16 plus per-channel sum / sum-of-squares."""
    n, h, w, cin = x_nhwc.shape
    cout = w_taps.shape[-1]
    mcomp = h * (w + 2)
    msp = (h + 3) * (w + 2)
    shifts = _phase_shifts(w)
    xflat = _pad_flatten(x_nhwc)
    mask = (jnp.arange(mcomp) % (w + 2) < w).astype(jnp.float32).reshape(mcomp, 1)

    kernel = functools.partial(_convt_relu_bn_kernel, mcomp=mcomp, shifts=shifts)
    z, ssum, ssq = pl.pallas_call(
        kernel,
        out_shape=(jax.ShapeDtypeStruct((n, mcomp, 4 * cout), jnp.bfloat16),
                   jax.ShapeDtypeStruct((1, cout), jnp.float32),
                   jax.ShapeDtypeStruct((1, cout), jnp.float32)),
        grid=(n,),
        in_specs=[pl.BlockSpec((mcomp, 1), lambda i: (0, 0)),
                  pl.BlockSpec((1, msp, cin), lambda i: (i, 0, 0)),
                  pl.BlockSpec((4, 4, cin, cout), lambda i: (0, 0, 0, 0)),
                  pl.BlockSpec((1, cout), lambda i: (0, 0))],
        out_specs=(pl.BlockSpec((1, mcomp, 4 * cout), lambda i: (i, 0, 0)),
                   pl.BlockSpec((1, cout), lambda i: (0, 0)),
                   pl.BlockSpec((1, cout), lambda i: (0, 0))),
        compiler_params=pltpu.CompilerParams(
            dimension_semantics=("arbitrary",),
            vmem_limit_bytes=_VMEM_LIMIT),
    )(mask, xflat, w_taps, b)
    return z, ssum, ssq


def _bn_apply_interleave(z, ssum, ssq, gamma, beta, count, n, h, w, cout):
    # Train-mode BatchNorm scale/shift from the kernel's sum/sumsq, fused by
    # XLA into the phase -> NHWC interleave pass.  Padding for the next layer
    # happens after normalization, so the conv's zero padding stays exact.
    mean = ssum / count
    var = jnp.maximum(ssq / count - mean * mean, 0.0)      # biased (train-mode)
    scale = gamma * jax.lax.rsqrt(var + _BN_EPS)
    shift = beta - mean * scale
    z6 = z.reshape(n, h, w + 2, 2, 2, cout)[:, :, :w]      # drop garbage cols
    y = (z6.astype(jnp.float32) * scale + shift).astype(jnp.bfloat16)
    y = jnp.transpose(y, (0, 1, 3, 2, 4, 5)).reshape(n, 2 * h, 2 * w, cout)
    return y


def conv_transpose_sigmoid(x_nhwc, w_blk, b4):
    """Final ConvTranspose2d(4,2,1) + Sigmoid; returns NCHW f32 image."""
    n, h, w, cin = x_nhwc.shape
    cout = b4.shape[-1] // 4
    mcomp = h * (w + 2)
    msp = (h + 3) * (w + 2)
    shifts = _phase_shifts(w)
    xflat = _pad_flatten(x_nhwc)

    kernel = functools.partial(_convt_sigmoid_kernel, mcomp=mcomp, shifts=shifts)
    o = pl.pallas_call(
        kernel,
        out_shape=jax.ShapeDtypeStruct((n, mcomp, 4 * cout), jnp.float32),
        grid=(n,),
        in_specs=[pl.BlockSpec((1, msp, cin), lambda i: (i, 0, 0)),
                  pl.BlockSpec((16 * cin, 4 * cout), lambda i: (0, 0)),
                  pl.BlockSpec((1, 4 * cout), lambda i: (0, 0))],
        out_specs=pl.BlockSpec((1, mcomp, 4 * cout), lambda i: (i, 0, 0)),
        compiler_params=pltpu.CompilerParams(
            dimension_semantics=("parallel",),
            vmem_limit_bytes=_VMEM_LIMIT),
    )(xflat, w_blk, b4)

    o6 = o.reshape(n, h, w + 2, 2, 2, cout)[:, :, :w]
    return jnp.transpose(o6, (0, 5, 1, 3, 2, 4)).reshape(n, cout, 2 * h, 2 * w)


# ---------------------------------------------------------------------------
# Parameters: raw (PyTorch-like) init + one-time packing into kernel layouts
# ---------------------------------------------------------------------------
def init_generator_params(key, img_size, latent_dim, dim):
    # NOTE: lin_w is stored as (in, out) = (latent_dim, features); a real
    # PyTorch checkpoint stores nn.Linear weight as (out, in) -> transpose it.
    c_img, ih, iw = img_size
    f0, f1 = ih // 16, iw // 16
    keys = jax.random.split(key, 32)
    s = 0.05
    p = {
        "lin_w": s * jax.random.normal(keys[0], (latent_dim, 8 * dim * f0 * f1), jnp.float32),
        "lin_b": s * jax.random.normal(keys[1], (8 * dim * f0 * f1,), jnp.float32),
    }
    chans = [8 * dim, 4 * dim, 2 * dim, dim, c_img]
    k = 2
    for l in range(4):
        cin, cout = chans[l], chans[l + 1]
        p[f"w{l}"] = s * jax.random.normal(keys[k], (cin, cout, 4, 4), jnp.float32); k += 1
        p[f"b{l}"] = s * jax.random.normal(keys[k], (cout,), jnp.float32); k += 1
        if l < 3:
            p[f"gamma{l}"] = 1.0 + s * jax.random.normal(keys[k], (cout,), jnp.float32); k += 1
            p[f"beta{l}"] = s * jax.random.normal(keys[k], (cout,), jnp.float32); k += 1
    return p


def pack_generator_params(params, img_size, dim):
    """One-time packing into kernel-ready bf16 layouts (hoisted out of forward)."""
    c_img, ih, iw = img_size
    f0, f1 = ih // 16, iw // 16
    c0 = 8 * dim
    feat = c0 * f0 * f1
    lat = params["lin_w"].shape[0]

    packed = {
        # Linear columns permuted channel-major -> NHWC so the kernel output
        # reshapes straight to (N, f0, f1, 8*dim).
        "lin_w": params["lin_w"].reshape(lat, c0, f0, f1).transpose(0, 2, 3, 1)
                 .reshape(lat, feat).astype(jnp.bfloat16),
        "lin_b": params["lin_b"].reshape(c0, f0, f1).transpose(1, 2, 0)
                 .reshape(1, feat).astype(jnp.float32),
    }

    def phase_taps(w):
        phases = []
        for py in range(2):
            for px in range(2):
                taps = [w[:, :, ky, kx]
                        for (_, ky) in _TAPS[py] for (_, kx) in _TAPS[px]]
                phases.append(jnp.stack(taps, axis=0))       # (4, cin, cout)
        return jnp.stack(phases, axis=0)                      # (4, 4, cin, cout)

    for l in range(3):
        w = params[f"w{l}"]
        cout = w.shape[1]
        packed[f"w{l}"] = phase_taps(w).astype(jnp.bfloat16)
        packed[f"b{l}"] = params[f"b{l}"].reshape(1, cout).astype(jnp.float32)
        packed[f"gamma{l}"] = params[f"gamma{l}"].reshape(1, cout).astype(jnp.float32)
        packed[f"beta{l}"] = params[f"beta{l}"].reshape(1, cout).astype(jnp.float32)

    # Final layer: block-diagonal (16*Cin, 4*Cout) weight -> one lane-dense matmul.
    w = params["w3"]
    cin, cout = w.shape[0], w.shape[1]
    w_ph = phase_taps(w).reshape(4, 4 * cin, cout)
    w_blk = jnp.zeros((4, 4 * cin, 4, cout), jnp.float32)
    for p in range(4):
        w_blk = w_blk.at[p, :, p, :].set(w_ph[p])
    packed["w3"] = w_blk.reshape(16 * cin, 4 * cout).astype(jnp.bfloat16)
    packed["b3"] = jnp.tile(params["b3"].reshape(1, cout).astype(jnp.float32), (1, 4))
    return packed


# ---------------------------------------------------------------------------
# Forward
# ---------------------------------------------------------------------------
@functools.partial(jax.jit, static_argnums=(2, 3))
def generator_forward(packed, z, img_size, dim):
    """z: (N, latent_dim) -> image (N, C, H, W)  (NCHW, matching PyTorch)."""
    c_img, ih, iw = img_size
    f0, f1 = ih // 16, iw // 16
    n = z.shape[0]
    c0 = 8 * dim
    feat = c0 * f0 * f1

    feats = _full_vmem_call(
        _linear_relu_kernel,
        jax.ShapeDtypeStruct((n, feat), jnp.bfloat16),
        z.astype(jnp.bfloat16), packed["lin_w"], packed["lin_b"])
    x = feats.reshape(n, f0, f1, c0)                      # NHWC, bf16

    hh, ww = f0, f1
    for l in range(3):
        cout = packed[f"w{l}"].shape[-1]
        z_pk, ssum, ssq = conv_transpose_relu_bn_stats(
            x, packed[f"w{l}"], packed[f"b{l}"])
        count = float(n * 4 * hh * ww)                    # N * OH * OW per channel
        x = _bn_apply_interleave(z_pk, ssum, ssq,
                                 packed[f"gamma{l}"], packed[f"beta{l}"],
                                 count, n, hh, ww, cout)
        hh, ww = 2 * hh, 2 * ww

    return conv_transpose_sigmoid(x, packed["w3"], packed["b3"])


# ---------------------------------------------------------------------------
# Pure-JAX f32 reference (direct transcription of the PyTorch module) used
# only for numerical validation in __main__.
# ---------------------------------------------------------------------------
@functools.partial(jax.jit, static_argnums=(2, 3))
def _reference_forward(params, z, img_size, dim):
    c_img, ih, iw = img_size
    f0, f1 = ih // 16, iw // 16
    n = z.shape[0]
    x = jnp.maximum(z @ params["lin_w"] + params["lin_b"], 0.0)
    x = x.reshape(n, 8 * dim, f0, f1)                     # NCHW
    for l in range(4):
        w, b = params[f"w{l}"], params[f"b{l}"]
        cout = w.shape[1]
        N, _, H, W = x.shape
        OH, OW = 2 * H, 2 * W
        y = jnp.einsum("ncij,cokl->noijkl", x, w)
        out = jnp.zeros((N, cout, OH + 2, OW + 2), jnp.float32)
        for ky in range(4):
            for kx in range(4):
                out = out.at[:, :, ky:ky + OH:2, kx:kx + OW:2].add(y[..., ky, kx])
        x = out[:, :, 1:OH + 1, 1:OW + 1] + b.reshape(1, cout, 1, 1)
        if l < 3:
            x = jnp.maximum(x, 0.0)
            mean = x.mean(axis=(0, 2, 3), keepdims=True)
            var = ((x - mean) ** 2).mean(axis=(0, 2, 3), keepdims=True)
            x = ((x - mean) * jax.lax.rsqrt(var + _BN_EPS)
                 * params[f"gamma{l}"].reshape(1, cout, 1, 1)
                 + params[f"beta{l}"].reshape(1, cout, 1, 1))
        else:
            x = jax.nn.sigmoid(x)
    return x


if __name__ == "__main__":
    img_size = (1, 32, 32)    # (C, H, W); H and W must be divisible by 16
    latent_dim = 16
    dim = 8
    batch = 2

    key = jax.random.PRNGKey(0)
    pkey, zkey = jax.random.split(key)
    params = init_generator_params(pkey, img_size, latent_dim, dim)
    packed = pack_generator_params(params, img_size, dim)
    z = jax.random.normal(zkey, (batch, latent_dim), jnp.float32)

    img = generator_forward(packed, z, img_size, dim)
    jax.block_until_ready(img)

    assert img.shape == (batch, img_size[0], img_size[1], img_size[2]), img.shape
    assert bool(jnp.all(jnp.isfinite(img)))
    assert bool(jnp.all(img >= 0.0)) and bool(jnp.all(img <= 1.0))  # sigmoid range

    # Validate against the pure-JAX f32 reference (bf16 MXU operands / bf16
    # inter-layer activations in the Pallas path -> loose-ish tolerance).
    ref = _reference_forward(params, z, img_size, dim)
    max_diff = float(jnp.max(jnp.abs(img - ref)))
    assert max_diff < 6e-2, f"max|pallas - reference| = {max_diff}"

    print("KERNEL_OK")
</pallas_src>

<mosaic_0001>
module attributes {stable_mosaic.version = 11 : i64} {
  func.func @_linear_relu_kernel(%arg0: memref<2x16xbf16, #tpu.memory_space<vmem>>, %arg1: memref<16x256xbf16, #tpu.memory_space<vmem>>, %arg2: memref<1x256xf32, #tpu.memory_space<vmem>>, %arg3: memref<2x256xbf16, #tpu.memory_space<vmem>>) attributes {dimension_semantics = [], scalar_prefetch = 0 : i64, scratch_operands = 0 : i64, tpu.core_type = #tpu.core_type<tc>} {
    %c0 = arith.constant 0 : index
    %c0_0 = arith.constant 0 : index
    %0 = vector.load %arg0[%c0, %c0_0] : memref<2x16xbf16, #tpu.memory_space<vmem>>, vector<2x16xbf16>
    %c0_1 = arith.constant 0 : index
    %c0_2 = arith.constant 0 : index
    %1 = vector.load %arg1[%c0_1, %c0_2] : memref<16x256xbf16, #tpu.memory_space<vmem>>, vector<16x256xbf16>
    %cst = arith.constant dense<0.000000e+00> : vector<2x256xf32>
    %2 = tpu.matmul %0, %1, %cst {dimension_numbers = #tpu.dot_dimension_numbers<[1], [0], [0], [1], [0, 0, 1, 1], [], []>} : vector<2x16xbf16>, vector<16x256xbf16>, vector<2x256xf32> -> vector<2x256xf32>
    %c0_3 = arith.constant 0 : index
    %c0_4 = arith.constant 0 : index
    %3 = vector.load %arg2[%c0_3, %c0_4] : memref<1x256xf32, #tpu.memory_space<vmem>>, vector<1x256xf32>
    %4 = vector.broadcast %3 : vector<1x256xf32> to vector<2x256xf32>
    %5 = arith.addf %2, %4 : vector<2x256xf32>
    %cst_5 = arith.constant 0.000000e+00 : f32
    %6 = vector.broadcast %cst_5 : f32 to vector<2x256xf32>
    %7 = arith.maximumf %5, %6 : vector<2x256xf32>
    %8 = arith.truncf %7 : vector<2x256xf32> to vector<2x256xbf16>
    %c0_6 = arith.constant 0 : index
    %c0_7 = arith.constant 0 : index
    %9 = vector.load %arg3[%c0_6, %c0_7] : memref<2x256xbf16, #tpu.memory_space<vmem>>, vector<2x256xbf16>
    tpu.vector_store %arg3[%c0_6, %c0_7], %8 {strides = array<i32>} : memref<2x256xbf16, #tpu.memory_space<vmem>>, vector<2x256xbf16>,
    return
  }
}

module attributes {stable_mosaic.version = 11 : i64} {
  func.func @_convt_relu_bn_kernel(%arg0: i32, %arg1: memref<8x1xf32, #tpu.memory_space<vmem>>, %arg2: memref<1x20x64xbf16, #tpu.memory_space<vmem>>, %arg3: memref<4x4x64x32xbf16, #tpu.memory_space<vmem>>, %arg4: memref<1x32xf32, #tpu.memory_space<vmem>>, %arg5: memref<1x8x128xbf16, #tpu.memory_space<vmem>>, %arg6: memref<1x32xf32, #tpu.memory_space<vmem>>, %arg7: memref<1x32xf32, #tpu.memory_space<vmem>>) attributes {dimension_semantics = [#tpu.dimension_semantics<arbitrary>], iteration_bounds = array<i64: 2>, scalar_prefetch = 0 : i64, scratch_operands = 0 : i64, tpu.core_type = #tpu.core_type<tc>, window_params = [{pipeline_mode = #tpu.pipeline_mode<synchronous>, transform_indices = @transform_0, window_bounds = array<i64: 8, 1>}, {transform_indices = @transform_1, window_bounds = array<i64: 1, 20, 64>}, {pipeline_mode = #tpu.pipeline_mode<synchronous>, transform_indices = @transform_2, window_bounds = array<i64: 4, 4, 64, 32>}, {pipeline_mode = #tpu.pipeline_mode<synchronous>, transform_indices = @transform_3, window_bounds = array<i64: 1, 32>}, {transform_indices = @transform_4, window_bounds = array<i64: 1, 8, 128>}, {pipeline_mode = #tpu.pipeline_mode<synchronous>, transform_indices = @transform_5, window_bounds = array<i64: 1, 32>}, {pipeline_mode = #tpu.pipeline_mode<synchronous>, transform_indices = @transform_6, window_bounds = array<i64: 1, 32>}]} {
    %c0_i32 = arith.constant 0 : i32
    %0 = arith.cmpi eq, %arg0, %c0_i32 : i32
    %1 = arith.extui %0 : i1 to i32
    %c0_i32_0 = arith.constant 0 : i32
    %2 = arith.cmpi ne, %1, %c0_i32_0 : i32
    scf.if %2 {
      %cst_163 = arith.constant 0.000000e+00 : f32
      %184 = vector.broadcast %cst_163 : f32 to vector<1x32xf32>
      %c0_164 = arith.constant 0 : index
      %c0_165 = arith.constant 0 : index
      %185 = vector.load %arg6[%c0_164, %c0_165] : memref<1x32xf32, #tpu.memory_space<vmem>>, vector<1x32xf32>
      tpu.vector_store %arg6[%c0_164, %c0_165], %184 {strides = array<i32>} : memref<1x32xf32, #tpu.memory_space<vmem>>, vector<1x32xf32>,
      %cst_166 = arith.constant 0.000000e+00 : f32
      %186 = vector.broadcast %cst_166 : f32 to vector<1x32xf32>
      %c0_167 = arith.constant 0 : index
      %c0_168 = arith.constant 0 : index
      %187 = vector.load %arg7[%c0_167, %c0_168] : memref<1x32xf32, #tpu.memory_space<vmem>>, vector<1x32xf32>
      tpu.vector_store %arg7[%c0_167, %c0_168], %186 {strides = array<i32>} : memref<1x32xf32, #tpu.memory_space<vmem>>, vector<1x32xf32>,
    } else {
    }
    %c0 = arith.constant 0 : index
    %c0_1 = arith.constant 0 : index
    %3 = vector.load %arg1[%c0, %c0_1] : memref<8x1xf32, #tpu.memory_space<vmem>>, vector<8x1xf32>
    %cst = arith.constant 0.000000e+00 : f32
    %4 = vector.broadcast %cst : f32 to vector<1x32xf32>
    %cst_2 = arith.constant 0.000000e+00 : f32
    %5 = vector.broadcast %cst_2 : f32 to vector<1x32xf32>
    %cst_3 = arith.constant 0.000000e+00 : f32
    %6 = vector.broadcast %cst_3 : f32 to vector<8x32xf32>
    %c0_4 = arith.constant 0 : index
    %c0_5 = arith.constant 0 : index
    %c0_6 = arith.constant 0 : index
    %7 = vector.load %arg2[%c0_4, %c0_5, %c0_6] : memref<1x20x64xbf16, #tpu.memory_space<vmem>>, vector<1x8x64xbf16>
    %8 = vector.shape_cast %7 : vector<1x8x64xbf16> to vector<8x64xbf16>
    %c0_7 = arith.constant 0 : index
    %c0_8 = arith.constant 0 : index
    %c0_9 = arith.constant 0 : index
    %c0_10 = arith.constant 0 : index
    %9 = vector.load %arg3[%c0_7, %c0_8, %c0_9, %c0_10] : memref<4x4x64x32xbf16, #tpu.memory_space<vmem>>, vector<1x1x64x32xbf16>
    %10 = vector.shape_cast %9 : vector<1x1x64x32xbf16> to vector<64x32xbf16>
    %cst_11 = arith.constant dense<0.000000e+00> : vector<8x32xf32>
    %11 = tpu.matmul %8, %10, %cst_11 {dimension_numbers = #tpu.dot_dimension_numbers<[1], [0], [0], [1], [0, 0, 1, 1], [], []>} : vector<8x64xbf16>, vector<64x32xbf16>, vector<8x32xf32> -> vector<8x32xf32>
    %12 = arith.addf %6, %11 : vector<8x32xf32>
    %c0_12 = arith.constant 0 : index
    %c1 = arith.constant 1 : index
    %c0_13 = arith.constant 0 : index
    %13 = vector.load %arg2[%c0_12, %c1, %c0_13] : memref<1x20x64xbf16, #tpu.memory_space<vmem>>, vector<1x8x64xbf16>
    %14 = vector.shape_cast %13 : vector<1x8x64xbf16> to vector<8x64xbf16>
    %c0_14 = arith.constant 0 : index
    %c1_15 = arith.constant 1 : index
    %c0_16 = arith.constant 0 : index
    %c0_17 = arith.constant 0 : index
    %15 = vector.load %arg3[%c0_14, %c1_15, %c0_16, %c0_17] : memref<4x4x64x32xbf16, #tpu.memory_space<vmem>>, vector<1x1x64x32xbf16>
    %16 = vector.shape_cast %15 : vector<1x1x64x32xbf16> to vector<64x32xbf16>
    %cst_18 = arith.constant dense<0.000000e+00> : vector<8x32xf32>
    %17 = tpu.matmul %14, %16, %cst_18 {dimension_numbers = #tpu.dot_dimension_numbers<[1], [0], [0], [1], [0, 0, 1, 1], [], []>} : vector<8x64xbf16>, vector<64x32xbf16>, vector<8x32xf32> -> vector<8x32xf32>
    %18 = arith.addf %12, %17 : vector<8x32xf32>
    %c0_19 = arith.constant 0 : index
    %c4 = arith.constant 4 : index
    %c0_20 = arith.constant 0 : index
    %19 = vector.load %arg2[%c0_19, %c4, %c0_20] : memref<1x20x64xbf16, #tpu.memory_space<vmem>>, vector<1x8x64xbf16>
    %20 = vector.shape_cast %19 : vector<1x8x64xbf16> to vector<8x64xbf16>
    %c0_21 = arith.constant 0 : index
    %c2 = arith.constant 2 : index
    %c0_22 = arith.constant 0 : index
    %c0_23 = arith.constant 0 : index
    %21 = vector.load %arg3[%c0_21, %c2, %c0_22, %c0_23] : memref<4x4x64x32xbf16, #tpu.memory_space<vmem>>, vector<1x1x64x32xbf16>
    %22 = vector.shape_cast %21 : vector<1x1x64x32xbf16> to vector<64x32xbf16>
    %cst_24 = arith.constant dense<0.000000e+00> : vector<8x32xf32>
    %23 = tpu.matmul %20, %22, %cst_24 {dimension_numbers = #tpu.dot_dimension_numbers<[1], [0], [0], [1], [0, 0, 1, 1], [], []>} : vector<8x64xbf16>, vector<64x32xbf16>, vector<8x32xf32> -> vector<8x32xf32>
    %24 = arith.addf %18, %23 : vector<8x32xf32>
    %c0_25 = arith.constant 0 : index
    %c5 = arith.constant 5 : index
    %c0_26 = arith.constant 0 : index
    %25 = vector.load %arg2[%c0_25, %c5, %c0_26] : memref<1x20x64xbf16, #tpu.memory_space<vmem>>, vector<1x8x64xbf16>
    %26 = vector.shape_cast %25 : vector<1x8x64xbf16> to vector<8x64xbf16>
    %c0_27 = arith.constant 0 : index
    %c3 = arith.constant 3 : index
    %c0_28 = arith.constant 0 : index
    %c0_29 = arith.constant 0 : index
    %27 = vector.load %arg3[%c0_27, %c3, %c0_28, %c0_29] : memref<4x4x64x32xbf16, #tpu.memory_space<vmem>>, vector<1x1x64x32xbf16>
    %28 = vector.shape_cast %27 : vector<1x1x64x32xbf16> to vector<64x32xbf16>
    %cst_30 = arith.constant dense<0.000000e+00> : vector<8x32xf32>
    %29 = tpu.matmul %26, %28, %cst_30 {dimension_numbers = #tpu.dot_dimension_numbers<[1], [0], [0], [1], [0, 0, 1, 1], [], []>} : vector<8x64xbf16>, vector<64x32xbf16>, vector<8x32xf32> -> vector<8x32xf32>
    %30 = arith.addf %24, %29 : vector<8x32xf32>
    %c0_31 = arith.constant 0 : index
    %c0_32 = arith.constant 0 : index
    %31 = vector.load %arg4[%c0_31, %c0_32] : memref<1x32xf32, #tpu.memory_space<vmem>>, vector<1x32xf32>
    %32 = vector.broadcast %31 : vector<1x32xf32> to vector<8x32xf32>
    %33 = arith.addf %30, %32 : vector<8x32xf32>
    %cst_33 = arith.constant 0.000000e+00 : f32
    %34 = vector.broadcast %cst_33 : f32 to vector<8x32xf32>
    %35 = arith.maximumf %33, %34 : vector<8x32xf32>
    %36 = arith.truncf %35 : vector<8x32xf32> to vector<8x32xbf16>
    %c0_34 = arith.constant 0 : index
    %c0_35 = arith.constant 0 : index
    %c0_36 = arith.constant 0 : index
    %37 = vector.load %arg5[%c0_34, %c0_35, %c0_36] : memref<1x8x128xbf16, #tpu.memory_space<vmem>>, vector<1x8x32xbf16>
    %38 = vector.shape_cast %37 : vector<1x8x32xbf16> to vector<8x32xbf16>
    %39 = vector.shape_cast %36 : vector<8x32xbf16> to vector<1x8x32xbf16>
    tpu.vector_store %arg5[%c0_34, %c0_35, %c0_36], %39 {strides = array<i32>} : memref<1x8x128xbf16, #tpu.memory_space<vmem>>, vector<1x8x32xbf16>,
    %40 = vector.broadcast %3 : vector<8x1xf32> to vector<8x32xf32>
    %41 = arith.mulf %35, %40 : vector<8x32xf32>
    %cst_37 = arith.constant dense<0.000000e+00> : vector<32xf32>
    %42 = vector.multi_reduction <add>, %41, %cst_37 [0] : vector<8x32xf32> to vector<32xf32>
    %43 = vector.shape_cast %42 : vector<32xf32> to vector<1x32xf32>
    %44 = arith.addf %4, %43 : vector<1x32xf32>
    %45 = arith.mulf %41, %35 : vector<8x32xf32>
    %cst_38 = arith.constant dense<0.000000e+00> : vector<32xf32>
    %46 = vector.multi_reduction <add>, %45, %cst_38 [0] : vector<8x32xf32> to vector<32xf32>
    %47 = vector.shape_cast %46 : vector<32xf32> to vector<1x32xf32>
    %48 = arith.addf %5, %47 : vector<1x32xf32>
    %cst_39 = arith.constant 0.000000e+00 : f32
    %49 = vector.broadcast %cst_39 : f32 to vector<8x32xf32>
    %c0_40 = arith.constant 0 : index
    %c1_41 = arith.constant 1 : index
    %c0_42 = arith.constant 0 : index
    %50 = vector.load %arg2[%c0_40, %c1_41, %c0_42] : memref<1x20x64xbf16, #tpu.memory_space<vmem>>, vector<1x8x64xbf16>
    %51 = vector.shape_cast %50 : vector<1x8x64xbf16> to vector<8x64xbf16>
    %c1_43 = arith.constant 1 : index
    %c0_44 = arith.constant 0 : index
    %c0_45 = arith.constant 0 : index
    %c0_46 = arith.constant 0 : index
    %52 = vector.load %arg3[%c1_43, %c0_44, %c0_45, %c0_46] : memref<4x4x64x32xbf16, #tpu.memory_space<vmem>>, vector<1x1x64x32xbf16>
    %53 = vector.shape_cast %52 : vector<1x1x64x32xbf16> to vector<64x32xbf16>
    %cst_47 = arith.constant dense<0.000000e+00> : vector<8x32xf32>
    %54 = tpu.matmul %51, %53, %cst_47 {dimension_numbers = #tpu.dot_dimension_numbers<[1], [0], [0], [1], [0, 0, 1, 1], [], []>} : vector<8x64xbf16>, vector<64x32xbf16>, vector<8x32xf32> -> vector<8x32xf32>
    %55 = arith.addf %49, %54 : vector<8x32xf32>
    %c0_48 = arith.constant 0 : index
    %c2_49 = arith.constant 2 : index
    %c0_50 = arith.constant 0 : index
    %56 = vector.load %arg2[%c0_48, %c2_49, %c0_50] : memref<1x20x64xbf16, #tpu.memory_space<vmem>>, vector<1x8x64xbf16>
    %57 = vector.shape_cast %56 : vector<1x8x64xbf16> to vector<8x64xbf16>
    %c1_51 = arith.constant 1 : index
    %c1_52 = arith.constant 1 : index
    %c0_53 = arith.constant 0 : index
    %c0_54 = arith.constant 0 : index
    %58 = vector.load %arg3[%c1_51, %c1_52, %c0_53, %c0_54] : memref<4x4x64x32xbf16, #tpu.memory_space<vmem>>, vector<1x1x64x32xbf16>
    %59 = vector.shape_cast %58 : vector<1x1x64x32xbf16> to vector<64x32xbf16>
    %cst_55 = arith.constant dense<0.000000e+00> : vector<8x32xf32>
    %60 = tpu.matmul %57, %59, %cst_55 {dimension_numbers = #tpu.dot_dimension_numbers<[1], [0], [0], [1], [0, 0, 1, 1], [], []>} : vector<8x64xbf16>, vector<64x32xbf16>, vector<8x32xf32> -> vector<8x32xf32>
    %61 = arith.addf %55, %60 : vector<8x32xf32>
    %c0_56 = arith.constant 0 : index
    %c5_57 = arith.constant 5 : index
    %c0_58 = arith.constant 0 : index
    %62 = vector.load %arg2[%c0_56, %c5_57, %c0_58] : memref<1x20x64xbf16, #tpu.memory_space<vmem>>, vector<1x8x64xbf16>
    %63 = vector.shape_cast %62 : vector<1x8x64xbf16> to vector<8x64xbf16>
    %c1_59 = arith.constant 1 : index
    %c2_60 = arith.constant 2 : index
    %c0_61 = arith.constant 0 : index
    %c0_62 = arith.constant 0 : index
    %64 = vector.load %arg3[%c1_59, %c2_60, %c0_61, %c0_62] : memref<4x4x64x32xbf16, #tpu.memory_space<vmem>>, vector<1x1x64x32xbf16>
    %65 = vector.shape_cast %64 : vector<1x1x64x32xbf16> to vector<64x32xbf16>
    %cst_63 = arith.constant dense<0.000000e+00> : vector<8x32xf32>
    %66 = tpu.matmul %63, %65, %cst_63 {dimension_numbers = #tpu.dot_dimension_numbers<[1], [0], [0], [1], [0, 0, 1, 1], [], []>} : vector<8x64xbf16>, vector<64x32xbf16>, vector<8x32xf32> -> vector<8x32xf32>
    %67 = arith.addf %61, %66 : vector<8x32xf32>
    %c0_64 = arith.constant 0 : index
    %c6 = arith.constant 6 : index
    %c0_65 = arith.constant 0 : index
    %68 = vector.load %arg2[%c0_64, %c6, %c0_65] : memref<1x20x64xbf16, #tpu.memory_space<vmem>>, vector<1x8x64xbf16>
    %69 = vector.shape_cast %68 : vector<1x8x64xbf16> to vector<8x64xbf16>
    %c1_66 = arith.constant 1 : index
    %c3_67 = arith.constant 3 : index
    %c0_68 = arith.constant 0 : index
    %c0_69 = arith.constant 0 : index
    %70 = vector.load %arg3[%c1_66, %c3_67, %c0_68, %c0_69] : memref<4x4x64x32xbf16, #tpu.memory_space<vmem>>, vector<1x1x64x32xbf16>
    %71 = vector.shape_cast %70 : vector<1x1x64x32xbf16> to vector<64x32xbf16>
    %cst_70 = arith.constant dense<0.000000e+00> : vector<8x32xf32>
    %72 = tpu.matmul %69, %71, %cst_70 {dimension_numbers = #tpu.dot_dimension_numbers<[1], [0], [0], [1], [0, 0, 1, 1], [], []>} : vector<8x64xbf16>, vector<64x32xbf16>, vector<8x32xf32> -> vector<8x32xf32>
    %73 = arith.addf %67, %72 : vector<8x32xf32>
    %c0_71 = arith.constant 0 : index
    %c0_72 = arith.constant 0 : index
    %74 = vector.load %arg4[%c0_71, %c0_72] : memref<1x32xf32, #tpu.memory_space<vmem>>, vector<1x32xf32>
    %75 = vector.broadcast %74 : vector<1x32xf32> to vector<8x32xf32>
    %76 = arith.addf %73, %75 : vector<8x32xf32>
    %cst_73 = arith.constant 0.000000e+00 : f32
    %77 = vector.broadcast %cst_73 : f32 to vector<8x32xf32>
    %78 = arith.maximumf %76, %77 : vector<8x32xf32>
    %79 = arith.truncf %78 : vector<8x32xf32> to vector<8x32xbf16>
    %c0_74 = arith.constant 0 : index
    %c0_75 = arith.constant 0 : index
    %c32 = arith.constant 32 : index
    %80 = vector.load %arg5[%c0_74, %c0_75, %c32] : memref<1x8x128xbf16, #tpu.memory_space<vmem>>, vector<1x8x32xbf16>
    %81 = vector.shape_cast %80 : vector<1x8x32xbf16> to vector<8x32xbf16>
    %82 = vector.shape_cast %79 : vector<8x32xbf16> to vector<1x8x32xbf16>
    tpu.vector_store %arg5[%c0_74, %c0_75, %c32], %82 {strides = array<i32>} : memref<1x8x128xbf16, #tpu.memory_space<vmem>>, vector<1x8x32xbf16>,
    %83 = vector.broadcast %3 : vector<8x1xf32> to vector<8x32xf32>
    %84 = arith.mulf %78, %83 : vector<8x32xf32>
    %cst_76 = arith.constant dense<0.000000e+00> : vector<32xf32>
    %85 = vector.multi_reduction <add>, %84, %cst_76 [0] : vector<8x32xf32> to vector<32xf32>
    %86 = vector.shape_cast %85 : vector<32xf32> to vector<1x32xf32>
    %87 = arith.addf %44, %86 : vector<1x32xf32>
    %88 = arith.mulf %84, %78 : vector<8x32xf32>
    %cst_77 = arith.constant dense<0.000000e+00> : vector<32xf32>
    %89 = vector.multi_reduction <add>, %88, %cst_77 [0] : vector<8x32xf32> to vector<32xf32>
    %90 = vector.shape_cast %89 : vector<32xf32> to vector<1x32xf32>
    %91 = arith.addf %48, %90 : vector<1x32xf32>
    %cst_78 = arith.constant 0.000000e+00 : f32
    %92 = vector.broadcast %cst_78 : f32 to vector<8x32xf32>
    %c0_79 = arith.constant 0 : index
    %c4_80 = arith.constant 4 : index
    %c0_81 = arith.constant 0 : index
    %93 = vector.load %arg2[%c0_79, %c4_80, %c0_81] : memref<1x20x64xbf16, #tpu.memory_space<vmem>>, vector<1x8x64xbf16>
    %94 = vector.shape_cast %93 : vector<1x8x64xbf16> to vector<8x64xbf16>
    %c2_82 = arith.constant 2 : index
    %c0_83 = arith.constant 0 : index
    %c0_84 = arith.constant 0 : index
    %c0_85 = arith.constant 0 : index
    %95 = vector.load %arg3[%c2_82, %c0_83, %c0_84, %c0_85] : memref<4x4x64x32xbf16, #tpu.memory_space<vmem>>, vector<1x1x64x32xbf16>
    %96 = vector.shape_cast %95 : vector<1x1x64x32xbf16> to vector<64x32xbf16>
    %cst_86 = arith.constant dense<0.000000e+00> : vector<8x32xf32>
    %97 = tpu.matmul %94, %96, %cst_86 {dimension_numbers = #tpu.dot_dimension_numbers<[1], [0], [0], [1], [0, 0, 1, 1], [], []>} : vector<8x64xbf16>, vector<64x32xbf16>, vector<8x32xf32> -> vector<8x32xf32>
    %98 = arith.addf %92, %97 : vector<8x32xf32>
    %c0_87 = arith.constant 0 : index
    %c5_88 = arith.constant 5 : index
    %c0_89 = arith.constant 0 : index
    %99 = vector.load %arg2[%c0_87, %c5_88, %c0_89] : memref<1x20x64xbf16, #tpu.memory_space<vmem>>, vector<1x8x64xbf16>
    %100 = vector.shape_cast %99 : vector<1x8x64xbf16> to vector<8x64xbf16>
    %c2_90 = arith.constant 2 : index
    %c1_91 = arith.constant 1 : index
    %c0_92 = arith.constant 0 : index
    %c0_93 = arith.constant 0 : index
    %101 = vector.load %arg3[%c2_90, %c1_91, %c0_92, %c0_93] : memref<4x4x64x32xbf16, #tpu.memory_space<vmem>>, vector<1x1x64x32xbf16>
    %102 = vector.shape_cast %101 : vector<1x1x64x32xbf16> to vector<64x32xbf16>
    %cst_94 = arith.constant dense<0.000000e+00> : vector<8x32xf32>
    %103 = tpu.matmul %100, %102, %cst_94 {dimension_numbers = #tpu.dot_dimension_numbers<[1], [0], [0], [1], [0, 0, 1, 1], [], []>} : vector<8x64xbf16>, vector<64x32xbf16>, vector<8x32xf32> -> vector<8x32xf32>
    %104 = arith.addf %98, %103 : vector<8x32xf32>
    %c0_95 = arith.constant 0 : index
    %c8 = arith.constant 8 : index
    %c0_96 = arith.constant 0 : index
    %105 = vector.load %arg2[%c0_95, %c8, %c0_96] : memref<1x20x64xbf16, #tpu.memory_space<vmem>>, vector<1x8x64xbf16>
    %106 = vector.shape_cast %105 : vector<1x8x64xbf16> to vector<8x64xbf16>
    %c2_97 = arith.constant 2 : index
    %c2_98 = arith.constant 2 : index
    %c0_99 = arith.constant 0 : index
    %c0_100 = arith.constant 0 : index
    %107 = vector.load %arg3[%c2_97, %c2_98, %c0_99, %c0_100] : memref<4x4x64x32xbf16, #tpu.memory_space<vmem>>, vector<1x1x64x32xbf16>
    %108 = vector.shape_cast %107 : vector<1x1x64x32xbf16> to vector<64x32xbf16>
    %cst_101 = arith.constant dense<0.000000e+00> : vector<8x32xf32>
    %109 = tpu.matmul %106, %108, %cst_101 {dimension_numbers = #tpu.dot_dimension_numbers<[1], [0], [0], [1], [0, 0, 1, 1], [], []>} : vector<8x64xbf16>, vector<64x32xbf16>, vector<8x32xf32> -> vector<8x32xf32>
    %110 = arith.addf %104, %109 : vector<8x32xf32>
    %c0_102 = arith.constant 0 : index
    %c9 = arith.constant 9 : index
    %c0_103 = arith.constant 0 : index
    %111 = vector.load %arg2[%c0_102, %c9, %c0_103] : memref<1x20x64xbf16, #tpu.memory_space<vmem>>, vector<1x8x64xbf16>
    %112 = vector.shape_cast %111 : vector<1x8x64xbf16> to vector<8x64xbf16>
    %c2_104 = arith.constant 2 : index
    %c3_105 = arith.constant 3 : index
    %c0_106 = arith.constant 0 : index
    %c0_107 = arith.constant 0 : index
    %113 = vector.load %arg3[%c2_104, %c3_105, %c0_106, %c0_107] : memref<4x4x64x32xbf16, #tpu.memory_space<vmem>>, vector<1x1x64x32xbf16>
    %114 = vector.shape_cast %113 : vector<1x1x64x32xbf16> to vector<64x32xbf16>
    %cst_108 = arith.constant dense<0.000000e+00> : vector<8x32xf32>
    %115 = tpu.matmul %112, %114, %cst_108 {dimension_numbers = #tpu.dot_dimension_numbers<[1], [0], [0], [1], [0, 0, 1, 1], [], []>} : vector<8x64xbf16>, vector<64x32xbf16>, vector<8x32xf32> -> vector<8x32xf32>
    %116 = arith.addf %110, %115 : vector<8x32xf32>
    %c0_109 = arith.constant 0 : index
    %c0_110 = arith.constant 0 : index
    %117 = vector.load %arg4[%c0_109, %c0_110] : memref<1x32xf32, #tpu.memory_space<vmem>>, vector<1x32xf32>
    %118 = vector.broadcast %117 : vector<1x32xf32> to vector<8x32xf32>
    %119 = arith.addf %116, %118 : vector<8x32xf32>
    %cst_111 = arith.constant 0.000000e+00 : f32
    %120 = vector.broadcast %cst_111 : f32 to vector<8x32xf32>
    %121 = arith.maximumf %119, %120 : vector<8x32xf32>
    %122 = arith.truncf %121 : vector<8x32xf32> to vector<8x32xbf16>
    %c0_112 = arith.constant 0 : index
    %c0_113 = arith.constant 0 : index
    %c64 = arith.constant 64 : index
    %123 = vector.load %arg5[%c0_112, %c0_113, %c64] : memref<1x8x128xbf16, #tpu.memory_space<vmem>>, vector<1x8x32xbf16>
    %124 = vector.shape_cast %123 : vector<1x8x32xbf16> to vector<8x32xbf16>
    %125 = vector.shape_cast %122 : vector<8x32xbf16> to vector<1x8x32xbf16>
    tpu.vector_store %arg5[%c0_112, %c0_113, %c64], %125 {strides = array<i32>} : memref<1x8x128xbf16, #tpu.memory_space<vmem>>, vector<1x8x32xbf16>,
    %126 = vector.broadcast %3 : vector<8x1xf32> to vector<8x32xf32>
    %127 = arith.mulf %121, %126 : vector<8x32xf32>
    %cst_114 = arith.constant dense<0.000000e+00> : vector<32xf32>
    %128 = vector.multi_reduction <add>, %127, %cst_114 [0] : vector<8x32xf32> to vector<32xf32>
    %129 = vector.shape_cast %128 : vector<32xf32> to vector<1x32xf32>
    %130 = arith.addf %87, %129 : vector<1x32xf32>
    %131 = arith.mulf %127, %121 : vector<8x32xf32>
    %cst_115 = arith.constant dense<0.000000e+00> : vector<32xf32>
    %132 = vector.multi_reduction <add>, %131, %cst_115 [0] : vector<8x32xf32> to vector<32xf32>
    %133 = vector.shape_cast %132 : vector<32xf32> to vector<1x32xf32>
    %134 = arith.addf %91, %133 : vector<1x32xf32>
    %cst_116 = arith.constant 0.000000e+00 : f32
    %135 = vector.broadcast %cst_116 : f32 to vector<8x32xf32>
    %c0_117 = arith.constant 0 : index
    %c5_118 = arith.constant 5 : index
    %c0_119 = arith.constant 0 : index
    %136 = vector.load %arg2[%c0_117, %c5_118, %c0_119] : memref<1x20x64xbf16, #tpu.memory_space<vmem>>, vector<1x8x64xbf16>
    %137 = vector.shape_cast %136 : vector<1x8x64xbf16> to vector<8x64xbf16>
    %c3_120 = arith.constant 3 : index
    %c0_121 = arith.constant 0 : index
    %c0_122 = arith.constant 0 : index
    %c0_123 = arith.constant 0 : index
    %138 = vector.load %arg3[%c3_120, %c0_121, %c0_122, %c0_123] : memref<4x4x64x32xbf16, #tpu.memory_space<vmem>>, vector<1x1x64x32xbf16>
    %139 = vector.shape_cast %138 : vector<1x1x64x32xbf16> to vector<64x32xbf16>
    %cst_124 = arith.constant dense<0.000000e+00> : vector<8x32xf32>
    %140 = tpu.matmul %137, %139, %cst_124 {dimension_numbers = #tpu.dot_dimension_numbers<[1], [0], [0], [1], [0, 0, 1, 1], [], []>} : vector<8x64xbf16>, vector<64x32xbf16>, vector<8x32xf32> -> vector<8x32xf32>
    %141 = arith.addf %135, %140 : vector<8x32xf32>
    %c0_125 = arith.constant 0 : index
    %c6_126 = arith.constant 6 : index
    %c0_127 = arith.constant 0 : index
    %142 = vector.load %arg2[%c0_125, %c6_126, %c0_127] : memref<1x20x64xbf16, #tpu.memory_space<vmem>>, vector<1x8x64xbf16>
    %143 = vector.shape_cast %142 : vector<1x8x64xbf16> to vector<8x64xbf16>
    %c3_128 = arith.constant 3 : index
    %c1_129 = arith.constant 1 : index
    %c0_130 = arith.constant 0 : index
    %c0_131 = arith.constant 0 : index
    %144 = vector.load %arg3[%c3_128, %c1_129, %c0_130, %c0_131] : memref<4x4x64x32xbf16, #tpu.memory_space<vmem>>, vector<1x1x64x32xbf16>
    %145 = vector.shape_cast %144 : vector<1x1x64x32xbf16> to vector<64x32xbf16>
    %cst_132 = arith.constant dense<0.000000e+00> : vector<8x32xf32>
    %146 = tpu.matmul %143, %145, %cst_132 {dimension_numbers = #tpu.dot_dimension_numbers<[1], [0], [0], [1], [0, 0, 1, 1], [], []>} : vector<8x64xbf16>, vector<64x32xbf16>, vector<8x32xf32> -> vector<8x32xf32>
    %147 = arith.addf %141, %146 : vector<8x32xf32>
    %c0_133 = arith.constant 0 : index
    %c9_134 = arith.constant 9 : index
    %c0_135 = arith.constant 0 : index
    %148 = vector.load %arg2[%c0_133, %c9_134, %c0_135] : memref<1x20x64xbf16, #tpu.memory_space<vmem>>, vector<1x8x64xbf16>
    %149 = vector.shape_cast %148 : vector<1x8x64xbf16> to vector<8x64xbf16>
    %c3_136 = arith.constant 3 : index
    %c2_137 = arith.constant 2 : index
    %c0_138 = arith.constant 0 : index
    %c0_139 = arith.constant 0 : index
    %150 = vector.load %arg3[%c3_136, %c2_137, %c0_138, %c0_139] : memref<4x4x64x32xbf16, #tpu.memory_space<vmem>>, vector<1x1x64x32xbf16>
    %151 = vector.shape_cast %150 : vector<1x1x64x32xbf16> to vector<64x32xbf16>
    %cst_140 = arith.constant dense<0.000000e+00> : vector<8x32xf32>
    %152 = tpu.matmul %149, %151, %cst_140 {dimension_numbers = #tpu.dot_dimension_numbers<[1], [0], [0], [1], [0, 0, 1, 1], [], []>} : vector<8x64xbf16>, vector<64x32xbf16>, vector<8x32xf32> -> vector<8x32xf32>
    %153 = arith.addf %147, %152 : vector<8x32xf32>
    %c0_141 = arith.constant 0 : index
    %c10 = arith.constant 10 : index
    %c0_142 = arith.constant 0 : index
    %154 = vector.load %arg2[%c0_141, %c10, %c0_142] : memref<1x20x64xbf16, #tpu.memory_space<vmem>>, vector<1x8x64xbf16>
    %155 = vector.shape_cast %154 : vector<1x8x64xbf16> to vector<8x64xbf16>
    %c3_143 = arith.constant 3 : index
    %c3_144 = arith.constant 3 : index
    %c0_145 = arith.constant 0 : index
    %c0_146 = arith.constant 0 : index
    %156 = vector.load %arg3[%c3_143, %c3_144, %c0_145, %c0_146] : memref<4x4x64x32xbf16, #tpu.memory_space<vmem>>, vector<1x1x64x32xbf16>
    %157 = vector.shape_cast %156 : vector<1x1x64x32xbf16> to vector<64x32xbf16>
    %cst_147 = arith.constant dense<0.000000e+00> : vector<8x32xf32>
    %158 = tpu.matmul %155, %157, %cst_147 {dimension_numbers = #tpu.dot_dimension_numbers<[1], [0], [0], [1], [0, 0, 1, 1], [], []>} : vector<8x64xbf16>, vector<64x32xbf16>, vector<8x32xf32> -> vector<8x32xf32>
    %159 = arith.addf %153, %158 : vector<8x32xf32>
    %c0_148 = arith.constant 0 : index
    %c0_149 = arith.constant 0 : index
    %160 = vector.load %arg4[%c0_148, %c0_149] : memref<1x32xf32, #tpu.memory_space<vmem>>, vector<1x32xf32>
    %161 = vector.broadcast %160 : vector<1x32xf32> to vector<8x32xf32>
    %162 = arith.addf %159, %161 : vector<8x32xf32>
    %cst_150 = arith.constant 0.000000e+00 : f32
    %163 = vector.broadcast %cst_150 : f32 to vector<8x32xf32>
    %164 = arith.maximumf %162, %163 : vector<8x32xf32>
    %165 = arith.truncf %164 : vector<8x32xf32> to vector<8x32xbf16>
    %c0_151 = arith.constant 0 : index
    %c0_152 = arith.constant 0 : index
    %c96 = arith.constant 96 : index
    %166 = vector.load %arg5[%c0_151, %c0_152, %c96] : memref<1x8x128xbf16, #tpu.memory_space<vmem>>, vector<1x8x32xbf16>
    %167 = vector.shape_cast %166 : vector<1x8x32xbf16> to vector<8x32xbf16>
    %168 = vector.shape_cast %165 : vector<8x32xbf16> to vector<1x8x32xbf16>
    tpu.vector_store %arg5[%c0_151, %c0_152, %c96], %168 {strides = array<i32>} : memref<1x8x128xbf16, #tpu.memory_space<vmem>>, vector<1x8x32xbf16>,
    %169 = vector.broadcast %3 : vector<8x1xf32> to vector<8x32xf32>
    %170 = arith.mulf %164, %169 : vector<8x32xf32>
    %cst_153 = arith.constant dense<0.000000e+00> : vector<32xf32>
    %171 = vector.multi_reduction <add>, %170, %cst_153 [0] : vector<8x32xf32> to vector<32xf32>
    %172 = vector.shape_cast %171 : vector<32xf32> to vector<1x32xf32>
    %173 = arith.addf %130, %172 : vector<1x32xf32>
    %174 = arith.mulf %170, %164 : vector<8x32xf32>
    %cst_154 = arith.constant dense<0.000000e+00> : vector<32xf32>
    %175 = vector.multi_reduction <add>, %174, %cst_154 [0] : vector<8x32xf32> to vector<32xf32>
    %176 = vector.shape_cast %175 : vector<32xf32> to vector<1x32xf32>
    %177 = arith.addf %134, %176 : vector<1x32xf32>
    %c0_155 = arith.constant 0 : index
    %c0_156 = arith.constant 0 : index
    %178 = vector.load %arg6[%c0_155, %c0_156] : memref<1x32xf32, #tpu.memory_space<vmem>>, vector<1x32xf32>
    %179 = arith.addf %178, %173 : vector<1x32xf32>
    %c0_157 = arith.constant 0 : index
    %c0_158 = arith.constant 0 : index
    %180 = vector.load %arg6[%c0_157, %c0_158] : memref<1x32xf32, #tpu.memory_space<vmem>>, vector<1x32xf32>
    tpu.vector_store %arg6[%c0_157, %c0_158], %179 {strides = array<i32>} : memref<1x32xf32, #tpu.memory_space<vmem>>, vector<1x32xf32>,
    %c0_159 = arith.constant 0 : index
    %c0_160 = arith.constant 0 : index
    %181 = vector.load %arg7[%c0_159, %c0_160] : memref<1x32xf32, #tpu.memory_space<vmem>>, vector<1x32xf32>
    %182 = arith.addf %181, %177 : vector<1x32xf32>
    %c0_161 = arith.constant 0 : index
    %c0_162 = arith.constant 0 : index
    %183 = vector.load %arg7[%c0_161, %c0_162] : memref<1x32xf32, #tpu.memory_space<vmem>>, vector<1x32xf32>
    tpu.vector_store %arg7[%c0_161, %c0_162], %182 {strides = array<i32>} : memref<1x32xf32, #tpu.memory_space<vmem>>, vector<1x32xf32>,
    return
  }
  func.func @transform_0(%arg0: i32) -> (i32, i32) {
    %c0_i32 = arith.constant 0 : i32
    %c0_i32_0 = arith.constant 0 : i32
    %c0_i32_1 = arith.constant 0 : i32
    return %c0_i32, %c0_i32_0 : i32, i32
  }
  func.func @transform_1(%arg0: i32) -> (i32, i32, i32) {
    %c0_i32 = arith.constant 0 : i32
    %c0_i32_0 = arith.constant 0 : i32
    %c0_i32_1 = arith.constant 0 : i32
    return %arg0, %c0_i32, %c0_i32_0 : i32, i32, i32
  }
  func.func @transform_2(%arg0: i32) -> (i32, i32, i32, i32) {
    %c0_i32 = arith.constant 0 : i32
    %c0_i32_0 = arith.constant 0 : i32
    %c0_i32_1 = arith.constant 0 : i32
    %c0_i32_2 = arith.constant 0 : i32
    %c0_i32_3 = arith.constant 0 : i32
    return %c0_i32, %c0_i32_0, %c0_i32_1, %c0_i32_2 : i32, i32, i32, i32
  }
  func.func @transform_3(%arg0: i32) -> (i32, i32) {
    %c0_i32 = arith.constant 0 : i32
    %c0_i32_0 = arith.constant 0 : i32
    %c0_i32_1 = arith.constant 0 : i32
    return %c0_i32, %c0_i32_0 : i32, i32
  }
  func.func @transform_4(%arg0: i32) -> (i32, i32, i32) {
    %c0_i32 = arith.constant 0 : i32
    %c0_i32_0 = arith.constant 0 : i32
    %c0_i32_1 = arith.constant 0 : i32
    return %arg0, %c0_i32, %c0_i32_0 : i32, i32, i32
  }
  func.func @transform_5(%arg0: i32) -> (i32, i32) {
    %c0_i32 = arith.constant 0 : i32
    %c0_i32_0 = arith.constant 0 : i32
    %c0_i32_1 = arith.constant 0 : i32
    return %c0_i32, %c0_i32_0 : i32, i32
  }
  func.func @transform_6(%arg0: i32) -> (i32, i32) {
    %c0_i32 = arith.constant 0 : i32
    %c0_i32_0 = arith.constant 0 : i32
    %c0_i32_1 = arith.constant 0 : i32
    return %c0_i32, %c0_i32_0 : i32, i32
  }
}

module attributes {stable_mosaic.version = 11 : i64} {
  func.func @_convt_relu_bn_kernel(%arg0: i32, %arg1: memref<24x1xf32, #tpu.memory_space<vmem>>, %arg2: memref<1x42x32xbf16, #tpu.memory_space<vmem>>, %arg3: memref<4x4x32x16xbf16, #tpu.memory_space<vmem>>, %arg4: memref<1x16xf32, #tpu.memory_space<vmem>>, %arg5: memref<1x24x64xbf16, #tpu.memory_space<vmem>>, %arg6: memref<1x16xf32, #tpu.memory_space<vmem>>, %arg7: memref<1x16xf32, #tpu.memory_space<vmem>>) attributes {dimension_semantics = [#tpu.dimension_semantics<arbitrary>], iteration_bounds = array<i64: 2>, scalar_prefetch = 0 : i64, scratch_operands = 0 : i64, tpu.core_type = #tpu.core_type<tc>, window_params = [{pipeline_mode = #tpu.pipeline_mode<synchronous>, transform_indices = @transform_0, window_bounds = array<i64: 24, 1>}, {transform_indices = @transform_1, window_bounds = array<i64: 1, 42, 32>}, {pipeline_mode = #tpu.pipeline_mode<synchronous>, transform_indices = @transform_2, window_bounds = array<i64: 4, 4, 32, 16>}, {pipeline_mode = #tpu.pipeline_mode<synchronous>, transform_indices = @transform_3, window_bounds = array<i64: 1, 16>}, {transform_indices = @transform_4, window_bounds = array<i64: 1, 24, 64>}, {pipeline_mode = #tpu.pipeline_mode<synchronous>, transform_indices = @transform_5, window_bounds = array<i64: 1, 16>}, {pipeline_mode = #tpu.pipeline_mode<synchronous>, transform_indices = @transform_6, window_bounds = array<i64: 1, 16>}]} {
    %c0_i32 = arith.constant 0 : i32
    %0 = arith.cmpi eq, %arg0, %c0_i32 : i32
    %1 = arith.extui %0 : i1 to i32
    %c0_i32_0 = arith.constant 0 : i32
    %2 = arith.cmpi ne, %1, %c0_i32_0 : i32
    scf.if %2 {
      %cst_163 = arith.constant 0.000000e+00 : f32
      %184 = vector.broadcast %cst_163 : f32 to vector<1x16xf32>
      %c0_164 = arith.constant 0 : index
      %c0_165 = arith.constant 0 : index
      %185 = vector.load %arg6[%c0_164, %c0_165] : memref<1x16xf32, #tpu.memory_space<vmem>>, vector<1x16xf32>
      tpu.vector_store %arg6[%c0_164, %c0_165], %184 {strides = array<i32>} : memref<1x16xf32, #tpu.memory_space<vmem>>, vector<1x16xf32>,
      %cst_166 = arith.constant 0.000000e+00 : f32
      %186 = vector.broadcast %cst_166 : f32 to vector<1x16xf32>
      %c0_167 = arith.constant 0 : index
      %c0_168 = arith.constant 0 : index
      %187 = vector.load %arg7[%c0_167, %c0_168] : memref<1x16xf32, #tpu.memory_space<vmem>>, vector<1x16xf32>
      tpu.vector_store %arg7[%c0_167, %c0_168], %186 {strides = array<i32>} : memref<1x16xf32, #tpu.memory_space<vmem>>, vector<1x16xf32>,
    } else {
    }
    %c0 = arith.constant 0 : index
    %c0_1 = arith.constant 0 : index
    %3 = vector.load %arg1[%c0, %c0_1] : memref<24x1xf32, #tpu.memory_space<vmem>>, vector<24x1xf32>
    %cst = arith.constant 0.000000e+00 : f32
    %4 = vector.broadcast %cst : f32 to vector<1x16xf32>
    %cst_2 = arith.constant 0.000000e+00 : f32
    %5 = vector.broadcast %cst_2 : f32 to vector<1x16xf32>
    %cst_3 = arith.constant 0.000000e+00 : f32
    %6 = vector.broadcast %cst_3 : f32 to vector<24x16xf32>
    %c0_4 = arith.constant 0 : index
    %c0_5 = arith.constant 0 : index
    %c0_6 = arith.constant 0 : index
    %7 = vector.load %arg2[%c0_4, %c0_5, %c0_6] : memref<1x42x32xbf16, #tpu.memory_space<vmem>>, vector<1x24x32xbf16>
    %8 = vector.shape_cast %7 : vector<1x24x32xbf16> to vector<24x32xbf16>
    %c0_7 = arith.constant 0 : index
    %c0_8 = arith.constant 0 : index
    %c0_9 = arith.constant 0 : index
    %c0_10 = arith.constant 0 : index
    %9 = vector.load %arg3[%c0_7, %c0_8, %c0_9, %c0_10] : memref<4x4x32x16xbf16, #tpu.memory_space<vmem>>, vector<1x1x32x16xbf16>
    %10 = vector.shape_cast %9 : vector<1x1x32x16xbf16> to vector<32x16xbf16>
    %cst_11 = arith.constant dense<0.000000e+00> : vector<24x16xf32>
    %11 = tpu.matmul %8, %10, %cst_11 {dimension_numbers = #tpu.dot_dimension_numbers<[1], [0], [0], [1], [0, 0, 1, 1], [], []>} : vector<24x32xbf16>, vector<32x16xbf16>, vector<24x16xf32> -> vector<24x16xf32>
    %12 = arith.addf %6, %11 : vector<24x16xf32>
    %c0_12 = arith.constant 0 : index
    %c1 = arith.constant 1 : index
    %c0_13 = arith.constant 0 : index
    %13 = vector.load %arg2[%c0_12, %c1, %c0_13] : memref<1x42x32xbf16, #tpu.memory_space<vmem>>, vector<1x24x32xbf16>
    %14 = vector.shape_cast %13 : vector<1x24x32xbf16> to vector<24x32xbf16>
    %c0_14 = arith.constant 0 : index
    %c1_15 = arith.constant 1 : index
    %c0_16 = arith.constant 0 : index
    %c0_17 = arith.constant 0 : index
    %15 = vector.load %arg3[%c0_14, %c1_15, %c0_16, %c0_17] : memref<4x4x32x16xbf16, #tpu.memory_space<vmem>>, vector<1x1x32x16xbf16>
    %16 = vector.shape_cast %15 : vector<1x1x32x16xbf16> to vector<32x16xbf16>
    %cst_18 = arith.constant dense<0.000000e+00> : vector<24x16xf32>
    %17 = tpu.matmul %14, %16, %cst_18 {dimension_numbers = #tpu.dot_dimension_numbers<[1], [0], [0], [1], [0, 0, 1, 1], [], []>} : vector<24x32xbf16>, vector<32x16xbf16>, vector<24x16xf32> -> vector<24x16xf32>
    %18 = arith.addf %12, %17 : vector<24x16xf32>
    %c0_19 = arith.constant 0 : index
    %c6 = arith.constant 6 : index
    %c0_20 = arith.constant 0 : index
    %19 = vector.load %arg2[%c0_19, %c6, %c0_20] : memref<1x42x32xbf16, #tpu.memory_space<vmem>>, vector<1x24x32xbf16>
    %20 = vector.shape_cast %19 : vector<1x24x32xbf16> to vector<24x32xbf16>
    %c0_21 = arith.constant 0 : index
    %c2 = arith.constant 2 : index
    %c0_22 = arith.constant 0 : index
    %c0_23 = arith.constant 0 : index
    %21 = vector.load %arg3[%c0_21, %c2, %c0_22, %c0_23] : memref<4x4x32x16xbf16, #tpu.memory_space<vmem>>, vector<1x1x32x16xbf16>
    %22 = vector.shape_cast %21 : vector<1x1x32x16xbf16> to vector<32x16xbf16>
    %cst_24 = arith.constant dense<0.000000e+00> : vector<24x16xf32>
    %23 = tpu.matmul %20, %22, %cst_24 {dimension_numbers = #tpu.dot_dimension_numbers<[1], [0], [0], [1], [0, 0, 1, 1], [], []>} : vector<24x32xbf16>, vector<32x16xbf16>, vector<24x16xf32> -> vector<24x16xf32>
    %24 = arith.addf %18, %23 : vector<24x16xf32>
    %c0_25 = arith.constant 0 : index
    %c7 = arith.constant 7 : index
    %c0_26 = arith.constant 0 : index
    %25 = vector.load %arg2[%c0_25, %c7, %c0_26] : memref<1x42x32xbf16, #tpu.memory_space<vmem>>, vector<1x24x32xbf16>
    %26 = vector.shape_cast %25 : vector<1x24x32xbf16> to vector<24x32xbf16>
    %c0_27 = arith.constant 0 : index
    %c3 = arith.constant 3 : index
    %c0_28 = arith.constant 0 : index
    %c0_29 = arith.constant 0 : index
    %27 = vector.load %arg3[%c0_27, %c3, %c0_28, %c0_29] : memref<4x4x32x16xbf16, #tpu.memory_space<vmem>>, vector<1x1x32x16xbf16>
    %28 = vector.shape_cast %27 : vector<1x1x32x16xbf16> to vector<32x16xbf16>
    %cst_30 = arith.constant dense<0.000000e+00> : vector<24x16xf32>
    %29 = tpu.matmul %26, %28, %cst_30 {dimension_numbers = #tpu.dot_dimension_numbers<[1], [0], [0], [1], [0, 0, 1, 1], [], []>} : vector<24x32xbf16>, vector<32x16xbf16>, vector<24x16xf32> -> vector<24x16xf32>
    %30 = arith.addf %24, %29 : vector<24x16xf32>
    %c0_31 = arith.constant 0 : index
    %c0_32 = arith.constant 0 : index
    %31 = vector.load %arg4[%c0_31, %c0_32] : memref<1x16xf32, #tpu.memory_space<vmem>>, vector<1x16xf32>
    %32 = vector.broadcast %31 : vector<1x16xf32> to vector<24x16xf32>
    %33 = arith.addf %30, %32 : vector<24x16xf32>
    %cst_33 = arith.constant 0.000000e+00 : f32
    %34 = vector.broadcast %cst_33 : f32 to vector<24x16xf32>
    %35 = arith.maximumf %33, %34 : vector<24x16xf32>
    %36 = arith.truncf %35 : vector<24x16xf32> to vector<24x16xbf16>
    %c0_34 = arith.constant 0 : index
    %c0_35 = arith.constant 0 : index
    %c0_36 = arith.constant 0 : index
    %37 = vector.load %arg5[%c0_34, %c0_35, %c0_36] : memref<1x24x64xbf16, #tpu.memory_space<vmem>>, vector<1x24x16xbf16>
    %38 = vector.shape_cast %37 : vector<1x24x16xbf16> to vector<24x16xbf16>
    %39 = vector.shape_cast %36 : vector<24x16xbf16> to vector<1x24x16xbf16>
    tpu.vector_store %arg5[%c0_34, %c0_35, %c0_36], %39 {strides = array<i32>} : memref<1x24x64xbf16, #tpu.memory_space<vmem>>, vector<1x24x16xbf16>,
    %40 = vector.broadcast %3 : vector<24x1xf32> to vector<24x16xf32>
    %41 = arith.mulf %35, %40 : vector<24x16xf32>
    %cst_37 = arith.constant dense<0.000000e+00> : vector<16xf32>
    %42 = vector.multi_reduction <add>, %41, %cst_37 [0] : vector<24x16xf32> to vector<16xf32>
    %43 = vector.shape_cast %42 : vector<16xf32> to vector<1x16xf32>
    %44 = arith.addf %4, %43 : vector<1x16xf32>
    %45 = arith.mulf %41, %35 : vector<24x16xf32>
    %cst_38 = arith.constant dense<0.000000e+00> : vector<16xf32>
    %46 = vector.multi_reduction <add>, %45, %cst_38 [0] : vector<24x16xf32> to vector<16xf32>
    %47 = vector.shape_cast %46 : vector<16xf32> to vector<1x16xf32>
    %48 = arith.addf %5, %47 : vector<1x16xf32>
    %cst_39 = arith.constant 0.000000e+00 : f32
    %49 = vector.broadcast %cst_39 : f32 to vector<24x16xf32>
    %c0_40 = arith.constant 0 : index
    %c1_41 = arith.constant 1 : index
    %c0_42 = arith.constant 0 : index
    %50 = vector.load %arg2[%c0_40, %c1_41, %c0_42] : memref<1x42x32xbf16, #tpu.memory_space<vmem>>, vector<1x24x32xbf16>
    %51 = vector.shape_cast %50 : vector<1x24x32xbf16> to vector<24x32xbf16>
    %c1_43 = arith.constant 1 : index
    %c0_44 = arith.constant 0 : index
    %c0_45 = arith.constant 0 : index
    %c0_46 = arith.constant 0 : index
    %52 = vector.load %arg3[%c1_43, %c0_44, %c0_45, %c0_46] : memref<4x4x32x16xbf16, #tpu.memory_space<vmem>>, vector<1x1x32x16xbf16>
    %53 = vector.shape_cast %52 : vector<1x1x32x16xbf16> to vector<32x16xbf16>
    %cst_47 = arith.constant dense<0.000000e+00> : vector<24x16xf32>
    %54 = tpu.matmul %51, %53, %cst_47 {dimension_numbers = #tpu.dot_dimension_numbers<[1], [0], [0], [1], [0, 0, 1, 1], [], []>} : vector<24x32xbf16>, vector<32x16xbf16>, vector<24x16xf32> -> vector<24x16xf32>
    %55 = arith.addf %49, %54 : vector<24x16xf32>
    %c0_48 = arith.constant 0 : index
    %c2_49 = arith.constant 2 : index
    %c0_50 = arith.constant 0 : index
    %56 = vector.load %arg2[%c0_48, %c2_49, %c0_50] : memref<1x42x32xbf16, #tpu.memory_space<vmem>>, vector<1x24x32xbf16>
    %57 = vector.shape_cast %56 : vector<1x24x32xbf16> to vector<24x32xbf16>
    %c1_51 = arith.constant 1 : index
    %c1_52 = arith.constant 1 : index
    %c0_53 = arith.constant 0 : index
    %c0_54 = arith.constant 0 : index
    %58 = vector.load %arg3[%c1_51, %c1_52, %c0_53, %c0_54] : memref<4x4x32x16xbf16, #tpu.memory_space<vmem>>, vector<1x1x32x16xbf16>
    %59 = vector.shape_cast %58 : vector<1x1x32x16xbf16> to vector<32x16xbf16>
    %cst_55 = arith.constant dense<0.000000e+00> : vector<24x16xf32>
    %60 = tpu.matmul %57, %59, %cst_55 {dimension_numbers = #tpu.dot_dimension_numbers<[1], [0], [0], [1], [0, 0, 1, 1], [], []>} : vector<24x32xbf16>, vector<32x16xbf16>, vector<24x16xf32> -> vector<24x16xf32>
    %61 = arith.addf %55, %60 : vector<24x16xf32>
    %c0_56 = arith.constant 0 : index
    %c7_57 = arith.constant 7 : index
    %c0_58 = arith.constant 0 : index
    %62 = vector.load %arg2[%c0_56, %c7_57, %c0_58] : memref<1x42x32xbf16, #tpu.memory_space<vmem>>, vector<1x24x32xbf16>
    %63 = vector.shape_cast %62 : vector<1x24x32xbf16> to vector<24x32xbf16>
    %c1_59 = arith.constant 1 : index
    %c2_60 = arith.constant 2 : index
    %c0_61 = arith.constant 0 : index
    %c0_62 = arith.constant 0 : index
    %64 = vector.load %arg3[%c1_59, %c2_60, %c0_61, %c0_62] : memref<4x4x32x16xbf16, #tpu.memory_space<vmem>>, vector<1x1x32x16xbf16>
    %65 = vector.shape_cast %64 : vector<1x1x32x16xbf16> to vector<32x16xbf16>
    %cst_63 = arith.constant dense<0.000000e+00> : vector<24x16xf32>
    %66 = tpu.matmul %63, %65, %cst_63 {dimension_numbers = #tpu.dot_dimension_numbers<[1], [0], [0], [1], [0, 0, 1, 1], [], []>} : vector<24x32xbf16>, vector<32x16xbf16>, vector<24x16xf32> -> vector<24x16xf32>
    %67 = arith.addf %61, %66 : vector<24x16xf32>
    %c0_64 = arith.constant 0 : index
    %c8 = arith.constant 8 : index
    %c0_65 = arith.constant 0 : index
    %68 = vector.load %arg2[%c0_64, %c8, %c0_65] : memref<1x42x32xbf16, #tpu.memory_space<vmem>>, vector<1x24x32xbf16>
    %69 = vector.shape_cast %68 : vector<1x24x32xbf16> to vector<24x32xbf16>
    %c1_66 = arith.constant 1 : index
    %c3_67 = arith.constant 3 : index
    %c0_68 = arith.constant 0 : index
    %c0_69 = arith.constant 0 : index
    %70 = vector.load %arg3[%c1_66, %c3_67, %c0_68, %c0_69] : memref<4x4x32x16xbf16, #tpu.memory_space<vmem>>, vector<1x1x32x16xbf16>
    %71 = vector.shape_cast %70 : vector<1x1x32x16xbf16> to vector<32x16xbf16>
    %cst_70 = arith.constant dense<0.000000e+00> : vector<24x16xf32>
    %72 = tpu.matmul %69, %71, %cst_70 {dimension_numbers = #tpu.dot_dimension_numbers<[1], [0], [0], [1], [0, 0, 1, 1], [], []>} : vector<24x32xbf16>, vector<32x16xbf16>, vector<24x16xf32> -> vector<24x16xf32>
    %73 = arith.addf %67, %72 : vector<24x16xf32>
    %c0_71 = arith.constant 0 : index
    %c0_72 = arith.constant 0 : index
    %74 = vector.load %arg4[%c0_71, %c0_72] : memref<1x16xf32, #tpu.memory_space<vmem>>, vector<1x16xf32>
    %75 = vector.broadcast %74 : vector<1x16xf32> to vector<24x16xf32>
    %76 = arith.addf %73, %75 : vector<24x16xf32>
    %cst_73 = arith.constant 0.000000e+00 : f32
    %77 = vector.broadcast %cst_73 : f32 to vector<24x16xf32>
    %78 = arith.maximumf %76, %77 : vector<24x16xf32>
    %79 = arith.truncf %78 : vector<24x16xf32> to vector<24x16xbf16>
    %c0_74 = arith.constant 0 : index
    %c0_75 = arith.constant 0 : index
    %c16 = arith.constant 16 : index
    %80 = vector.load %arg5[%c0_74, %c0_75, %c16] : memref<1x24x64xbf16, #tpu.memory_space<vmem>>, vector<1x24x16xbf16>
    %81 = vector.shape_cast %80 : vector<1x24x16xbf16> to vector<24x16xbf16>
    %82 = vector.shape_cast %79 : vector<24x16xbf16> to vector<1x24x16xbf16>
    tpu.vector_store %arg5[%c0_74, %c0_75, %c16], %82 {strides = array<i32>} : memref<1x24x64xbf16, #tpu.memory_space<vmem>>, vector<1x24x16xbf16>,
    %83 = vector.broadcast %3 : vector<24x1xf32> to vector<24x16xf32>
    %84 = arith.mulf %78, %83 : vector<24x16xf32>
    %cst_76 = arith.constant dense<0.000000e+00> : vector<16xf32>
    %85 = vector.multi_reduction <add>, %84, %cst_76 [0] : vector<24x16xf32> to vector<16xf32>
    %86 = vector.shape_cast %85 : vector<16xf32> to vector<1x16xf32>
    %87 = arith.addf %44, %86 : vector<1x16xf32>
    %88 = arith.mulf %84, %78 : vector<24x16xf32>
    %cst_77 = arith.constant dense<0.000000e+00> : vector<16xf32>
    %89 = vector.multi_reduction <add>, %88, %cst_77 [0] : vector<24x16xf32> to vector<16xf32>
    %90 = vector.shape_cast %89 : vector<16xf32> to vector<1x16xf32>
    %91 = arith.addf %48, %90 : vector<1x16xf32>
    %cst_78 = arith.constant 0.000000e+00 : f32
    %92 = vector.broadcast %cst_78 : f32 to vector<24x16xf32>
    %c0_79 = arith.constant 0 : index
    %c6_80 = arith.constant 6 : index
    %c0_81 = arith.constant 0 : index
    %93 = vector.load %arg2[%c0_79, %c6_80, %c0_81] : memref<1x42x32xbf16, #tpu.memory_space<vmem>>, vector<1x24x32xbf16>
    %94 = vector.shape_cast %93 : vector<1x24x32xbf16> to vector<24x32xbf16>
    %c2_82 = arith.constant 2 : index
    %c0_83 = arith.constant 0 : index
    %c0_84 = arith.constant 0 : index
    %c0_85 = arith.constant 0 : index
    %95 = vector.load %arg3[%c2_82, %c0_83, %c0_84, %c0_85] : memref<4x4x32x16xbf16, #tpu.memory_space<vmem>>, vector<1x1x32x16xbf16>
    %96 = vector.shape_cast %95 : vector<1x1x32x16xbf16> to vector<32x16xbf16>
    %cst_86 = arith.constant dense<0.000000e+00> : vector<24x16xf32>
    %97 = tpu.matmul %94, %96, %cst_86 {dimension_numbers = #tpu.dot_dimension_numbers<[1], [0], [0], [1], [0, 0, 1, 1], [], []>} : vector<24x32xbf16>, vector<32x16xbf16>, vector<24x16xf32> -> vector<24x16xf32>
    %98 = arith.addf %92, %97 : vector<24x16xf32>
    %c0_87 = arith.constant 0 : index
    %c7_88 = arith.constant 7 : index
    %c0_89 = arith.constant 0 : index
    %99 = vector.load %arg2[%c0_87, %c7_88, %c0_89] : memref<1x42x32xbf16, #tpu.memory_space<vmem>>, vector<1x24x32xbf16>
    %100 = vector.shape_cast %99 : vector<1x24x32xbf16> to vector<24x32xbf16>
    %c2_90 = arith.constant 2 : index
    %c1_91 = arith.constant 1 : index
    %c0_92 = arith.constant 0 : index
    %c0_93 = arith.constant 0 : index
    %101 = vector.load %arg3[%c2_90, %c1_91, %c0_92, %c0_93] : memref<4x4x32x16xbf16, #tpu.memory_space<vmem>>, vector<1x1x32x16xbf16>
    %102 = vector.shape_cast %101 : vector<1x1x32x16xbf16> to vector<32x16xbf16>
    %cst_94 = arith.constant dense<0.000000e+00> : vector<24x16xf32>
    %103 = tpu.matmul %100, %102, %cst_94 {dimension_numbers = #tpu.dot_dimension_numbers<[1], [0], [0], [1], [0, 0, 1, 1], [], []>} : vector<24x32xbf16>, vector<32x16xbf16>, vector<24x16xf32> -> vector<24x16xf32>
    %104 = arith.addf %98, %103 : vector<24x16xf32>
    %c0_95 = arith.constant 0 : index
    %c12 = arith.constant 12 : index
    %c0_96 = arith.constant 0 : index
    %105 = vector.load %arg2[%c0_95, %c12, %c0_96] : memref<1x42x32xbf16, #tpu.memory_space<vmem>>, vector<1x24x32xbf16>
    %106 = vector.shape_cast %105 : vector<1x24x32xbf16> to vector<24x32xbf16>
    %c2_97 = arith.constant 2 : index
    %c2_98 = arith.constant 2 : index
    %c0_99 = arith.constant 0 : index
    %c0_100 = arith.constant 0 : index
    %107 = vector.load %arg3[%c2_97, %c2_98, %c0_99, %c0_100] : memref<4x4x32x16xbf16, #tpu.memory_space<vmem>>, vector<1x1x32x16xbf16>
    %108 = vector.shape_cast %107 : vector<1x1x32x16xbf16> to vector<32x16xbf16>
    %cst_101 = arith.constant dense<0.000000e+00> : vector<24x16xf32>
    %109 = tpu.matmul %106, %108, %cst_101 {dimension_numbers = #tpu.dot_dimension_numbers<[1], [0], [0], [1], [0, 0, 1, 1], [], []>} : vector<24x32xbf16>, vector<32x16xbf16>, vector<24x16xf32> -> vector<24x16xf32>
    %110 = arith.addf %104, %109 : vector<24x16xf32>
    %c0_102 = arith.constant 0 : index
    %c13 = arith.constant 13 : index
    %c0_103 = arith.constant 0 : index
    %111 = vector.load %arg2[%c0_102, %c13, %c0_103] : memref<1x42x32xbf16, #tpu.memory_space<vmem>>, vector<1x24x32xbf16>
    %112 = vector.shape_cast %111 : vector<1x24x32xbf16> to vector<24x32xbf16>
    %c2_104 = arith.constant 2 : index
    %c3_105 = arith.constant 3 : index
    %c0_106 = arith.constant 0 : index
    %c0_107 = arith.constant 0 : index
    %113 = vector.load %arg3[%c2_104, %c3_105, %c0_106, %c0_107] : memref<4x4x32x16xbf16, #tpu.memory_space<vmem>>, vector<1x1x32x16xbf16>
    %114 = vector.shape_cast %113 : vector<1x1x32x16xbf16> to vector<32x16xbf16>
    %cst_108 = arith.constant dense<0.000000e+00> : vector<24x16xf32>
    %115 = tpu.matmul %112, %114, %cst_108 {dimension_numbers = #tpu.dot_dimension_numbers<[1], [0], [0], [1], [0, 0, 1, 1], [], []>} : vector<24x32xbf16>, vector<32x16xbf16>, vector<24x16xf32> -> vector<24x16xf32>
    %116 = arith.addf %110, %115 : vector<24x16xf32>
    %c0_109 = arith.constant 0 : index
    %c0_110 = arith.constant 0 : index
    %117 = vector.load %arg4[%c0_109, %c0_110] : memref<1x16xf32, #tpu.memory_space<vmem>>, vector<1x16xf32>
    %118 = vector.broadcast %117 : vector<1x16xf32> to vector<24x16xf32>
    %119 = arith.addf %116, %118 : vector<24x16xf32>
    %cst_111 = arith.constant 0.000000e+00 : f32
    %120 = vector.broadcast %cst_111 : f32 to vector<24x16xf32>
    %121 = arith.maximumf %119, %120 : vector<24x16xf32>
    %122 = arith.truncf %121 : vector<24x16xf32> to vector<24x16xbf16>
    %c0_112 = arith.constant 0 : index
    %c0_113 = arith.constant 0 : index
    %c32 = arith.constant 32 : index
    %123 = vector.load %arg5[%c0_112, %c0_113, %c32] : memref<1x24x64xbf16, #tpu.memory_space<vmem>>, vector<1x24x16xbf16>
    %124 = vector.shape_cast %123 : vector<1x24x16xbf16> to vector<24x16xbf16>
    %125 = vector.shape_cast %122 : vector<24x16xbf16> to vector<1x24x16xbf16>
    tpu.vector_store %arg5[%c0_112, %c0_113, %c32], %125 {strides = array<i32>} : memref<1x24x64xbf16, #tpu.memory_space<vmem>>, vector<1x24x16xbf16>,
    %126 = vector.broadcast %3 : vector<24x1xf32> to vector<24x16xf32>
    %127 = arith.mulf %121, %126 : vector<24x16xf32>
    %cst_114 = arith.constant dense<0.000000e+00> : vector<16xf32>
    %128 = vector.multi_reduction <add>, %127, %cst_114 [0] : vector<24x16xf32> to vector<16xf32>
    %129 = vector.shape_cast %128 : vector<16xf32> to vector<1x16xf32>
    %130 = arith.addf %87, %129 : vector<1x16xf32>
    %131 = arith.mulf %127, %121 : vector<24x16xf32>
    %cst_115 = arith.constant dense<0.000000e+00> : vector<16xf32>
    %132 = vector.multi_reduction <add>, %131, %cst_115 [0] : vector<24x16xf32> to vector<16xf32>
    %133 = vector.shape_cast %132 : vector<16xf32> to vector<1x16xf32>
    %134 = arith.addf %91, %133 : vector<1x16xf32>
    %cst_116 = arith.constant 0.000000e+00 : f32
    %135 = vector.broadcast %cst_116 : f32 to vector<24x16xf32>
    %c0_117 = arith.constant 0 : index
    %c7_118 = arith.constant 7 : index
    %c0_119 = arith.constant 0 : index
    %136 = vector.load %arg2[%c0_117, %c7_118, %c0_119] : memref<1x42x32xbf16, #tpu.memory_space<vmem>>, vector<1x24x32xbf16>
    %137 = vector.shape_cast %136 : vector<1x24x32xbf16> to vector<24x32xbf16>
    %c3_120 = arith.constant 3 : index
    %c0_121 = arith.constant 0 : index
    %c0_122 = arith.constant 0 : index
    %c0_123 = arith.constant 0 : index
    %138 = vector.load %arg3[%c3_120, %c0_121, %c0_122, %c0_123] : memref<4x4x32x16xbf16, #tpu.memory_space<vmem>>, vector<1x1x32x16xbf16>
    %139 = vector.shape_cast %138 : vector<1x1x32x16xbf16> to vector<32x16xbf16>
    %cst_124 = arith.constant dense<0.000000e+00> : vector<24x16xf32>
    %140 = tpu.matmul %137, %139, %cst_124 {dimension_numbers = #tpu.dot_dimension_numbers<[1], [0], [0], [1], [0, 0, 1, 1], [], []>} : vector<24x32xbf16>, vector<32x16xbf16>, vector<24x16xf32> -> vector<24x16xf32>
    %141 = arith.addf %135, %140 : vector<24x16xf32>
    %c0_125 = arith.constant 0 : index
    %c8_126 = arith.constant 8 : index
    %c0_127 = arith.constant 0 : index
    %142 = vector.load %arg2[%c0_125, %c8_126, %c0_127] : memref<1x42x32xbf16, #tpu.memory_space<vmem>>, vector<1x24x32xbf16>
    %143 = vector.shape_cast %142 : vector<1x24x32xbf16> to vector<24x32xbf16>
    %c3_128 = arith.constant 3 : index
    %c1_129 = arith.constant 1 : index
    %c0_130 = arith.constant 0 : index
    %c0_131 = arith.constant 0 : index
    %144 = vector.load %arg3[%c3_128, %c1_129, %c0_130, %c0_131] : memref<4x4x32x16xbf16, #tpu.memory_space<vmem>>, vector<1x1x32x16xbf16>
    %145 = vector.shape_cast %144 : vector<1x1x32x16xbf16> to vector<32x16xbf16>
    %cst_132 = arith.constant dense<0.000000e+00> : vector<24x16xf32>
    %146 = tpu.matmul %143, %145, %cst_132 {dimension_numbers = #tpu.dot_dimension_numbers<[1], [0], [0], [1], [0, 0, 1, 1], [], []>} : vector<24x32xbf16>, vector<32x16xbf16>, vector<24x16xf32> -> vector<24x16xf32>
    %147 = arith.addf %141, %146 : vector<24x16xf32>
    %c0_133 = arith.constant 0 : index
    %c13_134 = arith.constant 13 : index
    %c0_135 = arith.constant 0 : index
    %148 = vector.load %arg2[%c0_133, %c13_134, %c0_135] : memref<1x42x32xbf16, #tpu.memory_space<vmem>>, vector<1x24x32xbf16>
    %149 = vector.shape_cast %148 : vector<1x24x32xbf16> to vector<24x32xbf16>
    %c3_136 = arith.constant 3 : index
    %c2_137 = arith.constant 2 : index
    %c0_138 = arith.constant 0 : index
    %c0_139 = arith.constant 0 : index
    %150 = vector.load %arg3[%c3_136, %c2_137, %c0_138, %c0_139] : memref<4x4x32x16xbf16, #tpu.memory_space<vmem>>, vector<1x1x32x16xbf16>
    %151 = vector.shape_cast %150 : vector<1x1x32x16xbf16> to vector<32x16xbf16>
    %cst_140 = arith.constant dense<0.000000e+00> : vector<24x16xf32>
    %152 = tpu.matmul %149, %151, %cst_140 {dimension_numbers = #tpu.dot_dimension_numbers<[1], [0], [0], [1], [0, 0, 1, 1], [], []>} : vector<24x32xbf16>, vector<32x16xbf16>, vector<24x16xf32> -> vector<24x16xf32>
    %153 = arith.addf %147, %152 : vector<24x16xf32>
    %c0_141 = arith.constant 0 : index
    %c14 = arith.constant 14 : index
    %c0_142 = arith.constant 0 : index
    %154 = vector.load %arg2[%c0_141, %c14, %c0_142] : memref<1x42x32xbf16, #tpu.memory_space<vmem>>, vector<1x24x32xbf16>
    %155 = vector.shape_cast %154 : vector<1x24x32xbf16> to vector<24x32xbf16>
    %c3_143 = arith.constant 3 : index
    %c3_144 = arith.constant 3 : index
    %c0_145 = arith.constant 0 : index
    %c0_146 = arith.constant 0 : index
    %156 = vector.load %arg3[%c3_143, %c3_144, %c0_145, %c0_146] : memref<4x4x32x16xbf16, #tpu.memory_space<vmem>>, vector<1x1x32x16xbf16>
    %157 = vector.shape_cast %156 : vector<1x1x32x16xbf16> to vector<32x16xbf16>
    %cst_147 = arith.constant dense<0.000000e+00> : vector<24x16xf32>
    %158 = tpu.matmul %155, %157, %cst_147 {dimension_numbers = #tpu.dot_dimension_numbers<[1], [0], [0], [1], [0, 0, 1, 1], [], []>} : vector<24x32xbf16>, vector<32x16xbf16>, vector<24x16xf32> -> vector<24x16xf32>
    %159 = arith.addf %153, %158 : vector<24x16xf32>
    %c0_148 = arith.constant 0 : index
    %c0_149 = arith.constant 0 : index
    %160 = vector.load %arg4[%c0_148, %c0_149] : memref<1x16xf32, #tpu.memory_space<vmem>>, vector<1x16xf32>
    %161 = vector.broadcast %160 : vector<1x16xf32> to vector<24x16xf32>
    %162 = arith.addf %159, %161 : vector<24x16xf32>
    %cst_150 = arith.constant 0.000000e+00 : f32
    %163 = vector.broadcast %cst_150 : f32 to vector<24x16xf32>
    %164 = arith.maximumf %162, %163 : vector<24x16xf32>
    %165 = arith.truncf %164 : vector<24x16xf32> to vector<24x16xbf16>
    %c0_151 = arith.constant 0 : index
    %c0_152 = arith.constant 0 : index
    %c48 = arith.constant 48 : index
    %166 = vector.load %arg5[%c0_151, %c0_152, %c48] : memref<1x24x64xbf16, #tpu.memory_space<vmem>>, vector<1x24x16xbf16>
    %167 = vector.shape_cast %166 : vector<1x24x16xbf16> to vector<24x16xbf16>
    %168 = vector.shape_cast %165 : vector<24x16xbf16> to vector<1x24x16xbf16>
    tpu.vector_store %arg5[%c0_151, %c0_152, %c48], %168 {strides = array<i32>} : memref<1x24x64xbf16, #tpu.memory_space<vmem>>, vector<1x24x16xbf16>,
    %169 = vector.broadcast %3 : vector<24x1xf32> to vector<24x16xf32>
    %170 = arith.mulf %164, %169 : vector<24x16xf32>
    %cst_153 = arith.constant dense<0.000000e+00> : vector<16xf32>
    %171 = vector.multi_reduction <add>, %170, %cst_153 [0] : vector<24x16xf32> to vector<16xf32>
    %172 = vector.shape_cast %171 : vector<16xf32> to vector<1x16xf32>
    %173 = arith.addf %130, %172 : vector<1x16xf32>
    %174 = arith.mulf %170, %164 : vector<24x16xf32>
    %cst_154 = arith.constant dense<0.000000e+00> : vector<16xf32>
    %175 = vector.multi_reduction <add>, %174, %cst_154 [0] : vector<24x16xf32> to vector<16xf32>
    %176 = vector.shape_cast %175 : vector<16xf32> to vector<1x16xf32>
    %177 = arith.addf %134, %176 : vector<1x16xf32>
    %c0_155 = arith.constant 0 : index
    %c0_156 = arith.constant 0 : index
    %178 = vector.load %arg6[%c0_155, %c0_156] : memref<1x16xf32, #tpu.memory_space<vmem>>, vector<1x16xf32>
    %179 = arith.addf %178, %173 : vector<1x16xf32>
    %c0_157 = arith.constant 0 : index
    %c0_158 = arith.constant 0 : index
    %180 = vector.load %arg6[%c0_157, %c0_158] : memref<1x16xf32, #tpu.memory_space<vmem>>, vector<1x16xf32>
    tpu.vector_store %arg6[%c0_157, %c0_158], %179 {strides = array<i32>} : memref<1x16xf32, #tpu.memory_space<vmem>>, vector<1x16xf32>,
    %c0_159 = arith.constant 0 : index
    %c0_160 = arith.constant 0 : index
    %181 = vector.load %arg7[%c0_159, %c0_160] : memref<1x16xf32, #tpu.memory_space<vmem>>, vector<1x16xf32>
    %182 = arith.addf %181, %177 : vector<1x16xf32>
    %c0_161 = arith.constant 0 : index
    %c0_162 = arith.constant 0 : index
    %183 = vector.load %arg7[%c0_161, %c0_162] : memref<1x16xf32, #tpu.memory_space<vmem>>, vector<1x16xf32>
    tpu.vector_store %arg7[%c0_161, %c0_162], %182 {strides = array<i32>} : memref<1x16xf32, #tpu.memory_space<vmem>>, vector<1x16xf32>,
    return
  }
  func.func @transform_0(%arg0: i32) -> (i32, i32) {
    %c0_i32 = arith.constant 0 : i32
    %c0_i32_0 = arith.constant 0 : i32
    %c0_i32_1 = arith.constant 0 : i32
    return %c0_i32, %c0_i32_0 : i32, i32
  }
  func.func @transform_1(%arg0: i32) -> (i32, i32, i32) {
    %c0_i32 = arith.constant 0 : i32
    %c0_i32_0 = arith.constant 0 : i32
    %c0_i32_1 = arith.constant 0 : i32
    return %arg0, %c0_i32, %c0_i32_0 : i32, i32, i32
  }
  func.func @transform_2(%arg0: i32) -> (i32, i32, i32, i32) {
    %c0_i32 = arith.constant 0 : i32
    %c0_i32_0 = arith.constant 0 : i32
    %c0_i32_1 = arith.constant 0 : i32
    %c0_i32_2 = arith.constant 0 : i32
    %c0_i32_3 = arith.constant 0 : i32
    return %c0_i32, %c0_i32_0, %c0_i32_1, %c0_i32_2 : i32, i32, i32, i32
  }
  func.func @transform_3(%arg0: i32) -> (i32, i32) {
    %c0_i32 = arith.constant 0 : i32
    %c0_i32_0 = arith.constant 0 : i32
    %c0_i32_1 = arith.constant 0 : i32
    return %c0_i32, %c0_i32_0 : i32, i32
  }
  func.func @transform_4(%arg0: i32) -> (i32, i32, i32) {
    %c0_i32 = arith.constant 0 : i32
    %c0_i32_0 = arith.constant 0 : i32
    %c0_i32_1 = arith.constant 0 : i32
    return %arg0, %c0_i32, %c0_i32_0 : i32, i32, i32
  }
  func.func @transform_5(%arg0: i32) -> (i32, i32) {
    %c0_i32 = arith.constant 0 : i32
    %c0_i32_0 = arith.constant 0 : i32
    %c0_i32_1 = arith.constant 0 : i32
    return %c0_i32, %c0_i32_0 : i32, i32
  }
  func.func @transform_6(%arg0: i32) -> (i32, i32) {
    %c0_i32 = arith.constant 0 : i32
    %c0_i32_0 = arith.constant 0 : i32
    %c0_i32_1 = arith.constant 0 : i32
    return %c0_i32, %c0_i32_0 : i32, i32
  }
}

module attributes {stable_mosaic.version = 11 : i64} {
  func.func @_convt_relu_bn_kernel(%arg0: i32, %arg1: memref<80x1xf32, #tpu.memory_space<vmem>>, %arg2: memref<1x110x16xbf16, #tpu.memory_space<vmem>>, %arg3: memref<4x4x16x8xbf16, #tpu.memory_space<vmem>>, %arg4: memref<1x8xf32, #tpu.memory_space<vmem>>, %arg5: memref<1x80x32xbf16, #tpu.memory_space<vmem>>, %arg6: memref<1x8xf32, #tpu.memory_space<vmem>>, %arg7: memref<1x8xf32, #tpu.memory_space<vmem>>) attributes {dimension_semantics = [#tpu.dimension_semantics<arbitrary>], iteration_bounds = array<i64: 2>, scalar_prefetch = 0 : i64, scratch_operands = 0 : i64, tpu.core_type = #tpu.core_type<tc>, window_params = [{pipeline_mode = #tpu.pipeline_mode<synchronous>, transform_indices = @transform_0, window_bounds = array<i64: 80, 1>}, {transform_indices = @transform_1, window_bounds = array<i64: 1, 110, 16>}, {pipeline_mode = #tpu.pipeline_mode<synchronous>, transform_indices = @transform_2, window_bounds = array<i64: 4, 4, 16, 8>}, {pipeline_mode = #tpu.pipeline_mode<synchronous>, transform_indices = @transform_3, window_bounds = array<i64: 1, 8>}, {transform_indices = @transform_4, window_bounds = array<i64: 1, 80, 32>}, {pipeline_mode = #tpu.pipeline_mode<synchronous>, transform_indices = @transform_5, window_bounds = array<i64: 1, 8>}, {pipeline_mode = #tpu.pipeline_mode<synchronous>, transform_indices = @transform_6, window_bounds = array<i64: 1, 8>}]} {
    %c0_i32 = arith.constant 0 : i32
    %0 = arith.cmpi eq, %arg0, %c0_i32 : i32
    %1 = arith.extui %0 : i1 to i32
    %c0_i32_0 = arith.constant 0 : i32
    %2 = arith.cmpi ne, %1, %c0_i32_0 : i32
    scf.if %2 {
      %cst_163 = arith.constant 0.000000e+00 : f32
      %184 = vector.broadcast %cst_163 : f32 to vector<1x8xf32>
      %c0_164 = arith.constant 0 : index
      %c0_165 = arith.constant 0 : index
      %185 = vector.load %arg6[%c0_164, %c0_165] : memref<1x8xf32, #tpu.memory_space<vmem>>, vector<1x8xf32>
      tpu.vector_store %arg6[%c0_164, %c0_165], %184 {strides = array<i32>} : memref<1x8xf32, #tpu.memory_space<vmem>>, vector<1x8xf32>,
      %cst_166 = arith.constant 0.000000e+00 : f32
      %186 = vector.broadcast %cst_166 : f32 to vector<1x8xf32>
      %c0_167 = arith.constant 0 : index
      %c0_168 = arith.constant 0 : index
      %187 = vector.load %arg7[%c0_167, %c0_168] : memref<1x8xf32, #tpu.memory_space<vmem>>, vector<1x8xf32>
      tpu.vector_store %arg7[%c0_167, %c0_168], %186 {strides = array<i32>} : memref<1x8xf32, #tpu.memory_space<vmem>>, vector<1x8xf32>,
    } else {
    }
    %c0 = arith.constant 0 : index
    %c0_1 = arith.constant 0 : index
    %3 = vector.load %arg1[%c0, %c0_1] : memref<80x1xf32, #tpu.memory_space<vmem>>, vector<80x1xf32>
    %cst = arith.constant 0.000000e+00 : f32
    %4 = vector.broadcast %cst : f32 to vector<1x8xf32>
    %cst_2 = arith.constant 0.000000e+00 : f32
    %5 = vector.broadcast %cst_2 : f32 to vector<1x8xf32>
    %cst_3 = arith.constant 0.000000e+00 : f32
    %6 = vector.broadcast %cst_3 : f32 to vector<80x8xf32>
    %c0_4 = arith.constant 0 : index
    %c0_5 = arith.constant 0 : index
    %c0_6 = arith.constant 0 : index
    %7 = vector.load %arg2[%c0_4, %c0_5, %c0_6] : memref<1x110x16xbf16, #tpu.memory_space<vmem>>, vector<1x80x16xbf16>
    %8 = vector.shape_cast %7 : vector<1x80x16xbf16> to vector<80x16xbf16>
    %c0_7 = arith.constant 0 : index
    %c0_8 = arith.constant 0 : index
    %c0_9 = arith.constant 0 : index
    %c0_10 = arith.constant 0 : index
    %9 = vector.load %arg3[%c0_7, %c0_8, %c0_9, %c0_10] : memref<4x4x16x8xbf16, #tpu.memory_space<vmem>>, vector<1x1x16x8xbf16>
    %10 = vector.shape_cast %9 : vector<1x1x16x8xbf16> to vector<16x8xbf16>
    %cst_11 = arith.constant dense<0.000000e+00> : vector<80x8xf32>
    %11 = tpu.matmul %8, %10, %cst_11 {dimension_numbers = #tpu.dot_dimension_numbers<[1], [0], [0], [1], [0, 0, 1, 1], [], []>} : vector<80x16xbf16>, vector<16x8xbf16>, vector<80x8xf32> -> vector<80x8xf32>
    %12 = arith.addf %6, %11 : vector<80x8xf32>
    %c0_12 = arith.constant 0 : index
    %c1 = arith.constant 1 : index
    %c0_13 = arith.constant 0 : index
    %13 = vector.load %arg2[%c0_12, %c1, %c0_13] : memref<1x110x16xbf16, #tpu.memory_space<vmem>>, vector<1x80x16xbf16>
    %14 = vector.shape_cast %13 : vector<1x80x16xbf16> to vector<80x16xbf16>
    %c0_14 = arith.constant 0 : index
    %c1_15 = arith.constant 1 : index
    %c0_16 = arith.constant 0 : index
    %c0_17 = arith.constant 0 : index
    %15 = vector.load %arg3[%c0_14, %c1_15, %c0_16, %c0_17] : memref<4x4x16x8xbf16, #tpu.memory_space<vmem>>, vector<1x1x16x8xbf16>
    %16 = vector.shape_cast %15 : vector<1x1x16x8xbf16> to vector<16x8xbf16>
    %cst_18 = arith.constant dense<0.000000e+00> : vector<80x8xf32>
    %17 = tpu.matmul %14, %16, %cst_18 {dimension_numbers = #tpu.dot_dimension_numbers<[1], [0], [0], [1], [0, 0, 1, 1], [], []>} : vector<80x16xbf16>, vector<16x8xbf16>, vector<80x8xf32> -> vector<80x8xf32>
    %18 = arith.addf %12, %17 : vector<80x8xf32>
    %c0_19 = arith.constant 0 : index
    %c10 = arith.constant 10 : index
    %c0_20 = arith.constant 0 : index
    %19 = vector.load %arg2[%c0_19, %c10, %c0_20] : memref<1x110x16xbf16, #tpu.memory_space<vmem>>, vector<1x80x16xbf16>
    %20 = vector.shape_cast %19 : vector<1x80x16xbf16> to vector<80x16xbf16>
    %c0_21 = arith.constant 0 : index
    %c2 = arith.constant 2 : index
    %c0_22 = arith.constant 0 : index
    %c0_23 = arith.constant 0 : index
    %21 = vector.load %arg3[%c0_21, %c2, %c0_22, %c0_23] : memref<4x4x16x8xbf16, #tpu.memory_space<vmem>>, vector<1x1x16x8xbf16>
    %22 = vector.shape_cast %21 : vector<1x1x16x8xbf16> to vector<16x8xbf16>
    %cst_24 = arith.constant dense<0.000000e+00> : vector<80x8xf32>
    %23 = tpu.matmul %20, %22, %cst_24 {dimension_numbers = #tpu.dot_dimension_numbers<[1], [0], [0], [1], [0, 0, 1, 1], [], []>} : vector<80x16xbf16>, vector<16x8xbf16>, vector<80x8xf32> -> vector<80x8xf32>
    %24 = arith.addf %18, %23 : vector<80x8xf32>
    %c0_25 = arith.constant 0 : index
    %c11 = arith.constant 11 : index
    %c0_26 = arith.constant 0 : index
    %25 = vector.load %arg2[%c0_25, %c11, %c0_26] : memref<1x110x16xbf16, #tpu.memory_space<vmem>>, vector<1x80x16xbf16>
    %26 = vector.shape_cast %25 : vector<1x80x16xbf16> to vector<80x16xbf16>
    %c0_27 = arith.constant 0 : index
    %c3 = arith.constant 3 : index
    %c0_28 = arith.constant 0 : index
    %c0_29 = arith.constant 0 : index
    %27 = vector.load %arg3[%c0_27, %c3, %c0_28, %c0_29] : memref<4x4x16x8xbf16, #tpu.memory_space<vmem>>, vector<1x1x16x8xbf16>
    %28 = vector.shape_cast %27 : vector<1x1x16x8xbf16> to vector<16x8xbf16>
    %cst_30 = arith.constant dense<0.000000e+00> : vector<80x8xf32>
    %29 = tpu.matmul %26, %28, %cst_30 {dimension_numbers = #tpu.dot_dimension_numbers<[1], [0], [0], [1], [0, 0, 1, 1], [], []>} : vector<80x16xbf16>, vector<16x8xbf16>, vector<80x8xf32> -> vector<80x8xf32>
    %30 = arith.addf %24, %29 : vector<80x8xf32>
    %c0_31 = arith.constant 0 : index
    %c0_32 = arith.constant 0 : index
    %31 = vector.load %arg4[%c0_31, %c0_32] : memref<1x8xf32, #tpu.memory_space<vmem>>, vector<1x8xf32>
    %32 = vector.broadcast %31 : vector<1x8xf32> to vector<80x8xf32>
    %33 = arith.addf %30, %32 : vector<80x8xf32>
    %cst_33 = arith.constant 0.000000e+00 : f32
    %34 = vector.broadcast %cst_33 : f32 to vector<80x8xf32>
    %35 = arith.maximumf %33, %34 : vector<80x8xf32>
    %36 = arith.truncf %35 : vector<80x8xf32> to vector<80x8xbf16>
    %c0_34 = arith.constant 0 : index
    %c0_35 = arith.constant 0 : index
    %c0_36 = arith.constant 0 : index
    %37 = vector.load %arg5[%c0_34, %c0_35, %c0_36] : memref<1x80x32xbf16, #tpu.memory_space<vmem>>, vector<1x80x8xbf16>
    %38 = vector.shape_cast %37 : vector<1x80x8xbf16> to vector<80x8xbf16>
    %39 = vector.shape_cast %36 : vector<80x8xbf16> to vector<1x80x8xbf16>
    tpu.vector_store %arg5[%c0_34, %c0_35, %c0_36], %39 {strides = array<i32>} : memref<1x80x32xbf16, #tpu.memory_space<vmem>>, vector<1x80x8xbf16>,
    %40 = vector.broadcast %3 : vector<80x1xf32> to vector<80x8xf32>
    %41 = arith.mulf %35, %40 : vector<80x8xf32>
    %cst_37 = arith.constant dense<0.000000e+00> : vector<8xf32>
    %42 = vector.multi_reduction <add>, %41, %cst_37 [0] : vector<80x8xf32> to vector<8xf32>
    %43 = vector.shape_cast %42 : vector<8xf32> to vector<1x8xf32>
    %44 = arith.addf %4, %43 : vector<1x8xf32>
    %45 = arith.mulf %41, %35 : vector<80x8xf32>
    %cst_38 = arith.constant dense<0.000000e+00> : vector<8xf32>
    %46 = vector.multi_reduction <add>, %45, %cst_38 [0] : vector<80x8xf32> to vector<8xf32>
    %47 = vector.shape_cast %46 : vector<8xf32> to vector<1x8xf32>
    %48 = arith.addf %5, %47 : vector<1x8xf32>
    %cst_39 = arith.constant 0.000000e+00 : f32
    %49 = vector.broadcast %cst_39 : f32 to vector<80x8xf32>
    %c0_40 = arith.constant 0 : index
    %c1_41 = arith.constant 1 : index
    %c0_42 = arith.constant 0 : index
    %50 = vector.load %arg2[%c0_40, %c1_41, %c0_42] : memref<1x110x16xbf16, #tpu.memory_space<vmem>>, vector<1x80x16xbf16>
    %51 = vector.shape_cast %50 : vector<1x80x16xbf16> to vector<80x16xbf16>
    %c1_43 = arith.constant 1 : index
    %c0_44 = arith.constant 0 : index
    %c0_45 = arith.constant 0 : index
    %c0_46 = arith.constant 0 : index
    %52 = vector.load %arg3[%c1_43, %c0_44, %c0_45, %c0_46] : memref<4x4x16x8xbf16, #tpu.memory_space<vmem>>, vector<1x1x16x8xbf16>
    %53 = vector.shape_cast %52 : vector<1x1x16x8xbf16> to vector<16x8xbf16>
    %cst_47 = arith.constant dense<0.000000e+00> : vector<80x8xf32>
    %54 = tpu.matmul %51, %53, %cst_47 {dimension_numbers = #tpu.dot_dimension_numbers<[1], [0], [0], [1], [0, 0, 1, 1], [], []>} : vector<80x16xbf16>, vector<16x8xbf16>, vector<80x8xf32> -> vector<80x8xf32>
    %55 = arith.addf %49, %54 : vector<80x8xf32>
    %c0_48 = arith.constant 0 : index
    %c2_49 = arith.constant 2 : index
    %c0_50 = arith.constant 0 : index
    %56 = vector.load %arg2[%c0_48, %c2_49, %c0_50] : memref<1x110x16xbf16, #tpu.memory_space<vmem>>, vector<1x80x16xbf16>
    %57 = vector.shape_cast %56 : vector<1x80x16xbf16> to vector<80x16xbf16>
    %c1_51 = arith.constant 1 : index
    %c1_52 = arith.constant 1 : index
    %c0_53 = arith.constant 0 : index
    %c0_54 = arith.constant 0 : index
    %58 = vector.load %arg3[%c1_51, %c1_52, %c0_53, %c0_54] : memref<4x4x16x8xbf16, #tpu.memory_space<vmem>>, vector<1x1x16x8xbf16>
    %59 = vector.shape_cast %58 : vector<1x1x16x8xbf16> to vector<16x8xbf16>
    %cst_55 = arith.constant dense<0.000000e+00> : vector<80x8xf32>
    %60 = tpu.matmul %57, %59, %cst_55 {dimension_numbers = #tpu.dot_dimension_numbers<[1], [0], [0], [1], [0, 0, 1, 1], [], []>} : vector<80x16xbf16>, vector<16x8xbf16>, vector<80x8xf32> -> vector<80x8xf32>
    %61 = arith.addf %55, %60 : vector<80x8xf32>
    %c0_56 = arith.constant 0 : index
    %c11_57 = arith.constant 11 : index
    %c0_58 = arith.constant 0 : index
    %62 = vector.load %arg2[%c0_56, %c11_57, %c0_58] : memref<1x110x16xbf16, #tpu.memory_space<vmem>>, vector<1x80x16xbf16>
    %63 = vector.shape_cast %62 : vector<1x80x16xbf16> to vector<80x16xbf16>
    %c1_59 = arith.constant 1 : index
    %c2_60 = arith.constant 2 : index
    %c0_61 = arith.constant 0 : index
    %c0_62 = arith.constant 0 : index
    %64 = vector.load %arg3[%c1_59, %c2_60, %c0_61, %c0_62] : memref<4x4x16x8xbf16, #tpu.memory_space<vmem>>, vector<1x1x16x8xbf16>
    %65 = vector.shape_cast %64 : vector<1x1x16x8xbf16> to vector<16x8xbf16>
    %cst_63 = arith.constant dense<0.000000e+00> : vector<80x8xf32>
    %66 = tpu.matmul %63, %65, %cst_63 {dimension_numbers = #tpu.dot_dimension_numbers<[1], [0], [0], [1], [0, 0, 1, 1], [], []>} : vector<80x16xbf16>, vector<16x8xbf16>, vector<80x8xf32> -> vector<80x8xf32>
    %67 = arith.addf %61, %66 : vector<80x8xf32>
    %c0_64 = arith.constant 0 : index
    %c12 = arith.constant 12 : index
    %c0_65 = arith.constant 0 : index
    %68 = vector.load %arg2[%c0_64, %c12, %c0_65] : memref<1x110x16xbf16, #tpu.memory_space<vmem>>, vector<1x80x16xbf16>
    %69 = vector.shape_cast %68 : vector<1x80x16xbf16> to vector<80x16xbf16>
    %c1_66 = arith.constant 1 : index
    %c3_67 = arith.constant 3 : index
    %c0_68 = arith.constant 0 : index
    %c0_69 = arith.constant 0 : index
    %70 = vector.load %arg3[%c1_66, %c3_67, %c0_68, %c0_69] : memref<4x4x16x8xbf16, #tpu.memory_space<vmem>>, vector<1x1x16x8xbf16>
    %71 = vector.shape_cast %70 : vector<1x1x16x8xbf16> to vector<16x8xbf16>
    %cst_70 = arith.constant dense<0.000000e+00> : vector<80x8xf32>
    %72 = tpu.matmul %69, %71, %cst_70 {dimension_numbers = #tpu.dot_dimension_numbers<[1], [0], [0], [1], [0, 0, 1, 1], [], []>} : vector<80x16xbf16>, vector<16x8xbf16>, vector<80x8xf32> -> vector<80x8xf32>
    %73 = arith.addf %67, %72 : vector<80x8xf32>
    %c0_71 = arith.constant 0 : index
    %c0_72 = arith.constant 0 : index
    %74 = vector.load %arg4[%c0_71, %c0_72] : memref<1x8xf32, #tpu.memory_space<vmem>>, vector<1x8xf32>
    %75 = vector.broadcast %74 : vector<1x8xf32> to vector<80x8xf32>
    %76 = arith.addf %73, %75 : vector<80x8xf32>
    %cst_73 = arith.constant 0.000000e+00 : f32
    %77 = vector.broadcast %cst_73 : f32 to vector<80x8xf32>
    %78 = arith.maximumf %76, %77 : vector<80x8xf32>
    %79 = arith.truncf %78 : vector<80x8xf32> to vector<80x8xbf16>
    %c0_74 = arith.constant 0 : index
    %c0_75 = arith.constant 0 : index
    %c8 = arith.constant 8 : index
    %80 = vector.load %arg5[%c0_74, %c0_75, %c8] : memref<1x80x32xbf16, #tpu.memory_space<vmem>>, vector<1x80x8xbf16>
    %81 = vector.shape_cast %80 : vector<1x80x8xbf16> to vector<80x8xbf16>
    %82 = vector.shape_cast %79 : vector<80x8xbf16> to vector<1x80x8xbf16>
    tpu.vector_store %arg5[%c0_74, %c0_75, %c8], %82 {strides = array<i32>} : memref<1x80x32xbf16, #tpu.memory_space<vmem>>, vector<1x80x8xbf16>,
    %83 = vector.broadcast %3 : vector<80x1xf32> to vector<80x8xf32>
    %84 = arith.mulf %78, %83 : vector<80x8xf32>
    %cst_76 = arith.constant dense<0.000000e+00> : vector<8xf32>
    %85 = vector.multi_reduction <add>, %84, %cst_76 [0] : vector<80x8xf32> to vector<8xf32>
    %86 = vector.shape_cast %85 : vector<8xf32> to vector<1x8xf32>
    %87 = arith.addf %44, %86 : vector<1x8xf32>
    %88 = arith.mulf %84, %78 : vector<80x8xf32>
    %cst_77 = arith.constant dense<0.000000e+00> : vector<8xf32>
    %89 = vector.multi_reduction <add>, %88, %cst_77 [0] : vector<80x8xf32> to vector<8xf32>
    %90 = vector.shape_cast %89 : vector<8xf32> to vector<1x8xf32>
    %91 = arith.addf %48, %90 : vector<1x8xf32>
    %cst_78 = arith.constant 0.000000e+00 : f32
    %92 = vector.broadcast %cst_78 : f32 to vector<80x8xf32>
    %c0_79 = arith.constant 0 : index
    %c10_80 = arith.constant 10 : index
    %c0_81 = arith.constant 0 : index
    %93 = vector.load %arg2[%c0_79, %c10_80, %c0_81] : memref<1x110x16xbf16, #tpu.memory_space<vmem>>, vector<1x80x16xbf16>
    %94 = vector.shape_cast %93 : vector<1x80x16xbf16> to vector<80x16xbf16>
    %c2_82 = arith.constant 2 : index
    %c0_83 = arith.constant 0 : index
    %c0_84 = arith.constant 0 : index
    %c0_85 = arith.constant 0 : index
    %95 = vector.load %arg3[%c2_82, %c0_83, %c0_84, %c0_85] : memref<4x4x16x8xbf16, #tpu.memory_space<vmem>>, vector<1x1x16x8xbf16>
    %96 = vector.shape_cast %95 : vector<1x1x16x8xbf16> to vector<16x8xbf16>
    %cst_86 = arith.constant dense<0.000000e+00> : vector<80x8xf32>
    %97 = tpu.matmul %94, %96, %cst_86 {dimension_numbers = #tpu.dot_dimension_numbers<[1], [0], [0], [1], [0, 0, 1, 1], [], []>} : vector<80x16xbf16>, vector<16x8xbf16>, vector<80x8xf32> -> vector<80x8xf32>
    %98 = arith.addf %92, %97 : vector<80x8xf32>
    %c0_87 = arith.constant 0 : index
    %c11_88 = arith.constant 11 : index
    %c0_89 = arith.constant 0 : index
    %99 = vector.load %arg2[%c0_87, %c11_88, %c0_89] : memref<1x110x16xbf16, #tpu.memory_space<vmem>>, vector<1x80x16xbf16>
    %100 = vector.shape_cast %99 : vector<1x80x16xbf16> to vector<80x16xbf16>
    %c2_90 = arith.constant 2 : index
    %c1_91 = arith.constant 1 : index
    %c0_92 = arith.constant 0 : index
    %c0_93 = arith.constant 0 : index
    %101 = vector.load %arg3[%c2_90, %c1_91, %c0_92, %c0_93] : memref<4x4x16x8xbf16, #tpu.memory_space<vmem>>, vector<1x1x16x8xbf16>
    %102 = vector.shape_cast %101 : vector<1x1x16x8xbf16> to vector<16x8xbf16>
    %cst_94 = arith.constant dense<0.000000e+00> : vector<80x8xf32>
    %103 = tpu.matmul %100, %102, %cst_94 {dimension_numbers = #tpu.dot_dimension_numbers<[1], [0], [0], [1], [0, 0, 1, 1], [], []>} : vector<80x16xbf16>, vector<16x8xbf16>, vector<80x8xf32> -> vector<80x8xf32>
    %104 = arith.addf %98, %103 : vector<80x8xf32>
    %c0_95 = arith.constant 0 : index
    %c20 = arith.constant 20 : index
    %c0_96 = arith.constant 0 : index
    %105 = vector.load %arg2[%c0_95, %c20, %c0_96] : memref<1x110x16xbf16, #tpu.memory_space<vmem>>, vector<1x80x16xbf16>
    %106 = vector.shape_cast %105 : vector<1x80x16xbf16> to vector<80x16xbf16>
    %c2_97 = arith.constant 2 : index
    %c2_98 = arith.constant 2 : index
    %c0_99 = arith.constant 0 : index
    %c0_100 = arith.constant 0 : index
    %107 = vector.load %arg3[%c2_97, %c2_98, %c0_99, %c0_100] : memref<4x4x16x8xbf16, #tpu.memory_space<vmem>>, vector<1x1x16x8xbf16>
    %108 = vector.shape_cast %107 : vector<1x1x16x8xbf16> to vector<16x8xbf16>
    %cst_101 = arith.constant dense<0.000000e+00> : vector<80x8xf32>
    %109 = tpu.matmul %106, %108, %cst_101 {dimension_numbers = #tpu.dot_dimension_numbers<[1], [0], [0], [1], [0, 0, 1, 1], [], []>} : vector<80x16xbf16>, vector<16x8xbf16>, vector<80x8xf32> -> vector<80x8xf32>
    %110 = arith.addf %104, %109 : vector<80x8xf32>
    %c0_102 = arith.constant 0 : index
    %c21 = arith.constant 21 : index
    %c0_103 = arith.constant 0 : index
    %111 = vector.load %arg2[%c0_102, %c21, %c0_103] : memref<1x110x16xbf16, #tpu.memory_space<vmem>>, vector<1x80x16xbf16>
    %112 = vector.shape_cast %111 : vector<1x80x16xbf16> to vector<80x16xbf16>
    %c2_104 = arith.constant 2 : index
    %c3_105 = arith.constant 3 : index
    %c0_106 = arith.constant 0 : index
    %c0_107 = arith.constant 0 : index
    %113 = vector.load %arg3[%c2_104, %c3_105, %c0_106, %c0_107] : memref<4x4x16x8xbf16, #tpu.memory_space<vmem>>, vector<1x1x16x8xbf16>
    %114 = vector.shape_cast %113 : vector<1x1x16x8xbf16> to vector<16x8xbf16>
    %cst_108 = arith.constant dense<0.000000e+00> : vector<80x8xf32>
    %115 = tpu.matmul %112, %114, %cst_108 {dimension_numbers = #tpu.dot_dimension_numbers<[1], [0], [0], [1], [0, 0, 1, 1], [], []>} : vector<80x16xbf16>, vector<16x8xbf16>, vector<80x8xf32> -> vector<80x8xf32>
    %116 = arith.addf %110, %115 : vector<80x8xf32>
    %c0_109 = arith.constant 0 : index
    %c0_110 = arith.constant 0 : index
    %117 = vector.load %arg4[%c0_109, %c0_110] : memref<1x8xf32, #tpu.memory_space<vmem>>, vector<1x8xf32>
    %118 = vector.broadcast %117 : vector<1x8xf32> to vector<80x8xf32>
    %119 = arith.addf %116, %118 : vector<80x8xf32>
    %cst_111 = arith.constant 0.000000e+00 : f32
    %120 = vector.broadcast %cst_111 : f32 to vector<80x8xf32>
    %121 = arith.maximumf %119, %120 : vector<80x8xf32>
    %122 = arith.truncf %121 : vector<80x8xf32> to vector<80x8xbf16>
    %c0_112 = arith.constant 0 : index
    %c0_113 = arith.constant 0 : index
    %c16 = arith.constant 16 : index
    %123 = vector.load %arg5[%c0_112, %c0_113, %c16] : memref<1x80x32xbf16, #tpu.memory_space<vmem>>, vector<1x80x8xbf16>
    %124 = vector.shape_cast %123 : vector<1x80x8xbf16> to vector<80x8xbf16>
    %125 = vector.shape_cast %122 : vector<80x8xbf16> to vector<1x80x8xbf16>
    tpu.vector_store %arg5[%c0_112, %c0_113, %c16], %125 {strides = array<i32>} : memref<1x80x32xbf16, #tpu.memory_space<vmem>>, vector<1x80x8xbf16>,
    %126 = vector.broadcast %3 : vector<80x1xf32> to vector<80x8xf32>
    %127 = arith.mulf %121, %126 : vector<80x8xf32>
    %cst_114 = arith.constant dense<0.000000e+00> : vector<8xf32>
    %128 = vector.multi_reduction <add>, %127, %cst_114 [0] : vector<80x8xf32> to vector<8xf32>
    %129 = vector.shape_cast %128 : vector<8xf32> to vector<1x8xf32>
    %130 = arith.addf %87, %129 : vector<1x8xf32>
    %131 = arith.mulf %127, %121 : vector<80x8xf32>
    %cst_115 = arith.constant dense<0.000000e+00> : vector<8xf32>
    %132 = vector.multi_reduction <add>, %131, %cst_115 [0] : vector<80x8xf32> to vector<8xf32>
    %133 = vector.shape_cast %132 : vector<8xf32> to vector<1x8xf32>
    %134 = arith.addf %91, %133 : vector<1x8xf32>
    %cst_116 = arith.constant 0.000000e+00 : f32
    %135 = vector.broadcast %cst_116 : f32 to vector<80x8xf32>
    %c0_117 = arith.constant 0 : index
    %c11_118 = arith.constant 11 : index
    %c0_119 = arith.constant 0 : index
    %136 = vector.load %arg2[%c0_117, %c11_118, %c0_119] : memref<1x110x16xbf16, #tpu.memory_space<vmem>>, vector<1x80x16xbf16>
    %137 = vector.shape_cast %136 : vector<1x80x16xbf16> to vector<80x16xbf16>
    %c3_120 = arith.constant 3 : index
    %c0_121 = arith.constant 0 : index
    %c0_122 = arith.constant 0 : index
    %c0_123 = arith.constant 0 : index
    %138 = vector.load %arg3[%c3_120, %c0_121, %c0_122, %c0_123] : memref<4x4x16x8xbf16, #tpu.memory_space<vmem>>, vector<1x1x16x8xbf16>
    %139 = vector.shape_cast %138 : vector<1x1x16x8xbf16> to vector<16x8xbf16>
    %cst_124 = arith.constant dense<0.000000e+00> : vector<80x8xf32>
    %140 = tpu.matmul %137, %139, %cst_124 {dimension_numbers = #tpu.dot_dimension_numbers<[1], [0], [0], [1], [0, 0, 1, 1], [], []>} : vector<80x16xbf16>, vector<16x8xbf16>, vector<80x8xf32> -> vector<80x8xf32>
    %141 = arith.addf %135, %140 : vector<80x8xf32>
    %c0_125 = arith.constant 0 : index
    %c12_126 = arith.constant 12 : index
    %c0_127 = arith.constant 0 : index
    %142 = vector.load %arg2[%c0_125, %c12_126, %c0_127] : memref<1x110x16xbf16, #tpu.memory_space<vmem>>, vector<1x80x16xbf16>
    %143 = vector.shape_cast %142 : vector<1x80x16xbf16> to vector<80x16xbf16>
    %c3_128 = arith.constant 3 : index
    %c1_129 = arith.constant 1 : index
    %c0_130 = arith.constant 0 : index
    %c0_131 = arith.constant 0 : index
    %144 = vector.load %arg3[%c3_128, %c1_129, %c0_130, %c0_131] : memref<4x4x16x8xbf16, #tpu.memory_space<vmem>>, vector<1x1x16x8xbf16>
    %145 = vector.shape_cast %144 : vector<1x1x16x8xbf16> to vector<16x8xbf16>
    %cst_132 = arith.constant dense<0.000000e+00> : vector<80x8xf32>
    %146 = tpu.matmul %143, %145, %cst_132 {dimension_numbers = #tpu.dot_dimension_numbers<[1], [0], [0], [1], [0, 0, 1, 1], [], []>} : vector<80x16xbf16>, vector<16x8xbf16>, vector<80x8xf32> -> vector<80x8xf32>
    %147 = arith.addf %141, %146 : vector<80x8xf32>
    %c0_133 = arith.constant 0 : index
    %c21_134 = arith.constant 21 : index
    %c0_135 = arith.constant 0 : index
    %148 = vector.load %arg2[%c0_133, %c21_134, %c0_135] : memref<1x110x16xbf16, #tpu.memory_space<vmem>>, vector<1x80x16xbf16>
    %149 = vector.shape_cast %148 : vector<1x80x16xbf16> to vector<80x16xbf16>
    %c3_136 = arith.constant 3 : index
    %c2_137 = arith.constant 2 : index
    %c0_138 = arith.constant 0 : index
    %c0_139 = arith.constant 0 : index
    %150 = vector.load %arg3[%c3_136, %c2_137, %c0_138, %c0_139] : memref<4x4x16x8xbf16, #tpu.memory_space<vmem>>, vector<1x1x16x8xbf16>
    %151 = vector.shape_cast %150 : vector<1x1x16x8xbf16> to vector<16x8xbf16>
    %cst_140 = arith.constant dense<0.000000e+00> : vector<80x8xf32>
    %152 = tpu.matmul %149, %151, %cst_140 {dimension_numbers = #tpu.dot_dimension_numbers<[1], [0], [0], [1], [0, 0, 1, 1], [], []>} : vector<80x16xbf16>, vector<16x8xbf16>, vector<80x8xf32> -> vector<80x8xf32>
    %153 = arith.addf %147, %152 : vector<80x8xf32>
    %c0_141 = arith.constant 0 : index
    %c22 = arith.constant 22 : index
    %c0_142 = arith.constant 0 : index
    %154 = vector.load %arg2[%c0_141, %c22, %c0_142] : memref<1x110x16xbf16, #tpu.memory_space<vmem>>, vector<1x80x16xbf16>
    %155 = vector.shape_cast %154 : vector<1x80x16xbf16> to vector<80x16xbf16>
    %c3_143 = arith.constant 3 : index
    %c3_144 = arith.constant 3 : index
    %c0_145 = arith.constant 0 : index
    %c0_146 = arith.constant 0 : index
    %156 = vector.load %arg3[%c3_143, %c3_144, %c0_145, %c0_146] : memref<4x4x16x8xbf16, #tpu.memory_space<vmem>>, vector<1x1x16x8xbf16>
    %157 = vector.shape_cast %156 : vector<1x1x16x8xbf16> to vector<16x8xbf16>
    %cst_147 = arith.constant dense<0.000000e+00> : vector<80x8xf32>
    %158 = tpu.matmul %155, %157, %cst_147 {dimension_numbers = #tpu.dot_dimension_numbers<[1], [0], [0], [1], [0, 0, 1, 1], [], []>} : vector<80x16xbf16>, vector<16x8xbf16>, vector<80x8xf32> -> vector<80x8xf32>
    %159 = arith.addf %153, %158 : vector<80x8xf32>
    %c0_148 = arith.constant 0 : index
    %c0_149 = arith.constant 0 : index
    %160 = vector.load %arg4[%c0_148, %c0_149] : memref<1x8xf32, #tpu.memory_space<vmem>>, vector<1x8xf32>
    %161 = vector.broadcast %160 : vector<1x8xf32> to vector<80x8xf32>
    %162 = arith.addf %159, %161 : vector<80x8xf32>
    %cst_150 = arith.constant 0.000000e+00 : f32
    %163 = vector.broadcast %cst_150 : f32 to vector<80x8xf32>
    %164 = arith.maximumf %162, %163 : vector<80x8xf32>
    %165 = arith.truncf %164 : vector<80x8xf32> to vector<80x8xbf16>
    %c0_151 = arith.constant 0 : index
    %c0_152 = arith.constant 0 : index
    %c24 = arith.constant 24 : index
    %166 = vector.load %arg5[%c0_151, %c0_152, %c24] : memref<1x80x32xbf16, #tpu.memory_space<vmem>>, vector<1x80x8xbf16>
    %167 = vector.shape_cast %166 : vector<1x80x8xbf16> to vector<80x8xbf16>
    %168 = vector.shape_cast %165 : vector<80x8xbf16> to vector<1x80x8xbf16>
    tpu.vector_store %arg5[%c0_151, %c0_152, %c24], %168 {strides = array<i32>} : memref<1x80x32xbf16, #tpu.memory_space<vmem>>, vector<1x80x8xbf16>,
    %169 = vector.broadcast %3 : vector<80x1xf32> to vector<80x8xf32>
    %170 = arith.mulf %164, %169 : vector<80x8xf32>
    %cst_153 = arith.constant dense<0.000000e+00> : vector<8xf32>
    %171 = vector.multi_reduction <add>, %170, %cst_153 [0] : vector<80x8xf32> to vector<8xf32>
    %172 = vector.shape_cast %171 : vector<8xf32> to vector<1x8xf32>
    %173 = arith.addf %130, %172 : vector<1x8xf32>
    %174 = arith.mulf %170, %164 : vector<80x8xf32>
    %cst_154 = arith.constant dense<0.000000e+00> : vector<8xf32>
    %175 = vector.multi_reduction <add>, %174, %cst_154 [0] : vector<80x8xf32> to vector<8xf32>
    %176 = vector.shape_cast %175 : vector<8xf32> to vector<1x8xf32>
    %177 = arith.addf %134, %176 : vector<1x8xf32>
    %c0_155 = arith.constant 0 : index
    %c0_156 = arith.constant 0 : index
    %178 = vector.load %arg6[%c0_155, %c0_156] : memref<1x8xf32, #tpu.memory_space<vmem>>, vector<1x8xf32>
    %179 = arith.addf %178, %173 : vector<1x8xf32>
    %c0_157 = arith.constant 0 : index
    %c0_158 = arith.constant 0 : index
    %180 = vector.load %arg6[%c0_157, %c0_158] : memref<1x8xf32, #tpu.memory_space<vmem>>, vector<1x8xf32>
    tpu.vector_store %arg6[%c0_157, %c0_158], %179 {strides = array<i32>} : memref<1x8xf32, #tpu.memory_space<vmem>>, vector<1x8xf32>,
    %c0_159 = arith.constant 0 : index
    %c0_160 = arith.constant 0 : index
    %181 = vector.load %arg7[%c0_159, %c0_160] : memref<1x8xf32, #tpu.memory_space<vmem>>, vector<1x8xf32>
    %182 = arith.addf %181, %177 : vector<1x8xf32>
    %c0_161 = arith.constant 0 : index
    %c0_162 = arith.constant 0 : index
    %183 = vector.load %arg7[%c0_161, %c0_162] : memref<1x8xf32, #tpu.memory_space<vmem>>, vector<1x8xf32>
    tpu.vector_store %arg7[%c0_161, %c0_162], %182 {strides = array<i32>} : memref<1x8xf32, #tpu.memory_space<vmem>>, vector<1x8xf32>,
    return
  }
  func.func @transform_0(%arg0: i32) -> (i32, i32) {
    %c0_i32 = arith.constant 0 : i32
    %c0_i32_0 = arith.constant 0 : i32
    %c0_i32_1 = arith.constant 0 : i32
    return %c0_i32, %c0_i32_0 : i32, i32
  }
  func.func @transform_1(%arg0: i32) -> (i32, i32, i32) {
    %c0_i32 = arith.constant 0 : i32
    %c0_i32_0 = arith.constant 0 : i32
    %c0_i32_1 = arith.constant 0 : i32
    return %arg0, %c0_i32, %c0_i32_0 : i32, i32, i32
  }
  func.func @transform_2(%arg0: i32) -> (i32, i32, i32, i32) {
    %c0_i32 = arith.constant 0 : i32
    %c0_i32_0 = arith.constant 0 : i32
    %c0_i32_1 = arith.constant 0 : i32
    %c0_i32_2 = arith.constant 0 : i32
    %c0_i32_3 = arith.constant 0 : i32
    return %c0_i32, %c0_i32_0, %c0_i32_1, %c0_i32_2 : i32, i32, i32, i32
  }
  func.func @transform_3(%arg0: i32) -> (i32, i32) {
    %c0_i32 = arith.constant 0 : i32
    %c0_i32_0 = arith.constant 0 : i32
    %c0_i32_1 = arith.constant 0 : i32
    return %c0_i32, %c0_i32_0 : i32, i32
  }
  func.func @transform_4(%arg0: i32) -> (i32, i32, i32) {
    %c0_i32 = arith.constant 0 : i32
    %c0_i32_0 = arith.constant 0 : i32
    %c0_i32_1 = arith.constant 0 : i32
    return %arg0, %c0_i32, %c0_i32_0 : i32, i32, i32
  }
  func.func @transform_5(%arg0: i32) -> (i32, i32) {
    %c0_i32 = arith.constant 0 : i32
    %c0_i32_0 = arith.constant 0 : i32
    %c0_i32_1 = arith.constant 0 : i32
    return %c0_i32, %c0_i32_0 : i32, i32
  }
  func.func @transform_6(%arg0: i32) -> (i32, i32) {
    %c0_i32 = arith.constant 0 : i32
    %c0_i32_0 = arith.constant 0 : i32
    %c0_i32_1 = arith.constant 0 : i32
    return %c0_i32, %c0_i32_0 : i32, i32
  }
}

module attributes {stable_mosaic.version = 11 : i64} {
  func.func @_convt_sigmoid_kernel(%arg0: i32, %arg1: memref<1x342x8xbf16, #tpu.memory_space<vmem>>, %arg2: memref<128x4xbf16, #tpu.memory_space<vmem>>, %arg3: memref<1x4xf32, #tpu.memory_space<vmem>>, %arg4: memref<1x288x4xf32, #tpu.memory_space<vmem>>) attributes {dimension_semantics = [#tpu.dimension_semantics<parallel>], iteration_bounds = array<i64: 2>, scalar_prefetch = 0 : i64, scratch_operands = 0 : i64, tpu.core_type = #tpu.core_type<tc>, window_params = [{transform_indices = @transform_0, window_bounds = array<i64: 1, 342, 8>}, {pipeline_mode = #tpu.pipeline_mode<synchronous>, transform_indices = @transform_1, window_bounds = array<i64: 128, 4>}, {pipeline_mode = #tpu.pipeline_mode<synchronous>, transform_indices = @transform_2, window_bounds = array<i64: 1, 4>}, {transform_indices = @transform_3, window_bounds = array<i64: 1, 288, 4>}]} {
    %c0 = arith.constant 0 : index
    %c0_0 = arith.constant 0 : index
    %c0_1 = arith.constant 0 : index
    %0 = vector.load %arg1[%c0, %c0_0, %c0_1] : memref<1x342x8xbf16, #tpu.memory_space<vmem>>, vector<1x288x8xbf16>
    %1 = vector.shape_cast %0 : vector<1x288x8xbf16> to vector<288x8xbf16>
    %c0_2 = arith.constant 0 : index
    %c1 = arith.constant 1 : index
    %c0_3 = arith.constant 0 : index
    %2 = vector.load %arg1[%c0_2, %c1, %c0_3] : memref<1x342x8xbf16, #tpu.memory_space<vmem>>, vector<1x288x8xbf16>
    %3 = vector.shape_cast %2 : vector<1x288x8xbf16> to vector<288x8xbf16>
    %c0_4 = arith.constant 0 : index
    %c18 = arith.constant 18 : index
    %c0_5 = arith.constant 0 : index
    %4 = vector.load %arg1[%c0_4, %c18, %c0_5] : memref<1x342x8xbf16, #tpu.memory_space<vmem>>, vector<1x288x8xbf16>
    %5 = vector.shape_cast %4 : vector<1x288x8xbf16> to vector<288x8xbf16>
    %c0_6 = arith.constant 0 : index
    %c19 = arith.constant 19 : index
    %c0_7 = arith.constant 0 : index
    %6 = vector.load %arg1[%c0_6, %c19, %c0_7] : memref<1x342x8xbf16, #tpu.memory_space<vmem>>, vector<1x288x8xbf16>
    %7 = vector.shape_cast %6 : vector<1x288x8xbf16> to vector<288x8xbf16>
    %c0_8 = arith.constant 0 : index
    %c1_9 = arith.constant 1 : index
    %c0_10 = arith.constant 0 : index
    %8 = vector.load %arg1[%c0_8, %c1_9, %c0_10] : memref<1x342x8xbf16, #tpu.memory_space<vmem>>, vector<1x288x8xbf16>
    %9 = vector.shape_cast %8 : vector<1x288x8xbf16> to vector<288x8xbf16>
    %c0_11 = arith.constant 0 : index
    %c2 = arith.constant 2 : index
    %c0_12 = arith.constant 0 : index
    %10 = vector.load %arg1[%c0_11, %c2, %c0_12] : memref<1x342x8xbf16, #tpu.memory_space<vmem>>, vector<1x288x8xbf16>
    %11 = vector.shape_cast %10 : vector<1x288x8xbf16> to vector<288x8xbf16>
    %c0_13 = arith.constant 0 : index
    %c19_14 = arith.constant 19 : index
    %c0_15 = arith.constant 0 : index
    %12 = vector.load %arg1[%c0_13, %c19_14, %c0_15] : memref<1x342x8xbf16, #tpu.memory_space<vmem>>, vector<1x288x8xbf16>
    %13 = vector.shape_cast %12 : vector<1x288x8xbf16> to vector<288x8xbf16>
    %c0_16 = arith.constant 0 : index
    %c20 = arith.constant 20 : index
    %c0_17 = arith.constant 0 : index
    %14 = vector.load %arg1[%c0_16, %c20, %c0_17] : memref<1x342x8xbf16, #tpu.memory_space<vmem>>, vector<1x288x8xbf16>
    %15 = vector.shape_cast %14 : vector<1x288x8xbf16> to vector<288x8xbf16>
    %c0_18 = arith.constant 0 : index
    %c18_19 = arith.constant 18 : index
    %c0_20 = arith.constant 0 : index
    %16 = vector.load %arg1[%c0_18, %c18_19, %c0_20] : memref<1x342x8xbf16, #tpu.memory_space<vmem>>, vector<1x288x8xbf16>
    %17 = vector.shape_cast %16 : vector<1x288x8xbf16> to vector<288x8xbf16>
    %c0_21 = arith.constant 0 : index
    %c19_22 = arith.constant 19 : index
    %c0_23 = arith.constant 0 : index
    %18 = vector.load %arg1[%c0_21, %c19_22, %c0_23] : memref<1x342x8xbf16, #tpu.memory_space<vmem>>, vector<1x288x8xbf16>
    %19 = vector.shape_cast %18 : vector<1x288x8xbf16> to vector<288x8xbf16>
    %c0_24 = arith.constant 0 : index
    %c36 = arith.constant 36 : index
    %c0_25 = arith.constant 0 : index
    %20 = vector.load %arg1[%c0_24, %c36, %c0_25] : memref<1x342x8xbf16, #tpu.memory_space<vmem>>, vector<1x288x8xbf16>
    %21 = vector.shape_cast %20 : vector<1x288x8xbf16> to vector<288x8xbf16>
    %c0_26 = arith.constant 0 : index
    %c37 = arith.constant 37 : index
    %c0_27 = arith.constant 0 : index
    %22 = vector.load %arg1[%c0_26, %c37, %c0_27] : memref<1x342x8xbf16, #tpu.memory_space<vmem>>, vector<1x288x8xbf16>
    %23 = vector.shape_cast %22 : vector<1x288x8xbf16> to vector<288x8xbf16>
    %c0_28 = arith.constant 0 : index
    %c19_29 = arith.constant 19 : index
    %c0_30 = arith.constant 0 : index
    %24 = vector.load %arg1[%c0_28, %c19_29, %c0_30] : memref<1x342x8xbf16, #tpu.memory_space<vmem>>, vector<1x288x8xbf16>
    %25 = vector.shape_cast %24 : vector<1x288x8xbf16> to vector<288x8xbf16>
    %c0_31 = arith.constant 0 : index
    %c20_32 = arith.constant 20 : index
    %c0_33 = arith.constant 0 : index
    %26 = vector.load %arg1[%c0_31, %c20_32, %c0_33] : memref<1x342x8xbf16, #tpu.memory_space<vmem>>, vector<1x288x8xbf16>
    %27 = vector.shape_cast %26 : vector<1x288x8xbf16> to vector<288x8xbf16>
    %c0_34 = arith.constant 0 : index
    %c37_35 = arith.constant 37 : index
    %c0_36 = arith.constant 0 : index
    %28 = vector.load %arg1[%c0_34, %c37_35, %c0_36] : memref<1x342x8xbf16, #tpu.memory_space<vmem>>, vector<1x288x8xbf16>
    %29 = vector.shape_cast %28 : vector<1x288x8xbf16> to vector<288x8xbf16>
    %c0_37 = arith.constant 0 : index
    %c38 = arith.constant 38 : index
    %c0_38 = arith.constant 0 : index
    %30 = vector.load %arg1[%c0_37, %c38, %c0_38] : memref<1x342x8xbf16, #tpu.memory_space<vmem>>, vector<1x288x8xbf16>
    %31 = vector.shape_cast %30 : vector<1x288x8xbf16> to vector<288x8xbf16>
    %32 = tpu.concatenate %1, %3, %5, %7, %9, %11, %13, %15, %17, %19, %21, %23, %25, %27, %29, %31 in 1 : vector<288x8xbf16>, vector<288x8xbf16>, vector<288x8xbf16>, vector<288x8xbf16>, vector<288x8xbf16>, vector<288x8xbf16>, vector<288x8xbf16>, vector<288x8xbf16>, vector<288x8xbf16>, vector<288x8xbf16>, vector<288x8xbf16>, vector<288x8xbf16>, vector<288x8xbf16>, vector<288x8xbf16>, vector<288x8xbf16>, vector<288x8xbf16> -> vector<288x128xbf16>
    %c0_39 = arith.constant 0 : index
    %c0_40 = arith.constant 0 : index
    %33 = vector.load %arg2[%c0_39, %c0_40] : memref<128x4xbf16, #tpu.memory_space<vmem>>, vector<128x4xbf16>
    %cst = arith.constant dense<0.000000e+00> : vector<288x4xf32>
    %34 = tpu.matmul %32, %33, %cst {dimension_numbers = #tpu.dot_dimension_numbers<[1], [0], [0], [1], [0, 0, 1, 1], [], []>} : vector<288x128xbf16>, vector<128x4xbf16>, vector<288x4xf32> -> vector<288x4xf32>
    %c0_41 = arith.constant 0 : index
    %c0_42 = arith.constant 0 : index
    %35 = vector.load %arg3[%c0_41, %c0_42] : memref<1x4xf32, #tpu.memory_space<vmem>>, vector<1x4xf32>
    %36 = vector.broadcast %35 : vector<1x4xf32> to vector<288x4xf32>
    %37 = arith.addf %34, %36 : vector<288x4xf32>
    %38 = arith.negf %37 : vector<288x4xf32>
    %39 = math.exp %38 : vector<288x4xf32>
    %cst_43 = arith.constant 1.000000e+00 : f32
    %40 = vector.broadcast %cst_43 : f32 to vector<288x4xf32>
    %41 = arith.addf %40, %39 : vector<288x4xf32>
    %42 = arith.divf %40, %41 : vector<288x4xf32>
    %c0_44 = arith.constant 0 : index
    %c0_45 = arith.constant 0 : index
    %c0_46 = arith.constant 0 : index
    %43 = vector.load %arg4[%c0_44, %c0_45, %c0_46] : memref<1x288x4xf32, #tpu.memory_space<vmem>>, vector<1x288x4xf32>
    %44 = vector.shape_cast %43 : vector<1x288x4xf32> to vector<288x4xf32>
    %45 = vector.shape_cast %42 : vector<288x4xf32> to vector<1x288x4xf32>
    tpu.vector_store %arg4[%c0_44, %c0_45, %c0_46], %45 {strides = array<i32>} : memref<1x288x4xf32, #tpu.memory_space<vmem>>, vector<1x288x4xf32>,
    return
  }
  func.func @transform_0(%arg0: i32) -> (i32, i32, i32) {
    %c0_i32 = arith.constant 0 : i32
    %c0_i32_0 = arith.constant 0 : i32
    %c0_i32_1 = arith.constant 0 : i32
    return %arg0, %c0_i32, %c0_i32_0 : i32, i32, i32
  }
  func.func @transform_1(%arg0: i32) -> (i32, i32) {
    %c0_i32 = arith.constant 0 : i32
    %c0_i32_0 = arith.constant 0 : i32
    %c0_i32_1 = arith.constant 0 : i32
    return %c0_i32, %c0_i32_0 : i32, i32
  }
  func.func @transform_2(%arg0: i32) -> (i32, i32) {
    %c0_i32 = arith.constant 0 : i32
    %c0_i32_0 = arith.constant 0 : i32
    %c0_i32_1 = arith.constant 0 : i32
    return %c0_i32, %c0_i32_0 : i32, i32
  }
  func.func @transform_3(%arg0: i32) -> (i32, i32, i32) {
    %c0_i32 = arith.constant 0 : i32
    %c0_i32_0 = arith.constant 0 : i32
    %c0_i32_1 = arith.constant 0 : i32
    return %arg0, %c0_i32, %c0_i32_0 : i32, i32, i32
  }
}

</mosaic_0001>

<bundles_post_ra>
// kernel: generator_forward.5
= control target key start
LH: loop header
LB: loop body
LE: loop exit
PB: predicated region body
PF: predicated region fallthrough
CT: control target
= control target key end

     0   :  { %v122_v1 = vmov 0   ;;  %vm40_vm0 = vcmask 130048   ;;  %v20_v4 = vlaneseq  ;;  %v123_v10 = vmov 1966171168   ;;  %s159_s1 = inlined_call_operand.vmem [shape: bf16[16,256], index: 1, kind: input, shape index: {}]   ;;  %s160_s0 = inlined_call_operand.vmem [shape: bf16[2,16], index: 0, kind: input, shape index: {}]   ;;  %s161_s2 = inlined_call_operand.vmem [shape: f32[1,256], index: 2, kind: input, shape index: {}]   ;;  %s162_s3 = inlined_call_operand.vmem [shape: bf16[2,256], index: 3, kind: output, shape index: {}]  }
   0x1   :  { %v119_v0 = vld [vmem:[%s159_s1 + $0x4] ss:$8 sps:$4 sm:$0xff]   ;;  %76 = vmatprep.mubr.bf16.mxu0 %v122_v1  ;;  %v121_v2 = vld [vmem:[%s159_s1] ss:$8 sps:$4 sm:$0xff]   ;;  %v93_v11 = vunpack.c.l.s4 %v123_v10 }
   0x2   :  { %58 = vmatprep.subr.bf16.mxu0 %v119_v0  ;;  %v15_v3 = vld [vmem:[%s160_s0] sm:$0x1]  ;;  %v21_v5 = vshrl.u32 %v20_v4, 7 }
   0x3   :  { %59 = vmatpush1.bf16.msra.mxu0 %v121_v2  ;;  %v18_v7 = vld [vmem:[%s161_s2] sm:$0x3]  ;;  %v94_v15 = vunpack.c.0.s8 %v93_v11 }
   0x4   :  { %v22_v6 = vsub.s32 0, %v21_v5  ;;  %v26_v8 = vsub.s32 1, %v21_v5 }
   0x5   :  { %v97_v21 = vsub.s32 %v94_v15, %v21_v5 }
   0x6   :  { %114 = vmatmul.mubr.msk.bf16.vlgmr.msra.gmra.mxu0 %vm40_vm0, %v15_v3  ;;  %v23_v9 = vrot.slane %v18_v7, %v22_v6  ;;  %v27_v12 = vrot.slane %v18_v7, %v26_v8 }
  0xc6   :  { %v78_v13 = vpop.f32.mrf.mxu0 }
  0xc7   :  { %v79_v14 = vadd.f32 %v78_v13, %v23_v9 }
  0xc8   :  { %v80_v16 = vpop.f32.mrf.mxu0 }
  0xc9   :  { %v81_v17 = vadd.f32 %v80_v16, %v27_v12  ;;  %v85_v19 = vmax.f32 %v79_v14, 0.0 }
  0xca   :  { %v82_v18 = vpop.f32.mrf.mxu0 }
  0xcb   :  { %v86_v20 = vmax.f32 %v81_v17, 0.0 }
  0xcc   :  { %v83_v22 = vpop.f32.mrf.mxu0 }
  0xcd   :  { %v115_v23 = vpack.c.bf16 %v86_v20, %v85_v19 }
  0xcf   :  { %v98_v24 = vrot.slane %v115_v23, %v97_v21 }
  0xd1   :  { %116 = vst.sshfl [vmem:[%s162_s3] sm:$0x5 pattern:$0x73625140] %v98_v24 }

// kernel: generator_forward.6
= control target key start
LH: loop header
LB: loop body
LE: loop exit
PB: predicated region body
PF: predicated region fallthrough
CT: control target
= control target key end

     0   :  { %s2492_s21 = smov 0   ;;  %s2887_s0 = inlined_call_operand.vmem [shape: f32[8,1], index: 0, kind: input, shape index: {}]   ;;  %s2888_s1 = inlined_call_operand.vmem [shape: bf16[2,20,64], index: 1, kind: input, shape index: {}]   ;;  %s2889_s2 = inlined_call_operand.vmem [shape: bf16[4,4,64,32], index: 2, kind: input, shape index: {}]   ;;  %s2890_s3 = inlined_call_operand.vmem [shape: f32[1,32], index: 3, kind: input, shape index: {}]   ;;  %s2891_s4 = inlined_call_operand.vmem [shape: bf16[2,8,128], index: 4, kind: output, shape index: {0}]   ;;  %s2892_s5 = inlined_call_operand.vmem [shape: f32[1,32], index: 5, kind: output, shape index: {1}]   ;;  %s2893_s6 = inlined_call_operand.vmem [shape: f32[1,32], index: 6, kind: output, shape index: {2}]  }
   0x1 LB: > { %s1841_s22 = sadd.s32 4294967295, %s2448_s21   ;;  %p1845_p0 = scmp.ge.s32.totalorder %s2448_s21, 1  ;;  %s2448_s21 = sphi %s2492_s21, %s17_s21  }
   0x2   : > { %p207_p1 = scmp.lt.s32.totalorder %s2448_s21, 3 }
   0x4   : > { %p208_p2 = pnand %p1845_p0, %p207_p1 }
   0x5   : > { %p236_p3 = scmp.lt.s32.totalorder (!%p208_p2), %s1841_s22, 1  ;;  %p1848_p4 = scmp.ne.s32.totalorder (!%p208_p2), %s1841_s22, 0 }
   0x6   : > { %211 = sbr.rel (%p208_p2) target bundleno = 467 (0x1d3), region = 36 }
   0xb   : > { %s237_s23 = scalar_select %p236_p3, %s1841_s22, 1 }
   0xc   : > { %249 = sbr.rel (%p1848_p4) target bundleno = 19 (0x13), region = 40 }
   0xd   : > { %s2347_s24 = smul.u32 12, %s237_s23  ;;  %s1847_s25 = sshll.u32 %s237_s23, 2 }
   0xe   : > { %s2503_s28 = scalar_lea.vmem %s2891_s4, %s1847_s25 }
   0xf   : > { %s2508_s7 = scalar_lea.vmem %s2888_s1, %s2347_s24 }
  0x11   : > { %vm250_vm0 = vcmask 253952   ;;  %v2450_v0 = vmov 0.0  }
  0x12   : > { %251 = vst.msk [vmem:[%s2892_s5] sm:$0x1] %vm250_vm0, %v2450_v0  ;;  %252 = vst.msk [vmem:[%s2893_s6] sm:$0x1] %vm250_vm0, %v2450_v0 }
  0x13 PF: > { %v2364_v1 = vld [vmem:[%s2889_s2 + $0x38] sm:$0xff]   ;;  %v2451_v2 = vmov 0.0   ;;  %v2366_v4 = vld [vmem:[%s2889_s2 + $0x30] sm:$0xff]   ;;  %vm2452_vm1 = vmmov 0   ;;  %v2453_v6 = vmov 0   ;;  %v2368_v7 = vld [vmem:[%s2889_s2 + $0x28] sm:$0xff]  }
  0x14   : > { %2155 = vmatprep.subr.bf16.mxu0 %v2451_v2  ;;  %2167 = vmatprep.subr.bf16.mxu1 %v2451_v2  ;;  %v2365_v3 = vld [vmem:[%s2889_s2 + $0x18] sm:$0xff]   ;;  %v2367_v5 = vld [vmem:[%s2889_s2 + $0x10] sm:$0xff]   ;;  %v2369_v8 = vld [vmem:[%s2889_s2 + $0x8] sm:$0xff]   ;;  %vm309_vm2 = vcmask 523264   ;;  %vm604_vm3 = vcmask 257024   ;;  %s2454_s17 = smov 32  }
  0x15   : > { %2156 = vmatpush3.bf16.msra.mxu0 %v2364_v1  ;;  %2163 = vmatprep.mubr.msk.bf16.mxu0 %vm2452_vm1, %v2451_v2  ;;  %v254_v9 = vld [vmem:[%s2508_s7] sm:$0xf]  ;;  %v263_v10 = vld [vmem:[%s2508_s7 + $0x4] sm:$0x1]  ;;  %v2373_v17 = vld [vmem:[%s2889_s2 + $0x58] sm:$0xff]   ;;  %s2455_s18 = smov 64  }
  0x16   : > { %2168 = vmatpush3.bf16.msra.mxu1 %v2365_v3  ;;  %2157 = vmatprep.subr.bf16.mxu0 %v2451_v2  ;;  %v1857_v11 = vcombine.low %v254_v9, %v263_v10  ;;  %v2370_v12 = vld [vmem:[%s2889_s2 + $0x20] sm:$0xff]   ;;  %v2374_v19 = vld [vmem:[%s2889_s2 + $0x78] sm:$0xff]   ;;  %v2375_v22 = vld [vmem:[%s2889_s2 + $0x50] sm:$0xff]   ;;  %vm612_vm4 = vcmask 261120   ;;  %s2456_s19 = smov 96   ;;  %vm1771_vm5 = vcmask 253952  }
  0x17   : > { %2169 = vmatprep.subr.bf16.mxu1 %v2451_v2  ;;  %2175 = vmatprep.mubr.msk.bf16.mxu1 %vm2452_vm1, %v2451_v2  ;;  %v2371_v13 = vld [vmem:[%s2889_s2] sm:$0xff]   ;;  %v2376_v24 = vld [vmem:[%s2889_s2 + $0x70] sm:$0xff]   ;;  %v2377_v25 = vld [vmem:[%s2889_s2 + $0x48] sm:$0xff]   ;;  %vm991_vm6 = vcmask 519424   ;;  %vm1368_vm7 = vcmask 781824   ;;  %vm1749_vm8 = vcmask 1044224  }
  0x18   : > { %2363 = vset.pattern.permute.xlu0 %v2453_v6  ;;  %v279_v14 = vshrl.u32 %v1857_v11, 16  ;;  %v281_v15 = vshll.u32 %v1857_v11, 16  ;;  %v420_v20 = vld [vmem:[%s2508_s7] sm:$0xc]  ;;  %v505_v21 = vld [vmem:[%s2508_s7 + $0x4] sm:$0x7] }
  0x19   : > { %2158 = vmatpush3.bf16.msra.mxu0 %v2366_v4  ;;  %v1890_v23 = vcombine.low %v420_v20, %v505_v21  ;;  %v421_v26 = vld [vmem:[%s2508_s7 + $0x4] sm:$0x3]  ;;  %v2378_v29 = vld [vmem:[%s2889_s2 + $0x68] sm:$0xff]   ;;  %v2383_v36 = vld [vmem:[%s2889_s2 + $0xb8] sm:$0xff]  }
  0x1a   : > { %2170 = vmatpush3.bf16.msra.mxu1 %v2367_v5  ;;  %2159 = vmatprep.subr.bf16.mxu0 %v2451_v2  ;;  %v283_v16 = vrot.slane %v281_v15, 1  ;;  %v1876_v30 = vcombine.low %v420_v20, %v421_v26  ;;  %v2379_v31 = vld [vmem:[%s2889_s2 + $0x40] sm:$0xff]   ;;  %v2384_v37 = vld [vmem:[%s2889_s2 + $0x98] sm:$0xff]   ;;  %v2385_v41 = vld [vmem:[%s2889_s2 + $0xb0] sm:$0xff]  }
  0x1b   : > { %2171 = vmatprep.subr.bf16.mxu1 %v2451_v2  ;;  %v519_v27 = vshrl.u32 %v1890_v23, 16  ;;  %v522_v28 = vshll.u32 %v1890_v23, 16  ;;  %v2380_v34 = vld [vmem:[%s2889_s2 + $0x60] sm:$0xff]   ;;  %v2386_v43 = vld [vmem:[%s2889_s2 + $0x90] sm:$0xff]   ;;  %v2387_v44 = vld [vmem:[%s2889_s2 + $0xa8] sm:$0xff]  }
  0x1c   : > { %v284_v18 = vor.u32 %v283_v16, %v279_v14  ;;  %v436_v35 = vrot.slane %v1876_v30, 2  ;;  %v630_v39 = vld [vmem:[%s2508_s7] sm:$0xf]  ;;  %v631_v40 = vld [vmem:[%s2508_s7 + $0x4] sm:$0x1]  ;;  %v2388_v47 = vld [vmem:[%s2889_s2 + $0x88] sm:$0xff]  }
  0x1d   : > { %2160 = vmatpush3.bf16.msra.mxu0 %v2368_v7  ;;  %v521_v32 = vrot.slane %v519_v27, 2  ;;  %v524_v33 = vrot.slane %v522_v28, 3  ;;  %v1919_v42 = vcombine.low %v630_v39, %v631_v40  ;;  %v641_v45 = vld [vmem:[%s2508_s7] sm:$0xe]  ;;  %v2393_v54 = vld [vmem:[%s2889_s2 + $0xd8] sm:$0xff]   ;;  %v2395_v60 = vld [vmem:[%s2889_s2 + $0xd0] sm:$0xff]  }
  0x1e   : > { %2172 = vmatpush3.bf16.msra.mxu1 %v2369_v8  ;;  %2161 = vmatprep.subr.bf16.mxu0 %v2451_v2  ;;  %v2389_v48 = vld [vmem:[%s2889_s2 + $0xa0] sm:$0xff]   ;;  %v1913_v49 = vcombine.low %v641_v45, %v631_v40  ;;  %v2394_v58 = vld [vmem:[%s2889_s2 + $0xf8] sm:$0xff]   ;;  %v2396_v61 = vld [vmem:[%s2889_s2 + $0xf0] sm:$0xff]  }
  0x1f   : > { %2173 = vmatprep.subr.bf16.mxu1 %v2451_v2  ;;  %v525_v38 = vor.u32 %v524_v33, %v521_v32  ;;  %v730_v46 = vshll.u32 %v1919_v42, 16  ;;  %v728_v50 = vshrl.u32 %v1919_v42, 16  ;;  %v2390_v52 = vld [vmem:[%s2889_s2 + $0x80] sm:$0xff]   ;;  %v2397_v1 = vld [vmem:[%s2889_s2 + $0xc8] sm:$0xff]   ;;  %v2403_v10 = vld [vmem:[%s2889_s2 + $0x138] sm:$0xff]  }
  0x20   : > { %v656_v53 = vrot.slane %v1913_v49, 1  ;;  %v801_v55 = vld [vmem:[%s2508_s7] sm:$0xc]  ;;  %v802_v57 = vld [vmem:[%s2508_s7 + $0x4] sm:$0x7]  ;;  %v2398_v3 = vld [vmem:[%s2889_s2 + $0xe8] sm:$0xff]  }
  0x21   : > { %2162 = vmatpush3.bf16.msra.mxu0 %v2370_v12  ;;  %v732_v51 = vrot.slane %v730_v46, 1  ;;  %v1933_v59 = vcombine.low %v801_v55, %v802_v57  ;;  %v893_v62 = vld [vmem:[%s2508_s7] sm:$0x8]  ;;  %v2404_v14 = vld [vmem:[%s2889_s2 + $0x118] sm:$0xff]   ;;  %v2408_v20 = vld [vmem:[%s2889_s2 + $0x108] sm:$0xff]  }
  0x22   : > { %2174 = vmatpush3.bf16.msra.mxu1 %v2371_v13  ;;  %2179 = vmatprep.subr.bf16.mxu0 %v2451_v2  ;;  %v1947_v4 = vcombine.low %v893_v62, %v802_v57  ;;  %v2399_v5 = vld [vmem:[%s2889_s2 + $0xc0] sm:$0xff]   ;;  %v2414_v32 = vld [vmem:[%s2889_s2 + $0x178] sm:$0xff]   ;;  %v2415_v33 = vld [vmem:[%s2889_s2 + $0x150] sm:$0xff]  }
  0x23   : > { %2191 = vmatprep.subr.bf16.mxu1 %v2451_v2  ;;  %v733_v56 = vor.u32 %v732_v51, %v728_v50  ;;  %v818_v63 = vshrl.u32 %v1933_v59, 16  ;;  %v821_v0 = vshll.u32 %v1933_v59, 16  ;;  %v2400_v8 = vld [vmem:[%s2889_s2 + $0xe0] sm:$0xff]   ;;  %v2422_v45 = vld [vmem:[%s2889_s2 + $0x1b8] sm:$0xff]   ;;  %v2424_v49 = vld [vmem:[%s2889_s2 + $0x1b0] sm:$0xff]  }
  0x24   : > { %2164 = vmatmul.mubr.msk.bf16.vlgmr.msra.gmra.mxu0 %vm309_vm2, %v284_v18  ;;  %v1011_v12 = vld [vmem:[%s2508_s7] sm:$0xc]  ;;  %v1022_v13 = vld [vmem:[%s2508_s7 + $0x4] sm:$0x7]  ;;  %v2406_v18 = vld [vmem:[%s2889_s2 + $0x110] sm:$0xff]  }
  0x25   : > { %2176 = vmatmul.mubr.msk.bf16.vlgmr.msra.gmra.mxu1 %vm309_vm2, %v254_v9  ;;  %2180 = vmatpush3.bf16.msra.mxu0 %v2373_v17  ;;  %v820_v6 = vrot.slane %v818_v63, 2  ;;  %v823_v7 = vrot.slane %v821_v0, 3  ;;  %v906_v9 = vrot.slane %v1947_v4, 3  ;;  %v253_v15 = vld [vmem:[%s2887_s0] sm:$0xff]  ;;  %v1971_v16 = vcombine.low %v1011_v12, %v1022_v13  ;;  %v2405_v17 = vld [vmem:[%s2889_s2 + $0x130] sm:$0xff]   ;;  %v2423_v46 = vld [vmem:[%s2889_s2 + $0x198] sm:$0xff]  }
  0x26   : > { %2192 = vmatpush3.bf16.msra.mxu1 %v2374_v19  ;;  %2181 = vmatprep.subr.bf16.mxu0 %v2451_v2  ;;  %v2407_v19 = vld [vmem:[%s2889_s2 + $0x128] sm:$0xff]   ;;  %v1012_v23 = vld [vmem:[%s2508_s7 + $0x4] sm:$0x3]  ;;  %v2425_v51 = vld [vmem:[%s2889_s2 + $0x190] sm:$0xff]  }
  0x27   : > { %2193 = vmatprep.subr.bf16.mxu1 %v2451_v2  ;;  %2187 = vmatprep.mubr.msk.bf16.mxu0 %vm2452_vm1, %v2451_v2  ;;  %v824_v11 = vor.u32 %v823_v7, %v820_v6  ;;  %v1038_v21 = vshrl.u32 %v1971_v16, 16  ;;  %v2409_v26 = vld [vmem:[%s2889_s2 + $0x120] sm:$0xff]   ;;  %v1977_v27 = vcombine.low %v1011_v12, %v1012_v23  ;;  %v2432_v0 = vld [vmem:[%s2889_s2 + $0x1d8] sm:$0xff]   ;;  %v2434_v6 = vld [vmem:[%s2889_s2 + $0x1d0] sm:$0xff]  }
  0x28   : > { %2199 = vmatprep.mubr.msk.bf16.mxu1 %vm2452_vm1, %v2451_v2  ;;  %608 = vperm.xlu0 %2363, %v253_v15   ;;  %v2410_v28 = vld [vmem:[%s2889_s2 + $0x100] sm:$0xff]   ;;  %v2433_v4 = vld [vmem:[%s2889_s2 + $0x1f8] sm:$0xff]   ;;  %v2435_v7 = vld [vmem:[%s2889_s2 + $0x1f0] sm:$0xff]  }
  0x29   : > { %2182 = vmatpush3.bf16.msra.mxu0 %v2375_v22  ;;  %v1041_v22 = vshll.u32 %v1971_v16, 16  ;;  %v1115_v30 = vrot.slane %v1977_v27, 2  ;;  %v2419_v39 = vld [vmem:[%s2889_s2 + $0x140] sm:$0xff]  }
  0x2a   : > { %2194 = vmatpush3.bf16.msra.mxu1 %v2376_v24  ;;  %2183 = vmatprep.subr.bf16.mxu0 %v2451_v2  ;;  %v1040_v24 = vrot.slane %v1038_v21, 2  ;;  %v2420_v42 = vld [vmem:[%s2889_s2 + $0x160] sm:$0xff]  }
  0x2b   : > { %2195 = vmatprep.subr.bf16.mxu1 %v2451_v2  ;;  %v2439_v16 = vld [vmem:[%s2889_s2 + $0x1e0] sm:$0xff]  }
  0x2d   : > { %2184 = vmatpush3.bf16.msra.mxu0 %v2377_v25  ;;  %v1043_v25 = vrot.slane %v1041_v22, 3 }
  0x2e   : > { %2196 = vmatpush3.bf16.msra.mxu1 %v2378_v29  ;;  %2185 = vmatprep.subr.bf16.mxu0 %v2451_v2 }
  0x2f   : > { %2197 = vmatprep.subr.bf16.mxu1 %v2451_v2  ;;  %v1044_v29 = vor.u32 %v1043_v25, %v1040_v24 }
  0x31   : > { %2186 = vmatpush3.bf16.msra.mxu0 %v2379_v31  ;;  %v2413_v31 = vld [vmem:[%s2889_s2 + $0x158] sm:$0xff]  }
  0x32   : > { %2198 = vmatpush3.bf16.msra.mxu1 %v2380_v34  ;;  %2203 = vmatprep.subr.bf16.mxu0 %v2451_v2  ;;  %v2421_v34 = vld [vmem:[%s2508_s7 + $0x4] sm:$0x1f]  }
  0x33   : > { %2215 = vmatprep.subr.bf16.mxu1 %v2451_v2  ;;  %v1278_v40 = vshrl.u32 %v2421_v34, 16 }
  0x34   : > { %2188 = vmatmul.mubr.msk.bf16.vlgmr.msra.gmra.mxu0 %vm309_vm2, %v436_v35  ;;  %v2416_v35 = vld [vmem:[%s2889_s2 + $0x170] sm:$0xff]  }
  0x35   : > { %2200 = vmatmul.mubr.msk.bf16.vlgmr.msra.gmra.mxu1 %vm309_vm2, %v525_v38  ;;  %2204 = vmatpush3.bf16.msra.mxu0 %v2383_v36  ;;  %v2417_v36 = vld [vmem:[%s2889_s2 + $0x148] sm:$0xff]  }
  0x36   : > { %2216 = vmatpush3.bf16.msra.mxu1 %v2384_v37  ;;  %2205 = vmatprep.subr.bf16.mxu0 %v2451_v2  ;;  %v1280_v37 = vshll.u32 %v2421_v34, 16  ;;  %v2418_v38 = vld [vmem:[%s2889_s2 + $0x168] sm:$0xff]  }
  0x37   : > { %2217 = vmatprep.subr.bf16.mxu1 %v2451_v2  ;;  %2211 = vmatprep.mubr.msk.bf16.mxu0 %vm2452_vm1, %v2451_v2 }
  0x38   : > { %2223 = vmatprep.mubr.msk.bf16.mxu1 %vm2452_vm1, %v2451_v2 }
  0x39   : > { %2206 = vmatpush3.bf16.msra.mxu0 %v2385_v41  ;;  %v1282_v41 = vrot.slane %v1280_v37, 1 }
  0x3a   : > { %2218 = vmatpush3.bf16.msra.mxu1 %v2386_v43  ;;  %2207 = vmatprep.subr.bf16.mxu0 %v2451_v2  ;;  %v1183_v43 = vld [vmem:[%s2508_s7 + $0x4] sm:$0xf] }
  0x3b   : > { %2219 = vmatprep.subr.bf16.mxu1 %v2451_v2 }
  0x3d   : > { %2208 = vmatpush3.bf16.msra.mxu0 %v2387_v44  ;;  %v1283_v44 = vor.u32 %v1282_v41, %v1278_v40 }
  0x3e   : > { %2220 = vmatpush3.bf16.msra.mxu1 %v2388_v47  ;;  %2209 = vmatprep.subr.bf16.mxu0 %v2451_v2  ;;  %v1388_v47 = vld [vmem:[%s2508_s7] sm:$0xc] }
  0x3f   : > { %2221 = vmatprep.subr.bf16.mxu1 %v2451_v2 }
  0x41   : > { %2210 = vmatpush3.bf16.msra.mxu0 %v2389_v48  ;;  %v1389_v48 = vld [vmem:[%s2508_s7 + $0x4] sm:$0x7] }
  0x42   : > { %2222 = vmatpush3.bf16.msra.mxu1 %v2390_v52  ;;  %2227 = vmatprep.subr.bf16.mxu0 %v2451_v2  ;;  %v2034_v50 = vcombine.low %v1388_v47, %v1389_v48  ;;  %v2426_v52 = vld [vmem:[%s2889_s2 + $0x1a8] sm:$0xff]  }
  0x43   : > { %2239 = vmatprep.subr.bf16.mxu1 %v2451_v2 }
  0x44   : > { %2212 = vmatmul.mubr.msk.bf16.vlgmr.msra.gmra.mxu0 %vm309_vm2, %v656_v53  ;;  %v1399_v53 = vld [vmem:[%s2508_s7] sm:$0x8]  ;;  %v1489_v55 = vshll.u32 %v2034_v50, 16 }
  0x45   : > { %2224 = vmatmul.mubr.msk.bf16.vlgmr.msra.gmra.mxu1 %vm309_vm2, %v733_v56  ;;  %2228 = vmatpush3.bf16.msra.mxu0 %v2393_v54  ;;  %v1486_v54 = vshrl.u32 %v2034_v50, 16  ;;  %v2427_v56 = vld [vmem:[%s2889_s2 + $0x188] sm:$0xff]   ;;  %v2028_v57 = vcombine.low %v1399_v53, %v1389_v48 }
  0x46   : > { %2240 = vmatpush3.bf16.msra.mxu1 %v2394_v58  ;;  %2229 = vmatprep.subr.bf16.mxu0 %v2451_v2  ;;  %v2428_v58 = vld [vmem:[%s2889_s2 + $0x1a0] sm:$0xff]  }
  0x47   : > { %2241 = vmatprep.subr.bf16.mxu1 %v2451_v2  ;;  %2235 = vmatprep.mubr.msk.bf16.mxu0 %vm2452_vm1, %v2451_v2  ;;  %v1488_v59 = vrot.slane %v1486_v54, 2  ;;  %v1414_v62 = vrot.slane %v2028_v57, 3 }
  0x48   : > { %2247 = vmatprep.mubr.msk.bf16.mxu1 %vm2452_vm1, %v2451_v2 }
  0x49   : > { %2230 = vmatpush3.bf16.msra.mxu0 %v2395_v60  ;;  %v1491_v60 = vrot.slane %v1489_v55, 3 }
  0x4a   : > { %2242 = vmatpush3.bf16.msra.mxu1 %v2396_v61  ;;  %2231 = vmatprep.subr.bf16.mxu0 %v2451_v2  ;;  %v2429_v61 = vld [vmem:[%s2889_s2 + $0x180] sm:$0xff]  }
  0x4b   : > { %2243 = vmatprep.subr.bf16.mxu1 %v2451_v2  ;;  %v1492_v63 = vor.u32 %v1491_v60, %v1488_v59 }
  0x4d   : > { %2232 = vmatpush3.bf16.msra.mxu0 %v2397_v1  ;;  %v1560_v1 = vld [vmem:[%s2508_s7 + $0x4] sm:$0xf] }
  0x4e   : > { %2244 = vmatpush3.bf16.msra.mxu1 %v2398_v3  ;;  %2233 = vmatprep.subr.bf16.mxu0 %v2451_v2  ;;  %v1561_v3 = vld [vmem:[%s2508_s7 + $0x8] sm:$0x1] }
  0x4f   : > { %2245 = vmatprep.subr.bf16.mxu1 %v2451_v2 }
  0x51   : > { %2234 = vmatpush3.bf16.msra.mxu0 %v2399_v5  ;;  %v2048_v5 = vcombine.low %v1560_v1, %v1561_v3 }
  0x52   : > { %2246 = vmatpush3.bf16.msra.mxu1 %v2400_v8  ;;  %2251 = vmatprep.subr.bf16.mxu0 %v2451_v2 }
  0x53   : > { %2263 = vmatprep.subr.bf16.mxu1 %v2451_v2  ;;  %v1579_v8 = vshll.u32 %v2048_v5, 16  ;;  %v1577_v12 = vshrl.u32 %v2048_v5, 16 }
  0x54   : > { %2236 = vmatmul.mubr.msk.bf16.vlgmr.msra.gmra.mxu0 %vm309_vm2, %v824_v11  ;;  %v1651_v11 = vld [vmem:[%s2508_s7 + $0x4] sm:$0xe] }
  0x55   : > { %2248 = vmatmul.mubr.msk.bf16.vlgmr.msra.gmra.mxu1 %vm309_vm2, %v906_v9  ;;  %2252 = vmatpush3.bf16.msra.mxu0 %v2403_v10  ;;  %v2436_v9 = vld [vmem:[%s2889_s2 + $0x1c8] sm:$0xff]   ;;  %v1581_v13 = vrot.slane %v1579_v8, 1  ;;  %v2062_v15 = vcombine.low %v1651_v11, %v1561_v3 }
  0x56   : > { %2264 = vmatpush3.bf16.msra.mxu1 %v2404_v14  ;;  %2253 = vmatprep.subr.bf16.mxu0 %v2451_v2  ;;  %v2437_v10 = vld [vmem:[%s2889_s2 + $0x1e8] sm:$0xff]   ;;  %v2438_v14 = vld [vmem:[%s2889_s2 + $0x1c0] sm:$0xff]  }
  0x57   : > { %2265 = vmatprep.subr.bf16.mxu1 %v2451_v2  ;;  %2259 = vmatprep.mubr.msk.bf16.mxu0 %vm2452_vm1, %v2451_v2 }
  0x58   : > { %2271 = vmatprep.mubr.msk.bf16.mxu1 %vm2452_vm1, %v2451_v2 }
  0x59   : > { %2254 = vmatpush3.bf16.msra.mxu0 %v2405_v17  ;;  %v1582_v17 = vor.u32 %v1581_v13, %v1577_v12 }
  0x5a   : > { %2266 = vmatpush3.bf16.msra.mxu1 %v2406_v18  ;;  %2255 = vmatprep.subr.bf16.mxu0 %v2451_v2  ;;  %v1664_v18 = vrot.slane %v2062_v15, 1 }
  0x5b   : > { %2267 = vmatprep.subr.bf16.mxu1 %v2451_v2 }
  0x5d   : > { %2256 = vmatpush3.bf16.msra.mxu0 %v2407_v19 }
  0x5e   : > { %2268 = vmatpush3.bf16.msra.mxu1 %v2408_v20  ;;  %2257 = vmatprep.subr.bf16.mxu0 %v2451_v2 }
  0x5f   : > { %2269 = vmatprep.subr.bf16.mxu1 %v2451_v2 }
  0x61   : > { %2258 = vmatpush3.bf16.msra.mxu0 %v2409_v26 }
  0x62   : > { %2270 = vmatpush3.bf16.msra.mxu1 %v2410_v28  ;;  %2275 = vmatprep.subr.bf16.mxu0 %v2451_v2 }
  0x63   : > { %2287 = vmatprep.subr.bf16.mxu1 %v2451_v2 }
  0x64   : > { %2260 = vmatmul.mubr.msk.bf16.vlgmr.msra.gmra.mxu0 %vm309_vm2, %v1044_v29 }
  0x65   : > { %2272 = vmatmul.mubr.msk.bf16.vlgmr.msra.gmra.mxu1 %vm309_vm2, %v1115_v30  ;;  %2276 = vmatpush3.bf16.msra.mxu0 %v2413_v31  ;;  %v2848_v30 = vld [vmem:[%s2890_s3] ss:$0 sm:$0xff] }
  0x66   : > { %2288 = vmatpush3.bf16.msra.mxu1 %v2414_v32  ;;  %2277 = vmatprep.subr.bf16.mxu0 %v2451_v2 }
  0x67   : > { %2289 = vmatprep.subr.bf16.mxu1 %v2451_v2  ;;  %2283 = vmatprep.mubr.msk.bf16.mxu0 %vm2452_vm1, %v2451_v2 }
  0x68   : > { %2295 = vmatprep.mubr.msk.bf16.mxu1 %vm2452_vm1, %v2451_v2 }
  0x69   : > { %2278 = vmatpush3.bf16.msra.mxu0 %v2415_v33 }
  0x6a   : > { %2290 = vmatpush3.bf16.msra.mxu1 %v2416_v35  ;;  %2279 = vmatprep.subr.bf16.mxu0 %v2451_v2 }
  0x6b   : > { %2291 = vmatprep.subr.bf16.mxu1 %v2451_v2 }
  0x6d   : > { %2280 = vmatpush3.bf16.msra.mxu0 %v2417_v36 }
  0x6e   : > { %2292 = vmatpush3.bf16.msra.mxu1 %v2418_v38  ;;  %2281 = vmatprep.subr.bf16.mxu0 %v2451_v2 }
  0x6f   : > { %2293 = vmatprep.subr.bf16.mxu1 %v2451_v2 }
  0x71   : > { %2282 = vmatpush3.bf16.msra.mxu0 %v2419_v39 }
  0x72   : > { %2294 = vmatpush3.bf16.msra.mxu1 %v2420_v42  ;;  %2299 = vmatprep.subr.bf16.mxu0 %v2451_v2 }
  0x73   : > { %2311 = vmatprep.subr.bf16.mxu1 %v2451_v2 }
  0x74   : > { %2284 = vmatmul.mubr.msk.bf16.vlgmr.msra.gmra.mxu0 %vm309_vm2, %v1183_v43 }
  0x75   : > { %2296 = vmatmul.mubr.msk.bf16.vlgmr.msra.gmra.mxu1 %vm309_vm2, %v1283_v44  ;;  %2300 = vmatpush3.bf16.msra.mxu0 %v2422_v45 }
  0x76   : > { %2312 = vmatpush3.bf16.msra.mxu1 %v2423_v46  ;;  %2301 = vmatprep.subr.bf16.mxu0 %v2451_v2 }
  0x77   : > { %2313 = vmatprep.subr.bf16.mxu1 %v2451_v2  ;;  %2307 = vmatprep.mubr.msk.bf16.mxu0 %vm2452_vm1, %v2451_v2 }
  0x78   : > { %2319 = vmatprep.mubr.msk.bf16.mxu1 %vm2452_vm1, %v2451_v2 }
  0x79   : > { %2302 = vmatpush3.bf16.msra.mxu0 %v2424_v49 }
  0x7a   : > { %2314 = vmatpush3.bf16.msra.mxu1 %v2425_v51  ;;  %2303 = vmatprep.subr.bf16.mxu0 %v2451_v2 }
  0x7b   : > { %2315 = vmatprep.subr.bf16.mxu1 %v2451_v2 }
  0x7d   : > { %2304 = vmatpush3.bf16.msra.mxu0 %v2426_v52 }
  0x7e   : > { %2316 = vmatpush3.bf16.msra.mxu1 %v2427_v56  ;;  %2305 = vmatprep.subr.bf16.mxu0 %v2451_v2 }
  0x7f   : > { %2317 = vmatprep.subr.bf16.mxu1 %v2451_v2 }
  0x81   : > { %2306 = vmatpush3.bf16.msra.mxu0 %v2428_v58 }
  0x82   : > { %2318 = vmatpush3.bf16.msra.mxu1 %v2429_v61  ;;  %2323 = vmatprep.subr.bf16.mxu0 %v2451_v2 }
  0x83   : > { %2335 = vmatprep.subr.bf16.mxu1 %v2451_v2 }
  0x84   : > { %2308 = vmatmul.mubr.msk.bf16.vlgmr.msra.gmra.mxu0 %vm309_vm2, %v1414_v62 }
  0x85   : > { %2320 = vmatmul.mubr.msk.bf16.vlgmr.msra.gmra.mxu1 %vm309_vm2, %v1492_v63  ;;  %2324 = vmatpush3.bf16.msra.mxu0 %v2432_v0 }
  0x86   : > { %2336 = vmatpush3.bf16.msra.mxu1 %v2433_v4  ;;  %2325 = vmatprep.subr.bf16.mxu0 %v2451_v2 }
  0x87   : > { %2337 = vmatprep.subr.bf16.mxu1 %v2451_v2  ;;  %2331 = vmatprep.mubr.msk.bf16.mxu0 %vm2452_vm1, %v2451_v2 }
  0x88   : > { %2343 = vmatprep.mubr.msk.bf16.mxu1 %vm2452_vm1, %v2451_v2 }
  0x89   : > { %2326 = vmatpush3.bf16.msra.mxu0 %v2434_v6 }
  0x8a   : > { %2338 = vmatpush3.bf16.msra.mxu1 %v2435_v7  ;;  %2327 = vmatprep.subr.bf16.mxu0 %v2451_v2 }
  0x8b   : > { %2339 = vmatprep.subr.bf16.mxu1 %v2451_v2 }
  0x8d   : > { %2328 = vmatpush3.bf16.msra.mxu0 %v2436_v9 }
  0x8e   : > { %2340 = vmatpush3.bf16.msra.mxu1 %v2437_v10  ;;  %2329 = vmatprep.subr.bf16.mxu0 %v2451_v2 }
  0x8f   : > { %2341 = vmatprep.subr.bf16.mxu1 %v2451_v2 }
  0x91   : > { %2330 = vmatpush3.bf16.msra.mxu0 %v2438_v14 }
  0x92   : > { %2342 = vmatpush3.bf16.msra.mxu1 %v2439_v16 }
  0x94   : > { %2332 = vmatmul.mubr.msk.bf16.vlgmr.msra.gmra.mxu0 %vm309_vm2, %v1582_v17 }
  0x95   : > { %2344 = vmatmul.mubr.msk.bf16.vlgmr.msra.gmra.mxu1 %vm309_vm2, %v1664_v18 }
  0xe4   : > { %v347_v19 = vpop.f32.mrf.mxu0 }
  0xe5   : > { %v414_v20 = vpop.f32.mrf.mxu1 }
  0xe6   : > { %v2165_v21 = vpop.f32.mrf.mxu0  ;;  %v415_v27 = vadd.f32 %v414_v20, %v347_v19 }
  0xe7   : > { %v2177_v22 = vpop.f32.mrf.mxu1 }
  0xe8   : > { %v350_v23 = vpop.f32.mrf.mxu0 }
  0xe9   : > { %v417_v24 = vpop.f32.mrf.mxu1  ;;  %v609_v23 = vpop.permute.xlu0 %608 }
  0xea   : > { %v2166_v25 = vpop.f32.mrf.mxu0 }
  0xeb   : > { %v2178_v26 = vpop.f32.mrf.mxu1 }
  0xf4   : > { %v498_v28 = vpop.f32.mrf.mxu0 }
  0xf5   : > { %v504_v2 = vadd.f32 %v498_v28, %v415_v27  ;;  %v587_v29 = vpop.f32.mrf.mxu1 }
  0xf6   : > { %v2189_v31 = vpop.f32.mrf.mxu0 }
  0xf7   : > { %v593_v32 = vadd.f32 %v587_v29, %v504_v2  ;;  %v2201_v33 = vpop.f32.mrf.mxu1 }
  0xf8   : > { %v501_v34 = vpop.f32.mrf.mxu0 }
  0xf9   : > { %v601_v35 = vadd.f32 %v2848_v30, %v593_v32  ;;  %v590_v36 = vpop.f32.mrf.mxu1 }
  0xfa   : > { %v2190_v37 = vpop.f32.mrf.mxu0 }
  0xfb   : > { %v2851_v38 = vmax.f32 %v601_v35, 0.0  ;;  %v2202_v39 = vpop.f32.mrf.mxu1 }
  0xfd   : > { %v603_v40 = vpack.c.bf16 %v2851_v38, %v2851_v38  ;;  %v611_v28 = vmul.f32 %v609_v23, %v2851_v38 }
  0xff   : > { %605 = vst.msk [vmem:[%s2503_s28] sm:$0xf] %vm604_vm3, %v603_v40  ;;  %v621_v35 = vmul.f32 %v611_v28, %v2851_v38  ;;  %v613_v39 = vsel %vm612_vm4, %v611_v28, 0.0 }
 0x104   : > { %v718_v41 = vpop.f32.mrf.mxu0 }
 0x105   : > { %v795_v42 = vpop.f32.mrf.mxu1 }
 0x106   : > { %v2213_v43 = vpop.f32.mrf.mxu0  ;;  %v796_v49 = vadd.f32 %v795_v42, %v718_v41  ;;  %v622_v42 = vsel %vm612_vm4, %v621_v35, 0.0 }
 0x107   : > { %v2225_v44 = vpop.f32.mrf.mxu1 }
 0x108   : > { %v721_v45 = vpop.f32.mrf.mxu0  ;;  %v614_v44 = vrot.slane %v613_v39, 4 }
 0x109   : > { %v798_v46 = vpop.f32.mrf.mxu1 }
 0x10a   : > { %v2214_v47 = vpop.f32.mrf.mxu0 }
 0x10b   : > { %v2226_v48 = vpop.f32.mrf.mxu1 }
 0x10c   : > { %v623_v48 = vrot.slane %v622_v42, 4 }
 0x114   : > { %v886_v50 = vpop.f32.mrf.mxu0 }
 0x115   : > { %v892_v51 = vadd.f32 %v886_v50, %v796_v49  ;;  %v968_v52 = vpop.f32.mrf.mxu1 }
 0x116   : > { %v2237_v53 = vpop.f32.mrf.mxu0 }
 0x117   : > { %v974_v54 = vadd.f32 %v968_v52, %v892_v51  ;;  %v2249_v55 = vpop.f32.mrf.mxu1  ;;  %v615_v52 = vadd.f32 %v614_v44, %v613_v39 }
 0x118   : > { %v889_v56 = vpop.f32.mrf.mxu0 }
 0x119   : > { %v982_v57 = vadd.f32 %v2848_v30, %v974_v54  ;;  %v971_v58 = vpop.f32.mrf.mxu1 }
 0x11a   : > { %v2238_v59 = vpop.f32.mrf.mxu0  ;;  %v624_v58 = vadd.f32 %v623_v48, %v622_v42  ;;  %v1769_v48 = vld [vmem:[%s2892_s5] sm:$0x1] }
 0x11b   : > { %v983_v60 = vmax.f32 %v982_v57, 0.0  ;;  %v2250_v61 = vpop.f32.mrf.mxu1 }
 0x11d   : > { %v2072_v62 = vpack.c.bf16 %v983_v60, %v983_v60  ;;  %v993_v26 = vmul.f32 %v983_v60, %v609_v23 }
 0x11f   : > { %988 = vrot.lane.b32.xlu0 %v2072_v62, %s2454_s17  ;;  %v1002_v33 = vmul.f32 %v993_v26, %v983_v60  ;;  %v994_v36 = vsel %vm612_vm4, %v993_v26, 0.0 }
 0x120   : > { %v995_v43 = vrot.slane %v994_v36, 4 }
 0x121   : > { %v1003_v40 = vsel %vm612_vm4, %v1002_v33, 0.0 }
 0x122   : > { %v1004_v46 = vrot.slane %v1003_v40, 4  ;;  %v996_v38 = vadd.f32 %v995_v43, %v994_v36 }
 0x124   : > { %v1106_v63 = vpop.f32.mrf.mxu0  ;;  %v1005_v55 = vadd.f32 %v1004_v46, %v1003_v40  ;;  %v997_v61 = vrot.slane %v996_v38, 2 }
 0x125   : > { %v1177_v0 = vpop.f32.mrf.mxu1 }
 0x126   : > { %v2261_v1 = vpop.f32.mrf.mxu0  ;;  %v1178_v8 = vadd.f32 %v1177_v0, %v1106_v63  ;;  %v616_v0 = vrot.slane %v615_v52, 2 }
 0x127   : > { %v2273_v3 = vpop.f32.mrf.mxu1 }
 0x128   : > { %v1109_v4 = vpop.f32.mrf.mxu0 }
 0x129   : > { %v1180_v5 = vpop.f32.mrf.mxu1  ;;  %v1006_v4 = vrot.slane %v1005_v55, 2 }
 0x12a   : > { %v2262_v6 = vpop.f32.mrf.mxu0 }
 0x12b   : > { %v2274_v7 = vpop.f32.mrf.mxu1 }
 0x12c   : > { %v625_v7 = vrot.slane %v624_v58, 2 }
 0x134   : > { %v1254_v9 = vpop.f32.mrf.mxu0 }
 0x135   : > { %v1260_v10 = vadd.f32 %v1254_v9, %v1178_v8  ;;  %v1345_v11 = vpop.f32.mrf.mxu1 }
 0x136   : > { %v2285_v12 = vpop.f32.mrf.mxu0 }
 0x137   : > { %v1351_v13 = vadd.f32 %v1345_v11, %v1260_v10  ;;  %v2297_v14 = vpop.f32.mrf.mxu1  ;;  %v998_v10 = vadd.f32 %v997_v61, %v996_v38  ;;  %v617_v12 = vadd.f32 %v616_v0, %v615_v52 }
 0x138   : > { %v1257_v15 = vpop.f32.mrf.mxu0 }
 0x139   : > { %v1359_v16 = vadd.f32 %v2848_v30, %v1351_v13  ;;  %v1348_v17 = vpop.f32.mrf.mxu1  ;;  %v1007_v15 = vadd.f32 %v1006_v4, %v1005_v55 }
 0x13a   : > { %v2286_v18 = vpop.f32.mrf.mxu0  ;;  %v626_v17 = vadd.f32 %v625_v7, %v624_v58 }
 0x13b   : > { %v1360_v19 = vmax.f32 %v1359_v16, 0.0  ;;  %v2298_v20 = vpop.f32.mrf.mxu1 }
 0x13d   : > { %v2073_v21 = vpack.c.bf16 %v1360_v19, %v1360_v19  ;;  %v1370_v29 = vmul.f32 %v1360_v19, %v609_v23 }
 0x13f   : > { %1365 = vrot.lane.b32.xlu1 %v2073_v21, %s2455_s18  ;;  %v1379_v37 = vmul.f32 %v1370_v29, %v1360_v19  ;;  %v1371_v41 = vsel %vm612_vm4, %v1370_v29, 0.0 }
 0x140   : > { %v1372_v47 = vrot.slane %v1371_v41, 4 }
 0x141   : > { %v1380_v45 = vsel %vm612_vm4, %v1379_v37, 0.0 }
 0x142   : > { %v1381_v50 = vrot.slane %v1380_v45, 4  ;;  %v1373_v56 = vadd.f32 %v1372_v47, %v1371_v41 }
 0x144   : > { %v1476_v22 = vpop.f32.mrf.mxu0  ;;  %v1382_v62 = vadd.f32 %v1381_v50, %v1380_v45  ;;  %v1374_v5 = vrot.slane %v1373_v56, 2 }
 0x145   : > { %v1554_v24 = vpop.f32.mrf.mxu1 }
 0x146   : > { %v2309_v25 = vpop.f32.mrf.mxu0  ;;  %v1555_v49 = vadd.f32 %v1554_v24, %v1476_v22  ;;  %v1383_v11 = vrot.slane %v1382_v62, 2  ;;  %v1375_v16 = vadd.f32 %v1374_v5, %v1373_v56  ;;  %v618_v22 = vrot.slane %v617_v12, 1 }
 0x147   : > { %v2321_v27 = vpop.f32.mrf.mxu1  ;;  %v1008_v25 = vrot.slane %v1007_v15, 1 }
 0x148   : > { %v1479_v2 = vpop.f32.mrf.mxu0  ;;  %v1384_v20 = vadd.f32 %v1383_v11, %v1382_v62  ;;  %v1376_v26 = vrot.slane %v1375_v16, 1  ;;  %v619_v33 = vadd.f32 %v618_v22, %v617_v12 }
 0x149   : > { %v1557_v31 = vpop.f32.mrf.mxu1 }
 0x14a   : > { %v2310_v32 = vpop.f32.mrf.mxu0  ;;  %v1385_v29 = vrot.slane %v1384_v20, 1  ;;  %v1377_v35 = vadd.f32 %v1376_v26, %v1375_v16 }
 0x14b   : > { %v2322_v34 = vpop.f32.mrf.mxu1 }
 0x14c   : > { %v1009_v34 = vadd.f32 %v1008_v25, %v1007_v15  ;;  %v1386_v41 = vadd.f32 %v1385_v29, %v1384_v20 }
 0x154   : > { %v1644_v51 = vpop.f32.mrf.mxu0 }
 0x155   : > { %v1650_v53 = vadd.f32 %v1644_v51, %v1555_v49  ;;  %v1726_v54 = vpop.f32.mrf.mxu1  ;;  %v1773_v51 = vld [vmem:[%s2893_s6] sm:$0x1] }
 0x156   : > { %v2333_v57 = vpop.f32.mrf.mxu0 }
 0x157   : > { %v1732_v59 = vadd.f32 %v1726_v54, %v1650_v53  ;;  %v2345_v60 = vpop.f32.mrf.mxu1 }
 0x158   : > { %v1647_v63 = vpop.f32.mrf.mxu0 }
 0x159   : > { %v1740_v1 = vadd.f32 %v2848_v30, %v1732_v59  ;;  %v1729_v3 = vpop.f32.mrf.mxu1  ;;  %v999_v30 = vrot.slane %v998_v10, 1 }
 0x15a   : > { %v2334_v6 = vpop.f32.mrf.mxu0 }
 0x15b   : > { %v1741_v8 = vmax.f32 %v1740_v1, 0.0  ;;  %v2346_v9 = vpop.f32.mrf.mxu1  ;;  %v1000_v2 = vadd.f32 %v999_v30, %v998_v10 }
 0x15d   : > { %v1751_v13 = vmul.f32 %v1741_v8, %v609_v23  ;;  %v2074_v14 = vpack.c.bf16 %v1741_v8, %v1741_v8  ;;  %v627_v23 = vrot.slane %v626_v17, 1  ;;  %v1001_v40 = vadd.f32 %v1000_v2, %v619_v33 }
 0x15f   : > { %v1752_v18 = vsel %vm612_vm4, %v1751_v13, 0.0  ;;  %v1760_v19 = vmul.f32 %v1751_v13, %v1741_v8  ;;  %1746 = vrot.lane.b32.xlu1 %v2074_v14, %s2456_s19  ;;  %v628_v39 = vadd.f32 %v627_v23, %v626_v17  ;;  %v1378_v45 = vadd.f32 %v1377_v35, %v1001_v40 }
 0x160   : > { %v1753_v21 = vrot.slane %v1752_v18, 4 }
 0x161   : > { %v1761_v24 = vsel %vm612_vm4, %v1760_v19, 0.0  ;;  %v1010_v44 = vadd.f32 %v1009_v34, %v628_v39 }
 0x162   : > { %v1754_v27 = vadd.f32 %v1753_v21, %v1752_v18  ;;  %v1762_v28 = vrot.slane %v1761_v24, 4 }
 0x163   : > { %v1387_v49 = vadd.f32 %v1386_v41, %v1010_v44 }
 0x164   : > { %v1755_v31 = vrot.slane %v1754_v27, 2  ;;  %v1763_v32 = vadd.f32 %v1762_v28, %v1761_v24 }
 0x166   : > { %v1756_v36 = vadd.f32 %v1755_v31, %v1754_v27  ;;  %v1764_v37 = vrot.slane %v1763_v32, 2 }
 0x168   : > { %v1757_v42 = vrot.slane %v1756_v36, 1  ;;  %v1765_v43 = vadd.f32 %v1764_v37, %v1763_v32 }
 0x16a   : > { %v1758_v46 = vadd.f32 %v1757_v42, %v1756_v36  ;;  %v1766_v47 = vrot.slane %v1765_v43, 1 }
 0x16c   : > { %v1759_v38 = vadd.f32 %v1758_v46, %v1378_v45  ;;  %v1767_v50 = vadd.f32 %v1766_v47, %v1765_v43 }
 0x16e   : > { %v1768_v52 = vadd.f32 %v1767_v50, %v1387_v49  ;;  %v1770_v53 = vadd.f32 %v1769_v48, %v1759_v38 }
 0x170   : > { %1772 = vst.msk [vmem:[%s2892_s5] sm:$0x1] %vm1771_vm5, %v1770_v53  ;;  %v1774_v54 = vadd.f32 %v1773_v51, %v1768_v52 }
 0x172   : > { %1775 = vst.msk [vmem:[%s2893_s6] sm:$0x1] %vm1771_vm5, %v1774_v54 }
 0x191   : > { %v989_v55 = vpop.permute.xlu0 %988 }
 0x192   : > { %992 = vst.msk [vmem:[%s2503_s28] sm:$0xf] %vm991_vm6, %v989_v55 }
 0x1b1   : > { %v1366_v56 = vpop.permute.xlu1 %1365 }
 0x1b2   : > { %1369 = vst.msk [vmem:[%s2503_s28] sm:$0xf] %vm1368_vm7, %v1366_v56 }
 0x1d1   : > { %v1747_v57 = vpop.permute.xlu1 %1746 }
 0x1d2   : > { %1750 = vst.msk [vmem:[%s2503_s28] sm:$0xf] %vm1749_vm8, %v1747_v57 }
 0x1d3 PF: > { %s17_s21 = sadd.s32 1, %s2448_s21  }
 0x1d4   : > { %p14_p5 = scmp.ge.s32.totalorder %s17_s21, 4  }
 0x1d6   :  { %16 = sbr.rel (!%p14_p5) target bundleno = 1 (0x1), region = 101 }

// kernel: generator_forward.7
= control target key start
LH: loop header
LB: loop body
LE: loop exit
PB: predicated region body
PF: predicated region fallthrough
CT: control target
= control target key end

     0   :  { %s2546_s21 = smov 0   ;;  %s2899_s0 = inlined_call_operand.vmem [shape: f32[24,1], index: 0, kind: input, shape index: {}]   ;;  %s2900_s1 = inlined_call_operand.vmem [shape: bf16[2,42,32], index: 1, kind: input, shape index: {}]   ;;  %s2901_s2 = inlined_call_operand.vmem [shape: bf16[4,4,32,16], index: 2, kind: input, shape index: {}]   ;;  %s2902_s3 = inlined_call_operand.vmem [shape: f32[1,16], index: 3, kind: input, shape index: {}]   ;;  %s2903_s4 = inlined_call_operand.vmem [shape: bf16[2,24,64], index: 4, kind: output, shape index: {0}]   ;;  %s2904_s5 = inlined_call_operand.vmem [shape: f32[1,16], index: 5, kind: output, shape index: {1}]   ;;  %s2905_s6 = inlined_call_operand.vmem [shape: f32[1,16], index: 6, kind: output, shape index: {2}]  }
   0x1 LB: > { %s2043_s22 = sadd.s32 4294967295, %s2504_s21   ;;  %p2047_p0 = scmp.ge.s32.totalorder %s2504_s21, 1  ;;  %s2504_s21 = sphi %s2546_s21, %s17_s21  }
   0x2   : > { %p207_p1 = scmp.lt.s32.totalorder %s2504_s21, 3 }
   0x4   : > { %p208_p2 = pnand %p2047_p0, %p207_p1 }
   0x5   : > { %p237_p3 = scmp.lt.s32.totalorder (!%p208_p2), %s2043_s22, 1  ;;  %p2050_p4 = scmp.ne.s32.totalorder (!%p208_p2), %s2043_s22, 0 }
   0x6   : > { %211 = sbr.rel (%p208_p2) target bundleno = 413 (0x19d), region = 36 }
   0xb   : > { %s238_s23 = scalar_select %p237_p3, %s2043_s22, 1 }
   0xc   : > { %251 = sbr.rel (%p2050_p4) target bundleno = 19 (0x13), region = 40 }
   0xd   : > { %s2423_s24 = smul.u32 24, %s238_s23 }
   0xe   : > { %s2424_s25 = smul.u32 12, %s238_s23 }
   0xf   : > { %s2557_s28 = scalar_lea.vmem %s2900_s1, %s2423_s24 }
  0x10   : > { %s2562_s7 = scalar_lea.vmem %s2903_s4, %s2424_s25 }
  0x11   : > { %vm252_vm0 = vcmask 122880   ;;  %v2506_v0 = vmov 0.0  }
  0x12   : > { %253 = vst.msk [vmem:[%s2904_s5] sm:$0x1] %vm252_vm0, %v2506_v0  ;;  %254 = vst.msk [vmem:[%s2905_s6] sm:$0x1] %vm252_vm0, %v2506_v0 }
  0x13 PF: > { %v2440_v1 = vld [vmem:[%s2901_s2 + $0x18] sm:$0xff]   ;;  %v2441_v2 = vld [vmem:[%s2901_s2 + $0x8] sm:$0xff]   ;;  %v2442_v3 = vld [vmem:[%s2901_s2 + $0x10] sm:$0xff]   ;;  %vm309_vm1 = vcmask 261120   ;;  %vm281_vm2 = vsmask.f32 7424 }
  0x14   : > { %2295 = vmatprep.subr.bf16.mxu0 %v2440_v1  ;;  %2303 = vmatprep.subr.bf16.mxu1 %v2441_v2  ;;  %v2443_v4 = vld [vmem:[%s2901_s2] sm:$0xff]   ;;  %v260_v7 = vld [vmem:[%s2557_s28 + $0x8] sm:$0xf]  ;;  %v265_v8 = vld [vmem:[%s2557_s28 + $0xc] sm:$0x1]  ;;  %v2507_v20 = vmov 0  }
  0x15   : > { %2296 = vmatpush3.bf16.msra.mxu0 %v2440_v1  ;;  %2304 = vmatpush3.bf16.msra.mxu1 %v2441_v2  ;;  %v258_v5 = vld [vmem:[%s2557_s28] sm:$0xf]  ;;  %v259_v6 = vld [vmem:[%s2557_s28 + $0x4] sm:$0xf]  ;;  %v2056_v10 = vcombine.low %v260_v7, %v265_v8  ;;  %v2447_v11 = vld [vmem:[%s2901_s2 + $0x28] sm:$0xff]   ;;  %v2061_v14 = vcombine.low %v260_v7, %v260_v7  ;;  %vm443_vm3 = vcmask 1044480  }
  0x16   : > { %2297 = vmatprep.subr.bf16.mxu0 %v2442_v3  ;;  %2305 = vmatprep.subr.bf16.mxu1 %v2443_v4  ;;  %v2055_v9 = vcombine.low %v258_v5, %v259_v6  ;;  %v2448_v15 = vld [vmem:[%s2901_s2 + $0x38] sm:$0xff]   ;;  %v2450_v19 = vld [vmem:[%s2901_s2 + $0x30] sm:$0xff]   ;;  %v430_v22 = vld [vmem:[%s2557_s28] sm:$0x8]  ;;  %vm525_vm4 = vsmask.f32 4352 }
  0x17   : > { %v290_v16 = vshll.u32 %v2056_v10, 16  ;;  %v294_v17 = vshrl.u32 %v2056_v10, 16  ;;  %2439 = vset.pattern.permute.xlu1 %v2507_v20  ;;  %v431_v23 = vld [vmem:[%s2557_s28 + $0xc] sm:$0x7]  ;;  %2438 = vset.pattern.permute.xlu0 %v2507_v20  ;;  %v2070_v25 = vcombine.low %v430_v22, %v259_v6  ;;  %v2449_v31 = vld [vmem:[%s2901_s2 + $0x20] sm:$0xff]   ;;  %v2454_v44 = vld [vmem:[%s2901_s2 + $0x58] sm:$0xff]  }
  0x18   : > { %v283_v12 = vshrl.u32 %v2055_v9, 16  ;;  %v285_v13 = vshll.u32 %v2055_v9, 16  ;;  %2307 = vmatprep.mubr.msk.bf16.mxu1 %vm309_vm1, %v2055_v9  ;;  %v2071_v26 = vcombine.low %v260_v7, %v431_v23  ;;  %v516_v27 = vld [vmem:[%s2557_s28 + $0xc] sm:$0xf]  ;;  %v2614_v45 = vld [vmem:[%s2557_s28 + $0x4] sm:$0xf] }
  0x19   : > { %2298 = vmatpush3.bf16.msra.mxu0 %v2442_v3  ;;  %2306 = vmatpush3.bf16.msra.mxu1 %v2443_v4  ;;  %v292_v21 = vrot.slane %v290_v16, 1  ;;  %v2080_v29 = vcombine.low %v260_v7, %v516_v27  ;;  %v444_v32 = vrot.slane %v2070_v25, 3  ;;  %v527_v34 = vshrl.u32 %v2070_v25, 16  ;;  %v2455_v38 = vld [vmem:[%s2901_s2 + $0x48] sm:$0xff]   ;;  %v697_v48 = vld [vmem:[%s2557_s28] sm:$0xe] }
  0x1a   : > { %2311 = vmatprep.subr.bf16.mxu0 %v2447_v11  ;;  %v287_v18 = vrot.slane %v285_v13, 1  ;;  %2319 = vmatprep.subr.bf16.mxu1 %v2448_v15  ;;  %v445_v33 = vrot.slane %v2071_v26, 3  ;;  %v530_v35 = vshll.u32 %v2070_v25, 16  ;;  %v2618_v46 = vld [vmem:[%s2557_s28 + $0x8] sm:$0xf]  ;;  %v2097_v51 = vcombine.low %v697_v48, %v2614_v45  ;;  %v2457_v56 = vld [vmem:[%s2901_s2 + $0x40] sm:$0xff]  }
  0x1b   : > { %v296_v28 = vor.u32 %v294_v17, %v292_v21  ;;  %v535_v36 = vshrl.u32 %v2080_v29, 16  ;;  %v538_v37 = vshll.u32 %v2080_v29, 16  ;;  %v529_v40 = vrot.slane %v527_v34, 3  ;;  %v691_v47 = vld [vmem:[%s2557_s28 + $0xc] sm:$0x1]  ;;  %v2456_v60 = vld [vmem:[%s2901_s2 + $0x50] sm:$0xff]  }
  0x1c   : > { %v288_v24 = vor.u32 %v287_v18, %v283_v12  ;;  %2308 = vmatmul.mubr.msk.bf16.vlgmr.msra.gmra.mxu1 %vm309_vm1, %v2061_v14  ;;  %v446_v39 = vsel %vm443_vm3, %v444_v32, %v445_v33  ;;  %v532_v41 = vrot.slane %v530_v35, 4  ;;  %v2098_v52 = vcombine.low %v2618_v46, %v691_v47  ;;  %v688_v53 = vld [vmem:[%s2557_s28] sm:$0xf]  ;;  %v2461_v3 = vld [vmem:[%s2901_s2 + $0x68] sm:$0xff]   ;;  %v2462_v4 = vld [vmem:[%s2901_s2 + $0x78] sm:$0xff]   ;;  %s2508_s20 = smov 16  }
  0x1d   : > { %2320 = vmatpush3.bf16.msra.mxu1 %v2448_v15  ;;  %v537_v42 = vrot.slane %v535_v36, 3  ;;  %v540_v43 = vrot.slane %v538_v37, 4  ;;  %vm713_vm5 = vcmask 1046528   ;;  %v2103_v54 = vcombine.low %v688_v53, %v2614_v45  ;;  %v867_v5 = vld [vmem:[%s2557_s28] sm:$0x8]  ;;  %v2469_v34 = vld [vmem:[%s2901_s2 + $0x98] sm:$0xff]  }
  0x1e   : > { %v293_v30 = vsel %vm281_vm2, %v288_v24, %v292_v21  ;;  %2321 = vmatprep.subr.bf16.mxu1 %v2450_v19  ;;  %v533_v49 = vor.u32 %v532_v41, %v529_v40  ;;  %v714_v57 = vrot.slane %v2097_v51, 1  ;;  %v715_v58 = vrot.slane %v2098_v52, 1  ;;  %v2644_v6 = vld [vmem:[%s2557_s28 + $0xc] sm:$0xf]  ;;  %v2463_v17 = vld [vmem:[%s2901_s2 + $0x60] sm:$0xff]   ;;  %v2471_v51 = vld [vmem:[%s2901_s2 + $0x90] sm:$0xff]  }
  0x1f   : > { %2299 = vmatprep.mubr.msk.bf16.mxu0 %vm309_vm1, %v293_v30  ;;  %v541_v50 = vor.u32 %v540_v43, %v537_v42  ;;  %v794_v59 = vshll.u32 %v2098_v52, 16  ;;  %v787_v61 = vshrl.u32 %v2103_v54, 16  ;;  %v789_v62 = vshll.u32 %v2103_v54, 16  ;;  %v1110_v22 = vld [vmem:[%s2557_s28 + $0x8] sm:$0xf]  ;;  %v2472_v43 = vld [vmem:[%s2901_s2 + $0x80] sm:$0xff]  }
  0x20   : > { %2300 = vmatmul.mubr.msk.bf16.vlgmr.msra.gmra.mxu0 %vm309_vm1, %v296_v28  ;;  %v798_v63 = vshrl.u32 %v2098_v52, 16  ;;  %v716_v0 = vsel %vm713_vm5, %v714_v57, %v715_v58  ;;  %v2112_v7 = vcombine.low %v867_v5, %v2614_v45  ;;  %v2113_v8 = vcombine.low %v2618_v46, %v2644_v6  ;;  %v1117_v23 = vld [vmem:[%s2557_s28 + $0xc] sm:$0xf]  ;;  %v2473_v24 = vld [vmem:[%s2557_s28] sm:$0xf8]   ;;  %s2509_s22 = smov 32  }
  0x21   : > { %2312 = vmatpush3.bf16.msra.mxu0 %v2447_v11  ;;  %2322 = vmatpush3.bf16.msra.mxu1 %v2450_v19  ;;  %v542_v55 = vsel %vm525_vm4, %v533_v49, %v541_v50  ;;  %v796_v1 = vrot.slane %v794_v59, 1  ;;  %v791_v2 = vrot.slane %v789_v62, 1  ;;  %v2464_v11 = vld [vmem:[%s2901_s2 + $0x70] sm:$0xff]   ;;  %v2122_v27 = vcombine.low %v2614_v45, %v2618_v46  ;;  %v1111_v29 = vld [vmem:[%s2557_s28 + $0xc] sm:$0x7]  ;;  %v2477_v59 = vld [vmem:[%s2901_s2 + $0xb8] sm:$0xff]  }
  0x22   : > { %2313 = vmatprep.subr.bf16.mxu0 %v2449_v31  ;;  %2315 = vmatprep.mubr.msk.bf16.mxu0 %vm309_vm1, %v446_v39  ;;  %v881_v12 = vshrl.u32 %v2112_v7, 16  ;;  %v884_v13 = vshll.u32 %v2112_v7, 16  ;;  %v889_v14 = vshrl.u32 %v2113_v8, 16  ;;  %v892_v15 = vshll.u32 %v2113_v8, 16  ;;  %v2470_v35 = vld [vmem:[%s2901_s2 + $0x88] sm:$0xff]   ;;  %s2510_s23 = smov 48  }
  0x23   : > { %2335 = vmatprep.subr.bf16.mxu1 %v2455_v38  ;;  %2323 = vmatprep.mubr.msk.bf16.mxu1 %vm309_vm1, %v542_v55  ;;  %v792_v9 = vor.u32 %v791_v2, %v787_v61  ;;  %v800_v10 = vor.u32 %v798_v63, %v796_v1  ;;  %v2141_v28 = vcombine.low %v1110_v22, %v1117_v23  ;;  %v1134_v30 = vshrl.u32 %v2473_v24, 16  ;;  %v1290_v48 = vld [vmem:[%s2557_s28 + $0xc] sm:$0xf]  ;;  %v1291_v49 = vld [vmem:[%s2557_s28 + $0x10] sm:$0x3] }
  0x24   : > { %2324 = vmatmul.mubr.msk.bf16.vlgmr.msra.gmra.mxu1 %vm309_vm1, %v541_v50  ;;  %v883_v18 = vrot.slane %v881_v12, 3  ;;  %v886_v19 = vrot.slane %v884_v13, 4  ;;  %v891_v20 = vrot.slane %v889_v14, 3  ;;  %v894_v21 = vrot.slane %v892_v15, 4  ;;  %v2480_v50 = vld [vmem:[%s2557_s28 + $0x4] sm:$0xfc]  }
  0x25   : > { %2314 = vmatpush3.bf16.msra.mxu0 %v2449_v31  ;;  %2336 = vmatpush3.bf16.msra.mxu1 %v2455_v38  ;;  %v797_v16 = vsel %vm281_vm2, %v792_v9, %v796_v1  ;;  %v1137_v31 = vshll.u32 %v2473_v24, 16  ;;  %v2146_v32 = vcombine.low %v1110_v22, %v1111_v29  ;;  %v1142_v36 = vshrl.u32 %v2141_v28, 16  ;;  %v1380_v53 = vld [vmem:[%s2557_s28 + $0x10] sm:$0x7]  ;;  %v1542_v5 = vld [vmem:[%s2557_s28] sm:$0x8] }
  0x26   : > { %2327 = vmatprep.subr.bf16.mxu0 %v2454_v44  ;;  %2337 = vmatprep.subr.bf16.mxu1 %v2457_v56  ;;  %v887_v25 = vor.u32 %v886_v19, %v883_v18  ;;  %v895_v26 = vor.u32 %v894_v21, %v891_v20  ;;  %v1145_v37 = vshll.u32 %v2141_v28, 16  ;;  %v1136_v38 = vrot.slane %v1134_v30, 3  ;;  %v2703_v7 = vld [vmem:[%s2557_s28 + $0x4] sm:$0xf]  ;;  %v2706_v8 = vld [vmem:[%s2557_s28 + $0x8] sm:$0xf] }
  0x27   : > { %2339 = vmatprep.mubr.msk.bf16.mxu1 %vm309_vm1, %v797_v16  ;;  %v1139_v39 = vrot.slane %v1137_v31, 4  ;;  %v1219_v40 = vrot.slane %v2473_v24, 3  ;;  %v1220_v41 = vrot.slane %v2146_v32, 3  ;;  %v2123_v42 = vcombine.low %v2644_v6, %v2644_v6  ;;  %v2709_v9 = vld [vmem:[%s2557_s28 + $0xc] sm:$0xf]  ;;  %v2478_v12 = vld [vmem:[%s2901_s2 + $0xa0] sm:$0xff]  }
  0x28   : > { %2316 = vmatmul.mubr.msk.bf16.vlgmr.msra.gmra.mxu0 %vm309_vm1, %v445_v33  ;;  %v896_v33 = vsel %vm525_vm4, %v887_v25, %v895_v26  ;;  %v1147_v45 = vrot.slane %v1145_v37, 4  ;;  %v2156_v52 = vcombine.low %v1290_v48, %v1291_v49  ;;  %vm1307_vm6 = vcmask 1045504   ;;  %v2484_v22 = vld [vmem:[%s2901_s2 + $0xc8] sm:$0xff]   ;;  %v1717_v23 = vld [vmem:[%s2557_s28 + $0x4] sm:$0xc] }
  0x29   : > { %2328 = vmatpush3.bf16.msra.mxu0 %v2454_v44  ;;  %2331 = vmatprep.mubr.msk.bf16.mxu0 %vm309_vm1, %v716_v0  ;;  %v1144_v44 = vrot.slane %v1142_v36, 3  ;;  %v1140_v46 = vor.u32 %v1139_v39, %v1136_v38  ;;  %v2165_v55 = vcombine.low %v1290_v48, %v1380_v53  ;;  %vm1389_vm7 = vsmask.f32 5376  ;;  %v1718_v28 = vld [vmem:[%s2557_s28 + $0x8] sm:$0xf]  ;;  %v2486_v31 = vld [vmem:[%s2901_s2 + $0xc0] sm:$0xff]  }
  0x2a   : > { %2329 = vmatprep.subr.bf16.mxu0 %v2456_v60  ;;  %2338 = vmatpush3.bf16.msra.mxu1 %v2457_v56  ;;  %v1391_v56 = vshrl.u32 %v2480_v50, 16  ;;  %v1221_v57 = vsel %vm443_vm3, %v1219_v40, %v1220_v41  ;;  %v1308_v61 = vrot.slane %v2480_v50, 2  ;;  %v2698_v1 = vrot.slane %v2156_v52, 2  ;;  %v2496_v30 = vld [vmem:[%s2557_s28 + $0xc] sm:$0x7f]  }
  0x2b   : > { %2351 = vmatprep.subr.bf16.mxu1 %v2462_v4  ;;  %v1148_v47 = vor.u32 %v1147_v45, %v1144_v44  ;;  %v1399_v63 = vshrl.u32 %v2165_v55, 16  ;;  %v1402_v0 = vshll.u32 %v2165_v55, 16  ;;  %v2188_v13 = vcombine.low %v1542_v5, %v2703_v7  ;;  %v1822_v40 = vld [vmem:[%s2557_s28 + $0x4] sm:$0x8]  ;;  %v256_v49 = vld [vmem:[%s2899_s0 + $0x8] sm:$0xff] }
  0x2c   : > { %v1393_v62 = vrot.slane %v1391_v56, 2  ;;  %v2189_v14 = vcombine.low %v2706_v8, %v2709_v9  ;;  %v1310_v15 = vsel %vm1307_vm6, %v1308_v61, %v2698_v1  ;;  %v2198_v29 = vcombine.low %v1717_v23, %v1718_v28 }
  0x2d   : > { %2330 = vmatpush3.bf16.msra.mxu0 %v2456_v60  ;;  %2340 = vmatmul.mubr.msk.bf16.vlgmr.msra.gmra.mxu1 %vm309_vm1, %v800_v10  ;;  %v1149_v54 = vsel %vm525_vm4, %v1140_v46, %v1148_v47  ;;  %v1394_v60 = vshll.u32 %v2480_v50, 16  ;;  %v2479_v10 = vld [vmem:[%s2901_s2 + $0xb0] sm:$0xff]   ;;  %v1635_v18 = vshrl.u32 %v2188_v13, 16  ;;  %v1638_v19 = vshll.u32 %v2188_v13, 16  ;;  %v2492_v50 = vld [vmem:[%s2901_s2 + $0xf8] sm:$0xff]  }
  0x2e   : > { %2343 = vmatprep.subr.bf16.mxu0 %v2461_v3  ;;  %2352 = vmatpush3.bf16.msra.mxu1 %v2462_v4  ;;  %v1404_v4 = vrot.slane %v1402_v0, 3  ;;  %v1643_v20 = vshrl.u32 %v2189_v14, 16  ;;  %v1646_v21 = vshll.u32 %v2189_v14, 16  ;;  %v1737_v36 = vshrl.u32 %v2198_v29, 16 }
  0x2f   : > { %2353 = vmatprep.subr.bf16.mxu1 %v2464_v11  ;;  %2355 = vmatprep.mubr.msk.bf16.mxu1 %vm309_vm1, %v2122_v27  ;;  %v1396_v2 = vrot.slane %v1394_v60, 3  ;;  %v1637_v24 = vrot.slane %v1635_v18, 3  ;;  %v1640_v25 = vrot.slane %v1638_v19, 4  ;;  %v1740_v37 = vshll.u32 %v2198_v29, 16 }
  0x30   : > { %2332 = vmatmul.mubr.msk.bf16.vlgmr.msra.gmra.mxu0 %vm309_vm1, %v715_v58  ;;  %v2476_v58 = vld [vmem:[%s2901_s2 + $0xa8] sm:$0xff]   ;;  %v1648_v27 = vrot.slane %v1646_v21, 4  ;;  %v1745_v38 = vshrl.u32 %v2496_v30, 16  ;;  %v1748_v39 = vshll.u32 %v2496_v30, 16  ;;  %v2208_v48 = vcombine.low %v1822_v40, %v1718_v28 }
  0x31   : > { %2344 = vmatpush3.bf16.msra.mxu0 %v2461_v3  ;;  %2347 = vmatprep.mubr.msk.bf16.mxu0 %vm309_vm1, %v896_v33  ;;  %v1401_v3 = vrot.slane %v1399_v63, 2  ;;  %v1397_v6 = vor.u32 %v1396_v2, %v1393_v62  ;;  %v1641_v32 = vor.u32 %v1640_v25, %v1637_v24  ;;  %v1742_v44 = vrot.slane %v1740_v37, 3 }
  0x32   : > { %2345 = vmatprep.subr.bf16.mxu0 %v2463_v17  ;;  %2354 = vmatpush3.bf16.msra.mxu1 %v2464_v11  ;;  %v1747_v45 = vrot.slane %v1745_v38, 2  ;;  %v1750_v46 = vrot.slane %v1748_v39, 3  ;;  %v1831_v55 = vrot.slane %v2208_v48, 3  ;;  %v1832_v56 = vrot.slane %v2496_v30, 3 }
  0x33   : > { %2367 = vmatprep.subr.bf16.mxu1 %v2470_v35  ;;  %v1405_v11 = vor.u32 %v1404_v4, %v1401_v3  ;;  %vm638_vm8 = vcmask 125952   ;;  %vm660_vm9 = vcmask 130048   ;;  %vm1971_vm10 = vcmask 122880  }
  0x34   : > { %v1751_v53 = vor.u32 %v1750_v46, %v1747_v45  ;;  %v1833_v60 = vsel %vm443_vm3, %v1831_v55, %v1832_v56  ;;  %vm1074_vm11 = vcmask 257152   ;;  %vm1508_vm12 = vcmask 388352  }
  0x35   : > { %2346 = vmatpush3.bf16.msra.mxu0 %v2463_v17  ;;  %2356 = vmatmul.mubr.msk.bf16.vlgmr.msra.gmra.mxu1 %vm309_vm1, %v2123_v42  ;;  %v1406_v16 = vsel %vm1389_vm7, %v1397_v6, %v1405_v11  ;;  %v2483_v17 = vld [vmem:[%s2901_s2 + $0xd8] sm:$0xff]   ;;  %v2182_v42 = vcombine.low %v2703_v7, %v2706_v8  ;;  %vm1935_vm13 = vcmask 519552  }
  0x36   : > { %2359 = vmatprep.subr.bf16.mxu0 %v2469_v34  ;;  %2368 = vmatpush3.bf16.msra.mxu1 %v2470_v35  ;;  %v255_v35 = vld [vmem:[%s2899_s0] sm:$0xff] }
  0x37   : > { %2369 = vmatprep.subr.bf16.mxu1 %v2472_v43  ;;  %2371 = vmatprep.mubr.msk.bf16.mxu1 %vm309_vm1, %v1221_v57  ;;  %v2494_v57 = vld [vmem:[%s2901_s2 + $0xf0] sm:$0xff]  }
  0x38   : > { %2348 = vmatmul.mubr.msk.bf16.vlgmr.msra.gmra.mxu0 %vm309_vm1, %v895_v26  ;;  %v1645_v26 = vrot.slane %v1643_v20, 3  ;;  %644 = vperm.xlu0 %2438, %v255_v35  }
  0x39   : > { %2360 = vmatpush3.bf16.msra.mxu0 %v2469_v34  ;;  %2363 = vmatprep.mubr.msk.bf16.mxu0 %vm309_vm1, %v1149_v54  ;;  %v257_v34 = vld [vmem:[%s2899_s0 + $0x10] sm:$0xff]  ;;  %v2183_v54 = vcombine.low %v2709_v9, %v2709_v9 }
  0x3a   : > { %2361 = vmatprep.subr.bf16.mxu0 %v2471_v51  ;;  %2370 = vmatpush3.bf16.msra.mxu1 %v2472_v43  ;;  %v1649_v33 = vor.u32 %v1648_v27, %v1645_v26  ;;  %v1739_v43 = vrot.slane %v1737_v36, 2 }
  0x3b   : > { %2383 = vmatprep.subr.bf16.mxu1 %v2477_v59  ;;  %654 = vperm.xlu1 %2439, %v257_v34  }
  0x3c   : > { %v1743_v52 = vor.u32 %v1742_v44, %v1739_v43  ;;  %649 = vperm.xlu0 %2438, %v256_v49  }
  0x3d   : > { %2362 = vmatpush3.bf16.msra.mxu0 %v2471_v51  ;;  %2372 = vmatmul.mubr.msk.bf16.vlgmr.msra.gmra.mxu1 %vm309_vm1, %v1220_v41  ;;  %v2485_v41 = vld [vmem:[%s2901_s2 + $0xd0] sm:$0xff]   ;;  %v2491_v51 = vld [vmem:[%s2901_s2 + $0xe8] sm:$0xff]  }
  0x3e   : > { %2375 = vmatprep.subr.bf16.mxu0 %v2476_v58  ;;  %2384 = vmatpush3.bf16.msra.mxu1 %v2477_v59  ;;  %v1752_v59 = vsel %vm1389_vm7, %v1743_v52, %v1751_v53 }
  0x3f   : > { %2385 = vmatprep.subr.bf16.mxu1 %v2479_v10  ;;  %2387 = vmatprep.mubr.msk.bf16.mxu1 %vm309_vm1, %v1406_v16 }
  0x40   : > { %2364 = vmatmul.mubr.msk.bf16.vlgmr.msra.gmra.mxu0 %vm309_vm1, %v1148_v47  ;;  %v1650_v47 = vsel %vm525_vm4, %v1641_v32, %v1649_v33 }
  0x41   : > { %2376 = vmatpush3.bf16.msra.mxu0 %v2476_v58  ;;  %2379 = vmatprep.mubr.msk.bf16.mxu0 %vm309_vm1, %v1310_v15  ;;  %v2493_v58 = vld [vmem:[%s2901_s2 + $0xe0] sm:$0xff]  }
  0x42   : > { %2377 = vmatprep.subr.bf16.mxu0 %v2478_v12  ;;  %2386 = vmatpush3.bf16.msra.mxu1 %v2479_v10 }
  0x43   : > { %2399 = vmatprep.subr.bf16.mxu1 %v2484_v22 }
  0x45   : > { %2378 = vmatpush3.bf16.msra.mxu0 %v2478_v12  ;;  %2388 = vmatmul.mubr.msk.bf16.vlgmr.msra.gmra.mxu1 %vm309_vm1, %v1405_v11  ;;  %v2785_v11 = vld [vmem:[%s2902_s3] ss:$0 sm:$0xff] }
  0x46   : > { %2391 = vmatprep.subr.bf16.mxu0 %v2483_v17  ;;  %2400 = vmatpush3.bf16.msra.mxu1 %v2484_v22 }
  0x47   : > { %2401 = vmatprep.subr.bf16.mxu1 %v2486_v31  ;;  %2403 = vmatprep.mubr.msk.bf16.mxu1 %vm309_vm1, %v1650_v47 }
  0x48   : > { %2380 = vmatmul.mubr.msk.bf16.vlgmr.msra.gmra.mxu0 %vm309_vm1, %v2698_v1 }
  0x49   : > { %2392 = vmatpush3.bf16.msra.mxu0 %v2483_v17  ;;  %2395 = vmatprep.mubr.msk.bf16.mxu0 %vm309_vm1, %v2182_v42 }
  0x4a   : > { %2393 = vmatprep.subr.bf16.mxu0 %v2485_v41  ;;  %2402 = vmatpush3.bf16.msra.mxu1 %v2486_v31 }
  0x4b   : > { %2415 = vmatprep.subr.bf16.mxu1 %v2492_v50 }
  0x4d   : > { %2394 = vmatpush3.bf16.msra.mxu0 %v2485_v41  ;;  %2404 = vmatmul.mubr.msk.bf16.vlgmr.msra.gmra.mxu1 %vm309_vm1, %v1649_v33 }
  0x4e   : > { %2407 = vmatprep.subr.bf16.mxu0 %v2491_v51  ;;  %2416 = vmatpush3.bf16.msra.mxu1 %v2492_v50 }
  0x4f   : > { %2417 = vmatprep.subr.bf16.mxu1 %v2494_v57  ;;  %2419 = vmatprep.mubr.msk.bf16.mxu1 %vm309_vm1, %v1833_v60 }
  0x50   : > { %2396 = vmatmul.mubr.msk.bf16.vlgmr.msra.gmra.mxu0 %vm309_vm1, %v2183_v54 }
  0x51   : > { %2408 = vmatpush3.bf16.msra.mxu0 %v2491_v51  ;;  %2411 = vmatprep.mubr.msk.bf16.mxu0 %vm309_vm1, %v1752_v59 }
  0x52   : > { %2409 = vmatprep.subr.bf16.mxu0 %v2493_v58  ;;  %2418 = vmatpush3.bf16.msra.mxu1 %v2494_v57 }
  0x55   : > { %2410 = vmatpush3.bf16.msra.mxu0 %v2493_v58  ;;  %2420 = vmatmul.mubr.msk.bf16.vlgmr.msra.gmra.mxu1 %vm309_vm1, %v1832_v56 }
  0x58   : > { %2412 = vmatmul.mubr.msk.bf16.vlgmr.msra.gmra.mxu0 %vm309_vm1, %v1751_v53 }
  0xb3   : > { %v2809_v56 = vpop.permute.xlu0 %644 }
  0xdc   : > { %v2309_v61 = vpop.f32.mrf.mxu1 }
  0xde   : > { %v416_v62 = vpop.f32.mrf.mxu1 }
  0xe0   : > { %v2301_v63 = vpop.f32.mrf.mxu0  ;;  %v2310_v0 = vpop.f32.mrf.mxu1 }
  0xe1   : > { %v425_v5 = vadd.f32 %v2309_v61, %v2301_v63 }
  0xe2   : > { %v350_v1 = vpop.f32.mrf.mxu0  ;;  %v419_v2 = vpop.f32.mrf.mxu1 }
  0xe3   : > { %v417_v8 = vadd.f32 %v416_v62, %v350_v1 }
  0xe4   : > { %v2302_v3 = vpop.f32.mrf.mxu0  ;;  %v2325_v6 = vpop.f32.mrf.mxu1 }
  0xe6   : > { %v353_v4 = vpop.f32.mrf.mxu0  ;;  %v595_v10 = vpop.f32.mrf.mxu1 }
  0xe7   : > { %v420_v17 = vadd.f32 %v419_v2, %v353_v4 }
  0xe8   : > { %v2317_v7 = vpop.f32.mrf.mxu0  ;;  %v2326_v15 = vpop.f32.mrf.mxu1 }
  0xe9   : > { %v515_v9 = vadd.f32 %v2317_v7, %v425_v5 }
  0xea   : > { %v499_v12 = vpop.f32.mrf.mxu0  ;;  %v598_v20 = vpop.f32.mrf.mxu1 }
  0xeb   : > { %v611_v13 = vadd.f32 %v2325_v6, %v515_v9  ;;  %v513_v14 = vadd.f32 %v499_v12, %v417_v8  ;;  %v2817_v6 = vpop.permute.xlu0 %649 }
  0xec   : > { %v2318_v16 = vpop.f32.mrf.mxu0 }
  0xed   : > { %v621_v18 = vadd.f32 %v2785_v11, %v611_v13  ;;  %v609_v19 = vadd.f32 %v595_v10, %v513_v14  ;;  %v2341_v25 = vpop.f32.mrf.mxu1 }
  0xee   : > { %v502_v21 = vpop.f32.mrf.mxu0 }
  0xef   : > { %v2788_v22 = vmax.f32 %v621_v18, 0.0  ;;  %v619_v23 = vadd.f32 %v2785_v11, %v609_v19  ;;  %v514_v24 = vadd.f32 %v502_v21, %v420_v17  ;;  %v853_v29 = vpop.f32.mrf.mxu1  ;;  %v2821_v17 = vpop.permute.xlu1 %654 }
  0xf0   : > { %v2333_v26 = vpop.f32.mrf.mxu0 }
  0xf1   : > { %v2791_v27 = vmax.f32 %v619_v23, 0.0  ;;  %v610_v28 = vadd.f32 %v598_v20, %v514_v24  ;;  %v2221_v31 = vpack.c.bf16 %v2788_v22, %v2788_v22  ;;  %v2342_v33 = vpop.f32.mrf.mxu1  ;;  %v862_v39 = vadd.f32 %v2341_v25, %v2333_v26 }
  0xf2   : > { %v769_v30 = vpop.f32.mrf.mxu0 }
  0xf3   : > { %v620_v32 = vadd.f32 %v2785_v11, %v610_v28  ;;  %641 = vst.msk [vmem:[%s2562_s7 + $0x8] sm:$0xf] %vm638_vm8, %v2221_v31  ;;  %v2219_v35 = vpack.c.bf16 %v2791_v27, %v2791_v27  ;;  %v856_v37 = vpop.f32.mrf.mxu1  ;;  %v854_v43 = vadd.f32 %v853_v29, %v769_v30  ;;  %v657_v23 = vmul.f32 %v2809_v56, %v2791_v27 }
  0xf4   : > { %v2334_v34 = vpop.f32.mrf.mxu0  ;;  %v659_v28 = vmul.f32 %v2821_v17, %v2788_v22 }
  0xf5   : > { %v2800_v36 = vmax.f32 %v620_v32, 0.0  ;;  %639 = vst.msk [vmem:[%s2562_s7] sm:$0xf] %vm638_vm8, %v2219_v35  ;;  %v2357_v40 = vpop.f32.mrf.mxu1 }
  0xf6   : > { %v772_v38 = vpop.f32.mrf.mxu0 }
  0xf7   : > { %v2220_v41 = vpack.c.bf16 %v2800_v36, %v2800_v36  ;;  %v1025_v45 = vpop.f32.mrf.mxu1  ;;  %v857_v51 = vadd.f32 %v856_v37, %v772_v38  ;;  %v658_v15 = vmul.f32 %v2817_v6, %v2800_v36 }
  0xf8   : > { %v2349_v42 = vpop.f32.mrf.mxu0 }
  0xf9   : > { %v965_v44 = vadd.f32 %v2349_v42, %v862_v39  ;;  %640 = vst.msk [vmem:[%s2562_s7 + $0x4] sm:$0xf] %vm638_vm8, %v2220_v41  ;;  %v2358_v49 = vpop.f32.mrf.mxu1  ;;  %v662_v29 = vsel %vm660_vm9, %v658_v15, 0.0  ;;  %v674_v37 = vmul.f32 %v658_v15, %v2800_v36 }
  0xfa   : > { %v949_v46 = vpop.f32.mrf.mxu0 }
  0xfb   : > { %v1041_v47 = vadd.f32 %v2357_v40, %v965_v44  ;;  %v963_v48 = vadd.f32 %v949_v46, %v854_v43  ;;  %v1028_v54 = vpop.f32.mrf.mxu1  ;;  %v661_v40 = vsel %vm660_vm9, %v657_v23, 0.0  ;;  %v673_v46 = vmul.f32 %v657_v23, %v2791_v27 }
  0xfc   : > { %v2350_v50 = vpop.f32.mrf.mxu0 }
  0xfd   : > { %v1051_v52 = vadd.f32 %v2785_v11, %v1041_v47  ;;  %v1039_v53 = vadd.f32 %v1025_v45, %v963_v48  ;;  %v2373_v60 = vpop.f32.mrf.mxu1  ;;  %v675_v45 = vmul.f32 %v659_v28, %v2788_v22  ;;  %v663_v47 = vadd.f32 %v662_v29, %v661_v40 }
  0xfe   : > { %v952_v55 = vpop.f32.mrf.mxu0 }
  0xff   : > { %v2811_v57 = vmax.f32 %v1051_v52, 0.0  ;;  %v1049_v58 = vadd.f32 %v2785_v11, %v1039_v53  ;;  %v964_v59 = vadd.f32 %v952_v55, %v857_v51  ;;  %v1274_v63 = vpop.f32.mrf.mxu1  ;;  %v677_v52 = vsel %vm660_vm9, %v674_v37, 0.0 }
 0x100   : > { %v2365_v61 = vpop.f32.mrf.mxu0 }
 0x101   : > { %v1040_v62 = vadd.f32 %v1028_v54, %v964_v59  ;;  %v1052_v0 = vmax.f32 %v1049_v58, 0.0  ;;  %v2224_v2 = vpack.c.bf16 %v2811_v57, %v2811_v57  ;;  %v2374_v4 = vpop.f32.mrf.mxu1  ;;  %v1283_v12 = vadd.f32 %v2373_v60, %v2365_v61 }
 0x102   : > { %v1202_v1 = vpop.f32.mrf.mxu0  ;;  %v1080_v53 = vmul.f32 %v2811_v57, %v2821_v17  ;;  %v664_v59 = vsel %vm660_vm9, %v659_v28, 0.0 }
 0x103   : > { %v1050_v3 = vadd.f32 %v2785_v11, %v1040_v62  ;;  %1069 = vrot.lane.b32.xlu1 %v2224_v2, %s2508_s20  ;;  %v1277_v8 = vpop.f32.mrf.mxu1  ;;  %v2222_v10 = vpack.c.bf16 %v1052_v0, %v1052_v0  ;;  %v1275_v18 = vadd.f32 %v1274_v63, %v1202_v1  ;;  %v1078_v38 = vmul.f32 %v1052_v0, %v2809_v56 }
 0x104   : > { %v2366_v5 = vpop.f32.mrf.mxu0  ;;  %v679_v62 = vsel %vm660_vm9, %v675_v45, 0.0  ;;  %v676_v63 = vsel %vm660_vm9, %v673_v46, 0.0  ;;  %v2845_v1 = vadd.f32 %v664_v59, %v663_v47 }
 0x105   : > { %v1053_v7 = vmax.f32 %v1050_v3, 0.0  ;;  %v2389_v13 = vpop.f32.mrf.mxu1  ;;  %v1093_v54 = vmul.f32 %v1078_v38, %v1052_v0  ;;  %v678_v3 = vadd.f32 %v677_v52, %v676_v63  ;;  %v1081_v4 = vsel %vm660_vm9, %v1078_v38, 0.0 }
 0x106   : > { %v1205_v9 = vpop.f32.mrf.mxu0 }
 0x107   : > { %v2223_v14 = vpack.c.bf16 %v1053_v7, %v1053_v7  ;;  %1065 = vrot.lane.b32.xlu1 %v2222_v10, %s2508_s20  ;;  %v1459_v20 = vpop.f32.mrf.mxu1  ;;  %v1079_v31 = vmul.f32 %v1053_v7, %v2817_v6  ;;  %v1278_v32 = vadd.f32 %v1277_v8, %v1205_v9  ;;  %v1095_v9 = vmul.f32 %v1080_v53, %v2811_v57 }
 0x108   : > { %v2381_v16 = vpop.f32.mrf.mxu0  ;;  %v1096_v10 = vsel %vm660_vm9, %v1093_v54, 0.0  ;;  %v666_v54 = vrot.slane %v2845_v1, 4 }
 0x109   : > { %v1379_v19 = vadd.f32 %v2381_v16, %v1283_v12  ;;  %1067 = vrot.lane.b32.xlu0 %v2223_v14, %s2508_s20  ;;  %v2390_v26 = vpop.f32.mrf.mxu1  ;;  %v1094_v49 = vmul.f32 %v1079_v31, %v1053_v7  ;;  %v1082_v22 = vsel %vm660_vm9, %v1079_v31, 0.0 }
 0x10a   : > { %v1363_v21 = vpop.f32.mrf.mxu0  ;;  %v1083_v12 = vadd.f32 %v1082_v22, %v1081_v4 }
 0x10b   : > { %v1475_v24 = vadd.f32 %v2389_v13, %v1379_v19  ;;  %v1377_v25 = vadd.f32 %v1363_v21, %v1275_v18  ;;  %v1462_v35 = vpop.f32.mrf.mxu1  ;;  %v1097_v5 = vsel %vm660_vm9, %v1094_v49, 0.0  ;;  %v1084_v21 = vsel %vm660_vm9, %v1080_v53, 0.0 }
 0x10c   : > { %v2382_v30 = vpop.f32.mrf.mxu0  ;;  %v1098_v23 = vadd.f32 %v1097_v5, %v1096_v10 }
 0x10d   : > { %v1485_v33 = vadd.f32 %v2785_v11, %v1475_v24  ;;  %v1473_v34 = vadd.f32 %v1459_v20, %v1377_v25  ;;  %v2405_v44 = vpop.f32.mrf.mxu1 }
 0x10e   : > { %v1366_v39 = vpop.f32.mrf.mxu0 }
 0x10f   : > { %v1488_v41 = vmax.f32 %v1485_v33, 0.0  ;;  %v1483_v42 = vadd.f32 %v2785_v11, %v1473_v34  ;;  %v1378_v43 = vadd.f32 %v1366_v39, %v1278_v32  ;;  %v1703_v36 = vpop.f32.mrf.mxu1  ;;  %v1099_v32 = vsel %vm660_vm9, %v1095_v9, 0.0 }
 0x110   : > { %v2397_v48 = vpop.f32.mrf.mxu0  ;;  %v1085_v33 = vadd.f32 %v1084_v21, %v1083_v12 }
 0x111   : > { %v1486_v50 = vmax.f32 %v1483_v42, 0.0  ;;  %v1474_v51 = vadd.f32 %v1462_v35, %v1378_v43  ;;  %v2227_v58 = vpack.c.bf16 %v1488_v41, %v1488_v41  ;;  %v2406_v61 = vpop.f32.mrf.mxu1  ;;  %v1514_v2 = vmul.f32 %v1488_v41, %v2821_v17 }
 0x112   : > { %v1616_v55 = vpop.f32.mrf.mxu0  ;;  %v1712_v18 = vadd.f32 %v2405_v44, %v2397_v48  ;;  %v680_v43 = vadd.f32 %v679_v62, %v678_v3  ;;  %v1100_v44 = vadd.f32 %v1099_v32, %v1098_v23  ;;  %v667_v3 = vadd.f32 %v666_v54, %v2845_v1 }
 0x113   : > { %v1512_v27 = vmul.f32 %v1486_v50, %v2809_v56  ;;  %v1484_v60 = vadd.f32 %v2785_v11, %v1474_v51  ;;  %1503 = vrot.lane.b32.xlu0 %v2227_v58, %s2509_s22  ;;  %v1706_v8 = vpop.f32.mrf.mxu1  ;;  %v2225_v14 = vpack.c.bf16 %v1486_v50, %v1486_v50  ;;  %v1529_v24 = vmul.f32 %v1514_v2, %v1488_v41 }
 0x114   : > { %v2398_v0 = vpop.f32.mrf.mxu0  ;;  %v1704_v25 = vadd.f32 %v1703_v36, %v1616_v55  ;;  %v1518_v34 = vsel %vm660_vm9, %v1514_v2, 0.0  ;;  %v1086_v36 = vrot.slane %v1085_v33, 4  ;;  %v681_v59 = vrot.slane %v680_v43, 4 }
 0x115   : > { %v1487_v7 = vmax.f32 %v1484_v60, 0.0  ;;  %v1527_v15 = vmul.f32 %v1512_v27, %v1486_v50  ;;  %v2421_v19 = vpop.f32.mrf.mxu1  ;;  %v1515_v57 = vsel %vm660_vm9, %v1512_v27, 0.0  ;;  %v1533_v48 = vsel %vm660_vm9, %v1529_v24, 0.0 }
 0x116   : > { %v1619_v13 = vpop.f32.mrf.mxu0  ;;  %v1101_v22 = vrot.slane %v1100_v44, 4  ;;  %v1087_v2 = vadd.f32 %v1086_v36, %v1085_v33 }
 0x117   : > { %v1513_v16 = vmul.f32 %v1487_v7, %v2817_v6  ;;  %v2226_v20 = vpack.c.bf16 %v1487_v7, %v1487_v7  ;;  %1499 = vrot.lane.b32.xlu0 %v2225_v14, %s2509_s22  ;;  %v1886_v31 = vpop.f32.mrf.mxu1  ;;  %v1530_v38 = vsel %vm660_vm9, %v1527_v15, 0.0  ;;  %v1707_v49 = vadd.f32 %v1706_v8, %v1619_v13 }
 0x118   : > { %v2413_v26 = vpop.f32.mrf.mxu0  ;;  %v1102_v8 = vadd.f32 %v1101_v22, %v1100_v44  ;;  %v1088_v14 = vrot.slane %v1087_v2, 2 }
 0x119   : > { %v1516_v28 = vsel %vm660_vm9, %v1513_v16, 0.0  ;;  %v1528_v29 = vmul.f32 %v1513_v16, %v1487_v7  ;;  %v1821_v30 = vadd.f32 %v2413_v26, %v1712_v18  ;;  %1501 = vrot.lane.b32.xlu1 %v2226_v20, %s2509_s22  ;;  %v2422_v42 = vpop.f32.mrf.mxu1  ;;  %v682_v7 = vadd.f32 %v681_v59, %v680_v43 }
 0x11a   : > { %v1517_v35 = vadd.f32 %v1516_v28, %v1515_v57  ;;  %v1805_v37 = vpop.f32.mrf.mxu0  ;;  %v668_v16 = vrot.slane %v667_v3, 2  ;;  %v1089_v26 = vadd.f32 %v1088_v14, %v1087_v2 }
 0x11b   : > { %v1531_v39 = vsel %vm660_vm9, %v1528_v29, 0.0  ;;  %v1902_v40 = vadd.f32 %v2421_v19, %v1821_v30  ;;  %v1819_v41 = vadd.f32 %v1805_v37, %v1704_v25  ;;  %v1889_v60 = vpop.f32.mrf.mxu1  ;;  %v683_v20 = vrot.slane %v682_v7, 2 }
 0x11c   : > { %v1519_v45 = vadd.f32 %v1518_v34, %v1517_v35  ;;  %v1532_v46 = vadd.f32 %v1531_v39, %v1530_v38  ;;  %v2414_v47 = vpop.f32.mrf.mxu0  ;;  %v669_v29 = vadd.f32 %v668_v16, %v667_v3  ;;  %v1090_v39 = vrot.slane %v1089_v26, 1  ;;  %v1969_v3 = vld [vmem:[%s2904_s5] sm:$0x1] }
 0x11d   : > { %v1912_v50 = vadd.f32 %v2785_v11, %v1902_v40  ;;  %v1900_v51 = vadd.f32 %v1886_v31, %v1819_v41  ;;  %v684_v37 = vadd.f32 %v683_v20, %v682_v7 }
 0x11e   : > { %v1534_v52 = vadd.f32 %v1533_v48, %v1532_v46  ;;  %v1808_v53 = vpop.f32.mrf.mxu0  ;;  %v1520_v27 = vrot.slane %v1519_v45, 4  ;;  %v670_v43 = vrot.slane %v669_v29, 1 }
 0x11f   : > { %v1910_v55 = vadd.f32 %v2785_v11, %v1900_v51  ;;  %v1820_v58 = vadd.f32 %v1808_v53, %v1707_v49  ;;  %v1915_v61 = vmax.f32 %v1912_v50, 0.0  ;;  %v685_v48 = vrot.slane %v684_v37, 1 }
 0x120   : > { %v1535_v0 = vrot.slane %v1534_v52, 4  ;;  %v1521_v9 = vadd.f32 %v1520_v27, %v1519_v45  ;;  %v1091_v49 = vadd.f32 %v1090_v39, %v1089_v26 }
 0x121   : > { %v1913_v62 = vmax.f32 %v1910_v55, 0.0  ;;  %v1901_v63 = vadd.f32 %v1889_v60, %v1820_v58  ;;  %v1941_v12 = vmul.f32 %v1915_v61, %v2821_v17  ;;  %v686_v59 = vadd.f32 %v685_v48, %v684_v37 }
 0x122   : > { %v1536_v15 = vadd.f32 %v1535_v0, %v1534_v52  ;;  %v1522_v21 = vrot.slane %v1521_v9, 2  ;;  %v671_v52 = vadd.f32 %v670_v43, %v669_v29 }
 0x123   : > { %v1939_v4 = vmul.f32 %v1913_v62, %v2809_v56  ;;  %v1911_v5 = vadd.f32 %v2785_v11, %v1901_v63  ;;  %v2228_v10 = vpack.c.bf16 %v1913_v62, %v1913_v62  ;;  %v1103_v56 = vrot.slane %v1102_v8, 2 }
 0x124   : > { %v2230_v11 = vpack.c.bf16 %v1915_v61, %v1915_v61  ;;  %v1956_v23 = vmul.f32 %v1941_v12, %v1915_v61  ;;  %v1537_v57 = vrot.slane %v1536_v15, 2  ;;  %v1945_v30 = vsel %vm660_vm9, %v1941_v12, 0.0 }
 0x125   : > { %v1914_v13 = vmax.f32 %v1911_v5, 0.0  ;;  %1926 = vrot.lane.b32.xlu1 %v2228_v10, %s2510_s23  ;;  %v1954_v18 = vmul.f32 %v1939_v4, %v1913_v62  ;;  %v1942_v24 = vsel %vm660_vm9, %v1939_v4, 0.0  ;;  %v1104_v32 = vadd.f32 %v1103_v56, %v1102_v8  ;;  %v1973_v8 = vld [vmem:[%s2905_s6] sm:$0x1] }
 0x126   : > { %v1523_v33 = vadd.f32 %v1522_v21, %v1521_v9  ;;  %v1960_v38 = vsel %vm660_vm9, %v1956_v23, 0.0  ;;  %v1538_v40 = vadd.f32 %v1537_v57, %v1536_v15  ;;  %v1092_v22 = vadd.f32 %v1091_v49, %v671_v52 }
 0x127   : > { %v1940_v19 = vmul.f32 %v1914_v13, %v2817_v6  ;;  %v2229_v1 = vpack.c.bf16 %v1914_v13, %v1914_v13  ;;  %v1957_v6 = vsel %vm660_vm9, %v1954_v18, 0.0  ;;  %v1105_v44 = vrot.slane %v1104_v32, 1 }
 0x128   : > { %v1524_v45 = vrot.slane %v1523_v33, 1  ;;  %v1539_v50 = vrot.slane %v1538_v40, 1 }
 0x129   : > { %v1943_v25 = vsel %vm660_vm9, %v1940_v19, 0.0  ;;  %v1955_v17 = vmul.f32 %v1940_v19, %v1914_v13  ;;  %1928 = vrot.lane.b32.xlu0 %v2229_v1, %s2510_s23  ;;  %1930 = vrot.lane.b32.xlu1 %v2230_v11, %s2510_s23  ;;  %v1106_v53 = vadd.f32 %v1105_v44, %v1104_v32 }
 0x12a   : > { %v1944_v28 = vadd.f32 %v1943_v25, %v1942_v24  ;;  %v1525_v54 = vadd.f32 %v1524_v45, %v1523_v33  ;;  %v1540_v27 = vadd.f32 %v1539_v50, %v1538_v40 }
 0x12b   : > { %v1958_v31 = vsel %vm660_vm9, %v1955_v17, 0.0  ;;  %v1107_v62 = vadd.f32 %v1106_v53, %v686_v59 }
 0x12c   : > { %v1946_v34 = vadd.f32 %v1945_v30, %v1944_v28  ;;  %v1959_v35 = vadd.f32 %v1958_v31, %v1957_v6  ;;  %v1526_v63 = vadd.f32 %v1525_v54, %v1092_v22 }
 0x12d   : > { %v1541_v4 = vadd.f32 %v1540_v27, %v1107_v62 }
 0x12e   : > { %v1947_v41 = vrot.slane %v1946_v34, 4  ;;  %v1961_v42 = vadd.f32 %v1960_v38, %v1959_v35 }
 0x130   : > { %v1948_v46 = vadd.f32 %v1947_v41, %v1946_v34  ;;  %v1962_v47 = vrot.slane %v1961_v42, 4 }
 0x132   : > { %v1949_v51 = vrot.slane %v1948_v46, 2  ;;  %v1963_v36 = vadd.f32 %v1962_v47, %v1961_v42 }
 0x134   : > { %v1950_v55 = vadd.f32 %v1949_v51, %v1948_v46  ;;  %v1964_v58 = vrot.slane %v1963_v36, 2 }
 0x136   : > { %v1951_v60 = vrot.slane %v1950_v55, 1  ;;  %v1965_v61 = vadd.f32 %v1964_v58, %v1963_v36 }
 0x138   : > { %v1952_v2 = vadd.f32 %v1951_v60, %v1950_v55  ;;  %v1966_v0 = vrot.slane %v1965_v61, 1 }
 0x13a   : > { %v1953_v5 = vadd.f32 %v1952_v2, %v1526_v63  ;;  %v1967_v7 = vadd.f32 %v1966_v0, %v1965_v61 }
 0x13c   : > { %v1968_v9 = vadd.f32 %v1967_v7, %v1541_v4  ;;  %v1970_v10 = vadd.f32 %v1969_v3, %v1953_v5 }
 0x13e   : > { %1972 = vst.msk [vmem:[%s2904_s5] sm:$0x1] %vm1971_vm10, %v1970_v10  ;;  %v1974_v12 = vadd.f32 %v1973_v8, %v1968_v9 }
 0x140   : > { %1975 = vst.msk [vmem:[%s2905_s6] sm:$0x1] %vm1971_vm10, %v1974_v12 }
 0x175   : > { %v1070_v13 = vpop.permute.xlu1 %1069 }
 0x176   : > { %1077 = vst.msk [vmem:[%s2562_s7 + $0x8] sm:$0xf] %vm1074_vm11, %v1070_v13 }
 0x179   : > { %v1066_v14 = vpop.permute.xlu1 %1065 }
 0x17a   : > { %1075 = vst.msk [vmem:[%s2562_s7] sm:$0xf] %vm1074_vm11, %v1066_v14 }
 0x17b   : > { %v1068_v15 = vpop.permute.xlu0 %1067 }
 0x17c   : > { %1076 = vst.msk [vmem:[%s2562_s7 + $0x4] sm:$0xf] %vm1074_vm11, %v1068_v15 }
 0x185   : > { %v1504_v16 = vpop.permute.xlu0 %1503 }
 0x186   : > { %1511 = vst.msk [vmem:[%s2562_s7 + $0x8] sm:$0xf] %vm1508_vm12, %v1504_v16 }
 0x189   : > { %v1500_v18 = vpop.permute.xlu0 %1499 }
 0x18a   : > { %1509 = vst.msk [vmem:[%s2562_s7] sm:$0xf] %vm1508_vm12, %v1500_v18 }
 0x18b   : > { %v1502_v19 = vpop.permute.xlu1 %1501 }
 0x18c   : > { %1510 = vst.msk [vmem:[%s2562_s7 + $0x4] sm:$0xf] %vm1508_vm12, %v1502_v19 }
 0x197   : > { %v1927_v1 = vpop.permute.xlu1 %1926 }
 0x198   : > { %1936 = vst.msk [vmem:[%s2562_s7] sm:$0xf] %vm1935_vm13, %v1927_v1 }
 0x19b   : > { %v1929_v20 = vpop.permute.xlu0 %1928  ;;  %v1931_v56 = vpop.permute.xlu1 %1930 }
 0x19c   : > { %1937 = vst.msk [vmem:[%s2562_s7 + $0x4] sm:$0xf] %vm1935_vm13, %v1929_v20  ;;  %1938 = vst.msk [vmem:[%s2562_s7 + $0x8] sm:$0xf] %vm1935_vm13, %v1931_v56 }
 0x19d PF: > { %s17_s21 = sadd.s32 1, %s2504_s21  }
 0x19e   : > { %p14_p5 = scmp.ge.s32.totalorder %s17_s21, 4  }
 0x1a0   :  { %16 = sbr.rel (!%p14_p5) target bundleno = 1 (0x1), region = 101 }

// kernel: generator_forward.8
= control target key start
LH: loop header
LB: loop body
LE: loop exit
PB: predicated region body
PF: predicated region fallthrough
CT: control target
= control target key end

     0   :  { %s4369_s21 = smov 0   ;;  %s5559_s0 = inlined_call_operand.vmem [shape: f32[80,1], index: 0, kind: input, shape index: {}]   ;;  %s5560_s1 = inlined_call_operand.vmem [shape: bf16[2,110,16], index: 1, kind: input, shape index: {}]   ;;  %s5561_s2 = inlined_call_operand.vmem [shape: bf16[4,4,16,8], index: 2, kind: input, shape index: {}]   ;;  %s5562_s3 = inlined_call_operand.vmem [shape: f32[1,8], index: 3, kind: input, shape index: {}]   ;;  %s5563_s4 = inlined_call_operand.vmem [shape: bf16[2,80,32], index: 4, kind: output, shape index: {0}]   ;;  %s5564_s5 = inlined_call_operand.vmem [shape: f32[1,8], index: 5, kind: output, shape index: {1}]   ;;  %s5565_s6 = inlined_call_operand.vmem [shape: f32[1,8], index: 6, kind: output, shape index: {2}]  }
   0x1 LB: > { %s3506_s22 = sadd.s32 4294967295, %s4325_s21   ;;  %p3510_p0 = scmp.ge.s32.totalorder %s4325_s21, 1  ;;  %s4325_s21 = sphi %s4369_s21, %s17_s21  }
   0x2   : > { %p207_p1 = scmp.lt.s32.totalorder %s4325_s21, 3 }
   0x4   : > { %p208_p2 = pnand %p3510_p0, %p207_p1 }
   0x5   : > { %p237_p3 = scmp.lt.s32.totalorder (!%p208_p2), %s3506_s22, 1  ;;  %p3513_p4 = scmp.ne.s32.totalorder (!%p208_p2), %s3506_s22, 0 }
   0x6   : > { %211 = sbr.rel (%p208_p2) target bundleno = 664 (0x298), region = 36 }
   0xb   : > { %s238_s23 = scalar_select %p237_p3, %s3506_s22, 1 }
   0xc   : > { %251 = sbr.rel (%p3513_p4) target bundleno = 19 (0x13), region = 40 }
   0xd   : > { %s4229_s24 = smul.u32 56, %s238_s23 }
   0xe   : > { %s4230_s25 = smul.u32 40, %s238_s23 }
   0xf   : > { %s4380_s28 = scalar_lea.vmem %s5560_s1, %s4229_s24 }
  0x10   : > { %s4385_s7 = scalar_lea.vmem %s5563_s4, %s4230_s25 }
  0x11   : > { %vm252_vm0 = vcmask 57344   ;;  %v4327_v0 = vmov 0.0  }
  0x12   : > { %253 = vst.msk [vmem:[%s5564_s5] sm:$0x1] %vm252_vm0, %v4327_v0  ;;  %254 = vst.msk [vmem:[%s5565_s6] sm:$0x1] %vm252_vm0, %v4327_v0 }
  0x13 PF: > { %v4248_v1 = vld [vmem:[%s5561_s2] sm:$0xff]   ;;  %v4328_v2 = vmov 0.0   ;;  %v4249_v3 = vld [vmem:[%s5561_s2 + $0x8] sm:$0xff]   ;;  %vm4329_vm1 = vmmov 0   ;;  %vm360_vm2 = vcmask 130048   ;;  %v4253_v10 = vld [vmem:[%s5561_s2 + $0x18] sm:$0xff]  }
  0x14   : > { %3899 = vmatprep.subr.bf16.mxu1 %v4328_v2  ;;  %3877 = vmatprep.subr.bf16.mxu0 %v4328_v2  ;;  %v4250_v4 = vld [vmem:[%s4380_s28] sm:$0xff]   ;;  %v4251_v5 = vld [vmem:[%s4380_s28 + $0x8] sm:$0xff]   ;;  %vm309_vm3 = vsmask.f32 7424  ;;  %v4252_v12 = vld [vmem:[%s5561_s2 + $0x10] sm:$0xff]   ;;  %v4330_v54 = vmov 0  }
  0x15   : > { %3900 = vmatpush3.bf16.msra.mxu1 %v4248_v1  ;;  %3901 = vmatprep.mubr.msk.bf16.mxu1 %vm4329_vm1, %v4328_v2  ;;  %v311_v6 = vshrl.u32 %v4250_v4, 16  ;;  %v313_v7 = vshll.u32 %v4250_v4, 16  ;;  %v318_v8 = vshll.u32 %v4251_v5, 16  ;;  %v4254_v13 = vld [vmem:[%s4380_s28 + $0x10] sm:$0xff]   ;;  %v322_v14 = vshrl.u32 %v4251_v5, 16  ;;  %v4255_v20 = vld [vmem:[%s4380_s28 + $0x18] sm:$0xff]  }
  0x16   : > { %3878 = vmatpush3.bf16.msra.mxu0 %v4249_v3  ;;  %3879 = vmatprep.mubr.msk.bf16.mxu0 %vm4329_vm1, %v4328_v2  ;;  %v326_v16 = vshll.u32 %v4254_v13, 16  ;;  %v330_v22 = vshrl.u32 %v4254_v13, 16  ;;  %v334_v23 = vshll.u32 %v4255_v20, 16  ;;  %v4256_v26 = vld [vmem:[%s4380_s28 + $0x20] sm:$0xff]   ;;  %v338_v28 = vshrl.u32 %v4255_v20, 16  ;;  %v4443_v32 = vld [vmem:[%s4380_s28 + $0xc] sm:$0xff]  }
  0x17   : > { %3921 = vmatprep.subr.bf16.mxu0 %v4328_v2  ;;  %3943 = vmatprep.subr.bf16.mxu1 %v4328_v2  ;;  %v315_v9 = vrot.slane %v313_v7, 1  ;;  %v320_v11 = vrot.slane %v318_v8, 1  ;;  %v342_v29 = vshll.u32 %v4256_v26, 16  ;;  %v4257_v30 = vld [vmem:[%s4380_s28 + $0x28] ss:$0 sps:$4 sm:$0x11]  }
  0x18   : > { %3902 = vmatmul.mubr.msk.bf16.vlgmr.msra.gmra.mxu1 %vm360_vm2, %v4250_v4  ;;  %v328_v19 = vrot.slane %v326_v16, 1  ;;  %v336_v25 = vrot.slane %v334_v23, 1  ;;  %v4440_v31 = vld [vmem:[%s4380_s28 + $0x4] sm:$0xfe]   ;;  %v713_v37 = vshrl.u32 %v4443_v32, 16  ;;  %v716_v38 = vshll.u32 %v4443_v32, 16  ;;  %4246 = vset.pattern.permute.xlu0 %v4330_v54 }
  0x19   : > { %3905 = vmatprep.mubr.msk.bf16.mxu1 %vm4329_vm1, %v4328_v2  ;;  %v316_v15 = vor.u32 %v315_v9, %v311_v6  ;;  %3944 = vmatpush3.bf16.msra.mxu1 %v4253_v10  ;;  %v324_v18 = vor.u32 %v322_v14, %v320_v11  ;;  %v344_v34 = vrot.slane %v342_v29, 1  ;;  %v705_v35 = vshrl.u32 %v4440_v31, 16  ;;  %v4457_v46 = vld [vmem:[%s4380_s28 + $0x14] sm:$0xff]   ;;  %v255_v49 = vld [vmem:[%s5559_s0] sm:$0xff]  ;;  %v256_v56 = vld [vmem:[%s5559_s0 + $0x8] sm:$0xff]  ;;  %s4332_s27 = smov 16  }
  0x1a   : > { %3987 = vmatprep.subr.bf16.mxu1 %v4328_v2  ;;  %v332_v24 = vor.u32 %v330_v22, %v328_v19  ;;  %v340_v33 = vor.u32 %v338_v28, %v336_v25  ;;  %v708_v36 = vshll.u32 %v4440_v31, 16  ;;  %v346_v40 = vshrl.u32 %v4256_v26, 16  ;;  %941 = vperm.xlu0 %4246, %v255_v49   ;;  %v257_v57 = vld [vmem:[%s5559_s0 + $0x10] sm:$0xff]  ;;  %v4261_v59 = vld [vmem:[%s5561_s2 + $0x20] sm:$0xff]   ;;  %v258_v1 = vld [vmem:[%s5559_s0 + $0x18] sm:$0xff]  ;;  %s4333_s29 = smov 24  }
  0x1b   : > { %v321_v17 = vsel %vm309_vm3, %v316_v15, %v320_v11  ;;  %v329_v21 = vsel %vm309_vm3, %v324_v18, %v328_v19  ;;  %v350_v41 = vshll.u32 %v4257_v30, 16  ;;  %v707_v42 = vrot.slane %v705_v35, 1  ;;  %4247 = vset.pattern.permute.xlu1 %v4330_v54  ;;  %v4482_v62 = vld [vmem:[%s4380_s28 + $0x1c] sm:$0xff]   ;;  %v4260_v8 = vld [vmem:[%s5561_s2 + $0x28] sm:$0xff]   ;;  %v261_v14 = vld [vmem:[%s5559_s0 + $0x30] sm:$0xff] }
  0x1c   : > { %3880 = vmatmul.mubr.msk.bf16.vlgmr.msra.gmra.mxu0 %vm360_vm2, %v321_v17  ;;  %v337_v27 = vsel %vm309_vm3, %v332_v24, %v336_v25  ;;  %v345_v39 = vsel %vm309_vm3, %v340_v33, %v344_v34  ;;  %v710_v43 = vrot.slane %v708_v36, 2  ;;  %v715_v44 = vrot.slane %v713_v37, 1  ;;  %951 = vperm.xlu1 %4247, %v257_v57   ;;  %v259_v3 = vld [vmem:[%s5559_s0 + $0x20] sm:$0xff]  ;;  %v260_v10 = vld [vmem:[%s5559_s0 + $0x28] sm:$0xff]  ;;  %v262_v16 = vld [vmem:[%s5559_s0 + $0x38] sm:$0xff] }
  0x1d   : > { %3922 = vmatpush3.bf16.msra.mxu0 %v4252_v12  ;;  %3883 = vmatprep.mubr.msk.bf16.mxu0 %vm4329_vm1, %v4328_v2  ;;  %v718_v45 = vrot.slane %v716_v38, 2  ;;  %v348_v47 = vor.u32 %v346_v40, %v344_v34  ;;  %v352_v48 = vrot.slane %v350_v41, 1  ;;  %v722_v52 = vshrl.u32 %v4457_v46, 16  ;;  %v4506_v9 = vld [vmem:[%s4380_s28 + $0x24] sm:$0xff]   ;;  %v1062_v28 = vld [vmem:[%s4380_s28] sm:$0xf] }
  0x1e   : > { %3965 = vmatprep.subr.bf16.mxu0 %v4328_v2  ;;  %v711_v50 = vor.u32 %v710_v43, %v707_v42  ;;  %v725_v53 = vshll.u32 %v4457_v46, 16  ;;  %vm703_vm4 = vsmask.f32 6400  ;;  %946 = vperm.xlu0 %4246, %v256_v56   ;;  %v581_v63 = vrot.slane %v4440_v31, 1  ;;  %v264_v22 = vld [vmem:[%s5559_s0 + $0x48] sm:$0xff]  ;;  %v4271_v56 = vld [vmem:[%s5561_s2 + $0x38] sm:$0xff]  }
  0x1f   : > { %v719_v51 = vor.u32 %v718_v45, %v715_v44  ;;  %v353_v55 = vsel %vm309_vm3, %v348_v47, %v352_v48  ;;  %v724_v60 = vrot.slane %v722_v52, 1  ;;  %v582_v0 = vrot.slane %v4443_v32, 1  ;;  %v1063_v32 = vld [vmem:[%s4380_s28 + $0x4] sm:$0xf]  ;;  %v4267_v41 = vld [vmem:[%s4380_s28 + $0x8] sm:$0xff]   ;;  %v4272_v52 = vld [vmem:[%s4380_s28 + $0x10] sm:$0xff]  }
  0x20   : > { %3906 = vmatmul.mubr.msk.bf16.gmra.mxu1 %vm360_vm2, %v4251_v5  ;;  %v727_v61 = vrot.slane %v725_v53, 2  ;;  %vm580_vm5 = vcmask 1046528   ;;  %v731_v5 = vshrl.u32 %v4482_v62, 16  ;;  %v734_v6 = vshll.u32 %v4482_v62, 16  ;;  %956 = vperm.xlu1 %4247, %v258_v1   ;;  %v1076_v49 = vld [vmem:[%s4380_s28] sm:$0xe] }
  0x21   : > { %3909 = vmatprep.mubr.msk.bf16.mxu1 %vm4329_vm1, %v4328_v2  ;;  %v720_v58 = vsel %vm703_vm4, %v711_v50, %v719_v51  ;;  %v583_v7 = vsel %vm580_vm5, %v581_v63, %v582_v0  ;;  %v584_v15 = vrot.slane %v4457_v46, 1  ;;  %v740_v17 = vshrl.u32 %v4506_v9, 16  ;;  %v4266_v40 = vld [vmem:[%s4380_s28 + $0x2c] ss:$0 sps:$4 sm:$0x11]   ;;  %v4273_v63 = vld [vmem:[%s4380_s28 + $0x18] sm:$0xff]  }
  0x22   : > { %v728_v4 = vor.u32 %v727_v61, %v724_v60  ;;  %961 = vperm.xlu0 %4246, %v259_v3   ;;  %v733_v12 = vrot.slane %v731_v5, 1  ;;  %v743_v19 = vshll.u32 %v4506_v9, 16  ;;  %v3584_v37 = vcombine.low %v1062_v28, %v1063_v32  ;;  %v4270_v1 = vld [vmem:[%s5561_s2 + $0x30] sm:$0xff]  }
  0x23   : > { %v742_v23 = vrot.slane %v740_v17, 1  ;;  %v588_v38 = vrot.slane %v4506_v9, 1  ;;  %v1224_v47 = vshll.u32 %v4267_v41, 16  ;;  %v590_v48 = vrot.slane %v4266_v40, 1  ;;  %v4274_v9 = vld [vmem:[%s4380_s28 + $0x20] sm:$0xff]  }
  0x24   : > { %3884 = vmatmul.mubr.msk.bf16.gmra.mxu0 %vm360_vm2, %v329_v21  ;;  %v729_v11 = vsel %vm703_vm4, %v719_v51, %v728_v4  ;;  %966 = vperm.xlu1 %4247, %v260_v10   ;;  %v585_v21 = vsel %vm580_vm5, %v582_v0, %v584_v15  ;;  %v745_v25 = vrot.slane %v743_v19, 2  ;;  %v1219_v42 = vshll.u32 %v3584_v37, 16  ;;  %v4275_v17 = vld [vmem:[%s4380_s28 + $0x28] ss:$0 sps:$4 sm:$0x11]  }
  0x25   : > { %3887 = vmatprep.mubr.msk.bf16.mxu0 %vm4329_vm1, %v4328_v2  ;;  %v1217_v45 = vshrl.u32 %v3584_v37, 16  ;;  %v1226_v51 = vrot.slane %v1224_v47, 1  ;;  %v591_v53 = vsel %vm580_vm5, %v588_v38, %v590_v48  ;;  %v3572_v54 = vcombine.low %v1076_v49, %v1063_v32  ;;  %v4280_v47 = vld [vmem:[%s5561_s2 + $0x40] sm:$0xff]  }
  0x26   : > { %971 = vperm.xlu0 %4246, %v261_v14   ;;  %v746_v29 = vor.u32 %v745_v25, %v742_v23  ;;  %v1221_v46 = vrot.slane %v1219_v42, 1  ;;  %v1228_v57 = vshrl.u32 %v4267_v41, 16  ;;  %v1109_v60 = vrot.slane %v4267_v41, 1  ;;  %v1354_v23 = vld [vmem:[%s4380_s28 + $0x4] sm:$0xe] }
  0x27   : > { %v1240_v5 = vshll.u32 %v4273_v63, 16  ;;  %v1113_v14 = vrot.slane %v4273_v63, 1  ;;  %vm1560_vm6 = vcmask 1045504   ;;  %vm2311_vm7 = vsmask.f32 5376 }
  0x28   : > { %3910 = vmatmul.mubr.msk.bf16.gmra.mxu1 %vm360_vm2, %v4254_v13  ;;  %v736_v13 = vrot.slane %v734_v6, 2  ;;  %976 = vperm.xlu1 %4247, %v262_v16   ;;  %v1222_v50 = vor.u32 %v1221_v46, %v1217_v45  ;;  %v1230_v61 = vor.u32 %v1228_v57, %v1226_v51  ;;  %v1111_v6 = vrot.slane %v4272_v52, 1  ;;  %v4281_v45 = vld [vmem:[%s4380_s28 + $0x14] sm:$0xff]   ;;  %v4282_v57 = vld [vmem:[%s4380_s28 + $0x1c] sm:$0xff]  }
  0x29   : > { %3913 = vmatprep.mubr.msk.bf16.mxu1 %vm4329_vm1, %v4328_v2  ;;  %vm928_vm8 = vcmask 60416   ;;  %vm999_vm9 = vcmask 64512   ;;  %vm3146_vm10 = vcmask 1044480   ;;  %vm1763_vm11 = vcmask 126016  }
  0x2a   : > { %v737_v18 = vor.u32 %v736_v13, %v733_v12  ;;  %v1112_v10 = vsel %vm580_vm5, %v1109_v60, %v1111_v6  ;;  %v1244_v12 = vshrl.u32 %v4273_v63, 16  ;;  %v1248_v13 = vshll.u32 %v4274_v9, 16 }
  0x2b   : > { %vm2556_vm12 = vcmask 191616   ;;  %vm3434_vm13 = vcmask 57344   ;;  %vm3349_vm14 = vcmask 257216  }
  0x2c   : > { %3888 = vmatmul.mubr.msk.bf16.gmra.mxu0 %vm360_vm2, %v337_v27  ;;  %v738_v24 = vsel %vm703_vm4, %v728_v4, %v737_v18  ;;  %986 = vperm.xlu1 %4247, %v264_v22   ;;  %v586_v27 = vrot.slane %v4482_v62, 1  ;;  %v747_v34 = vsel %vm703_vm4, %v737_v18, %v746_v29  ;;  %v1236_v4 = vshrl.u32 %v4272_v52, 16 }
  0x2d   : > { %3891 = vmatprep.mubr.msk.bf16.mxu0 %vm4329_vm1, %v4328_v2  ;;  %v1250_v16 = vrot.slane %v1248_v13, 1  ;;  %v1114_v18 = vsel %vm580_vm5, %v1111_v6, %v1113_v14  ;;  %v1115_v22 = vrot.slane %v4274_v9, 1 }
  0x2e   : > { %v587_v33 = vsel %vm580_vm5, %v584_v15, %v586_v27  ;;  %v589_v43 = vsel %vm580_vm5, %v586_v27, %v588_v38  ;;  %v1553_v27 = vld [vmem:[%s4380_s28 + $0x4] sm:$0xc] }
  0x2f   : > { %v1116_v28 = vsel %vm580_vm5, %v1113_v14, %v1115_v22 }
  0x30   : > { %3914 = vmatmul.mubr.msk.bf16.gmra.mxu1 %vm360_vm2, %v4255_v20  ;;  %v263_v20 = vld [vmem:[%s5559_s0 + $0x40] sm:$0xff] }
  0x31   : > { %3917 = vmatprep.mubr.msk.bf16.mxu1 %vm4329_vm1, %v4328_v2  ;;  %981 = vperm.xlu0 %4246, %v263_v20   ;;  %v1252_v20 = vshrl.u32 %v4274_v9, 16 }
  0x33   : > { %v1254_v25 = vor.u32 %v1252_v20, %v1250_v16 }
  0x34   : > { %3892 = vmatmul.mubr.msk.bf16.gmra.mxu0 %vm360_vm2, %v345_v39 }
  0x35   : > { %3895 = vmatprep.mubr.msk.bf16.mxu0 %vm4329_vm1, %v4328_v2 }
  0x38   : > { %3918 = vmatmul.mubr.msk.bf16.gmra.mxu1 %vm360_vm2, %v4256_v26  ;;  %v4265_v26 = vld [vmem:[%s4380_s28 + $0x2c] ss:$0 sps:$4 sm:$0x33]  }
  0x39   : > { %3945 = vmatprep.mubr.msk.bf16.mxu1 %vm4329_vm1, %v4328_v2  ;;  %v749_v30 = vshrl.u32 %v4265_v26, 16  ;;  %v752_v31 = vshll.u32 %v4265_v26, 16 }
  0x3b   : > { %v751_v35 = vrot.slane %v749_v30, 1  ;;  %v754_v36 = vrot.slane %v752_v31, 2  ;;  %v4277_v30 = vld [vmem:[%s4380_s28 + $0xc] sm:$0xff]  }
  0x3c   : > { %3896 = vmatmul.mubr.msk.bf16.gmra.mxu0 %vm360_vm2, %v353_v55  ;;  %v1227_v55 = vsel %vm309_vm3, %v1222_v50, %v1226_v51  ;;  %v1408_v37 = vshll.u32 %v4277_v30, 16  ;;  %v1414_v50 = vshrl.u32 %v4281_v45, 16  ;;  %v1417_v51 = vshll.u32 %v4281_v45, 16 }
  0x3d   : > { %3923 = vmatprep.mubr.msk.bf16.mxu0 %vm4329_vm1, %v4328_v2  ;;  %v755_v39 = vor.u32 %v754_v36, %v751_v35  ;;  %v1405_v36 = vshrl.u32 %v4277_v30, 16 }
  0x3f   : > { %v756_v44 = vsel %vm703_vm4, %v746_v29, %v755_v39  ;;  %v1562_v39 = vrot.slane %v4277_v30, 2 }
  0x40   : > { %3946 = vmatmul.mubr.msk.bf16.vlgmr.msra.gmra.mxu1 %vm360_vm2, %v720_v58  ;;  %v1232_v58 = vshll.u32 %v4272_v52, 16  ;;  %v1564_v52 = vrot.slane %v4281_v45, 2  ;;  %v4287_v45 = vld [vmem:[%s5561_s2 + $0x50] sm:$0xff]  }
  0x41   : > { %3988 = vmatpush3.bf16.msra.mxu1 %v4261_v59  ;;  %3949 = vmatprep.mubr.msk.bf16.mxu1 %vm4329_vm1, %v4328_v2  ;;  %v1108_v59 = vrot.slane %v3572_v54, 1  ;;  %v4279_v54 = vld [vmem:[%s5561_s2 + $0x48] sm:$0xff]  }
  0x42   : > { %4031 = vmatprep.subr.bf16.mxu1 %v4328_v2  ;;  %v1234_v62 = vrot.slane %v1232_v58, 1  ;;  %v1565_v58 = vsel %vm1560_vm6, %v1562_v39, %v1564_v52 }
  0x43   : > { %v1110_v0 = vsel %vm580_vm5, %v1108_v59, %v1109_v60  ;;  %v1423_v60 = vshrl.u32 %v4282_v57, 16 }
  0x44   : > { %3924 = vmatmul.mubr.msk.bf16.vlgmr.msra.gmra.mxu0 %vm360_vm2, %v583_v7  ;;  %v1235_v3 = vsel %vm309_vm3, %v1230_v61, %v1234_v62  ;;  %v1238_v7 = vor.u32 %v1236_v4, %v1234_v62  ;;  %v1426_v61 = vshll.u32 %v4282_v57, 16  ;;  %v1566_v62 = vrot.slane %v4282_v57, 2  ;;  %v4291_v57 = vld [vmem:[%s4380_s28 + $0x24] sm:$0xff]  }
  0x45   : > { %3966 = vmatpush3.bf16.msra.mxu0 %v4260_v8  ;;  %3927 = vmatprep.mubr.msk.bf16.mxu0 %vm4329_vm1, %v4328_v2  ;;  %v1242_v8 = vrot.slane %v1240_v5, 1 }
  0x46   : > { %4009 = vmatprep.subr.bf16.mxu0 %v4328_v2  ;;  %v1567_v4 = vsel %vm1560_vm6, %v1564_v52, %v1566_v62 }
  0x47   : > { %v1246_v15 = vor.u32 %v1244_v12, %v1242_v8  ;;  %v4284_v12 = vld [vmem:[%s4380_s28 + $0x2c] ss:$0 sps:$4 sm:$0x33]  }
  0x48   : > { %3950 = vmatmul.mubr.msk.bf16.gmra.mxu1 %vm360_vm2, %v729_v11  ;;  %v1243_v11 = vsel %vm309_vm3, %v1238_v7, %v1242_v8 }
  0x49   : > { %3953 = vmatprep.mubr.msk.bf16.mxu1 %vm4329_vm1, %v4328_v2  ;;  %v1251_v19 = vsel %vm309_vm3, %v1246_v15, %v1250_v16  ;;  %v1441_v15 = vshrl.u32 %v4284_v12, 16  ;;  %v1444_v16 = vshll.u32 %v4284_v12, 16 }
  0x4b   : > { %v1443_v20 = vrot.slane %v1441_v15, 1 }
  0x4c   : > { %3928 = vmatmul.mubr.msk.bf16.gmra.mxu0 %vm360_vm2, %v585_v21  ;;  %v1256_v21 = vshll.u32 %v4275_v17, 16 }
  0x4d   : > { %3931 = vmatprep.mubr.msk.bf16.mxu0 %vm4329_vm1, %v4328_v2 }
  0x4e   : > { %v1258_v26 = vrot.slane %v1256_v21, 1  ;;  %v1446_v21 = vrot.slane %v1444_v16, 2 }
  0x50   : > { %3954 = vmatmul.mubr.msk.bf16.gmra.mxu1 %vm360_vm2, %v738_v24  ;;  %v1355_v24 = vld [vmem:[%s4380_s28 + $0x8] sm:$0xf]  ;;  %v1259_v31 = vsel %vm309_vm3, %v1254_v25, %v1258_v26  ;;  %v1447_v25 = vor.u32 %v1446_v21, %v1443_v20 }
  0x51   : > { %3957 = vmatprep.mubr.msk.bf16.mxu1 %vm4329_vm1, %v4328_v2  ;;  %v3593_v29 = vcombine.low %v1354_v23, %v1355_v24  ;;  %v3607_v32 = vcombine.low %v1553_v27, %v1355_v24 }
  0x53   : > { %v1400_v35 = vshll.u32 %v3593_v29, 16  ;;  %v1561_v38 = vrot.slane %v3607_v32, 2 }
  0x54   : > { %3932 = vmatmul.mubr.msk.bf16.gmra.mxu0 %vm360_vm2, %v587_v33  ;;  %v1117_v33 = vrot.slane %v4275_v17, 1  ;;  %v1570_v17 = vrot.slane %v4284_v12, 2 }
  0x55   : > { %3935 = vmatprep.mubr.msk.bf16.mxu0 %vm4329_vm1, %v4328_v2  ;;  %v1402_v42 = vrot.slane %v1400_v35, 2  ;;  %v1563_v46 = vsel %vm1560_vm6, %v1561_v38, %v1562_v39  ;;  %v4288_v38 = vld [vmem:[%s5561_s2 + $0x58] sm:$0xff]  }
  0x56   : > { %v1118_v40 = vsel %vm580_vm5, %v1115_v22, %v1117_v33  ;;  %v4285_v22 = vld [vmem:[%s4380_s28 + $0x4] sm:$0xfe]  }
  0x57   : > { %v1893_v26 = vshrl.u32 %v4285_v22, 16  ;;  %v1896_v27 = vshll.u32 %v4285_v22, 16 }
  0x58   : > { %3958 = vmatmul.mubr.msk.bf16.gmra.mxu1 %vm360_vm2, %v747_v34  ;;  %v1397_v34 = vshrl.u32 %v3593_v29, 16  ;;  %v2042_v29 = vrot.slane %v4285_v22, 1 }
  0x59   : > { %3961 = vmatprep.mubr.msk.bf16.mxu1 %vm4329_vm1, %v4328_v2  ;;  %v1895_v33 = vrot.slane %v1893_v26, 1 }
  0x5a   : > { %v1399_v41 = vrot.slane %v1397_v34, 1  ;;  %v1898_v34 = vrot.slane %v1896_v27, 2 }
  0x5c   : > { %3936 = vmatmul.mubr.msk.bf16.gmra.mxu0 %vm360_vm2, %v589_v43  ;;  %v1407_v43 = vrot.slane %v1405_v36, 1  ;;  %v1403_v48 = vor.u32 %v1402_v42, %v1399_v41  ;;  %v4289_v36 = vld [vmem:[%s4380_s28 + $0x14] sm:$0xff]   ;;  %v1899_v39 = vor.u32 %v1898_v34, %v1895_v33 }
  0x5d   : > { %3939 = vmatprep.mubr.msk.bf16.mxu0 %vm4329_vm1, %v4328_v2  ;;  %v1910_v41 = vshrl.u32 %v4289_v36, 16  ;;  %v1913_v42 = vshll.u32 %v4289_v36, 16 }
  0x60   : > { %3962 = vmatmul.mubr.msk.bf16.gmra.mxu1 %vm360_vm2, %v756_v44  ;;  %v1410_v44 = vrot.slane %v1408_v37, 2 }
  0x61   : > { %3989 = vmatprep.mubr.msk.bf16.mxu1 %vm4329_vm1, %v4328_v2 }
  0x62   : > { %v1411_v49 = vor.u32 %v1410_v44, %v1407_v43  ;;  %v2045_v43 = vrot.slane %v4289_v36, 1 }
  0x64   : > { %3940 = vmatmul.mubr.msk.bf16.gmra.mxu0 %vm360_vm2, %v591_v53  ;;  %v1412_v53 = vsel %vm703_vm4, %v1403_v48, %v1411_v49  ;;  %v4290_v48 = vld [vmem:[%s4380_s28 + $0x1c] sm:$0xff]  }
  0x65   : > { %3967 = vmatprep.mubr.msk.bf16.mxu0 %vm4329_vm1, %v4328_v2  ;;  %v1922_v52 = vshll.u32 %v4290_v48, 16 }
  0x68   : > { %3990 = vmatmul.mubr.msk.bf16.vlgmr.msra.gmra.mxu1 %vm360_vm2, %v1227_v55  ;;  %v1416_v55 = vrot.slane %v1414_v50, 1 }
  0x69   : > { %4032 = vmatpush3.bf16.msra.mxu1 %v4271_v56  ;;  %3993 = vmatprep.mubr.msk.bf16.mxu1 %vm4329_vm1, %v4328_v2  ;;  %v1419_v56 = vrot.slane %v1417_v51, 2  ;;  %v1919_v51 = vshrl.u32 %v4290_v48, 16 }
  0x6a   : > { %4075 = vmatprep.subr.bf16.mxu1 %v4328_v2 }
  0x6b   : > { %v1420_v59 = vor.u32 %v1419_v56, %v1416_v55  ;;  %v1921_v55 = vrot.slane %v1919_v51, 1  ;;  %v1924_v56 = vrot.slane %v1922_v52, 2  ;;  %v4296_v51 = vld [vmem:[%s5561_s2 + $0x68] sm:$0xff]  }
  0x6c   : > { %3968 = vmatmul.mubr.msk.bf16.vlgmr.msra.gmra.mxu0 %vm360_vm2, %v1110_v0  ;;  %v1425_v0 = vrot.slane %v1423_v60, 1  ;;  %v1928_v60 = vshrl.u32 %v4291_v57, 16 }
  0x6d   : > { %4010 = vmatpush3.bf16.msra.mxu0 %v4270_v1  ;;  %3971 = vmatprep.mubr.msk.bf16.mxu0 %vm4329_vm1, %v4328_v2  ;;  %v1421_v63 = vsel %vm703_vm4, %v1411_v49, %v1420_v59  ;;  %v1428_v1 = vrot.slane %v1426_v61, 2  ;;  %v1931_v61 = vshll.u32 %v4291_v57, 16 }
  0x6e   : > { %4053 = vmatprep.subr.bf16.mxu0 %v4328_v2 }
  0x6f   : > { %v1429_v5 = vor.u32 %v1428_v1, %v1425_v0  ;;  %v1930_v0 = vrot.slane %v1928_v60, 1  ;;  %v1933_v1 = vrot.slane %v1931_v61, 2 }
  0x70   : > { %3994 = vmatmul.mubr.msk.bf16.gmra.mxu1 %vm360_vm2, %v1235_v3  ;;  %v4283_v3 = vld [vmem:[%s4380_s28 + $0x24] sm:$0xff]  }
  0x71   : > { %3997 = vmatprep.mubr.msk.bf16.mxu1 %vm4329_vm1, %v4328_v2  ;;  %v1432_v6 = vshrl.u32 %v4283_v3, 16  ;;  %v1435_v7 = vshll.u32 %v4283_v3, 16  ;;  %v1568_v8 = vrot.slane %v4283_v3, 2  ;;  %v1430_v9 = vsel %vm703_vm4, %v1420_v59, %v1429_v5  ;;  %v4293_v3 = vld [vmem:[%s4380_s28 + $0x2c] ss:$0 sps:$4 sm:$0x33]  }
  0x72   : > { %v1925_v59 = vor.u32 %v1924_v56, %v1921_v55 }
  0x73   : > { %v1569_v13 = vsel %vm1560_vm6, %v1566_v62, %v1568_v8  ;;  %v1571_v23 = vsel %vm1560_vm6, %v1568_v8, %v1570_v17  ;;  %v2049_v62 = vrot.slane %v4291_v57, 1  ;;  %v1934_v8 = vor.u32 %v1933_v1, %v1930_v0  ;;  %v4776_v57 = vld [vmem:[%s4380_s28 + $0x28] sm:$0xff]  }
  0x74   : > { %3972 = vmatmul.mubr.msk.bf16.gmra.mxu0 %vm360_vm2, %v1112_v10  ;;  %v1434_v10 = vrot.slane %v1432_v6, 1  ;;  %v4294_v6 = vld [vmem:[%s4380_s28 + $0x8] sm:$0xfc]   ;;  %v2348_v0 = vshrl.u32 %v4776_v57, 16  ;;  %v2351_v1 = vshll.u32 %v4776_v57, 16 }
  0x75   : > { %3975 = vmatprep.mubr.msk.bf16.mxu0 %vm4329_vm1, %v4328_v2  ;;  %v2313_v12 = vshrl.u32 %v4294_v6, 16  ;;  %v1935_v16 = vsel %vm703_vm4, %v1925_v59, %v1934_v8 }
  0x77   : > { %v2315_v20 = vrot.slane %v2313_v12, 2 }
  0x78   : > { %3998 = vmatmul.mubr.msk.bf16.gmra.mxu1 %vm360_vm2, %v1243_v11  ;;  %v1437_v11 = vrot.slane %v1435_v7, 2  ;;  %v4717_v7 = vld [vmem:[%s4380_s28 + $0x10] sm:$0xff]  }
  0x79   : > { %4001 = vmatprep.mubr.msk.bf16.mxu1 %vm4329_vm1, %v4328_v2  ;;  %v2324_v15 = vshll.u32 %v4717_v7, 16 }
  0x7a   : > { %v1438_v14 = vor.u32 %v1437_v11, %v1434_v10  ;;  %v1940_v10 = vshll.u32 %v4293_v3, 16 }
  0x7c   : > { %3976 = vmatmul.mubr.msk.bf16.gmra.mxu0 %vm360_vm2, %v1114_v18  ;;  %v4286_v18 = vld [vmem:[%s4380_s28 + $0xc] sm:$0xff]   ;;  %v1448_v32 = vsel %vm703_vm4, %v1438_v14, %v1447_v25 }
  0x7d   : > { %3979 = vmatprep.mubr.msk.bf16.mxu0 %vm4329_vm1, %v4328_v2  ;;  %v1901_v24 = vshrl.u32 %v4286_v18, 16  ;;  %v2043_v30 = vrot.slane %v4286_v18, 1 }
  0x7f   : > { %v2044_v37 = vsel %vm580_vm5, %v2042_v29, %v2043_v30  ;;  %v2046_v49 = vsel %vm580_vm5, %v2043_v30, %v2045_v43 }
  0x80   : > { %4002 = vmatmul.mubr.msk.bf16.gmra.mxu1 %vm360_vm2, %v1251_v19  ;;  %v1439_v19 = vsel %vm703_vm4, %v1429_v5, %v1438_v14  ;;  %v2321_v14 = vshrl.u32 %v4717_v7, 16 }
  0x81   : > { %4005 = vmatprep.mubr.msk.bf16.mxu1 %vm4329_vm1, %v4328_v2 }
  0x82   : > { %v2323_v22 = vrot.slane %v2321_v14, 2 }
  0x84   : > { %3980 = vmatmul.mubr.msk.bf16.gmra.mxu0 %vm360_vm2, %v1116_v28  ;;  %v1904_v28 = vshll.u32 %v4286_v18, 16  ;;  %v1942_v18 = vrot.slane %v1940_v10, 2  ;;  %v2350_v10 = vrot.slane %v2348_v0, 2 }
  0x85   : > { %3983 = vmatprep.mubr.msk.bf16.mxu0 %vm4329_vm1, %v4328_v2 }
  0x86   : > { %v1906_v35 = vrot.slane %v1904_v28, 2 }
  0x88   : > { %4006 = vmatmul.mubr.msk.bf16.gmra.mxu1 %vm360_vm2, %v1259_v31  ;;  %v1903_v31 = vrot.slane %v1901_v24, 1  ;;  %v4730_v24 = vld [vmem:[%s4380_s28 + $0x18] sm:$0xff]  }
  0x89   : > { %4033 = vmatprep.mubr.msk.bf16.mxu1 %vm4329_vm1, %v4328_v2  ;;  %v2330_v29 = vshrl.u32 %v4730_v24, 16  ;;  %v2333_v30 = vshll.u32 %v4730_v24, 16  ;;  %v2192_v60 = vrot.slane %v4730_v24, 2 }
  0x8b   : > { %v2332_v36 = vrot.slane %v2330_v29, 2 }
  0x8c   : > { %3984 = vmatmul.mubr.msk.bf16.gmra.mxu0 %vm360_vm2, %v1118_v40  ;;  %v1907_v40 = vor.u32 %v1906_v35, %v1903_v31  ;;  %v4297_v35 = vld [vmem:[%s5561_s2 + $0x60] sm:$0xff]  }
  0x8d   : > { %4011 = vmatprep.mubr.msk.bf16.mxu0 %vm4329_vm1, %v4328_v2 }
  0x8e   : > { %v1908_v44 = vsel %vm703_vm4, %v1899_v39, %v1907_v40 }
  0x90   : > { %4034 = vmatmul.mubr.msk.bf16.vlgmr.msra.gmra.mxu1 %vm360_vm2, %v1563_v46  ;;  %v1912_v46 = vrot.slane %v1910_v41, 1  ;;  %v2189_v41 = vrot.slane %v4294_v6, 2 }
  0x91   : > { %4076 = vmatpush3.bf16.msra.mxu1 %v4280_v47  ;;  %4037 = vmatprep.mubr.msk.bf16.mxu1 %vm4329_vm1, %v4328_v2  ;;  %v1915_v47 = vrot.slane %v1913_v42, 2  ;;  %v2190_v42 = vrot.slane %v4717_v7, 2 }
  0x92   : > { %4119 = vmatprep.subr.bf16.mxu1 %v4328_v2 }
  0x93   : > { %v1916_v50 = vor.u32 %v1915_v47, %v1912_v46 }
  0x94   : > { %4012 = vmatmul.mubr.msk.bf16.vlgmr.msra.gmra.mxu0 %vm360_vm2, %v1412_v53  ;;  %v2047_v53 = vrot.slane %v4290_v48, 1 }
  0x95   : > { %4054 = vmatpush3.bf16.msra.mxu0 %v4279_v54  ;;  %4015 = vmatprep.mubr.msk.bf16.mxu0 %vm4329_vm1, %v4328_v2  ;;  %v1917_v54 = vsel %vm703_vm4, %v1907_v40, %v1916_v50 }
  0x96   : > { %4097 = vmatprep.subr.bf16.mxu0 %v4328_v2  ;;  %v2050_v5 = vsel %vm580_vm5, %v2047_v53, %v2049_v62 }
  0x98   : > { %4038 = vmatmul.mubr.msk.bf16.gmra.mxu1 %vm360_vm2, %v1565_v58  ;;  %v2048_v58 = vsel %vm580_vm5, %v2045_v43, %v2047_v53 }
  0x99   : > { %4041 = vmatprep.mubr.msk.bf16.mxu1 %vm4329_vm1, %v4328_v2 }
  0x9c   : > { %4016 = vmatmul.mubr.msk.bf16.gmra.mxu0 %vm360_vm2, %v1421_v63  ;;  %v1926_v63 = vsel %vm703_vm4, %v1916_v50, %v1925_v59  ;;  %v2191_v50 = vsel %vm1560_vm6, %v2189_v41, %v2190_v42 }
  0x9d   : > { %4019 = vmatprep.mubr.msk.bf16.mxu0 %vm4329_vm1, %v4328_v2 }
  0xa0   : > { %4042 = vmatmul.mubr.msk.bf16.gmra.mxu1 %vm360_vm2, %v1567_v4  ;;  %v4292_v4 = vld [vmem:[%s4380_s28 + $0x2c] ss:$0 sps:$4 sm:$0x11]  }
  0xa1   : > { %4045 = vmatprep.mubr.msk.bf16.mxu1 %vm4329_vm1, %v4328_v2  ;;  %v2051_v11 = vrot.slane %v4292_v4, 1 }
  0xa4   : > { %4020 = vmatmul.mubr.msk.bf16.gmra.mxu0 %vm360_vm2, %v1430_v9  ;;  %v1937_v9 = vshrl.u32 %v4293_v3, 16 }
  0xa5   : > { %4023 = vmatprep.mubr.msk.bf16.mxu0 %vm4329_vm1, %v4328_v2 }
  0xa6   : > { %v1939_v17 = vrot.slane %v1937_v9, 1 }
  0xa8   : > { %4046 = vmatmul.mubr.msk.bf16.gmra.mxu1 %vm360_vm2, %v1569_v13  ;;  %v2316_v13 = vshll.u32 %v4294_v6, 16  ;;  %v1943_v25 = vor.u32 %v1942_v18, %v1939_v17 }
  0xa9   : > { %4049 = vmatprep.mubr.msk.bf16.mxu1 %vm4329_vm1, %v4328_v2 }
  0xaa   : > { %v2318_v21 = vrot.slane %v2316_v13, 3 }
  0xac   : > { %4024 = vmatmul.mubr.msk.bf16.gmra.mxu0 %vm360_vm2, %v1439_v19  ;;  %v2052_v19 = vsel %vm580_vm5, %v2049_v62, %v2051_v11  ;;  %v2319_v27 = vor.u32 %v2318_v21, %v2315_v20  ;;  %v2353_v11 = vrot.slane %v2351_v1, 3 }
  0xad   : > { %4027 = vmatprep.mubr.msk.bf16.mxu0 %vm4329_vm1, %v4328_v2 }
  0xb0   : > { %4050 = vmatmul.mubr.msk.bf16.gmra.mxu1 %vm360_vm2, %v1571_v23  ;;  %v2326_v23 = vrot.slane %v2324_v15, 3 }
  0xb1   : > { %4077 = vmatprep.mubr.msk.bf16.mxu1 %vm4329_vm1, %v4328_v2 }
  0xb2   : > { %v2327_v28 = vor.u32 %v2326_v23, %v2323_v22  ;;  %v2639_v22 = vld [vmem:[%s4380_s28 + $0x4] sm:$0xe]  ;;  %v4814_v23 = vld [vmem:[%s4380_s28 + $0x8] sm:$0xf] }
  0xb4   : > { %4028 = vmatmul.mubr.msk.bf16.gmra.mxu0 %vm360_vm2, %v1448_v32  ;;  %v1944_v32 = vsel %vm703_vm4, %v1934_v8, %v1943_v25  ;;  %v2328_v34 = vsel %vm2311_vm7, %v2319_v27, %v2327_v28  ;;  %v4301_v8 = vld [vmem:[%s4380_s28 + $0x30] ss:$0 sps:$4 sm:$0x77]  }
  0xb5   : > { %4055 = vmatprep.mubr.msk.bf16.mxu0 %vm4329_vm1, %v4328_v2  ;;  %v2357_v17 = vshrl.u32 %v4301_v8, 16  ;;  %v2360_v18 = vshll.u32 %v4301_v8, 16 }
  0xb7   : > { %v2362_v29 = vrot.slane %v2360_v18, 3 }
  0xb8   : > { %4078 = vmatmul.mubr.msk.bf16.vlgmr.msra.gmra.mxu1 %vm360_vm2, %v2044_v37  ;;  %v2335_v37 = vrot.slane %v2333_v30, 3 }
  0xb9   : > { %4120 = vmatpush3.bf16.msra.mxu1 %v4288_v38  ;;  %4081 = vmatprep.mubr.msk.bf16.mxu1 %vm4329_vm1, %v4328_v2  ;;  %v4750_v38 = vld [vmem:[%s4380_s28 + $0x20] sm:$0xff]  }
  0xba   : > { %4163 = vmatprep.subr.bf16.mxu1 %v4328_v2  ;;  %v2339_v46 = vshrl.u32 %v4750_v38, 16  ;;  %v2342_v47 = vshll.u32 %v4750_v38, 16  ;;  %v2194_v14 = vrot.slane %v4750_v38, 2 }
  0xbc   : > { %4056 = vmatmul.mubr.msk.bf16.vlgmr.msra.gmra.mxu0 %vm360_vm2, %v1908_v44  ;;  %v2341_v55 = vrot.slane %v2339_v46, 2  ;;  %v2344_v56 = vrot.slane %v2342_v47, 3  ;;  %v2195_v24 = vsel %vm1560_vm6, %v2192_v60, %v2194_v14 }
  0xbd   : > { %4098 = vmatpush3.bf16.msra.mxu0 %v4287_v45  ;;  %4059 = vmatprep.mubr.msk.bf16.mxu0 %vm4329_vm1, %v4328_v2  ;;  %v2336_v45 = vor.u32 %v2335_v37, %v2332_v36  ;;  %v2196_v36 = vrot.slane %v4776_v57, 2 }
  0xbe   : > { %4141 = vmatprep.subr.bf16.mxu0 %v4328_v2 }
  0xc0   : > { %4082 = vmatmul.mubr.msk.bf16.gmra.mxu1 %vm360_vm2, %v2046_v49 }
  0xc1   : > { %4085 = vmatprep.mubr.msk.bf16.mxu1 %vm4329_vm1, %v4328_v2 }
  0xc4   : > { %4060 = vmatmul.mubr.msk.bf16.gmra.mxu0 %vm360_vm2, %v1917_v54  ;;  %v2337_v54 = vsel %vm2311_vm7, %v2327_v28, %v2336_v45  ;;  %v2359_v28 = vrot.slane %v2357_v17, 2 }
  0xc5   : > { %4063 = vmatprep.mubr.msk.bf16.mxu0 %vm4329_vm1, %v4328_v2 }
  0xc8   : > { %4086 = vmatmul.mubr.msk.bf16.gmra.mxu1 %vm360_vm2, %v2048_v58 }
  0xc9   : > { %4089 = vmatprep.mubr.msk.bf16.mxu1 %vm4329_vm1, %v4328_v2 }
  0xcc   : > { %4064 = vmatmul.mubr.msk.bf16.gmra.mxu0 %vm360_vm2, %v1926_v63  ;;  %v2345_v63 = vor.u32 %v2344_v56, %v2341_v55  ;;  %v4845_v55 = vld [vmem:[%s4380_s28 + $0x14] sm:$0xff]  }
  0xcd   : > { %4067 = vmatprep.mubr.msk.bf16.mxu0 %vm4329_vm1, %v4328_v2  ;;  %v2814_v8 = vshll.u32 %v4845_v55, 16 }
  0xce   : > { %v2346_v9 = vsel %vm2311_vm7, %v2336_v45, %v2345_v63 }
  0xd0   : > { %4090 = vmatmul.mubr.msk.bf16.gmra.mxu1 %vm360_vm2, %v2050_v5  ;;  %v2193_v5 = vsel %vm1560_vm6, %v2190_v42, %v2192_v60 }
  0xd1   : > { %4093 = vmatprep.mubr.msk.bf16.mxu1 %vm4329_vm1, %v4328_v2 }
  0xd4   : > { %4068 = vmatmul.mubr.msk.bf16.gmra.mxu0 %vm360_vm2, %v1935_v16 }
  0xd5   : > { %4071 = vmatprep.mubr.msk.bf16.mxu0 %vm4329_vm1, %v4328_v2 }
  0xd8   : > { %v4735_v26 = vpop.f32.mrf.mxu1  ;;  %4094 = vmatmul.mubr.msk.bf16.gmra.mxu1 %vm360_vm2, %v2052_v19  ;;  %v2354_v19 = vor.u32 %v2353_v11, %v2350_v10  ;;  %v4859_v11 = vld [vmem:[%s4380_s28 + $0x1c] sm:$0xff]  }
  0xd9   : > { %4121 = vmatprep.mubr.msk.bf16.mxu1 %vm4329_vm1, %v4328_v2 }
  0xda   : > { %v3903_v31 = vpop.f32.mrf.mxu1  ;;  %v2355_v30 = vsel %vm2311_vm7, %v2345_v63, %v2354_v19 }
  0xdb   : > { %v4821_v31 = vld [vmem:[%s4380_s28 + $0xc] sm:$0xff]  }
  0xdc   : > { %v4743_v33 = vpop.f32.mrf.mxu1  ;;  %v4752_v39 = vpop.f32.mrf.mxu0  ;;  %4072 = vmatmul.mubr.msk.bf16.gmra.mxu0 %vm360_vm2, %v1944_v32  ;;  %v3698_v32 = vcombine.low %v2639_v22, %v4814_v23  ;;  %v2805_v45 = vshll.u32 %v4821_v31, 16  ;;  %v2816_v22 = vrot.slane %v2814_v8, 2 }
  0xdd   : > { %4099 = vmatprep.mubr.msk.bf16.mxu0 %vm4329_vm1, %v4328_v2 }
  0xde   : > { %v3904_v40 = vpop.f32.mrf.mxu1  ;;  %v3881_v43 = vpop.f32.mrf.mxu0  ;;  %v2794_v41 = vshrl.u32 %v3698_v32, 16  ;;  %v2797_v42 = vshll.u32 %v3698_v32, 16  ;;  %v2807_v60 = vrot.slane %v2805_v45, 2 }
  0xdf   : > { %v2363_v40 = vor.u32 %v2362_v29, %v2359_v28  ;;  %v2802_v43 = vshrl.u32 %v4821_v31, 16  ;;  %v4307_v28 = vld [vmem:[%s5561_s2 + $0x78] sm:$0xff]   ;;  %v2820_v29 = vshrl.u32 %v4859_v11, 16 }
  0xe0   : > { %v4758_v44 = vpop.f32.mrf.mxu1  ;;  %4122 = vmatmul.mubr.msk.bf16.vlgmr.msra.gmra.mxu1 %vm360_vm2, %v2328_v34  ;;  %v4765_v48 = vpop.f32.mrf.mxu0  ;;  %v2796_v56 = vrot.slane %v2794_v41, 1  ;;  %v2799_v57 = vrot.slane %v2797_v42, 2 }
  0xe1   : > { %4164 = vmatpush3.bf16.msra.mxu1 %v4297_v35  ;;  %4125 = vmatprep.mubr.msk.bf16.mxu1 %vm4329_vm1, %v4328_v2 }
  0xe2   : > { %v3907_v49 = vpop.f32.mrf.mxu1  ;;  %4207 = vmatprep.subr.bf16.mxu1 %v4328_v2  ;;  %v3882_v52 = vpop.f32.mrf.mxu0 }
  0xe3   : > { %v2197_v49 = vsel %vm1560_vm6, %v2194_v14, %v2196_v36 }
  0xe4   : > { %v4772_v53 = vpop.f32.mrf.mxu1  ;;  %v4778_v58 = vpop.f32.mrf.mxu0  ;;  %4100 = vmatmul.mubr.msk.bf16.vlgmr.msra.gmra.mxu0 %vm360_vm2, %v2191_v50  ;;  %v4302_v50 = vld [vmem:[%s4380_s28 + $0x30] ss:$0 sps:$4 sm:$0x33]  }
  0xe5   : > { %4142 = vmatpush3.bf16.msra.mxu0 %v4296_v51  ;;  %4103 = vmatprep.mubr.msk.bf16.mxu0 %vm4329_vm1, %v4328_v2  ;;  %v2198_v0 = vrot.slane %v4302_v50, 2 }
  0xe6   : > { %v3908_v59 = vpop.f32.mrf.mxu1  ;;  %v3885_v61 = vpop.f32.mrf.mxu0  ;;  %4185 = vmatprep.subr.bf16.mxu0 %v4328_v2 }
  0xe7   : > { %v2804_v59 = vrot.slane %v2802_v43, 1  ;;  %v503_v43 = vadd.f32 %v4743_v33, %v4765_v48  ;;  %v4306_v33 = vld [vmem:[%s5561_s2 + $0x70] sm:$0xff]  }
  0xe8   : > { %v4784_v62 = vpop.f32.mrf.mxu1  ;;  %4126 = vmatmul.mubr.msk.bf16.gmra.mxu1 %vm360_vm2, %v2337_v54  ;;  %v4792_v3 = vpop.f32.mrf.mxu0  ;;  %v2364_v54 = vsel %vm2311_vm7, %v2354_v19, %v2363_v40 }
  0xe9   : > { %4129 = vmatprep.mubr.msk.bf16.mxu1 %vm4329_vm1, %v4328_v2  ;;  %v2808_v10 = vor.u32 %v2807_v60, %v2804_v59 }
  0xea   : > { %v3911_v4 = vpop.f32.mrf.mxu1  ;;  %v3886_v6 = vpop.f32.mrf.mxu0 }
  0xeb   : > { %v2811_v6 = vshrl.u32 %v4845_v55, 16 }
  0xec   : > { %v4795_v7 = vpop.f32.mrf.mxu1  ;;  %v4799_v12 = vpop.f32.mrf.mxu0  ;;  %4104 = vmatmul.mubr.msk.bf16.gmra.mxu0 %vm360_vm2, %v2193_v5  ;;  %v2653_v5 = vld [vmem:[%s4380_s28 + $0x4] sm:$0xc] }
  0xed   : > { %4107 = vmatprep.mubr.msk.bf16.mxu0 %vm4329_vm1, %v4328_v2  ;;  %v3686_v17 = vcombine.low %v2653_v5, %v4814_v23 }
  0xee   : > { %v3912_v13 = vpop.f32.mrf.mxu1  ;;  %v3889_v15 = vpop.f32.mrf.mxu0 }
  0xef   : > { %v2199_v15 = vsel %vm1560_vm6, %v2196_v36, %v2198_v0 }
  0xf0   : > { %v4805_v16 = vpop.f32.mrf.mxu1  ;;  %4130 = vmatmul.mubr.msk.bf16.gmra.mxu1 %vm360_vm2, %v2346_v9  ;;  %v4810_v20 = vpop.f32.mrf.mxu0  ;;  %v2800_v9 = vor.u32 %v2799_v57, %v2796_v56 }
  0xf1   : > { %4133 = vmatprep.mubr.msk.bf16.mxu1 %vm4329_vm1, %v4328_v2 }
  0xf2   : > { %v3915_v21 = vpop.f32.mrf.mxu1  ;;  %v3890_v25 = vpop.f32.mrf.mxu0 }
  0xf3   : > { %v2813_v21 = vrot.slane %v2811_v6, 1  ;;  %v2809_v25 = vsel %vm703_vm4, %v2800_v9, %v2808_v10 }
  0xf4   : > { %v4817_v27 = vpop.f32.mrf.mxu1  ;;  %v4824_v34 = vpop.f32.mrf.mxu0  ;;  %4108 = vmatmul.mubr.msk.bf16.gmra.mxu0 %vm360_vm2, %v2195_v24  ;;  %v500_v24 = vadd.f32 %v4735_v26, %v4752_v39  ;;  %v2685_v26 = vrot.slane %v3686_v17, 2  ;;  %v2686_v39 = vrot.slane %v4821_v31, 2  ;;  %v2822_v31 = vrot.slane %v2820_v29, 1  ;;  %v4907_v17 = vld [vmem:[%s4380_s28 + $0x2c] ss:$0 sps:$4 sm:$0x33]  }
  0xf5   : > { %4111 = vmatprep.mubr.msk.bf16.mxu0 %vm4329_vm1, %v4328_v2  ;;  %v2817_v42 = vor.u32 %v2816_v22, %v2813_v21 }
  0xf6   : > { %v3916_v35 = vpop.f32.mrf.mxu1  ;;  %v3893_v37 = vpop.f32.mrf.mxu0  ;;  %v2687_v59 = vsel %vm1560_vm6, %v2685_v26, %v2686_v39 }
  0xf7   : > { %v4875_v35 = vld [vmem:[%s4380_s28 + $0x24] sm:$0xff]   ;;  %v4883_v37 = vld [vmem:[%s5562_s3] ss:$0 sm:$0xff]  ;;  %v2818_v0 = vsel %vm703_vm4, %v2808_v10, %v2817_v42 }
  0xf8   : > { %v4830_v38 = vpop.f32.mrf.mxu1  ;;  %4134 = vmatmul.mubr.msk.bf16.gmra.mxu1 %vm360_vm2, %v2355_v30  ;;  %v4837_v46 = vpop.f32.mrf.mxu0  ;;  %v2823_v30 = vshll.u32 %v4859_v11, 16  ;;  %v2832_v48 = vshll.u32 %v4875_v35, 16 }
  0xf9   : > { %4137 = vmatprep.mubr.msk.bf16.mxu1 %vm4329_vm1, %v4328_v2 }
  0xfa   : > { %v3919_v47 = vpop.f32.mrf.mxu1  ;;  %v3894_v51 = vpop.f32.mrf.mxu0 }
  0xfb   : > { %v4888_v47 = vpop.permute.xlu0 %941 }
  0xfc   : > { %v4841_v52 = vpop.f32.mrf.mxu1  ;;  %v4847_v61 = vpop.f32.mrf.mxu0  ;;  %4112 = vmatmul.mubr.msk.bf16.gmra.mxu0 %vm360_vm2, %v2197_v49  ;;  %v2825_v49 = vrot.slane %v2823_v30, 2 }
  0xfd   : > { %4115 = vmatprep.mubr.msk.bf16.mxu0 %vm4329_vm1, %v4328_v2 }
  0xfe   : > { %v3920_v63 = vpop.f32.mrf.mxu1  ;;  %v3897_v1 = vpop.f32.mrf.mxu0  ;;  %v4903_v8 = vor.u32 %v2825_v49, %v2822_v31 }
  0xff   : > { %v2688_v1 = vrot.slane %v4845_v55, 2  ;;  %v4911_v22 = vpop.permute.xlu0 %946 }
 0x100   : > { %v812_v4 = vpop.f32.mrf.mxu1  ;;  %4138 = vmatmul.mubr.msk.bf16.gmra.mxu1 %vm360_vm2, %v2364_v54  ;;  %v4861_v13 = vpop.f32.mrf.mxu0  ;;  %v2829_v54 = vshrl.u32 %v4875_v35, 16 }
 0x101   : > { %4165 = vmatprep.mubr.msk.bf16.mxu1 %vm4329_vm1, %v4328_v2 }
 0x102   : > { %v3947_v14 = vpop.f32.mrf.mxu1  ;;  %v3898_v18 = vpop.f32.mrf.mxu0 }
 0x104   : > { %v815_v19 = vpop.f32.mrf.mxu1  ;;  %v647_v32 = vpop.f32.mrf.mxu0  ;;  %4116 = vmatmul.mubr.msk.bf16.gmra.mxu0 %vm360_vm2, %v2199_v15  ;;  %v2831_v15 = vrot.slane %v2829_v54, 1 }
 0x105   : > { %v686_v36 = vadd.f32 %v647_v32, %v500_v24  ;;  %4143 = vmatprep.mubr.msk.bf16.mxu0 %vm4329_vm1, %v4328_v2  ;;  %v2689_v24 = vsel %vm1560_vm6, %v2686_v39, %v2688_v1  ;;  %v4921_v32 = vpop.permute.xlu1 %951  ;;  %v2838_v39 = vshrl.u32 %v4907_v17, 16 }
 0x106   : > { %v3948_v23 = vpop.f32.mrf.mxu1  ;;  %v3925_v40 = vpop.f32.mrf.mxu0 }
 0x107   : > { %v851_v45 = vadd.f32 %v812_v4, %v686_v36  ;;  %v508_v4 = vadd.f32 %v4758_v44, %v4778_v58  ;;  %v2834_v44 = vrot.slane %v2832_v48, 2  ;;  %v2827_v23 = vsel %vm703_vm4, %v2817_v42, %v4903_v8 }
 0x108   : > { %v820_v41 = vpop.f32.mrf.mxu1  ;;  %4166 = vmatmul.mubr.msk.bf16.vlgmr.msra.gmra.mxu1 %vm360_vm2, %v2809_v25  ;;  %v650_v50 = vpop.f32.mrf.mxu0  ;;  %v516_v42 = vadd.f32 %v4784_v62, %v4799_v12  ;;  %v2840_v12 = vrot.slane %v2838_v39, 1 }
 0x109   : > { %4208 = vmatpush3.bf16.msra.mxu1 %v4307_v28  ;;  %4169 = vmatprep.mubr.msk.bf16.mxu1 %vm4329_vm1, %v4328_v2  ;;  %v868_v56 = vadd.f32 %v4883_v37, %v851_v45  ;;  %v687_v57 = vadd.f32 %v650_v50, %v503_v43  ;;  %v511_v28 = vadd.f32 %v4772_v53, %v4792_v3  ;;  %v2690_v43 = vrot.slane %v4859_v11, 2 }
 0x10a   : > { %v3951_v51 = vpop.f32.mrf.mxu1  ;;  %v3926_v60 = vpop.f32.mrf.mxu0  ;;  %v2841_v45 = vshll.u32 %v4907_v17, 16  ;;  %v4934_v31 = vor.u32 %v2834_v44, %v2831_v15  ;;  %v519_v15 = vadd.f32 %v4795_v7, %v4810_v20 }
 0x10b   : > { %v878_v5 = vmax.f32 %v868_v56, 0.0  ;;  %v852_v6 = vadd.f32 %v815_v19, %v687_v57  ;;  %v2692_v51 = vrot.slane %v4875_v35, 2  ;;  %v2691_v44 = vsel %vm1560_vm6, %v2688_v1, %v2690_v43 }
 0x10c   : > { %v823_v63 = vpop.f32.mrf.mxu1  ;;  %v655_v9 = vpop.f32.mrf.mxu0  ;;  %4144 = vmatmul.mubr.msk.bf16.vlgmr.msra.gmra.mxu0 %vm360_vm2, %v2687_v59  ;;  %v2836_v55 = vsel %vm703_vm4, %v4903_v8, %v4934_v31  ;;  %v3139_v8 = vld [vmem:[%s4380_s28 + $0x8] sm:$0x8] }
 0x10d   : > { %v869_v18 = vadd.f32 %v4883_v37, %v852_v6  ;;  %v688_v10 = vadd.f32 %v655_v9, %v508_v4  ;;  %4186 = vmatpush3.bf16.msra.mxu0 %v4306_v33  ;;  %v989_v21 = vmul.f32 %v4888_v47, %v878_v5  ;;  %4147 = vmatprep.mubr.msk.bf16.mxu0 %vm4329_vm1, %v4328_v2  ;;  %v2843_v4 = vrot.slane %v2841_v45, 2  ;;  %v4975_v45 = vpop.permute.xlu0 %961 }
 0x10e   : > { %v3952_v14 = vpop.f32.mrf.mxu1  ;;  %v3929_v58 = vpop.f32.mrf.mxu0  ;;  %v3741_v25 = vpack.c.bf16 %v878_v5, %v878_v5  ;;  %v4967_v1 = vsel %vm1560_vm6, %v2690_v43, %v2692_v51 }
 0x10f   : > { %v879_v29 = vmax.f32 %v869_v18, 0.0  ;;  %v853_v30 = vadd.f32 %v820_v41, %v688_v10  ;;  %v1026_v36 = vmul.f32 %v989_v21, %v878_v5  ;;  %v1000_v49 = vsel %vm999_vm9, %v989_v21, 0.0  ;;  %v4948_v14 = vpop.permute.xlu1 %956 }
 0x110   : > { %v828_v19 = vpop.f32.mrf.mxu1  ;;  %4170 = vmatmul.mubr.msk.bf16.gmra.mxu1 %vm360_vm2, %v2818_v0  ;;  %v658_v26 = vpop.f32.mrf.mxu0  ;;  %929 = vst.msk [vmem:[%s4385_s7] sm:$0xf] %vm928_vm8, %v3741_v25 }
 0x111   : > { %4173 = vmatprep.mubr.msk.bf16.mxu1 %vm4329_vm1, %v4328_v2  ;;  %v870_v53 = vadd.f32 %v4883_v37, %v853_v30  ;;  %v689_v3 = vadd.f32 %v658_v26, %v511_v28  ;;  %v990_v41 = vmul.f32 %v4911_v22, %v879_v29  ;;  %v3742_v54 = vpack.c.bf16 %v879_v29, %v879_v29 }
 0x112   : > { %v3955_v40 = vpop.f32.mrf.mxu1  ;;  %v3930_v11 = vpop.f32.mrf.mxu0  ;;  %v1036_v48 = vsel %vm999_vm9, %v1026_v36, 0.0 }
 0x113   : > { %v880_v56 = vmax.f32 %v870_v53, 0.0  ;;  %v854_v57 = vadd.f32 %v823_v63, %v689_v3  ;;  %v1001_v59 = vsel %vm999_vm9, %v990_v41, 0.0  ;;  %v1027_v33 = vmul.f32 %v990_v41, %v879_v29  ;;  %930 = vst.msk [vmem:[%s4385_s7 + $0x4] sm:$0xf] %vm928_vm8, %v3742_v54  ;;  %v2941_v53 = vld [vmem:[%s4380_s28 + $0xc] sm:$0xf] }
 0x114   : > { %v831_v50 = vpop.f32.mrf.mxu1  ;;  %v1002_v60 = vadd.f32 %v1001_v59, %v1000_v49  ;;  %v663_v0 = vpop.f32.mrf.mxu0  ;;  %4148 = vmatmul.mubr.msk.bf16.gmra.mxu0 %vm360_vm2, %v2689_v24  ;;  %v524_v3 = vadd.f32 %v4805_v16, %v4824_v34  ;;  %v2694_v49 = vrot.slane %v4907_v17, 2  ;;  %v3721_v17 = vcombine.low %v3139_v8, %v2941_v53 }
 0x115   : > { %v871_v5 = vadd.f32 %v4883_v37, %v854_v57  ;;  %v1037_v6 = vsel %vm999_vm9, %v1027_v33, 0.0  ;;  %v690_v9 = vadd.f32 %v663_v0, %v516_v42  ;;  %v991_v63 = vmul.f32 %v4921_v32, %v880_v56  ;;  %4151 = vmatprep.mubr.msk.bf16.mxu0 %vm4329_vm1, %v4328_v2  ;;  %v4991_v0 = vld [vmem:[%s4380_s28 + $0x10] sm:$0xff]  }
 0x116   : > { %v3956_v62 = vpop.f32.mrf.mxu1  ;;  %v1038_v18 = vadd.f32 %v1037_v6, %v1036_v48  ;;  %v3933_v10 = vpop.f32.mrf.mxu0  ;;  %v3743_v58 = vpack.c.bf16 %v880_v56, %v880_v56 }
 0x117   : > { %v881_v24 = vmax.f32 %v871_v5, 0.0  ;;  %v855_v25 = vadd.f32 %v828_v19, %v690_v9  ;;  %v1003_v28 = vsel %vm999_vm9, %v991_v63, 0.0  ;;  %v1028_v29 = vmul.f32 %v991_v63, %v880_v56  ;;  %v4998_v5 = vpop.permute.xlu1 %966 }
 0x118   : > { %v836_v21 = vpop.f32.mrf.mxu1  ;;  %4174 = vmatmul.mubr.msk.bf16.gmra.mxu1 %vm360_vm2, %v2827_v23  ;;  %v1004_v7 = vadd.f32 %v1003_v28, %v1002_v60  ;;  %v666_v20 = vpop.f32.mrf.mxu0  ;;  %v2844_v19 = vor.u32 %v2843_v4, %v2840_v12  ;;  %v2940_v23 = vld [vmem:[%s4380_s28 + $0x8] sm:$0xc]  ;;  %931 = vst.msk [vmem:[%s4385_s7 + $0x8] sm:$0xf] %vm928_vm8, %v3743_v58  ;;  %v3147_v28 = vrot.slane %v3721_v17, 3 }
 0x119   : > { %4177 = vmatprep.mubr.msk.bf16.mxu1 %vm4329_vm1, %v4328_v2  ;;  %v872_v36 = vadd.f32 %v4883_v37, %v855_v25  ;;  %v1039_v26 = vsel %vm999_vm9, %v1028_v29, 0.0  ;;  %v691_v40 = vadd.f32 %v666_v20, %v519_v15  ;;  %v992_v39 = vmul.f32 %v4948_v14, %v881_v24 }
 0x11a   : > { %v3959_v30 = vpop.f32.mrf.mxu1  ;;  %v1040_v43 = vadd.f32 %v1039_v26, %v1038_v18  ;;  %v3934_v41 = vpop.f32.mrf.mxu0  ;;  %v3744_v11 = vpack.c.bf16 %v881_v24, %v881_v24  ;;  %v4986_v16 = vsel %vm703_vm4, %v4934_v31, %v2844_v19  ;;  %v4988_v34 = vcombine.low %v2940_v23, %v2941_v53 }
 0x11b   : > { %v882_v54 = vmax.f32 %v872_v36, 0.0  ;;  %v856_v56 = vadd.f32 %v831_v50, %v691_v40  ;;  %v1005_v57 = vsel %vm999_vm9, %v992_v39, 0.0  ;;  %v1029_v59 = vmul.f32 %v992_v39, %v881_v24  ;;  %v5020_v30 = vpop.permute.xlu0 %971 }
 0x11c   : > { %v839_v42 = vpop.f32.mrf.mxu1  ;;  %v1006_v33 = vadd.f32 %v1005_v57, %v1004_v7  ;;  %v671_v48 = vpop.f32.mrf.mxu0  ;;  %4152 = vmatmul.mubr.msk.bf16.gmra.mxu0 %vm360_vm2, %v2691_v44  ;;  %932 = vst.msk [vmem:[%s4385_s7 + $0xc] sm:$0xf] %vm928_vm8, %v3744_v11  ;;  %v527_v31 = vadd.f32 %v4817_v27, %v4837_v46  ;;  %v5008_v15 = vsel %vm1560_vm6, %v2692_v51, %v2694_v49  ;;  %v3148_v29 = vrot.slane %v4991_v0, 3 }
 0x11d   : > { %v873_v50 = vadd.f32 %v4883_v37, %v856_v56  ;;  %v1041_v62 = vsel %vm999_vm9, %v1029_v59, 0.0  ;;  %v692_v12 = vadd.f32 %v671_v48, %v524_v3  ;;  %v993_v4 = vmul.f32 %v4975_v45, %v882_v54  ;;  %4155 = vmatprep.mubr.msk.bf16.mxu0 %vm4329_vm1, %v4328_v2  ;;  %v5035_v57 = vpop.permute.xlu1 %976 }
 0x11e   : > { %v3960_v60 = vpop.f32.mrf.mxu1  ;;  %v1042_v6 = vadd.f32 %v1041_v62, %v1040_v43  ;;  %v3937_v9 = vpop.f32.mrf.mxu0  ;;  %v3745_v18 = vpack.c.bf16 %v882_v54, %v882_v54  ;;  %v2983_v35 = vshrl.u32 %v4988_v34, 16  ;;  %v2986_v26 = vshll.u32 %v4988_v34, 16 }
 0x11f   : > { %v883_v10 = vmax.f32 %v873_v50, 0.0  ;;  %v857_v44 = vadd.f32 %v836_v21, %v692_v12  ;;  %v1007_v58 = vsel %vm999_vm9, %v993_v4, 0.0  ;;  %v1030_v24 = vmul.f32 %v993_v4, %v882_v54 }
 0x120   : > { %v844_v63 = vpop.f32.mrf.mxu1  ;;  %4178 = vmatmul.mubr.msk.bf16.gmra.mxu1 %vm360_vm2, %v2836_v55  ;;  %v1008_v27 = vadd.f32 %v1007_v58, %v1006_v33  ;;  %v674_v46 = vpop.f32.mrf.mxu0  ;;  %933 = vst.msk [vmem:[%s4385_s7 + $0x10] sm:$0xf] %vm928_vm8, %v3745_v18  ;;  %v532_v55 = vadd.f32 %v4830_v38, %v4847_v61  ;;  %v2991_v38 = vshrl.u32 %v4991_v0, 16  ;;  %v2994_v61 = vshll.u32 %v4991_v0, 16  ;;  %v5049_v18 = vld [vmem:[%s4380_s28 + $0x18] sm:$0xff]  }
 0x121   : > { %4181 = vmatprep.mubr.msk.bf16.mxu1 %vm4329_vm1, %v4328_v2  ;;  %v874_v51 = vadd.f32 %v4883_v37, %v857_v44  ;;  %v1043_v21 = vsel %vm999_vm9, %v1030_v24, 0.0  ;;  %v693_v7 = vadd.f32 %v674_v46, %v527_v31  ;;  %v994_v20 = vmul.f32 %v4998_v5, %v883_v10  ;;  %v5056_v58 = vpop.permute.xlu0 %981 }
 0x122   : > { %v3963_v25 = vpop.f32.mrf.mxu1  ;;  %v1044_v19 = vadd.f32 %v1043_v21, %v1042_v6  ;;  %v3938_v23 = vpop.f32.mrf.mxu0  ;;  %v3746_v40 = vpack.c.bf16 %v883_v10, %v883_v10  ;;  %v2985_v60 = vrot.slane %v2983_v35, 2  ;;  %v2988_v31 = vrot.slane %v2986_v26, 3 }
 0x123   : > { %v884_v39 = vmax.f32 %v874_v51, 0.0  ;;  %v858_v53 = vadd.f32 %v839_v42, %v693_v7  ;;  %v1009_v8 = vsel %vm999_vm9, %v994_v20, 0.0  ;;  %v1031_v3 = vmul.f32 %v994_v20, %v883_v10 }
 0x124   : > { %v847_v36 = vpop.f32.mrf.mxu1  ;;  %v1010_v43 = vadd.f32 %v1009_v8, %v1008_v27  ;;  %v679_v41 = vpop.f32.mrf.mxu0  ;;  %4156 = vmatmul.mubr.msk.bf16.gmra.mxu0 %vm360_vm2, %v4967_v1  ;;  %934 = vst.msk [vmem:[%s4385_s7 + $0x14] sm:$0xf] %vm928_vm8, %v3746_v40  ;;  %v535_v1 = vadd.f32 %v4841_v52, %v4861_v13  ;;  %v2993_v6 = vrot.slane %v2991_v38, 2  ;;  %v2996_v9 = vrot.slane %v2994_v61, 3 }
 0x125   : > { %v875_v11 = vadd.f32 %v4883_v37, %v858_v53  ;;  %v1045_v42 = vsel %vm999_vm9, %v1031_v3, 0.0  ;;  %v694_v54 = vadd.f32 %v679_v41, %v532_v55  ;;  %v995_v56 = vmul.f32 %v5020_v30, %v884_v39  ;;  %4159 = vmatprep.mubr.msk.bf16.mxu0 %vm4329_vm1, %v4328_v2  ;;  %v5074_v8 = vpop.permute.xlu1 %986 }
 0x126   : > { %v3964_v49 = vpop.f32.mrf.mxu1  ;;  %v1046_v59 = vadd.f32 %v1045_v42, %v1044_v19  ;;  %v3941_v33 = vpop.f32.mrf.mxu0  ;;  %v3747_v34 = vpack.c.bf16 %v884_v39, %v884_v39  ;;  %v3149_v25 = vsel %vm3146_vm10, %v3147_v28, %v3148_v29  ;;  %v2989_v26 = vor.u32 %v2988_v31, %v2985_v60 }
 0x127   : > { %v885_v17 = vmax.f32 %v875_v11, 0.0  ;;  %v859_v50 = vadd.f32 %v844_v63, %v694_v54  ;;  %v1011_v62 = vsel %vm999_vm9, %v995_v56, 0.0  ;;  %v1032_v12 = vmul.f32 %v995_v56, %v884_v39 }
 0x128   : > { %v5041_v48 = vpop.f32.mrf.mxu1  ;;  %4182 = vmatmul.mubr.msk.bf16.gmra.mxu1 %vm360_vm2, %v4986_v16  ;;  %v1012_v52 = vadd.f32 %v1011_v62, %v1010_v43  ;;  %v682_v13 = vpop.f32.mrf.mxu0  ;;  %935 = vst.msk [vmem:[%s4385_s7 + $0x18] sm:$0xf] %vm928_vm8, %v3747_v34  ;;  %v2997_v40 = vor.u32 %v2996_v9, %v2993_v6  ;;  %v3000_v39 = vshrl.u32 %v5049_v18, 16  ;;  %v3150_v42 = vrot.slane %v5049_v18, 3 }
 0x129   : > { %4209 = vmatprep.mubr.msk.bf16.mxu1 %vm4329_vm1, %v4328_v2  ;;  %v876_v16 = vadd.f32 %v4883_v37, %v859_v50  ;;  %v1047_v63 = vsel %vm999_vm9, %v1032_v12, 0.0  ;;  %v695_v10 = vadd.f32 %v682_v13, %v535_v1  ;;  %v996_v44 = vmul.f32 %v5035_v57, %v885_v17  ;;  %v4316_v50 = vld [vmem:[%s4380_s28 + $0x20] sm:$0xff]  }
 0x12a   : > { %v3991_v4 = vpop.f32.mrf.mxu1  ;;  %v1048_v24 = vadd.f32 %v1047_v63, %v1046_v59  ;;  %v3942_v27 = vpop.f32.mrf.mxu0  ;;  %v3748_v35 = vpack.c.bf16 %v885_v17, %v885_v17  ;;  %v2998_v59 = vsel %vm2311_vm7, %v2989_v26, %v2997_v40  ;;  %v3002_v33 = vrot.slane %v3000_v39, 2 }
 0x12b   : > { %v886_v51 = vmax.f32 %v876_v16, 0.0  ;;  %v860_v21 = vadd.f32 %v847_v36, %v695_v10  ;;  %v1013_v7 = vsel %vm999_vm9, %v996_v44, 0.0  ;;  %v1033_v20 = vmul.f32 %v996_v44, %v885_v17 }
 0x12c   : > { %v5058_v46 = vpop.f32.mrf.mxu1  ;;  %v1014_v55 = vadd.f32 %v1013_v7, %v1012_v52  ;;  %v5064_v19 = vpop.f32.mrf.mxu0  ;;  %4160 = vmatmul.mubr.msk.bf16.gmra.mxu0 %vm360_vm2, %v5008_v15  ;;  %936 = vst.msk [vmem:[%s4385_s7 + $0x1c] sm:$0xf] %vm928_vm8, %v3748_v35  ;;  %v3003_v15 = vshll.u32 %v5049_v18, 16  ;;  %v3151_v6 = vsel %vm3146_vm10, %v3148_v29, %v3150_v42  ;;  %v3009_v44 = vshrl.u32 %v4316_v50, 16 }
 0x12d   : > { %v877_v28 = vadd.f32 %v4883_v37, %v860_v21  ;;  %v1049_v36 = vsel %vm999_vm9, %v1033_v20, 0.0  ;;  %v997_v53 = vmul.f32 %v5056_v58, %v886_v51  ;;  %4187 = vmatprep.mubr.msk.bf16.mxu0 %vm4329_vm1, %v4328_v2  ;;  %v3749_v49 = vpack.c.bf16 %v886_v51, %v886_v51 }
 0x12e   : > { %v3992_v23 = vpop.f32.mrf.mxu1  ;;  %v1050_v3 = vadd.f32 %v1049_v36, %v1048_v24  ;;  %v3969_v43 = vpop.f32.mrf.mxu0  ;;  %v3005_v17 = vrot.slane %v3003_v15, 3  ;;  %v3012_v0 = vshll.u32 %v4316_v50, 16  ;;  %v3011_v7 = vrot.slane %v3009_v44, 2 }
 0x12f   : > { %v887_v38 = vmax.f32 %v877_v28, 0.0  ;;  %v1015_v61 = vsel %vm999_vm9, %v997_v53, 0.0  ;;  %v1034_v11 = vmul.f32 %v997_v53, %v886_v51  ;;  %937 = vst.msk [vmem:[%s4385_s7 + $0x20] sm:$0xf] %vm928_vm8, %v3749_v49 }
 0x130   : > { %v5079_v41 = vpop.f32.mrf.mxu1  ;;  %4210 = vmatmul.mubr.msk.bf16.vlgmr.msra.gmra.mxu1 %vm360_vm2, %v3149_v25  ;;  %v1016_v54 = vadd.f32 %v1015_v61, %v1014_v55  ;;  %v5086_v56 = vpop.f32.mrf.mxu0  ;;  %v3006_v10 = vor.u32 %v3005_v17, %v3002_v33  ;;  %v3152_v25 = vrot.slane %v4316_v50, 3  ;;  %v3014_v20 = vrot.slane %v3012_v0, 3  ;;  %v4317_v55 = vld [vmem:[%s4380_s28 + $0x28] sm:$0xff]  }
 0x131   : > { %4213 = vmatprep.mubr.msk.bf16.mxu1 %vm4329_vm1, %v4328_v2  ;;  %v1051_v60 = vsel %vm999_vm9, %v1034_v11, 0.0  ;;  %v998_v34 = vmul.f32 %v5074_v8, %v887_v38  ;;  %v3750_v62 = vpack.c.bf16 %v887_v38, %v887_v38  ;;  %v3018_v15 = vshrl.u32 %v4317_v55, 16 }
 0x132   : > { %v3995_v1 = vpop.f32.mrf.mxu1  ;;  %v1052_v12 = vadd.f32 %v1051_v60, %v1050_v3  ;;  %v3970_v52 = vpop.f32.mrf.mxu0  ;;  %v3007_v21 = vsel %vm2311_vm7, %v2997_v40, %v3006_v10  ;;  %v3153_v39 = vsel %vm3146_vm10, %v3150_v42, %v3152_v25  ;;  %v3015_v53 = vor.u32 %v3014_v20, %v3011_v7 }
 0x133   : > { %v1017_v4 = vsel %vm999_vm9, %v998_v34, 0.0  ;;  %v1035_v31 = vmul.f32 %v998_v34, %v887_v38  ;;  %938 = vst.msk [vmem:[%s4385_s7 + $0x24] sm:$0xf] %vm928_vm8, %v3750_v62  ;;  %v3021_v40 = vshll.u32 %v4317_v55, 16  ;;  %v3154_v49 = vrot.slane %v4317_v55, 3 }
 0x134   : > { %v5094_v13 = vpop.f32.mrf.mxu1  ;;  %v5102_v9 = vadd.f32 %v1017_v4, %v1016_v54  ;;  %v5104_v18 = vpop.f32.mrf.mxu0  ;;  %4188 = vmatmul.mubr.msk.bf16.vlgmr.msra.gmra.mxu0 %vm360_vm2, %v2998_v59  ;;  %v3016_v11 = vsel %vm2311_vm7, %v3006_v10, %v3015_v53  ;;  %v3020_v42 = vrot.slane %v3018_v15, 2  ;;  %v4318_v1 = vld [vmem:[%s4380_s28 + $0x30] ss:$0 sps:$4 sm:$0x77]   ;;  %s4331_s28 = smov 8  }
 0x135   : > { %v1053_v63 = vsel %vm999_vm9, %v1035_v31, 0.0  ;;  %4191 = vmatprep.mubr.msk.bf16.mxu0 %vm4329_vm1, %v4328_v2  ;;  %v3023_v54 = vrot.slane %v3021_v40, 3  ;;  %v3155_v60 = vsel %vm3146_vm10, %v3152_v25, %v3154_v49  ;;  %v3027_v62 = vshrl.u32 %v4318_v1, 16 }
 0x136   : > { %v3996_v16 = vpop.f32.mrf.mxu1  ;;  %v5110_v24 = vadd.f32 %v1053_v63, %v1052_v12  ;;  %v3973_v29 = vpop.f32.mrf.mxu0  ;;  %v3030_v12 = vshll.u32 %v4318_v1, 16  ;;  %v3156_v31 = vrot.slane %v4318_v1, 3  ;;  %v1316_v40 = vadd.f32 %v5041_v48, %v5064_v19 }
 0x137   : > { %v3024_v50 = vor.u32 %v3023_v54, %v3020_v42  ;;  %v3029_v10 = vrot.slane %v3027_v62, 2  ;;  %v1319_v42 = vadd.f32 %v5058_v46, %v5086_v56  ;;  %v1324_v48 = vadd.f32 %v5079_v41, %v5104_v18 }
 0x138   : > { %v5112_v27 = vpop.f32.mrf.mxu1  ;;  %4214 = vmatmul.mubr.msk.bf16.gmra.mxu1 %vm360_vm2, %v3151_v6  ;;  %v5117_v35 = vpop.f32.mrf.mxu0  ;;  %v3032_v44 = vrot.slane %v3030_v12, 3  ;;  %v3157_v25 = vsel %vm3146_vm10, %v3154_v49, %v3156_v31 }
 0x139   : > { %4217 = vmatprep.mubr.msk.bf16.mxu1 %vm4329_vm1, %v4328_v2  ;;  %v3025_v63 = vsel %vm2311_vm7, %v3015_v53, %v3024_v50 }
 0x13a   : > { %v3999_v51 = vpop.f32.mrf.mxu1  ;;  %v3974_v23 = vpop.f32.mrf.mxu0  ;;  %v3033_v7 = vor.u32 %v3032_v44, %v3029_v10 }
 0x13c   : > { %v5121_v26 = vpop.f32.mrf.mxu1  ;;  %v5124_v28 = vpop.f32.mrf.mxu0  ;;  %4192 = vmatmul.mubr.msk.bf16.gmra.mxu0 %vm360_vm2, %v3007_v21 }
 0x13d   : > { %4195 = vmatprep.mubr.msk.bf16.mxu0 %vm4329_vm1, %v4328_v2 }
 0x13e   : > { %v4000_v36 = vpop.f32.mrf.mxu1  ;;  %v3977_v3 = vpop.f32.mrf.mxu0 }
 0x13f   : > { %v3034_v36 = vsel %vm2311_vm7, %v3024_v50, %v3033_v7 }
 0x140   : > { %v5129_v43 = vpop.f32.mrf.mxu1  ;;  %4218 = vmatmul.mubr.msk.bf16.gmra.mxu1 %vm360_vm2, %v3153_v39  ;;  %v5134_v38 = vpop.f32.mrf.mxu0 }
 0x141   : > { %4221 = vmatprep.mubr.msk.bf16.mxu1 %vm4329_vm1, %v4328_v2 }
 0x142   : > { %v4003_v61 = vpop.f32.mrf.mxu1  ;;  %v3978_v59 = vpop.f32.mrf.mxu0 }
 0x144   : > { %v5138_v33 = vpop.f32.mrf.mxu1  ;;  %v5141_v34 = vpop.f32.mrf.mxu0  ;;  %4196 = vmatmul.mubr.msk.bf16.gmra.mxu0 %vm360_vm2, %v3016_v11 }
 0x145   : > { %4199 = vmatprep.mubr.msk.bf16.mxu0 %vm4329_vm1, %v4328_v2 }
 0x146   : > { %v4004_v17 = vpop.f32.mrf.mxu1  ;;  %v3981_v52 = vpop.f32.mrf.mxu0 }
 0x148   : > { %v5146_v4 = vpop.f32.mrf.mxu1  ;;  %4222 = vmatmul.mubr.msk.bf16.gmra.mxu1 %vm360_vm2, %v3155_v60  ;;  %v5151_v6 = vpop.f32.mrf.mxu0 }
 0x149   : > { %4225 = vmatprep.mubr.msk.bf16.mxu1 %vm4329_vm1, %v4328_v2 }
 0x14a   : > { %v4007_v16 = vpop.f32.mrf.mxu1  ;;  %v3982_v0 = vpop.f32.mrf.mxu0 }
 0x14b   : > { %v1327_v0 = vadd.f32 %v5094_v13, %v5117_v35 }
 0x14c   : > { %v5154_v29 = vpop.f32.mrf.mxu1  ;;  %v5157_v51 = vpop.f32.mrf.mxu0  ;;  %4200 = vmatmul.mubr.msk.bf16.gmra.mxu0 %vm360_vm2, %v3025_v63 }
 0x14d   : > { %4203 = vmatprep.mubr.msk.bf16.mxu0 %vm4329_vm1, %v4328_v2 }
 0x14e   : > { %v4008_v21 = vpop.f32.mrf.mxu1  ;;  %v3985_v20 = vpop.f32.mrf.mxu0 }
 0x150   : > { %v1627_v55 = vpop.f32.mrf.mxu1  ;;  %4226 = vmatmul.mubr.msk.bf16.gmra.mxu1 %vm360_vm2, %v3157_v25  ;;  %v5163_v23 = vpop.f32.mrf.mxu0 }
 0x152   : > { %v4035_v39 = vpop.f32.mrf.mxu1  ;;  %v3986_v53 = vpop.f32.mrf.mxu0 }
 0x154   : > { %v1630_v15 = vpop.f32.mrf.mxu1  ;;  %v1504_v3 = vpop.f32.mrf.mxu0  ;;  %4204 = vmatmul.mubr.msk.bf16.gmra.mxu0 %vm360_vm2, %v3034_v36  ;;  %v1332_v36 = vadd.f32 %v5112_v27, %v5124_v28 }
 0x155   : > { %v1543_v2 = vadd.f32 %v1504_v3, %v1316_v40 }
 0x156   : > { %v4036_v49 = vpop.f32.mrf.mxu1  ;;  %v4013_v61 = vpop.f32.mrf.mxu0 }
 0x157   : > { %v1666_v54 = vadd.f32 %v1627_v55, %v1543_v2 }
 0x158   : > { %v1635_v11 = vpop.f32.mrf.mxu1  ;;  %v1507_v1 = vpop.f32.mrf.mxu0 }
 0x159   : > { %v1683_v60 = vadd.f32 %v4883_v37, %v1666_v54  ;;  %v1544_v17 = vadd.f32 %v1507_v1, %v1319_v42 }
 0x15a   : > { %v4039_v59 = vpop.f32.mrf.mxu1  ;;  %v4014_v50 = vpop.f32.mrf.mxu0 }
 0x15b   : > { %v1693_v19 = vmax.f32 %v1683_v60, 0.0  ;;  %v1667_v12 = vadd.f32 %v1630_v15, %v1544_v17  ;;  %v1335_v60 = vadd.f32 %v5121_v26, %v5134_v38 }
 0x15c   : > { %v1638_v62 = vpop.f32.mrf.mxu1  ;;  %v1512_v52 = vpop.f32.mrf.mxu0 }
 0x15d   : > { %v1774_v16 = vmul.f32 %v1693_v19, %v4888_v47  ;;  %v1684_v63 = vadd.f32 %v4883_v37, %v1667_v12  ;;  %v1545_v46 = vadd.f32 %v1512_v52, %v1324_v48  ;;  %v3751_v56 = vpack.c.bf16 %v1693_v19, %v1693_v19 }
 0x15e   : > { %v4040_v31 = vpop.f32.mrf.mxu1  ;;  %v4017_v10 = vpop.f32.mrf.mxu0 }
 0x15f   : > { %v1694_v25 = vmax.f32 %v1684_v63, 0.0  ;;  %v1668_v21 = vadd.f32 %v1635_v11, %v1545_v46  ;;  %1733 = vrot.lane.b32.xlu0 %v3751_v56, %s4331_s28  ;;  %v1810_v41 = vmul.f32 %v1774_v16, %v1693_v19  ;;  %v1784_v53 = vsel %vm999_vm9, %v1774_v16, 0.0 }
 0x160   : > { %v1643_v44 = vpop.f32.mrf.mxu1  ;;  %v1515_v18 = vpop.f32.mrf.mxu0 }
 0x161   : > { %v1775_v20 = vmul.f32 %v1694_v25, %v4911_v22  ;;  %v1685_v55 = vadd.f32 %v4883_v37, %v1668_v21  ;;  %v1546_v39 = vadd.f32 %v1515_v18, %v1327_v0  ;;  %v3752_v13 = vpack.c.bf16 %v1694_v25, %v1694_v25 }
 0x162   : > { %v4043_v7 = vpop.f32.mrf.mxu1  ;;  %v4018_v15 = vpop.f32.mrf.mxu0  ;;  %v1820_v61 = vsel %vm999_vm9, %v1810_v41, 0.0  ;;  %v1340_v0 = vadd.f32 %v5129_v43, %v5141_v34 }
 0x163   : > { %v1785_v40 = vsel %vm999_vm9, %v1775_v20, 0.0  ;;  %v1811_v3 = vmul.f32 %v1775_v20, %v1694_v25  ;;  %v1695_v49 = vmax.f32 %v1685_v55, 0.0  ;;  %v1669_v2 = vadd.f32 %v1638_v62, %v1546_v39  ;;  %1735 = vrot.lane.b32.xlu1 %v3752_v13, %s4331_s28 }
 0x164   : > { %v1646_v35 = vpop.f32.mrf.mxu1  ;;  %v1786_v11 = vadd.f32 %v1785_v40, %v1784_v53  ;;  %v1520_v42 = vpop.f32.mrf.mxu0  ;;  %v1343_v40 = vadd.f32 %v5138_v33, %v5151_v6 }
 0x165   : > { %v1821_v1 = vsel %vm999_vm9, %v1811_v3, 0.0  ;;  %v1776_v27 = vmul.f32 %v1695_v49, %v4921_v32  ;;  %v1686_v28 = vadd.f32 %v4883_v37, %v1669_v2  ;;  %v1547_v59 = vadd.f32 %v1520_v42, %v1332_v36 }
 0x166   : > { %v4044_v54 = vpop.f32.mrf.mxu1  ;;  %v1822_v17 = vadd.f32 %v1821_v1, %v1820_v61  ;;  %v4021_v50 = vpop.f32.mrf.mxu0  ;;  %v3753_v62 = vpack.c.bf16 %v1695_v49, %v1695_v49 }
 0x167   : > { %v1787_v19 = vsel %vm999_vm9, %v1776_v27, 0.0  ;;  %v1812_v12 = vmul.f32 %v1776_v27, %v1695_v49  ;;  %v1696_v52 = vmax.f32 %v1686_v28, 0.0  ;;  %v1670_v31 = vadd.f32 %v1643_v44, %v1547_v59 }
 0x168   : > { %v1651_v48 = vpop.f32.mrf.mxu1  ;;  %v1788_v16 = vadd.f32 %v1787_v19, %v1786_v11  ;;  %1737 = vrot.lane.b32.xlu0 %v3753_v62, %s4331_s28  ;;  %v1523_v63 = vpop.f32.mrf.mxu0 }
 0x169   : > { %v1823_v56 = vsel %vm999_vm9, %v1812_v12, 0.0  ;;  %v1777_v10 = vmul.f32 %v1696_v52, %v4948_v14  ;;  %v1687_v26 = vadd.f32 %v4883_v37, %v1670_v31  ;;  %v1548_v38 = vadd.f32 %v1523_v63, %v1335_v60 }
 0x16a   : > { %v4047_v46 = vpop.f32.mrf.mxu1  ;;  %v1824_v25 = vadd.f32 %v1823_v56, %v1822_v17  ;;  %v4022_v21 = vpop.f32.mrf.mxu0  ;;  %v3754_v41 = vpack.c.bf16 %v1696_v52, %v1696_v52  ;;  %v1348_v17 = vadd.f32 %v5146_v4, %v5157_v51 }
 0x16b   : > { %v1789_v44 = vsel %vm999_vm9, %v1777_v10, 0.0  ;;  %v1813_v7 = vmul.f32 %v1777_v10, %v1696_v52  ;;  %v1697_v20 = vmax.f32 %v1687_v26, 0.0  ;;  %v1671_v55 = vadd.f32 %v1646_v35, %v1548_v38 }
 0x16c   : > { %v1654_v18 = vpop.f32.mrf.mxu1  ;;  %v1790_v39 = vadd.f32 %v1789_v44, %v1788_v16  ;;  %1739 = vrot.lane.b32.xlu1 %v3754_v41, %s4331_s28  ;;  %v1528_v36 = vpop.f32.mrf.mxu0  ;;  %v1351_v38 = vadd.f32 %v5154_v29, %v5163_v23 }
 0x16d   : > { %v1825_v15 = vsel %vm999_vm9, %v1813_v7, 0.0  ;;  %v1778_v13 = vmul.f32 %v1697_v20, %v4975_v45  ;;  %v1688_v43 = vadd.f32 %v4883_v37, %v1671_v55  ;;  %v1549_v34 = vadd.f32 %v1528_v36, %v1340_v0 }
 0x16e   : > { %v4048_v53 = vpop.f32.mrf.mxu1  ;;  %v1826_v3 = vadd.f32 %v1825_v15, %v1824_v25  ;;  %v4025_v49 = vpop.f32.mrf.mxu0  ;;  %v3755_v2 = vpack.c.bf16 %v1697_v20, %v1697_v20 }
 0x16f   : > { %v1791_v35 = vsel %vm999_vm9, %v1778_v13, 0.0  ;;  %v1814_v11 = vmul.f32 %v1778_v13, %v1697_v20  ;;  %v1698_v42 = vmax.f32 %v1688_v43, 0.0  ;;  %v1672_v54 = vadd.f32 %v1651_v48, %v1549_v34 }
 0x170   : > { %v1659_v61 = vpop.f32.mrf.mxu1  ;;  %v1792_v1 = vadd.f32 %v1791_v35, %v1790_v39  ;;  %1741 = vrot.lane.b32.xlu0 %v3755_v2, %s4331_s28  ;;  %v1531_v27 = vpop.f32.mrf.mxu0  ;;  %v1019_v35 = vrot.slane %v5102_v9, 4 }
 0x171   : > { %v1827_v59 = vsel %vm999_vm9, %v1814_v11, 0.0  ;;  %v1779_v60 = vmul.f32 %v1698_v42, %v4998_v5  ;;  %v1689_v33 = vadd.f32 %v4883_v37, %v1672_v54  ;;  %v1550_v6 = vadd.f32 %v1531_v27, %v1343_v40 }
 0x172   : > { %v4051_v28 = vpop.f32.mrf.mxu1  ;;  %v1828_v50 = vadd.f32 %v1827_v59, %v1826_v3  ;;  %v4026_v62 = vpop.f32.mrf.mxu0  ;;  %v3756_v19 = vpack.c.bf16 %v1698_v42, %v1698_v42  ;;  %v1055_v59 = vrot.slane %v5110_v24, 4 }
 0x173   : > { %v1793_v48 = vsel %vm999_vm9, %v1779_v60, 0.0  ;;  %v1815_v52 = vmul.f32 %v1779_v60, %v1698_v42  ;;  %v1699_v31 = vmax.f32 %v1689_v33, 0.0  ;;  %v1673_v16 = vadd.f32 %v1654_v18, %v1550_v6 }
 0x174   : > { %v1662_v12 = vpop.f32.mrf.mxu1  ;;  %v1794_v63 = vadd.f32 %v1793_v48, %v1792_v1  ;;  %1743 = vrot.lane.b32.xlu1 %v3756_v19, %s4331_s28  ;;  %v1536_v46 = vpop.f32.mrf.mxu0 }
 0x175   : > { %v1829_v10 = vsel %vm999_vm9, %v1815_v52, 0.0  ;;  %v1780_v26 = vmul.f32 %v1699_v31, %v5020_v30  ;;  %v1690_v4 = vadd.f32 %v4883_v37, %v1673_v16  ;;  %v1551_v51 = vadd.f32 %v1536_v46, %v1348_v17 }
 0x176   : > { %v4052_v56 = vpop.f32.mrf.mxu1  ;;  %v1830_v0 = vadd.f32 %v1829_v10, %v1828_v50  ;;  %v4029_v25 = vpop.f32.mrf.mxu0  ;;  %v3757_v21 = vpack.c.bf16 %v1699_v31, %v1699_v31  ;;  %v1056_v46 = vadd.f32 %v1055_v59, %v5110_v24 }
 0x177   : > { %v1795_v18 = vsel %vm999_vm9, %v1780_v26, 0.0  ;;  %v1816_v44 = vmul.f32 %v1780_v26, %v1699_v31  ;;  %v1700_v7 = vmax.f32 %v1690_v4, 0.0  ;;  %v1674_v20 = vadd.f32 %v1659_v61, %v1551_v51 }
 0x178   : > { %v5220_v41 = vpop.f32.mrf.mxu1  ;;  %v1796_v55 = vadd.f32 %v1795_v18, %v1794_v63  ;;  %1745 = vrot.lane.b32.xlu0 %v3757_v21, %s4331_s28  ;;  %v1539_v39 = vpop.f32.mrf.mxu0  ;;  %v1057_v18 = vrot.slane %v1056_v46, 2 }
 0x179   : > { %v1831_v53 = vsel %vm999_vm9, %v1816_v44, 0.0  ;;  %v1781_v15 = vmul.f32 %v1700_v7, %v5035_v57  ;;  %v1691_v29 = vadd.f32 %v4883_v37, %v1674_v20  ;;  %v1552_v23 = vadd.f32 %v1539_v39, %v1351_v38 }
 0x17a   : > { %v4079_v36 = vpop.f32.mrf.mxu1  ;;  %v1832_v13 = vadd.f32 %v1831_v53, %v1830_v0  ;;  %v4030_v43 = vpop.f32.mrf.mxu0  ;;  %v3758_v34 = vpack.c.bf16 %v1700_v7, %v1700_v7 }
 0x17b   : > { %v1797_v3 = vsel %vm999_vm9, %v1781_v15, 0.0  ;;  %v1817_v49 = vmul.f32 %v1781_v15, %v1700_v7  ;;  %v1701_v2 = vmax.f32 %v1691_v29, 0.0  ;;  %v1675_v61 = vadd.f32 %v1662_v12, %v1552_v23 }
 0x17c   : > { %v5227_v40 = vpop.f32.mrf.mxu1  ;;  %v1798_v11 = vadd.f32 %v1797_v3, %v1796_v55  ;;  %1747 = vrot.lane.b32.xlu1 %v3758_v34, %s4331_s28  ;;  %v5232_v42 = vpop.f32.mrf.mxu0  ;;  %v1020_v12 = vadd.f32 %v1019_v35, %v5102_v9  ;;  %v1058_v29 = vadd.f32 %v1057_v18, %v1056_v46 }
 0x17d   : > { %v1833_v1 = vsel %vm999_vm9, %v1817_v49, 0.0  ;;  %v1782_v27 = vmul.f32 %v1701_v2, %v5056_v58  ;;  %v1692_v28 = vadd.f32 %v4883_v37, %v1675_v61  ;;  %v3759_v6 = vpack.c.bf16 %v1701_v2, %v1701_v2 }
 0x17e   : > { %v4080_v54 = vpop.f32.mrf.mxu1  ;;  %v1834_v60 = vadd.f32 %v1833_v1, %v1832_v13  ;;  %v4057_v33 = vpop.f32.mrf.mxu0  ;;  %v1021_v51 = vrot.slane %v1020_v12, 2 }
 0x17f   : > { %v1799_v50 = vsel %vm999_vm9, %v1782_v27, 0.0  ;;  %v1818_v62 = vmul.f32 %v1782_v27, %v1701_v2  ;;  %v1702_v19 = vmax.f32 %v1692_v28, 0.0  ;;  %1749 = vrot.lane.b32.xlu0 %v3759_v6, %s4331_s28 }
 0x180   : > { %v5238_v17 = vpop.f32.mrf.mxu1  ;;  %v1800_v48 = vadd.f32 %v1799_v50, %v1798_v11  ;;  %v5243_v52 = vpop.f32.mrf.mxu0  ;;  %v1022_v55 = vadd.f32 %v1021_v51, %v1020_v12  ;;  %v1059_v11 = vrot.slane %v1058_v29, 1 }
 0x181   : > { %v1835_v37 = vsel %vm999_vm9, %v1818_v62, 0.0  ;;  %v1783_v16 = vmul.f32 %v1702_v19, %v5074_v8  ;;  %v3760_v63 = vpack.c.bf16 %v1702_v19, %v1702_v19 }
 0x182   : > { %v4083_v31 = vpop.f32.mrf.mxu1  ;;  %v1836_v56 = vadd.f32 %v1835_v37, %v1834_v60  ;;  %v4058_v10 = vpop.f32.mrf.mxu0  ;;  %v1023_v3 = vrot.slane %v1022_v55, 1  ;;  %v1060_v62 = vadd.f32 %v1059_v11, %v1058_v29 }
 0x183   : > { %v1801_v4 = vsel %vm999_vm9, %v1783_v16, 0.0  ;;  %v1819_v9 = vmul.f32 %v1783_v16, %v1702_v19  ;;  %1751 = vrot.lane.b32.xlu1 %v3760_v63, %s4331_s28 }
 0x184   : > { %v5248_v26 = vpop.f32.mrf.mxu1  ;;  %v1802_v38 = vadd.f32 %v1801_v4, %v1800_v48  ;;  %v5252_v0 = vpop.f32.mrf.mxu0  ;;  %v1024_v59 = vadd.f32 %v1023_v3, %v1022_v55  ;;  %v2112_v3 = vadd.f32 %v5227_v40, %v5243_v52 }
 0x185   : > { %v1837_v21 = vsel %vm999_vm9, %v1819_v9, 0.0 }
 0x186   : > { %v4084_v25 = vpop.f32.mrf.mxu1  ;;  %v1803_v44 = vrot.slane %v1802_v38, 4  ;;  %v1838_v7 = vadd.f32 %v1837_v21, %v1836_v56  ;;  %v4061_v24 = vpop.f32.mrf.mxu0 }
 0x188   : > { %v5255_v20 = vpop.f32.mrf.mxu1  ;;  %v1804_v39 = vadd.f32 %v1803_v44, %v1802_v38  ;;  %v1839_v36 = vrot.slane %v1838_v7, 4  ;;  %v5257_v53 = vpop.f32.mrf.mxu0 }
 0x18a   : > { %v4087_v15 = vpop.f32.mrf.mxu1  ;;  %v1805_v23 = vrot.slane %v1804_v39, 2  ;;  %v1840_v13 = vadd.f32 %v1839_v36, %v1838_v7  ;;  %v4062_v43 = vpop.f32.mrf.mxu0 }
 0x18c   : > { %v5259_v34 = vpop.f32.mrf.mxu1  ;;  %v1806_v49 = vadd.f32 %v1805_v23, %v1804_v39  ;;  %v1841_v2 = vrot.slane %v1840_v13, 2  ;;  %v5261_v61 = vpop.f32.mrf.mxu0  ;;  %v2109_v39 = vadd.f32 %v5220_v41, %v5232_v42  ;;  %v5290_v23 = vld [vmem:[%s5562_s3] ss:$0 sm:$0xff] }
 0x18e   : > { %v4088_v35 = vpop.f32.mrf.mxu1  ;;  %v1807_v54 = vrot.slane %v1806_v49, 1  ;;  %v1842_v1 = vadd.f32 %v1841_v2, %v1840_v13  ;;  %v4065_v27 = vpop.f32.mrf.mxu0 }
 0x190   : > { %v5263_v28 = vpop.f32.mrf.mxu1  ;;  %v1808_v60 = vadd.f32 %v1807_v54, %v1806_v49  ;;  %v1843_v33 = vrot.slane %v1842_v1, 1  ;;  %v5265_v6 = vpop.f32.mrf.mxu0 }
 0x192   : > { %v4091_v50 = vpop.f32.mrf.mxu1  ;;  %v5267_v19 = vadd.f32 %v1808_v60, %v1024_v59  ;;  %v1844_v12 = vadd.f32 %v1843_v33, %v1842_v1  ;;  %v4066_v48 = vpop.f32.mrf.mxu0  ;;  %v2117_v1 = vadd.f32 %v5238_v17, %v5252_v0 }
 0x194   : > { %v5269_v31 = vpop.f32.mrf.mxu1  ;;  %v5271_v37 = vadd.f32 %v1844_v12, %v1060_v62  ;;  %v5273_v16 = vpop.f32.mrf.mxu0 }
 0x196   : > { %v4092_v63 = vpop.f32.mrf.mxu1  ;;  %v4069_v46 = vpop.f32.mrf.mxu0 }
 0x197   : > { %v2120_v63 = vadd.f32 %v5248_v26, %v5257_v53 }
 0x198   : > { %v5275_v56 = vpop.f32.mrf.mxu1  ;;  %v5277_v10 = vpop.f32.mrf.mxu0 }
 0x19a   : > { %v4095_v4 = vpop.f32.mrf.mxu1  ;;  %v4070_v9 = vpop.f32.mrf.mxu0 }
 0x19c   : > { %v5279_v51 = vpop.f32.mrf.mxu1  ;;  %v5281_v38 = vpop.f32.mrf.mxu0 }
 0x19e   : > { %v4096_v25 = vpop.f32.mrf.mxu1  ;;  %v4073_v21 = vpop.f32.mrf.mxu0 }
 0x1a0   : > { %v2420_v18 = vpop.f32.mrf.mxu1  ;;  %v5283_v44 = vpop.f32.mrf.mxu0 }
 0x1a2   : > { %v4123_v7 = vpop.f32.mrf.mxu1  ;;  %v4074_v24 = vpop.f32.mrf.mxu0 }
 0x1a3   : > { %v2125_v7 = vadd.f32 %v5255_v20, %v5261_v61 }
 0x1a4   : > { %v2423_v55 = vpop.f32.mrf.mxu1  ;;  %v2255_v36 = vpop.f32.mrf.mxu0 }
 0x1a5   : > { %v2294_v29 = vadd.f32 %v2255_v36, %v2109_v39 }
 0x1a6   : > { %v4124_v15 = vpop.f32.mrf.mxu1  ;;  %v4101_v13 = vpop.f32.mrf.mxu0 }
 0x1a7   : > { %v2459_v49 = vadd.f32 %v2420_v18, %v2294_v29 }
 0x1a8   : > { %v2428_v43 = vpop.f32.mrf.mxu1  ;;  %v2258_v2 = vpop.f32.mrf.mxu0 }
 0x1a9   : > { %v2476_v11 = vadd.f32 %v5290_v23, %v2459_v49  ;;  %v2295_v54 = vadd.f32 %v2258_v2, %v2112_v3 }
 0x1aa   : > { %v4127_v35 = vpop.f32.mrf.mxu1  ;;  %v4102_v41 = vpop.f32.mrf.mxu0 }
 0x1ab   : > { %v2486_v27 = vmax.f32 %v2476_v11, 0.0  ;;  %v2460_v59 = vadd.f32 %v2423_v55, %v2295_v54  ;;  %v2128_v11 = vadd.f32 %v5259_v34, %v5265_v6 }
 0x1ac   : > { %v2431_v42 = vpop.f32.mrf.mxu1  ;;  %v2263_v60 = vpop.f32.mrf.mxu0 }
 0x1ad   : > { %v2567_v50 = vmul.f32 %v2486_v27, %v4888_v47  ;;  %v2477_v62 = vadd.f32 %v5290_v23, %v2460_v59  ;;  %v2296_v40 = vadd.f32 %v2263_v60, %v2117_v1  ;;  %v3761_v52 = vpack.c.bf16 %v2486_v27, %v2486_v27 }
 0x1ae   : > { %v4128_v33 = vpop.f32.mrf.mxu1  ;;  %v4105_v12 = vpop.f32.mrf.mxu0 }
 0x1af   : > { %v2487_v46 = vmax.f32 %v2477_v62, 0.0  ;;  %v2461_v4 = vadd.f32 %v2428_v43, %v2296_v40  ;;  %2526 = vrot.lane.b32.xlu0 %v3761_v52, %s4332_s27  ;;  %v2603_v17 = vmul.f32 %v2567_v50, %v2486_v27  ;;  %v2577_v24 = vsel %vm999_vm9, %v2567_v50, 0.0 }
 0x1b0   : > { %v2436_v48 = vpop.f32.mrf.mxu1  ;;  %v2266_v0 = vpop.f32.mrf.mxu0 }
 0x1b1   : > { %v2568_v25 = vmul.f32 %v2487_v46, %v4911_v22  ;;  %v2478_v21 = vadd.f32 %v5290_v23, %v2461_v4  ;;  %v2297_v18 = vadd.f32 %v2266_v0, %v2120_v63  ;;  %v3762_v26 = vpack.c.bf16 %v2487_v46, %v2487_v46 }
 0x1b2   : > { %v4131_v9 = vpop.f32.mrf.mxu1  ;;  %v4106_v55 = vpop.f32.mrf.mxu0  ;;  %v2613_v13 = vsel %vm999_vm9, %v2603_v17, 0.0  ;;  %v2133_v63 = vadd.f32 %v5263_v28, %v5273_v16 }
 0x1b3   : > { %v2578_v39 = vsel %vm999_vm9, %v2568_v25, 0.0  ;;  %v2604_v36 = vmul.f32 %v2568_v25, %v2487_v46  ;;  %v2488_v15 = vmax.f32 %v2478_v21, 0.0  ;;  %v2462_v29 = vadd.f32 %v2431_v42, %v2297_v18  ;;  %2528 = vrot.lane.b32.xlu1 %v3762_v26, %s4332_s27 }
 0x1b4   : > { %v2439_v53 = vpop.f32.mrf.mxu1  ;;  %v2579_v43 = vadd.f32 %v2578_v39, %v2577_v24  ;;  %v2271_v3 = vpop.f32.mrf.mxu0  ;;  %v2136_v39 = vadd.f32 %v5269_v31, %v5277_v10 }
 0x1b5   : > { %v2614_v2 = vsel %vm999_vm9, %v2604_v36, 0.0  ;;  %v2569_v20 = vmul.f32 %v2488_v15, %v4921_v32  ;;  %v2479_v61 = vadd.f32 %v5290_v23, %v2462_v29  ;;  %v2298_v35 = vadd.f32 %v2271_v3, %v2125_v7 }
 0x1b6   : > { %v4132_v49 = vpop.f32.mrf.mxu1  ;;  %v2615_v54 = vadd.f32 %v2614_v2, %v2613_v13  ;;  %v4109_v41 = vpop.f32.mrf.mxu0  ;;  %v3763_v42 = vpack.c.bf16 %v2488_v15, %v2488_v15 }
 0x1b7   : > { %v2580_v27 = vsel %vm999_vm9, %v2569_v20, 0.0  ;;  %v2605_v59 = vmul.f32 %v2569_v20, %v2488_v15  ;;  %v2489_v60 = vmax.f32 %v2479_v61, 0.0  ;;  %v2463_v33 = vadd.f32 %v2436_v48, %v2298_v35 }
 0x1b8   : > { %v2444_v1 = vpop.f32.mrf.mxu1  ;;  %v2581_v50 = vadd.f32 %v2580_v27, %v2579_v43  ;;  %2530 = vrot.lane.b32.xlu0 %v3763_v42, %s4332_s27  ;;  %v2274_v62 = vpop.f32.mrf.mxu0 }
 0x1b9   : > { %v2616_v52 = vsel %vm999_vm9, %v2605_v59, 0.0  ;;  %v2570_v12 = vmul.f32 %v2489_v60, %v4948_v14  ;;  %v2480_v34 = vadd.f32 %v5290_v23, %v2463_v33  ;;  %v2299_v6 = vadd.f32 %v2274_v62, %v2128_v11 }
 0x1ba   : > { %v4135_v40 = vpop.f32.mrf.mxu1  ;;  %v2617_v46 = vadd.f32 %v2616_v52, %v2615_v54  ;;  %v4110_v4 = vpop.f32.mrf.mxu0  ;;  %v3764_v17 = vpack.c.bf16 %v2489_v60, %v2489_v60  ;;  %v2141_v54 = vadd.f32 %v5275_v56, %v5281_v38 }
 0x1bb   : > { %v2582_v48 = vsel %vm999_vm9, %v2570_v12, 0.0  ;;  %v2606_v9 = vmul.f32 %v2570_v12, %v2489_v60  ;;  %v2490_v25 = vmax.f32 %v2480_v34, 0.0  ;;  %v2464_v21 = vadd.f32 %v2439_v53, %v2299_v6 }
 0x1bc   : > { %v2447_v0 = vpop.f32.mrf.mxu1  ;;  %v2583_v18 = vadd.f32 %v2582_v48, %v2581_v50  ;;  %2532 = vrot.lane.b32.xlu1 %v3764_v17, %s4332_s27  ;;  %v2279_v7 = vpop.f32.mrf.mxu0  ;;  %v2144_v6 = vadd.f32 %v5279_v51, %v5283_v44 }
 0x1bd   : > { %v2618_v55 = vsel %vm999_vm9, %v2606_v9, 0.0  ;;  %v2571_v26 = vmul.f32 %v2490_v25, %v4975_v45  ;;  %v2481_v28 = vadd.f32 %v5290_v23, %v2464_v21  ;;  %v2300_v16 = vadd.f32 %v2279_v7, %v2133_v63 }
 0x1be   : > { %v4136_v24 = vpop.f32.mrf.mxu1  ;;  %v2619_v36 = vadd.f32 %v2618_v55, %v2617_v46  ;;  %v4113_v15 = vpop.f32.mrf.mxu0  ;;  %v3765_v29 = vpack.c.bf16 %v2490_v25, %v2490_v25 }
 0x1bf   : > { %v2584_v53 = vsel %vm999_vm9, %v2571_v26, 0.0  ;;  %v2607_v43 = vmul.f32 %v2571_v26, %v2490_v25  ;;  %v2491_v3 = vmax.f32 %v2481_v28, 0.0  ;;  %v2465_v49 = vadd.f32 %v2444_v1, %v2300_v16 }
 0x1c0   : > { %v2452_v13 = vpop.f32.mrf.mxu1  ;;  %v2585_v2 = vadd.f32 %v2584_v53, %v2583_v18  ;;  %2534 = vrot.lane.b32.xlu0 %v3765_v29, %s4332_s27  ;;  %v2282_v20 = vpop.f32.mrf.mxu0 }
 0x1c1   : > { %v2620_v35 = vsel %vm999_vm9, %v2607_v43, 0.0  ;;  %v2572_v11 = vmul.f32 %v2491_v3, %v4998_v5  ;;  %v2482_v31 = vadd.f32 %v5290_v23, %v2465_v49  ;;  %v2301_v10 = vadd.f32 %v2282_v20, %v2136_v39 }
 0x1c2   : > { %v4139_v61 = vpop.f32.mrf.mxu1  ;;  %v2621_v41 = vadd.f32 %v2620_v35, %v2619_v36  ;;  %v4114_v42 = vpop.f32.mrf.mxu0  ;;  %v3766_v27 = vpack.c.bf16 %v2491_v3, %v2491_v3 }
 0x1c3   : > { %v2586_v1 = vsel %vm999_vm9, %v2572_v11, 0.0  ;;  %v2608_v60 = vmul.f32 %v2572_v11, %v2491_v3  ;;  %v2492_v33 = vmax.f32 %v2482_v31, 0.0  ;;  %v2466_v50 = vadd.f32 %v2447_v0, %v2301_v10 }
 0x1c4   : > { %v2455_v59 = vpop.f32.mrf.mxu1  ;;  %v2587_v62 = vadd.f32 %v2586_v1, %v2585_v2  ;;  %2536 = vrot.lane.b32.xlu1 %v3766_v27, %s4332_s27  ;;  %v2287_v40 = vpop.f32.mrf.mxu0 }
 0x1c5   : > { %v2622_v12 = vsel %vm999_vm9, %v2608_v60, 0.0  ;;  %v2573_v34 = vmul.f32 %v2492_v33, %v5020_v30  ;;  %v2483_v56 = vadd.f32 %v5290_v23, %v2466_v50  ;;  %v2302_v38 = vadd.f32 %v2287_v40, %v2141_v54 }
 0x1c6   : > { %v4140_v52 = vpop.f32.mrf.mxu1  ;;  %v2623_v63 = vadd.f32 %v2622_v12, %v2621_v41  ;;  %v4117_v46 = vpop.f32.mrf.mxu0  ;;  %v3767_v4 = vpack.c.bf16 %v2492_v33, %v2492_v33 }
 0x1c7   : > { %v2588_v0 = vsel %vm999_vm9, %v2573_v34, 0.0  ;;  %v2609_v48 = vmul.f32 %v2573_v34, %v2492_v33  ;;  %v2493_v9 = vmax.f32 %v2483_v56, 0.0  ;;  %v2467_v25 = vadd.f32 %v2452_v13, %v2302_v38 }
 0x1c8   : > { %v5343_v17 = vpop.f32.mrf.mxu1  ;;  %v2589_v21 = vadd.f32 %v2588_v0, %v2587_v62  ;;  %2538 = vrot.lane.b32.xlu0 %v3767_v4, %s4332_s27  ;;  %v2290_v18 = vpop.f32.mrf.mxu0 }
 0x1c9   : > { %v2624_v24 = vsel %vm999_vm9, %v2609_v48, 0.0  ;;  %v2574_v55 = vmul.f32 %v2493_v9, %v5035_v57  ;;  %v2484_v51 = vadd.f32 %v5290_v23, %v2467_v25  ;;  %v2303_v44 = vadd.f32 %v2290_v18, %v2144_v6 }
 0x1ca   : > { %v4167_v7 = vpop.f32.mrf.mxu1  ;;  %v2625_v26 = vadd.f32 %v2624_v24, %v2623_v63  ;;  %v4118_v28 = vpop.f32.mrf.mxu0  ;;  %v3768_v16 = vpack.c.bf16 %v2493_v9, %v2493_v9 }
 0x1cb   : > { %v2590_v36 = vsel %vm999_vm9, %v2574_v55, 0.0  ;;  %v2610_v15 = vmul.f32 %v2574_v55, %v2493_v9  ;;  %v2494_v29 = vmax.f32 %v2484_v51, 0.0  ;;  %v2468_v13 = vadd.f32 %v2455_v59, %v2303_v44 }
 0x1cc   : > { %v5350_v39 = vpop.f32.mrf.mxu1  ;;  %v2591_v53 = vadd.f32 %v2590_v36, %v2589_v21  ;;  %2540 = vrot.lane.b32.xlu1 %v3768_v16, %s4332_s27  ;;  %v5354_v43 = vpop.f32.mrf.mxu0 }
 0x1cd   : > { %v2626_v49 = vsel %vm999_vm9, %v2610_v15, 0.0  ;;  %v2575_v2 = vmul.f32 %v2494_v29, %v5056_v58  ;;  %v2485_v20 = vadd.f32 %v5290_v23, %v2468_v13  ;;  %v3769_v11 = vpack.c.bf16 %v2494_v29, %v2494_v29 }
 0x1ce   : > { %v4168_v3 = vpop.f32.mrf.mxu1  ;;  %v2627_v61 = vadd.f32 %v2626_v49, %v2625_v26  ;;  %v4145_v35 = vpop.f32.mrf.mxu0 }
 0x1cf   : > { %v2592_v10 = vsel %vm999_vm9, %v2575_v2, 0.0  ;;  %v2611_v54 = vmul.f32 %v2575_v2, %v2494_v29  ;;  %v2495_v41 = vmax.f32 %v2485_v20, 0.0  ;;  %2542 = vrot.lane.b32.xlu0 %v3769_v11, %s4332_s27 }
 0x1d0   : > { %v5359_v31 = vpop.f32.mrf.mxu1  ;;  %v2593_v42 = vadd.f32 %v2592_v10, %v2591_v53  ;;  %v5363_v27 = vpop.f32.mrf.mxu0 }
 0x1d1   : > { %v2628_v1 = vsel %vm999_vm9, %v2611_v54, 0.0  ;;  %v2576_v60 = vmul.f32 %v2495_v41, %v5074_v8  ;;  %v1734_v33 = vpop.permute.xlu0 %1733  ;;  %v3770_v50 = vpack.c.bf16 %v2495_v41, %v2495_v41 }
 0x1d2   : > { %v4171_v59 = vpop.f32.mrf.mxu1  ;;  %v2629_v62 = vadd.f32 %v2628_v1, %v2627_v61  ;;  %1764 = vst.msk [vmem:[%s4385_s7] sm:$0xf] %vm1763_vm11, %v1734_v33  ;;  %v4146_v40 = vpop.f32.mrf.mxu0 }
 0x1d3   : > { %v2594_v12 = vsel %vm999_vm9, %v2576_v60, 0.0  ;;  %v2612_v34 = vmul.f32 %v2576_v60, %v2495_v41  ;;  %2544 = vrot.lane.b32.xlu1 %v3770_v50, %s4332_s27 }
 0x1d4   : > { %v5369_v52 = vpop.f32.mrf.mxu1  ;;  %v2595_v56 = vadd.f32 %v2594_v12, %v2593_v42  ;;  %v5373_v38 = vpop.f32.mrf.mxu0 }
 0x1d5   : > { %v2630_v63 = vsel %vm999_vm9, %v2612_v34, 0.0  ;;  %v1736_v0 = vpop.permute.xlu1 %1735 }
 0x1d6   : > { %v4172_v6 = vpop.f32.mrf.mxu1  ;;  %v2596_v46 = vrot.slane %v2595_v56, 4  ;;  %v2631_v4 = vadd.f32 %v2630_v63, %v2629_v62  ;;  %v4149_v48 = vpop.f32.mrf.mxu0  ;;  %1765 = vst.msk [vmem:[%s4385_s7 + $0x4] sm:$0xf] %vm1763_vm11, %v1736_v0 }
 0x1d8   : > { %v5378_v9 = vpop.f32.mrf.mxu1  ;;  %v2597_v25 = vadd.f32 %v2596_v46, %v2595_v56  ;;  %v2632_v21 = vrot.slane %v2631_v4, 4  ;;  %v5380_v18 = vpop.f32.mrf.mxu0 }
 0x1da   : > { %v4175_v7 = vpop.f32.mrf.mxu1  ;;  %v2598_v24 = vrot.slane %v2597_v25, 2  ;;  %v2633_v55 = vadd.f32 %v2632_v21, %v2631_v4  ;;  %v1738_v51 = vpop.permute.xlu0 %1737 }
 0x1db   : > { %v4150_v44 = vpop.f32.mrf.mxu0  ;;  %1766 = vst.msk [vmem:[%s4385_s7 + $0x8] sm:$0xf] %vm1763_vm11, %v1738_v51  ;;  %v2902_v7 = vadd.f32 %v5343_v17, %v5354_v43 }
 0x1dc   : > { %v5384_v26 = vpop.f32.mrf.mxu1  ;;  %v2599_v28 = vadd.f32 %v2598_v24, %v2597_v25  ;;  %v2634_v16 = vrot.slane %v2633_v55, 2 }
 0x1dd   : > { %v5386_v36 = vpop.f32.mrf.mxu0 }
 0x1de   : > { %v4176_v15 = vpop.f32.mrf.mxu1  ;;  %v2600_v29 = vrot.slane %v2599_v28, 1  ;;  %v2635_v13 = vadd.f32 %v2634_v16, %v2633_v55  ;;  %v1740_v53 = vpop.permute.xlu1 %1739 }
 0x1df   : > { %v4153_v3 = vpop.f32.mrf.mxu0  ;;  %1767 = vst.msk [vmem:[%s4385_s7 + $0xc] sm:$0xf] %vm1763_vm11, %v1740_v53  ;;  %v2905_v15 = vadd.f32 %v5350_v39, %v5363_v27 }
 0x1e0   : > { %v5390_v49 = vpop.f32.mrf.mxu1  ;;  %v2601_v2 = vadd.f32 %v2600_v29, %v2599_v28  ;;  %v2636_v20 = vrot.slane %v2635_v13, 1 }
 0x1e1   : > { %v5392_v61 = vpop.f32.mrf.mxu0 }
 0x1e2   : > { %v4179_v35 = vpop.f32.mrf.mxu1  ;;  %v5395_v11 = vadd.f32 %v2601_v2, %v5267_v19  ;;  %v2637_v10 = vadd.f32 %v2636_v20, %v2635_v13  ;;  %v1742_v54 = vpop.permute.xlu0 %1741  ;;  %v2910_v20 = vadd.f32 %v5359_v31, %v5373_v38 }
 0x1e3   : > { %v4154_v41 = vpop.f32.mrf.mxu0  ;;  %1768 = vst.msk [vmem:[%s4385_s7 + $0x10] sm:$0xf] %vm1763_vm11, %v1742_v54 }
 0x1e4   : > { %v5399_v42 = vpop.f32.mrf.mxu1  ;;  %v5402_v59 = vadd.f32 %v2637_v10, %v5271_v37 }
 0x1e5   : > { %v5404_v1 = vpop.f32.mrf.mxu0 }
 0x1e6   : > { %v4180_v60 = vpop.f32.mrf.mxu1  ;;  %v1744_v33 = vpop.permute.xlu1 %1743 }
 0x1e7   : > { %v4157_v50 = vpop.f32.mrf.mxu0  ;;  %1769 = vst.msk [vmem:[%s4385_s7 + $0x14] sm:$0xf] %vm1763_vm11, %v1744_v33 }
 0x1e8   : > { %v5408_v19 = vpop.f32.mrf.mxu1 }
 0x1e9   : > { %v5410_v62 = vpop.f32.mrf.mxu0 }
 0x1ea   : > { %v4183_v40 = vpop.f32.mrf.mxu1  ;;  %v1746_v12 = vpop.permute.xlu0 %1745 }
 0x1eb   : > { %v4158_v34 = vpop.f32.mrf.mxu0  ;;  %1770 = vst.msk [vmem:[%s4385_s7 + $0x18] sm:$0xf] %vm1763_vm11, %v1746_v12  ;;  %v2913_v40 = vadd.f32 %v5369_v52, %v5380_v18 }
 0x1ec   : > { %v5414_v37 = vpop.f32.mrf.mxu1 }
 0x1ed   : > { %v5416_v56 = vpop.f32.mrf.mxu0 }
 0x1ee   : > { %v4184_v6 = vpop.f32.mrf.mxu1  ;;  %v1748_v63 = vpop.permute.xlu1 %1747 }
 0x1ef   : > { %v4161_v46 = vpop.f32.mrf.mxu0  ;;  %1771 = vst.msk [vmem:[%s4385_s7 + $0x1c] sm:$0xf] %vm1763_vm11, %v1748_v63 }
 0x1f0   : > { %v3213_v4 = vpop.f32.mrf.mxu1 }
 0x1f1   : > { %v5420_v0 = vpop.f32.mrf.mxu0  ;;  %v1750_v25 = vpop.permute.xlu0 %1749 }
 0x1f2   : > { %v4211_v48 = vpop.f32.mrf.mxu1  ;;  %1772 = vst.msk [vmem:[%s4385_s7 + $0x20] sm:$0xf] %vm1763_vm11, %v1750_v25  ;;  %v2918_v25 = vadd.f32 %v5378_v9, %v5386_v36 }
 0x1f3   : > { %v4162_v21 = vpop.f32.mrf.mxu0 }
 0x1f4   : > { %v3216_v24 = vpop.f32.mrf.mxu1 }
 0x1f5   : > { %v3090_v55 = vpop.f32.mrf.mxu0  ;;  %v1752_v44 = vpop.permute.xlu1 %1751 }
 0x1f6   : > { %v3129_v51 = vadd.f32 %v3090_v55, %v2902_v7  ;;  %v4212_v28 = vpop.f32.mrf.mxu1  ;;  %1773 = vst.msk [vmem:[%s4385_s7 + $0x24] sm:$0xf] %vm1763_vm11, %v1752_v44 }
 0x1f7   : > { %v4189_v16 = vpop.f32.mrf.mxu0 }
 0x1f8   : > { %v3252_v29 = vadd.f32 %v3213_v4, %v3129_v51  ;;  %v3221_v13 = vpop.f32.mrf.mxu1  ;;  %v2921_v16 = vadd.f32 %v5384_v26, %v5392_v61 }
 0x1f9   : > { %v3093_v53 = vpop.f32.mrf.mxu0 }
 0x1fa   : > { %v3269_v3 = vadd.f32 %v5290_v23, %v3252_v29  ;;  %v3130_v2 = vadd.f32 %v3093_v53, %v2905_v15  ;;  %v4215_v17 = vpop.f32.mrf.mxu1 }
 0x1fb   : > { %v4190_v43 = vpop.f32.mrf.mxu0 }
 0x1fc   : > { %v5433_v35 = vmax.f32 %v3269_v3, 0.0  ;;  %v3253_v10 = vadd.f32 %v3216_v24, %v3130_v2  ;;  %v3224_v54 = vpop.f32.mrf.mxu1 }
 0x1fd   : > { %v3098_v41 = vpop.f32.mrf.mxu0 }
 0x1fe   : > { %v3270_v60 = vadd.f32 %v5290_v23, %v3253_v10  ;;  %v3131_v33 = vadd.f32 %v3098_v41, %v2910_v20  ;;  %v4216_v39 = vpop.f32.mrf.mxu1  ;;  %v3771_v27 = vpack.c.bf16 %v5433_v35, %v5433_v35  ;;  %v2926_v20 = vadd.f32 %v5390_v49, %v5404_v1 }
 0x1ff   : > { %v4193_v50 = vpop.f32.mrf.mxu0  ;;  %v3360_v61 = vmul.f32 %v5433_v35, %v4888_v47  ;;  %v2929_v49 = vadd.f32 %v5399_v42, %v5410_v62 }
 0x200   : > { %v3280_v12 = vmax.f32 %v3270_v60, 0.0  ;;  %v3254_v34 = vadd.f32 %v3221_v13, %v3131_v33  ;;  %3319 = vrot.lane.b32.xlu0 %v3771_v27, %s4333_s29  ;;  %v3229_v31 = vpop.f32.mrf.mxu1 }
 0x201   : > { %v3101_v38 = vpop.f32.mrf.mxu0 }
 0x202   : > { %v3271_v6 = vadd.f32 %v5290_v23, %v3254_v34  ;;  %v3132_v63 = vadd.f32 %v3101_v38, %v2913_v40  ;;  %v4219_v46 = vpop.f32.mrf.mxu1  ;;  %v3772_v48 = vpack.c.bf16 %v3280_v12, %v3280_v12  ;;  %v3361_v2 = vmul.f32 %v3280_v12, %v4911_v22 }
 0x203   : > { %v4194_v4 = vpop.f32.mrf.mxu0  ;;  %v3396_v38 = vmul.f32 %v3360_v61, %v5433_v35  ;;  %v2937_v46 = vadd.f32 %v5414_v37, %v5420_v0 }
 0x204   : > { %v3281_v21 = vmax.f32 %v3271_v6, 0.0  ;;  %v3255_v7 = vadd.f32 %v3224_v54, %v3132_v63  ;;  %v3232_v24 = vpop.f32.mrf.mxu1  ;;  %3321 = vrot.lane.b32.xlu1 %v3772_v48, %s4333_s29  ;;  %v3397_v27 = vmul.f32 %v3361_v2, %v3280_v12  ;;  %v3371_v42 = vsel %vm999_vm9, %v3361_v2, 0.0 }
 0x205   : > { %v3106_v52 = vpop.f32.mrf.mxu0  ;;  %v3370_v48 = vsel %vm999_vm9, %v3360_v61, 0.0  ;;  %v3406_v0 = vsel %vm999_vm9, %v3396_v38, 0.0 }
 0x206   : > { %v3272_v18 = vadd.f32 %v5290_v23, %v3255_v7  ;;  %v3133_v55 = vadd.f32 %v3106_v52, %v2918_v25  ;;  %v4220_v51 = vpop.f32.mrf.mxu1  ;;  %v3773_v28 = vpack.c.bf16 %v3281_v21, %v3281_v21  ;;  %v3362_v41 = vmul.f32 %v3281_v21, %v4921_v32 }
 0x207   : > { %v4197_v44 = vpop.f32.mrf.mxu0  ;;  %v2934_v32 = vadd.f32 %v5408_v19, %v5416_v56  ;;  %v3407_v19 = vsel %vm999_vm9, %v3397_v27, 0.0  ;;  %v3372_v52 = vadd.f32 %v3371_v42, %v3370_v48 }
 0x208   : > { %v3282_v15 = vmax.f32 %v3272_v18, 0.0  ;;  %v3256_v29 = vadd.f32 %v3229_v31, %v3133_v55  ;;  %v3237_v13 = vpop.f32.mrf.mxu1  ;;  %3323 = vrot.lane.b32.xlu0 %v3773_v28, %s4333_s29  ;;  %v3398_v6 = vmul.f32 %v3362_v41, %v3281_v21  ;;  %v3373_v25 = vsel %vm999_vm9, %v3362_v41, 0.0 }
 0x209   : > { %v3109_v9 = vpop.f32.mrf.mxu0 }
 0x20a   : > { %v3273_v36 = vadd.f32 %v5290_v23, %v3256_v29  ;;  %v3134_v53 = vadd.f32 %v3109_v9, %v2921_v16  ;;  %v4223_v3 = vpop.f32.mrf.mxu1  ;;  %v3774_v43 = vpack.c.bf16 %v3282_v15, %v3282_v15  ;;  %v3363_v1 = vmul.f32 %v3282_v15, %v4948_v14 }
 0x20b   : > { %v4198_v17 = vpop.f32.mrf.mxu0  ;;  %v3409_v18 = vsel %vm999_vm9, %v3398_v6, 0.0  ;;  %v3408_v29 = vadd.f32 %v3407_v19, %v3406_v0 }
 0x20c   : > { %v3283_v10 = vmax.f32 %v3273_v36, 0.0  ;;  %v3257_v54 = vadd.f32 %v3232_v24, %v3134_v53  ;;  %v3240_v26 = vpop.f32.mrf.mxu1  ;;  %3325 = vrot.lane.b32.xlu1 %v3774_v43, %s4333_s29  ;;  %v3399_v21 = vmul.f32 %v3363_v1, %v3282_v15  ;;  %v3375_v44 = vsel %vm999_vm9, %v3363_v1, 0.0 }
 0x20d   : > { %v3114_v60 = vpop.f32.mrf.mxu0 }
 0x20e   : > { %v3274_v33 = vadd.f32 %v5290_v23, %v3257_v54  ;;  %v3135_v39 = vadd.f32 %v3114_v60, %v2926_v20  ;;  %v4224_v22 = vpop.f32.mrf.mxu1  ;;  %v3775_v40 = vpack.c.bf16 %v3283_v10, %v3283_v10  ;;  %v3364_v63 = vmul.f32 %v3283_v10, %v4975_v45 }
 0x20f   : > { %v4201_v50 = vpop.f32.mrf.mxu0  ;;  %v3411_v3 = vsel %vm999_vm9, %v3399_v21, 0.0  ;;  %v3410_v20 = vadd.f32 %v3409_v18, %v3408_v29 }
 0x210   : > { %v3284_v34 = vmax.f32 %v3274_v33, 0.0  ;;  %v3258_v31 = vadd.f32 %v3237_v13, %v3135_v39  ;;  %v3245_v47 = vpop.f32.mrf.mxu1  ;;  %3327 = vrot.lane.b32.xlu0 %v3775_v40, %s4333_s29  ;;  %v3400_v55 = vmul.f32 %v3364_v63, %v3283_v10  ;;  %v3374_v13 = vadd.f32 %v3373_v25, %v3372_v52 }
 0x211   : > { %v3117_v12 = vpop.f32.mrf.mxu0  ;;  %v3377_v2 = vsel %vm999_vm9, %v3364_v63, 0.0  ;;  %v3412_v39 = vadd.f32 %v3411_v3, %v3410_v20 }
 0x212   : > { %v3275_v14 = vadd.f32 %v5290_v23, %v3258_v31  ;;  %v3136_v62 = vadd.f32 %v3117_v12, %v2929_v49  ;;  %v4227_v4 = vpop.f32.mrf.mxu1  ;;  %v3365_v56 = vmul.f32 %v3284_v34, %v4998_v5  ;;  %v3776_v45 = vpack.c.bf16 %v3284_v34, %v3284_v34 }
 0x213   : > { %v4202_v35 = vpop.f32.mrf.mxu0  ;;  %v3376_v10 = vadd.f32 %v3375_v44, %v3374_v13  ;;  %v3413_v54 = vsel %vm999_vm9, %v3400_v55, 0.0 }
 0x214   : > { %v3285_v7 = vmax.f32 %v3275_v14, 0.0  ;;  %v3259_v24 = vadd.f32 %v3240_v26, %v3136_v62  ;;  %v3248_v37 = vpop.f32.mrf.mxu1  ;;  %3329 = vrot.lane.b32.xlu1 %v3776_v45, %s4333_s29  ;;  %v3401_v9 = vmul.f32 %v3365_v56, %v3284_v34  ;;  %v3379_v61 = vsel %vm999_vm9, %v3365_v56, 0.0 }
 0x215   : > { %v3122_v51 = vpop.f32.mrf.mxu0  ;;  %v3378_v22 = vadd.f32 %v3377_v2, %v3376_v10  ;;  %v3432_v2 = vld [vmem:[%s5564_s5] sm:$0x1] }
 0x216   : > { %v3366_v5 = vmul.f32 %v3285_v7, %v5020_v30  ;;  %v3276_v28 = vadd.f32 %v5290_v23, %v3259_v24  ;;  %v3137_v16 = vadd.f32 %v3122_v51, %v2934_v32  ;;  %v4228_v15 = vpop.f32.mrf.mxu1  ;;  %v3777_v53 = vpack.c.bf16 %v3285_v7, %v3285_v7  ;;  %v3436_v10 = vld [vmem:[%s5565_s6] sm:$0x1] }
 0x217   : > { %v4205_v36 = vpop.f32.mrf.mxu0  ;;  %v3415_v27 = vsel %vm999_vm9, %v3401_v9, 0.0  ;;  %v3380_v32 = vadd.f32 %v3379_v61, %v3378_v22 }
 0x218   : > { %v3286_v17 = vmax.f32 %v3276_v28, 0.0  ;;  %v3260_v43 = vadd.f32 %v3245_v47, %v3137_v16  ;;  %v3402_v30 = vmul.f32 %v3366_v5, %v3285_v7  ;;  %3331 = vrot.lane.b32.xlu0 %v3777_v53, %s4333_s29  ;;  %v3381_v49 = vsel %vm999_vm9, %v3366_v5, 0.0 }
 0x219   : > { %v3125_v26 = vpop.f32.mrf.mxu0  ;;  %v3414_v47 = vadd.f32 %v3413_v54, %v3412_v39  ;;  %v3382_v42 = vadd.f32 %v3381_v49, %v3380_v32 }
 0x21a   : > { %v3367_v41 = vmul.f32 %v3286_v17, %v5035_v57  ;;  %v3277_v60 = vadd.f32 %v5290_v23, %v3260_v43  ;;  %v3138_v33 = vadd.f32 %v3125_v26, %v2937_v46  ;;  %v3778_v40 = vpack.c.bf16 %v3286_v17, %v3286_v17 }
 0x21b   : > { %v4206_v50 = vpop.f32.mrf.mxu0  ;;  %v3417_v38 = vsel %vm999_vm9, %v3402_v30, 0.0  ;;  %v3416_v46 = vadd.f32 %v3415_v27, %v3414_v47 }
 0x21c   : > { %v3403_v1 = vmul.f32 %v3367_v41, %v3286_v17  ;;  %v3287_v34 = vmax.f32 %v3277_v60, 0.0  ;;  %v3261_v31 = vadd.f32 %v3248_v37, %v3138_v33  ;;  %3333 = vrot.lane.b32.xlu1 %v3778_v40, %s4333_s29  ;;  %v3383_v57 = vsel %vm999_vm9, %v3367_v41, 0.0 }
 0x21d   : > { %v3418_v19 = vadd.f32 %v3417_v38, %v3416_v46  ;;  %v3384_v56 = vadd.f32 %v3383_v57, %v3382_v42 }
 0x21e   : > { %v3368_v6 = vmul.f32 %v3287_v34, %v5056_v58  ;;  %v3278_v63 = vadd.f32 %v5290_v23, %v3261_v31  ;;  %v3779_v12 = vpack.c.bf16 %v3287_v34, %v3287_v34  ;;  %v3419_v14 = vsel %vm999_vm9, %v3403_v1, 0.0 }
 0x21f   : > { %v3420_v25 = vadd.f32 %v3419_v14, %v3418_v19 }
 0x220   : > { %v3385_v62 = vsel %vm999_vm9, %v3368_v6, 0.0  ;;  %v3404_v4 = vmul.f32 %v3368_v6, %v3287_v34  ;;  %v3288_v48 = vmax.f32 %v3278_v63, 0.0  ;;  %3335 = vrot.lane.b32.xlu0 %v3779_v12, %s4333_s29 }
 0x221   : > { %v2527_v23 = vpop.permute.xlu0 %2526  ;;  %v3386_v21 = vadd.f32 %v3385_v62, %v3384_v56 }
 0x222   : > { %v3421_v35 = vsel %vm999_vm9, %v3404_v4, 0.0  ;;  %v3369_v58 = vmul.f32 %v3288_v48, %v5074_v8  ;;  %v3780_v45 = vpack.c.bf16 %v3288_v48, %v3288_v48  ;;  %2557 = vst.msk [vmem:[%s4385_s7] sm:$0xf] %vm2556_vm12, %v2527_v23 }
 0x223   : > { %v3422_v37 = vadd.f32 %v3421_v35, %v3420_v25 }
 0x224   : > { %v3387_v7 = vsel %vm999_vm9, %v3369_v58, 0.0  ;;  %v3405_v24 = vmul.f32 %v3369_v58, %v3288_v48  ;;  %3337 = vrot.lane.b32.xlu1 %v3780_v45, %s4333_s29 }
 0x225   : > { %v3388_v0 = vadd.f32 %v3387_v7, %v3386_v21  ;;  %v2529_v8 = vpop.permute.xlu1 %2528 }
 0x226   : > { %v3423_v52 = vsel %vm999_vm9, %v3405_v24, 0.0  ;;  %2558 = vst.msk [vmem:[%s4385_s7 + $0x4] sm:$0xf] %vm2556_vm12, %v2529_v8 }
 0x227   : > { %v3389_v18 = vrot.slane %v3388_v0, 4  ;;  %v3424_v55 = vadd.f32 %v3423_v52, %v3422_v37 }
 0x229   : > { %v3390_v51 = vadd.f32 %v3389_v18, %v3388_v0  ;;  %v3425_v44 = vrot.slane %v3424_v55, 4 }
 0x22a   : > { %v2531_v16 = vpop.permute.xlu0 %2530 }
 0x22b   : > { %v3391_v5 = vrot.slane %v3390_v51, 2  ;;  %v3426_v28 = vadd.f32 %v3425_v44, %v3424_v55  ;;  %2559 = vst.msk [vmem:[%s4385_s7 + $0x8] sm:$0xf] %vm2556_vm12, %v2531_v16 }
 0x22d   : > { %v3392_v15 = vadd.f32 %v3391_v5, %v3390_v51  ;;  %v3427_v29 = vrot.slane %v3426_v28, 2 }
 0x22e   : > { %v2533_v36 = vpop.permute.xlu1 %2532 }
 0x22f   : > { %v3393_v13 = vrot.slane %v3392_v15, 1  ;;  %v3428_v9 = vadd.f32 %v3427_v29, %v3426_v28  ;;  %2560 = vst.msk [vmem:[%s4385_s7 + $0xc] sm:$0xf] %vm2556_vm12, %v2533_v36 }
 0x231   : > { %v3394_v53 = vadd.f32 %v3393_v13, %v3392_v15  ;;  %v3429_v3 = vrot.slane %v3428_v9, 1 }
 0x232   : > { %v2535_v20 = vpop.permute.xlu0 %2534 }
 0x233   : > { %v3395_v17 = vadd.f32 %v3394_v53, %v5395_v11  ;;  %v3430_v43 = vadd.f32 %v3429_v3, %v3428_v9  ;;  %2561 = vst.msk [vmem:[%s4385_s7 + $0x10] sm:$0xf] %vm2556_vm12, %v2535_v20 }
 0x235   : > { %v3431_v54 = vadd.f32 %v3430_v43, %v5402_v59  ;;  %v3433_v30 = vadd.f32 %v3432_v2, %v3395_v17 }
 0x236   : > { %v2537_v26 = vpop.permute.xlu1 %2536 }
 0x237   : > { %3435 = vst.msk [vmem:[%s5564_s5] sm:$0x1] %vm3434_vm13, %v3433_v30  ;;  %v3437_v11 = vadd.f32 %v3436_v10, %v3431_v54 }
 0x238   : > { %2562 = vst.msk [vmem:[%s4385_s7 + $0x14] sm:$0xf] %vm2556_vm12, %v2537_v26 }
 0x239   : > { %3438 = vst.msk [vmem:[%s5565_s6] sm:$0x1] %vm3434_vm13, %v3437_v11 }
 0x23a   : > { %v2539_v61 = vpop.permute.xlu0 %2538 }
 0x23b   : > { %2563 = vst.msk [vmem:[%s4385_s7 + $0x18] sm:$0xf] %vm2556_vm12, %v2539_v61 }
 0x23e   : > { %v2541_v59 = vpop.permute.xlu1 %2540 }
 0x23f   : > { %2564 = vst.msk [vmem:[%s4385_s7 + $0x1c] sm:$0xf] %vm2556_vm12, %v2541_v59 }
 0x241   : > { %v2543_v41 = vpop.permute.xlu0 %2542 }
 0x242   : > { %2565 = vst.msk [vmem:[%s4385_s7 + $0x20] sm:$0xf] %vm2556_vm12, %v2543_v41 }
 0x245   : > { %v2545_v60 = vpop.permute.xlu1 %2544 }
 0x246   : > { %2566 = vst.msk [vmem:[%s4385_s7 + $0x24] sm:$0xf] %vm2556_vm12, %v2545_v60 }
 0x272   : > { %v3320_v33 = vpop.permute.xlu0 %3319 }
 0x273   : > { %3350 = vst.msk [vmem:[%s4385_s7] sm:$0xf] %vm3349_vm14, %v3320_v33 }
 0x276   : > { %v3322_v39 = vpop.permute.xlu1 %3321 }
 0x277   : > { %3351 = vst.msk [vmem:[%s4385_s7 + $0x4] sm:$0xf] %vm3349_vm14, %v3322_v39 }
 0x27a   : > { %v3324_v22 = vpop.permute.xlu0 %3323 }
 0x27b   : > { %3352 = vst.msk [vmem:[%s4385_s7 + $0x8] sm:$0xf] %vm3349_vm14, %v3324_v22 }
 0x27e   : > { %v3326_v27 = vpop.permute.xlu1 %3325 }
 0x27f   : > { %3353 = vst.msk [vmem:[%s4385_s7 + $0xc] sm:$0xf] %vm3349_vm14, %v3326_v27 }
 0x282   : > { %v3328_v50 = vpop.permute.xlu0 %3327 }
 0x283   : > { %3354 = vst.msk [vmem:[%s4385_s7 + $0x10] sm:$0xf] %vm3349_vm14, %v3328_v50 }
 0x286   : > { %v3330_v40 = vpop.permute.xlu1 %3329 }
 0x287   : > { %3355 = vst.msk [vmem:[%s4385_s7 + $0x14] sm:$0xf] %vm3349_vm14, %v3330_v40 }
 0x28a   : > { %v3332_v49 = vpop.permute.xlu0 %3331 }
 0x28b   : > { %3356 = vst.msk [vmem:[%s4385_s7 + $0x18] sm:$0xf] %vm3349_vm14, %v3332_v49 }
 0x28e   : > { %v3334_v1 = vpop.permute.xlu1 %3333 }
 0x28f   : > { %3357 = vst.msk [vmem:[%s4385_s7 + $0x1c] sm:$0xf] %vm3349_vm14, %v3334_v1 }
 0x292   : > { %v3336_v34 = vpop.permute.xlu0 %3335 }
 0x293   : > { %3358 = vst.msk [vmem:[%s4385_s7 + $0x20] sm:$0xf] %vm3349_vm14, %v3336_v34 }
 0x296   : > { %v3338_v31 = vpop.permute.xlu1 %3337 }
 0x297   : > { %3359 = vst.msk [vmem:[%s4385_s7 + $0x24] sm:$0xf] %vm3349_vm14, %v3338_v31 }
 0x298 PF: > { %s17_s21 = sadd.s32 1, %s4325_s21  }
 0x299   : > { %p14_p5 = scmp.ge.s32.totalorder %s17_s21, 4  }
 0x29b   :  { %16 = sbr.rel (!%p14_p5) target bundleno = 1 (0x1), region = 101 }

// kernel: generator_forward.9
= control target key start
LH: loop header
LB: loop body
LE: loop exit
PB: predicated region body
PF: predicated region fallthrough
CT: control target
= control target key end

     0   :  { %s2925_s12 = smov 0   ;;  %s5261_s0 = inlined_call_operand.vmem [shape: bf16[2,342,8], index: 0, kind: input, shape index: {}]   ;;  %s5262_s1 = inlined_call_operand.vmem [shape: bf16[128,4], index: 1, kind: input, shape index: {}]   ;;  %s5263_s2 = inlined_call_operand.vmem [shape: f32[1,4], index: 2, kind: input, shape index: {}]   ;;  %s5264_s3 = inlined_call_operand.vmem [shape: f32[2,288,4], index: 3, kind: output, shape index: {}]  }
   0x1 LB: > { %s2478_s13 = sadd.s32 4294967295, %s2888_s12   ;;  %p2482_p0 = scmp.ge.s32.totalorder %s2888_s12, 1  ;;  %s2888_s12 = sphi %s2925_s12, %s13_s12  }
   0x2   : > { %p137_p1 = scmp.lt.s32.totalorder %s2888_s12, 3 }
   0x4   : > { %p138_p2 = pnand %p2482_p0, %p137_p1 }
   0x6   : > { %141 = sbr.rel (%p138_p2) target bundleno = 915 (0x393), region = 32 }
   0xb   : > { %p161_p3 = scmp.lt.s32.totalorder %s2478_s13, 1  ;;  %vm315_vm0 = vsmask.f32 7424  ;;  %s2890_s18 = smov 8   ;;  %vm511_vm1 = vcmask 1046528   ;;  %vm1349_vm3 = vcmask 64512  }
   0xc   : > { %s2891_s19 = smov 16   ;;  %vm588_vm2 = vsmask.f32 6400  ;;  %s2892_s20 = smov 24   ;;  %vm1386_vm4 = vcmask 130048   ;;  %vm1423_vm5 = vcmask 195584  }
   0xd   : > { %s5642_s13 = smov (!%p161_p3, %s2478_s13), 1  ;;  %s2893_s21 = smov 32   ;;  %vm835_vm6 = vcmask 1045504   ;;  %vm1037_vm7 = vsmask.f32 5376  ;;  %vm1460_vm8 = vcmask 261120  }
   0xe   : > { %s2656_s14 = smul.u32 172, %s5642_s13  ;;  %s2894_s22 = smov 40   ;;  %vm1275_vm9 = vcmask 1044480   ;;  %vm1497_vm10 = vcmask 326656   ;;  %vm1534_vm11 = vcmask 392192   ;;  %vm1571_vm12 = vcmask 457728  }
   0xf   : > { %s2895_s23 = smov 48   ;;  %s2896_s24 = smov 56   ;;  %vm1608_vm13 = vcmask 523264   ;;  %vm1645_vm14 = vcmask 588800   ;;  %vm1682_vm15 = vcmask 654336  }
  0x10   : > { %s2939_s17 = scalar_lea.vmem %s5261_s0, %s2656_s14  ;;  %s2897_s27 = smov 64  }
  0x11   : > { %v176_v0 = vld [vmem:[%s2939_s17 + $0x10] sm:$0xf]  ;;  %v2943_v1 = vld [vmem:[%s2939_s17 + $0x14] sm:$0xf]  ;;  %v2949_v3 = vld [vmem:[%s2939_s17 + $0x18] sm:$0xff]   ;;  %s2898_s30 = smov 72  }
  0x12   : > { %5387 = vst [vmem:[#allocation2_spill] sm:$0xff] %v2943_v1  ;;  %v2946_v2 = vcombine.low %v176_v0, %v2943_v1  ;;  %v172_v4 = vld [vmem:[%s2939_s17] sm:$0xf]  ;;  %v2953_v5 = vld [vmem:[%s2939_s17 + $0x4] sm:$0xf]  ;;  %v2962_v10 = vshll.u32 %v2949_v3, 16 }
  0x13   : > { %v174_v6 = vld [vmem:[%s2939_s17 + $0x8] sm:$0xf]  ;;  %v2957_v7 = vld [vmem:[%s2939_s17 + $0xc] sm:$0xf]  ;;  %v2965_v11 = vcombine.low %v172_v4, %v2953_v5  ;;  %v2968_v12 = vld [vmem:[%s2939_s17 + $0x20] sm:$0xff]   ;;  %v2974_v14 = vshrl.u32 %v2949_v3, 16 }
  0x14   : > { %5388 = vst [vmem:[#allocation3_spill] sm:$0xff] %v2957_v7  ;;  %v5265_v8 = vshll.u32 %v2946_v2, 16  ;;  %v5266_v9 = vshrl.u32 %v2946_v2, 16  ;;  %5389 = vst [vmem:[#allocation4_spill] sm:$0xff] %v2962_v10  ;;  %v2971_v13 = vcombine.low %v174_v6, %v2957_v7  ;;  %v2977_v15 = vld [vmem:[%s2939_s17 + $0x28] sm:$0xff]   ;;  %v342_v17 = vrot.slane %v2962_v10, 1 }
  0x15   : > { %5390 = vst [vmem:[#allocation5_spill] sm:$0xff] %v2965_v11  ;;  %5391 = vst [vmem:[#allocation6_spill] sm:$0xff] %v2968_v12  ;;  %v317_v18 = vshrl.u32 %v2965_v11, 16  ;;  %v319_v19 = vshll.u32 %v2965_v11, 16  ;;  %v2986_v21 = vshll.u32 %v2968_v12, 16  ;;  %v2993_v25 = vld [vmem:[%s2939_s17 + $0x30] sm:$0xff]  }
  0x16   : > { %5392 = vst [vmem:[#allocation7_spill] sm:$0xff] %v2971_v13  ;;  %5393 = vst [vmem:[#allocation8_spill] sm:$0xff] %v2974_v14  ;;  %v334_v16 = vrot.slane %v5265_v8, 1  ;;  %v324_v20 = vshll.u32 %v2971_v13, 16  ;;  %v328_v22 = vshrl.u32 %v2971_v13, 16  ;;  %v346_v24 = vor.u32 %v2974_v14, %v342_v17  ;;  %v3002_v28 = vld [vmem:[%s2939_s17 + $0x38] sm:$0xff]  }
  0x17   : > { %5394 = vst [vmem:[#allocation9_spill] sm:$0xff] %v2977_v15  ;;  %5395 = vst [vmem:[#allocation10_spill] sm:$0xff] %v2993_v25  ;;  %v2996_v26 = vshll.u32 %v2977_v15, 16  ;;  %v2999_v27 = vshrl.u32 %v2977_v15, 16  ;;  %v321_v29 = vrot.slane %v319_v19, 1  ;;  %v350_v31 = vrot.slane %v2986_v21, 1 }
  0x18   : > { %v338_v23 = vor.u32 %v5266_v9, %v334_v16  ;;  %5398 = vst [vmem:[#allocation13_spill] sm:$0xff] %v3002_v28  ;;  %v326_v30 = vrot.slane %v324_v20, 1  ;;  %v3006_v32 = vshrl.u32 %v2968_v12, 16  ;;  %v3013_v35 = vshll.u32 %v2993_v25, 16  ;;  %v3021_v39 = vld [vmem:[%s2939_s17 + $0x40] sm:$0xff]   ;;  %v3032_v44 = vld [vmem:[%s2939_s17 + $0x48] sm:$0xff]  }
  0x19   : > { %5396 = vst [vmem:[#allocation11_spill] sm:$0xff] %v2996_v26  ;;  %5397 = vst [vmem:[#allocation12_spill] sm:$0xff] %v2999_v27  ;;  %v358_v34 = vrot.slane %v2996_v26, 1  ;;  %v322_v36 = vor.u32 %v321_v29, %v317_v18  ;;  %v3018_v37 = vsel %vm315_vm0, %v346_v24, %v350_v31  ;;  %v3026_v42 = vshll.u32 %v3002_v28, 16  ;;  %v3041_v47 = vld [vmem:[%s2939_s17 + $0x50] sm:$0xff]   ;;  %v3054_v52 = vld [vmem:[%s2939_s17 + $0x58] sm:$0xff]  }
  0x1a   : > { %v3009_v33 = vsel %vm315_vm0, %v338_v23, %v342_v17  ;;  %5400 = vst [vmem:[#allocation15_spill] sm:$0xff] %v3013_v35  ;;  %5401 = vst [vmem:[#allocation16_spill] sm:$0xff] %v3018_v37  ;;  %v330_v38 = vor.u32 %v328_v22, %v326_v30  ;;  %v366_v41 = vrot.slane %v3013_v35, 1  ;;  %v3029_v43 = vshrl.u32 %v3002_v28, 16  ;;  %v3074_v60 = vld [vmem:[%s2939_s17 + $0x60] sm:$0xff]   ;;  %v3080_v62 = vld [vmem:[%s2939_s17 + $0x68] sm:$0xff]  }
  0x1b   : > { %5399 = vst [vmem:[#allocation14_spill] sm:$0xff] %v3009_v33  ;;  %468 = vrot.lane.b32.xlu1 %v3009_v33, %s2890_s18  ;;  %5402 = vst [vmem:[#allocation17_spill] sm:$0xff] %v3021_v39  ;;  %v362_v40 = vor.u32 %v2999_v27, %v358_v34  ;;  %v3035_v45 = vsel %vm315_vm0, %v322_v36, %v326_v30  ;;  %v3038_v46 = vshll.u32 %v3021_v39, 16  ;;  %v374_v50 = vrot.slane %v3026_v42, 1  ;;  %v3091_v4 = vld [vmem:[%s2939_s17 + $0x70] sm:$0xff]   ;;  %v3112_v24 = vld [vmem:[%s2939_s17 + $0x78] sm:$0xff]  }
  0x1c   : > { %5403 = vst [vmem:[#allocation18_spill] sm:$0xff] %v3026_v42  ;;  %5404 = vst [vmem:[#allocation19_spill] sm:$0xff] %v3029_v43  ;;  %464 = vrot.lane.b32.xlu0 %v3035_v45, %s2890_s18  ;;  %v3046_v48 = vsel %vm315_vm0, %v330_v38, %v334_v16  ;;  %v354_v49 = vor.u32 %v3006_v32, %v350_v31  ;;  %v3051_v51 = vshll.u32 %v3032_v44, 16  ;;  %v3060_v54 = vshrl.u32 %v2993_v25, 16  ;;  %v3144_v9 = vld [vmem:[%s2939_s17 + $0x88] sm:$0xff]   ;;  %s2899_s6 = smov 80  }
  0x1d   : > { %5405 = vst [vmem:[#allocation20_spill] sm:$0xff] %v3032_v44  ;;  %5406 = vst [vmem:[#allocation21_spill] sm:$0xff] %v3035_v45  ;;  %v382_v53 = vrot.slane %v3038_v46, 1  ;;  %v3063_v55 = vshrl.u32 %v3032_v44, 16  ;;  %v3066_v56 = vshll.u32 %v3041_v47, 16  ;;  %v3069_v57 = vsel %vm315_vm0, %v362_v40, %v366_v41  ;;  %s2900_s9 = smov 88  }
  0x1e   : > { %5407 = vst [vmem:[#allocation22_spill] sm:$0xff] %v3038_v46  ;;  %5408 = vst [vmem:[#allocation23_spill] sm:$0xff] %v3041_v47  ;;  %v378_v58 = vor.u32 %v3029_v43, %v374_v50  ;;  %v390_v59 = vrot.slane %v3051_v51, 1  ;;  %v3077_v61 = vshll.u32 %v3054_v52, 16  ;;  %v3085_v63 = vsel %vm315_vm0, %v354_v49, %v358_v34  ;;  %v3124_v34 = vld [vmem:[%s2939_s17 + $0x80] sm:$0xff]   ;;  %s2901_s14 = smov 96  }
  0x1f   : > { %5409 = vst [vmem:[#allocation24_spill] sm:$0xff] %v3046_v48  ;;  %5410 = vst [vmem:[#allocation25_spill] sm:$0xff] %v3051_v51  ;;  %470 = vrot.lane.b32.xlu1 %v3018_v37, %s2890_s18  ;;  %v3088_v0 = vshll.u32 %v3074_v60, 16  ;;  %v370_v6 = vor.u32 %v3060_v54, %v366_v41  ;;  %v398_v17 = vrot.slane %v3066_v56, 1  ;;  %v3099_v18 = vshrl.u32 %v3021_v39, 16  ;;  %s2903_s25 = smov 112  }
  0x20   : > { %5411 = vst [vmem:[#allocation26_spill] sm:$0xff] %v3054_v52  ;;  %5412 = vst [vmem:[#allocation27_spill] sm:$0xff] %v3063_v55  ;;  %466 = vrot.lane.b32.xlu0 %v3046_v48, %s2890_s18  ;;  %v394_v16 = vor.u32 %v3063_v55, %v390_v59  ;;  %v3102_v19 = vsel %vm315_vm0, %v378_v58, %v382_v53  ;;  %v406_v20 = vrot.slane %v3077_v61, 1  ;;  %v3106_v22 = vshrl.u32 %v3054_v52, 16  ;;  %s2904_s26 = smov 120  }
  0x21   : > { %5413 = vst [vmem:[#allocation28_spill] sm:$0xff] %v3066_v56  ;;  %5414 = vst [vmem:[#allocation29_spill] sm:$0xff] %v3069_v57  ;;  %v3109_v23 = vshll.u32 %v3080_v62, 16  ;;  %v414_v29 = vrot.slane %v3088_v0, 1  ;;  %v3118_v30 = vshrl.u32 %v3041_v47, 16  ;;  %v3121_v31 = vshll.u32 %v3091_v4, 16 }
  0x22   : > { %5415 = vst [vmem:[#allocation30_spill] sm:$0xff] %v3074_v60  ;;  %5416 = vst [vmem:[#allocation31_spill] sm:$0xff] %v3077_v61  ;;  %v3129_v36 = vsel %vm315_vm0, %v370_v6, %v374_v50  ;;  %v3132_v38 = vsel %vm315_vm0, %v394_v16, %v398_v17  ;;  %v386_v40 = vor.u32 %v3099_v18, %v382_v53  ;;  %v3138_v58 = vshrl.u32 %v3080_v62, 16 }
  0x23   : > { %5417 = vst [vmem:[#allocation32_spill] sm:$0xff] %v3080_v62  ;;  %5418 = vst [vmem:[#allocation33_spill] sm:$0xff] %v3085_v63  ;;  %474 = vrot.lane.b32.xlu1 %v3069_v57, %s2890_s18  ;;  %v410_v41 = vor.u32 %v3106_v22, %v406_v20  ;;  %v422_v49 = vrot.slane %v3109_v23, 1  ;;  %v3141_v8 = vshll.u32 %v3112_v24, 16  ;;  %v402_v50 = vor.u32 %v3118_v30, %v398_v17 }
  0x24   : > { %5419 = vst [vmem:[#allocation34_spill] sm:$0xff] %v3091_v4  ;;  %5420 = vst [vmem:[#allocation35_spill] sm:$0xff] %v3099_v18  ;;  %472 = vrot.lane.b32.xlu0 %v3085_v63, %s2890_s18  ;;  %v430_v53 = vrot.slane %v3121_v31, 1  ;;  %v3151_v6 = vshrl.u32 %v3074_v60, 16  ;;  %v3156_v16 = vsel %vm315_vm0, %v386_v40, %v390_v59  ;;  %v3159_v11 = vshrl.u32 %v3112_v24, 16 }
  0x25   : > { %5421 = vst [vmem:[#allocation36_spill] sm:$0xff] %v3102_v19  ;;  %5422 = vst [vmem:[#allocation37_spill] sm:$0xff] %v3106_v22  ;;  %v3162_v1 = vshll.u32 %v3124_v34, 16  ;;  %v426_v17 = vor.u32 %v3138_v58, %v422_v49  ;;  %v3170_v63 = vld [vmem:[%s2939_s17 + $0x90] ss:$0 sps:$4 sm:$0x11]   ;;  %v3178_v59 = vsel %vm315_vm0, %v402_v50, %v406_v20 }
  0x26   : > { %5423 = vst [vmem:[#allocation38_spill] sm:$0xff] %v3112_v24  ;;  %5424 = vst [vmem:[#allocation39_spill] sm:$0xff] %v3118_v30  ;;  %v418_v40 = vor.u32 %v3151_v6, %v414_v29  ;;  %v3185_v57 = vshrl.u32 %v3091_v4, 16  ;;  %v3188_v33 = vshrl.u32 %v3144_v9, 16  ;;  %v3207_v48 = vshrl.u32 %v3124_v34, 16 }
  0x27   : > { %5425 = vst [vmem:[#allocation40_spill] sm:$0xff] %v3124_v34  ;;  %478 = vrot.lane.b32.xlu1 %v3102_v19, %s2890_s18  ;;  %5426 = vst [vmem:[#allocation41_spill] sm:$0xff] %v3129_v36  ;;  %v438_v19 = vrot.slane %v3141_v8, 1  ;;  %v3191_v37 = vsel %vm315_vm0, %v426_v17, %v430_v53 }
  0x28   : > { %5427 = vst [vmem:[#allocation42_spill] sm:$0xff] %v3132_v38  ;;  %5428 = vst [vmem:[#allocation43_spill] sm:$0xff] %v3141_v8  ;;  %476 = vrot.lane.b32.xlu0 %v3129_v36, %s2890_s18  ;;  %v3165_v36 = vsel %vm315_vm0, %v410_v41, %v414_v29  ;;  %v446_v41 = vrot.slane %v3162_v1, 1  ;;  %v5437_v29 = vshrl.u32 %v2946_v2, 16  ;;  %v3203_v45 = vsel %vm315_vm0, %v418_v40, %v422_v49  ;;  %v209_v8 = vld [vmem:[%s2939_s17 + $0x8] sm:$0xe] }
  0x29   : > { %5429 = vst [vmem:[#allocation44_spill] sm:$0xff] %v3144_v9  ;;  %5430 = vst [vmem:[#allocation45_spill] sm:$0xff] %v3156_v16  ;;  %v442_v20 = vor.u32 %v3159_v11, %v438_v19  ;;  %v434_v17 = vor.u32 %v3185_v57, %v430_v53  ;;  %v3225_v40 = vcombine.low %v209_v8, %v2957_v7 }
  0x2a   : > { %5431 = vst [vmem:[#allocation46_spill] sm:$0xff] %v3159_v11  ;;  %5432 = vst [vmem:[#allocation47_spill] sm:$0xff] %v3162_v1  ;;  %v450_v53 = vor.u32 %v3207_v48, %v446_v41 }
  0x2b   : > { %482 = vrot.lane.b32.xlu1 %v3132_v38, %s2890_s18  ;;  %5433 = vst [vmem:[#allocation48_spill] sm:$0xff] %v3165_v36  ;;  %v3173_v38 = vshll.u32 %v3144_v9, 16  ;;  %5435 = vst [vmem:[#allocation50_spill] sm:$0xff] %v3178_v59  ;;  %v3221_v49 = vsel %vm315_vm0, %v434_v17, %v438_v19  ;;  %v512_v8 = vrot.slane %v3225_v40, 1  ;;  %v523_v17 = vrot.slane %v3002_v28, 1 }
  0x2c   : > { %480 = vrot.lane.b32.xlu0 %v3156_v16, %s2890_s18  ;;  %5436 = vst [vmem:[#allocation51_spill] sm:$0xff] %v3188_v33  ;;  %v597_v16 = vrot.slane %v5437_v29, 1  ;;  %5438 = vst [vmem:[#allocation52_spill] sm:$0xff] %v3203_v45  ;;  %v5440_v29 = vshll.u32 %v2946_v2, 16  ;;  %v531_v28 = vrot.slane %v3054_v52, 1 }
  0x2d   : > { %5434 = vst [vmem:[#allocation49_spill] sm:$0xff] %v3173_v38  ;;  %v454_v50 = vrot.slane %v3173_v38, 1  ;;  %5439 = vst [vmem:[#allocation53_spill] sm:$0xff] %v3207_v48  ;;  %v3210_v38 = vsel %vm315_vm0, %v442_v20, %v446_v41 }
  0x2e   : > { %v598_v11 = vrot.slane %v5440_v29, 2  ;;  %v513_v29 = vrot.slane %v2946_v2, 1 }
  0x2f   : > { %486 = vrot.lane.b32.xlu1 %v3165_v36, %s2890_s18  ;;  %v460_v36 = vshll.u32 %v3170_v63, 16  ;;  %v458_v1 = vor.u32 %v3188_v33, %v454_v50  ;;  %v3239_v19 = vsel %vm315_vm0, %v450_v53, %v454_v50  ;;  %v521_v50 = vrot.slane %v2993_v25, 1  ;;  %v214_v25 = vld [vmem:[%s2939_s17] sm:$0xe] }
  0x30   : > { %484 = vrot.lane.b32.xlu0 %v3178_v59, %s2890_s18  ;;  %v3227_v20 = vor.u32 %v598_v11, %v597_v16  ;;  %v519_v16 = vrot.slane %v2977_v15, 1 }
  0x31   : > { %v462_v59 = vrot.slane %v460_v36, 1  ;;  %v3267_v7 = vsel %vm511_vm1, %v521_v50, %v523_v17 }
  0x33   : > { %490 = vrot.lane.b32.xlu1 %v3191_v37, %s2890_s18  ;;  %v3230_v36 = vsel %vm315_vm0, %v458_v1, %v462_v59  ;;  %v517_v1 = vrot.slane %v2968_v12, 1  ;;  %v3252_v59 = vsel %vm511_vm1, %v512_v8, %v513_v29  ;;  %v525_v8 = vrot.slane %v3021_v39, 1 }
  0x34   : > { %488 = vrot.lane.b32.xlu0 %v3203_v45, %s2890_s18  ;;  %v515_v45 = vrot.slane %v2949_v3, 1  ;;  %5441 = vst [vmem:[#allocation54_spill] sm:$0xff] %v3252_v59  ;;  %v527_v12 = vrot.slane %v3032_v44, 1  ;;  %v755_v39 = vrot.slane %v2971_v13, 1  ;;  %v2508_v44 = vcombine.low %v214_v25, %v2953_v5 }
  0x35   : > { %v3255_v41 = vsel %vm511_vm1, %v517_v1, %v519_v16  ;;  %v758_v13 = vrot.slane %v3170_v63, 1  ;;  %v533_v25 = vrot.slane %v3074_v60, 1  ;;  %v593_v60 = vshll.u32 %v3225_v40, 16 }
  0x36   : > { %v3243_v11 = vsel %vm511_vm1, %v513_v29, %v515_v45  ;;  %v3264_v53 = vsel %vm511_vm1, %v515_v45, %v517_v1  ;;  %v3280_v45 = vsel %vm511_vm1, %v525_v8, %v527_v12  ;;  %v529_v1 = vrot.slane %v3041_v47, 1 }
  0x37   : > { %494 = vrot.lane.b32.xlu1 %v3210_v38, %s2890_s18  ;;  %5442 = vst [vmem:[#allocation55_spill] sm:$0xff] %v3280_v45  ;;  %v3289_v15 = vsel %vm511_vm1, %v755_v39, %v513_v29  ;;  %v754_v47 = vrot.slane %v2508_v44, 1  ;;  %v535_v29 = vrot.slane %v3080_v62, 1  ;;  %v602_v62 = vrot.slane %v2962_v10, 2 }
  0x38   : > { %492 = vrot.lane.b32.xlu0 %v3221_v49, %s2890_s18  ;;  %v3299_v5 = vsel %vm511_vm1, %v529_v1, %v531_v28  ;;  %v3314_v44 = vsel %vm511_vm1, %v527_v12, %v529_v1  ;;  %v2702_v12 = vld [vmem:[%s2939_s17 + $0x98] ss:$0 sps:$4 sm:$0x11]   ;;  %v609_v10 = vrot.slane %v2999_v27, 1  ;;  %vm1719_vm0 = vcmask 719872  }
  0x39   : > { %5444 = vst [vmem:[#allocation57_spill] sm:$0xff] %v3299_v5  ;;  %v3304_v52 = vsel %vm511_vm1, %v754_v47, %v755_v39  ;;  %5446 = vst [vmem:[#allocation59_spill] sm:$0xff] %v3314_v44  ;;  %v3317_v63 = vsel %vm511_vm1, %v533_v25, %v535_v29  ;;  %v539_v39 = vrot.slane %v3112_v24, 1  ;;  %v3329_v47 = vld [vmem:[%s2939_s17 + $0x90] sm:$0xff]   ;;  %v590_v24 = vshrl.u32 %v3225_v40, 16 }
  0x3a   : > { %5447 = vst [vmem:[#allocation60_spill] sm:$0xff] %v3317_v63  ;;  %5448 = vst [vmem:[#allocation61_spill] sm:$0xff] %v3329_v47 }
  0x3b   : > { %498 = vrot.lane.b32.xlu1 %v3230_v36, %s2890_s18  ;;  %v592_v40 = vrot.slane %v590_v24, 1  ;;  %v617_v24 = vrot.slane %v3029_v43, 1 }
  0x3c   : > { %496 = vrot.lane.b32.xlu0 %v3239_v19, %s2890_s18  ;;  %s2902_s18 = smov 104  }
  0x3f   : > { %551 = vrot.lane.b32.xlu1 %v3243_v11, %s2891_s19 }
  0x40   : > { %549 = vrot.lane.b32.xlu0 %v3252_v59, %s2891_s19  ;;  %v3277_v59 = vsel %vm511_vm1, %v519_v16, %v521_v50  ;;  %v3294_v16 = vsel %vm511_vm1, %v523_v17, %v525_v8  ;;  %v543_v50 = vrot.slane %v3144_v9, 1  ;;  %v537_v8 = vrot.slane %v3091_v4, 1 }
  0x41   : > { %5443 = vst [vmem:[#allocation56_spill] sm:$0xff] %v3294_v16  ;;  %v541_v9 = vrot.slane %v3124_v34, 1  ;;  %v601_v34 = vrot.slane %v2974_v14, 1  ;;  %v606_v14 = vrot.slane %v2986_v21, 2 }
  0x42   : > { %v3307_v17 = vsel %vm511_vm1, %v543_v50, %v758_v13  ;;  %v3326_v13 = vsel %vm511_vm1, %v531_v28, %v533_v25  ;;  %v3333_v1 = vsel %vm511_vm1, %v537_v8, %v539_v39  ;;  %v3339_v4 = vsel %vm511_vm1, %v535_v29, %v537_v8 }
  0x43   : > { %555 = vrot.lane.b32.xlu1 %v3255_v41, %s2891_s19  ;;  %5445 = vst [vmem:[#allocation58_spill] sm:$0xff] %v3307_v17  ;;  %5449 = vst [vmem:[#allocation62_spill] sm:$0xff] %v3333_v1  ;;  %v545_v28 = vrot.slane %v3329_v47, 1  ;;  %v547_v25 = vrot.slane %v2702_v12, 1  ;;  %v3347_v17 = vsel %vm511_vm1, %v541_v9, %v543_v50  ;;  %v3354_v29 = vsel %vm511_vm1, %v539_v39, %v541_v9 }
  0x44   : > { %553 = vrot.lane.b32.xlu0 %v3264_v53, %s2891_s19  ;;  %5450 = vst [vmem:[#allocation63_spill] sm:$0xff] %v3339_v4  ;;  %5451 = vst [vmem:[#allocation64_spill] sm:$0xff] %v3347_v17  ;;  %v595_v12 = vrot.slane %v593_v60, 2  ;;  %v613_v9 = vrot.slane %v3060_v54, 1  ;;  %v614_v39 = vrot.slane %v3013_v35, 2 }
  0x45   : > { %5452 = vst [vmem:[#allocation65_spill] sm:$0xff] %v3354_v29  ;;  %v3359_v8 = vsel %vm511_vm1, %v545_v28, %v547_v25  ;;  %v3372_v60 = vsel %vm511_vm1, %v543_v50, %v545_v28  ;;  %vm1756_vm1 = vcmask 785408  }
  0x46   : > { %5453 = vst [vmem:[#allocation66_spill] sm:$0xff] %v3359_v8  ;;  %5454 = vst [vmem:[#allocation67_spill] sm:$0xff] %v3372_v60  ;;  %v615_v35 = vor.u32 %v614_v39, %v613_v9  ;;  %v629_v39 = vrot.slane %v3118_v30, 1 }
  0x47   : > { %559 = vrot.lane.b32.xlu1 %v3267_v7, %s2891_s19 }
  0x48   : > { %557 = vrot.lane.b32.xlu0 %v3277_v59, %s2891_s19 }
  0x4b   : > { %563 = vrot.lane.b32.xlu1 %v3280_v45, %s2891_s19 }
  0x4c   : > { %561 = vrot.lane.b32.xlu0 %v3294_v16, %s2891_s19 }
  0x4f   : > { %567 = vrot.lane.b32.xlu1 %v3299_v5, %s2891_s19 }
  0x50   : > { %565 = vrot.lane.b32.xlu0 %v3314_v44, %s2891_s19 }
  0x53   : > { %571 = vrot.lane.b32.xlu1 %v3317_v63, %s2891_s19  ;;  %v603_v63 = vor.u32 %v602_v62, %v601_v34  ;;  %v596_v62 = vor.u32 %v595_v12, %v592_v40  ;;  %v618_v34 = vrot.slane %v3026_v42, 2  ;;  %v621_v40 = vrot.slane %v3099_v18, 1  ;;  %v5461_v18 = vld [vmem:[#allocation47_spill] sm:$0xff]  ;;  %v5462_v42 = vld [vmem:[#allocation49_spill] sm:$0xff] }
  0x54   : > { %569 = vrot.lane.b32.xlu0 %v3326_v13, %s2891_s19  ;;  %v622_v12 = vrot.slane %v3038_v46, 2  ;;  %v5458_v46 = vld [vmem:[#allocation43_spill] sm:$0xff]  ;;  %v658_v43 = vrot.slane %v5462_v42, 2 }
  0x55   : > { %v3378_v25 = vsel %vm588_vm2, %v3227_v20, %v603_v63  ;;  %v3386_v50 = vsel %vm588_vm2, %v596_v62, %v3227_v20  ;;  %v619_v28 = vor.u32 %v618_v34, %v617_v24  ;;  %v630_v24 = vrot.slane %v3066_v56, 2 }
  0x56   : > { %v623_v9 = vor.u32 %v622_v12, %v621_v40  ;;  %v633_v34 = vrot.slane %v3106_v22, 1  ;;  %v641_v40 = vrot.slane %v3138_v58, 1  ;;  %v642_v12 = vrot.slane %v3109_v23, 2 }
  0x57   : > { %575 = vrot.lane.b32.xlu1 %v3333_v1, %s2891_s19  ;;  %v605_v1 = vrot.slane %v3006_v32, 1  ;;  %v646_v22 = vrot.slane %v3121_v31, 2 }
  0x58   : > { %573 = vrot.lane.b32.xlu0 %v3339_v4, %s2891_s19  ;;  %v610_v4 = vrot.slane %v2996_v26, 2  ;;  %v643_v30 = vor.u32 %v642_v12, %v641_v40  ;;  %v657_v12 = vrot.slane %v3188_v33, 1 }
  0x59   : > { %v607_v26 = vor.u32 %v606_v14, %v605_v1  ;;  %v3403_v1 = vsel %vm588_vm2, %v615_v35, %v619_v28 }
  0x5a   : > { %v611_v27 = vor.u32 %v610_v4, %v609_v10  ;;  %v625_v10 = vrot.slane %v3063_v55, 1  ;;  %v626_v4 = vrot.slane %v3051_v51, 2  ;;  %v5457_v51 = vld [vmem:[#allocation46_spill] sm:$0xff]  ;;  %v659_v42 = vor.u32 %v658_v43, %v657_v12 }
  0x5b   : > { %579 = vrot.lane.b32.xlu1 %v3347_v17, %s2891_s19  ;;  %v3400_v20 = vsel %vm588_vm2, %v603_v63, %v607_v26  ;;  %v638_v63 = vrot.slane %v3088_v0, 2  ;;  %v649_v55 = vrot.slane %v5457_v51, 1 }
  0x5c   : > { %577 = vrot.lane.b32.xlu0 %v3354_v29, %s2891_s19  ;;  %v3391_v14 = vsel %vm588_vm2, %v607_v26, %v611_v27  ;;  %v627_v62 = vor.u32 %v626_v4, %v625_v10  ;;  %v637_v26 = vrot.slane %v3151_v6, 1  ;;  %v631_v4 = vor.u32 %v630_v24, %v629_v39  ;;  %v2703_v24 = vld [vmem:[%s2939_s17 + $0x98] ss:$0 sps:$4 sm:$0x33]  }
  0x5d   : > { %v650_v39 = vrot.slane %v5458_v46, 2  ;;  %v5334_v46 = vshrl.u32 %v3329_v47, 16 }
  0x5e   : > { %v3421_v10 = vsel %vm588_vm2, %v623_v9, %v627_v62  ;;  %v639_v56 = vor.u32 %v638_v63, %v637_v26  ;;  %v654_v26 = vrot.slane %v5461_v18, 2 }
  0x5f   : > { %583 = vrot.lane.b32.xlu1 %v3359_v8, %s2891_s19  ;;  %v634_v8 = vrot.slane %v3077_v61, 2  ;;  %5455 = vst [vmem:[#allocation68_spill] sm:$0xff] %v3421_v10  ;;  %v651_v40 = vor.u32 %v650_v39, %v649_v55  ;;  %v664_v33 = vrot.slane %v5334_v46, 1 }
  0x60   : > { %581 = vrot.lane.b32.xlu0 %v3372_v60, %s2891_s19  ;;  %v3412_v60 = vsel %vm588_vm2, %v611_v27, %v615_v35  ;;  %v3426_v27 = vsel %vm588_vm2, %v619_v28, %v623_v9  ;;  %v645_v35 = vrot.slane %v3185_v57, 1  ;;  %v3441_v28 = vsel %vm588_vm2, %v627_v62, %v631_v4 }
  0x61   : > { %v635_v61 = vor.u32 %v634_v8, %v633_v34  ;;  %5456 = vst [vmem:[#allocation69_spill] sm:$0xff] %v3426_v27  ;;  %5460 = vst [vmem:[#allocation70_spill] sm:$0xff] %v3441_v28  ;;  %v653_v34 = vrot.slane %v3207_v48, 1  ;;  %v3448_v63 = vsel %vm588_vm2, %v639_v56, %v643_v30  ;;  %v5333_v62 = vshll.u32 %v3329_v47, 16 }
  0x62   : > { %v647_v9 = vor.u32 %v646_v22, %v645_v35  ;;  %v671_v22 = vshrl.u32 %v2703_v24, 16 }
  0x63   : > { %681 = vrot.lane.b32.xlu1 %v3378_v25, %s2892_s20  ;;  %v3435_v8 = vsel %vm588_vm2, %v631_v4, %v635_v61  ;;  %v674_v4 = vshll.u32 %v2703_v24, 16  ;;  %v3459_v35 = vsel %vm588_vm2, %v635_v61, %v639_v56  ;;  %v655_v39 = vor.u32 %v654_v26, %v653_v34 }
  0x64   : > { %679 = vrot.lane.b32.xlu0 %v3386_v50, %s2892_s20  ;;  %5459 = vst [vmem:[#allocation46_spill] sm:$0xff] %v3435_v8  ;;  %v3462_v55 = vsel %vm588_vm2, %v647_v9, %v651_v40  ;;  %v667_v24 = vrot.slane %v5333_v62, 2  ;;  %v673_v18 = vrot.slane %v671_v22, 1  ;;  %v3473_v56 = vsel %vm588_vm2, %v643_v30, %v647_v9  ;;  %v5469_v30 = vld [vmem:[#allocation16_spill] sm:$0xff] }
  0x65   : > { %v676_v48 = vrot.slane %v674_v4, 2  ;;  %v3476_v61 = vsel %vm588_vm2, %v655_v39, %v659_v42  ;;  %v3483_v26 = vsel %vm588_vm2, %v651_v40, %v655_v39  ;;  %v5470_v40 = vld [vmem:[#allocation14_spill] sm:$0xff]  ;;  %v5473_v39 = vld [vmem:[#allocation33_spill] sm:$0xff]  ;;  %v5479_v62 = vld [vmem:[#allocation48_spill] sm:$0xff] }
  0x66   : > { %5463 = vst [vmem:[#allocation71_spill] sm:$0xff] %v3476_v61  ;;  %v668_v43 = vor.u32 %v667_v24, %v664_v33  ;;  %5464 = vst [vmem:[#allocation72_spill] sm:$0xff] %v3483_v26  ;;  %v5474_v24 = vld [vmem:[#allocation36_spill] sm:$0xff] }
  0x67   : > { %685 = vrot.lane.b32.xlu1 %v3391_v14, %s2892_s20  ;;  %v677_v34 = vor.u32 %v676_v48, %v673_v18  ;;  %v5467_v48 = vld [vmem:[#allocation24_spill] sm:$0xff]  ;;  %v5468_v18 = vld [vmem:[#allocation21_spill] sm:$0xff] }
  0x68   : > { %683 = vrot.lane.b32.xlu0 %v3400_v20, %s2892_s20  ;;  %v3493_v33 = vsel %vm588_vm2, %v659_v42, %v668_v43  ;;  %v5471_v42 = vld [vmem:[#allocation29_spill] sm:$0xff] }
  0x69   : > { %v3486_v12 = vsel %vm588_vm2, %v668_v43, %v677_v34  ;;  %5466 = vst [vmem:[#allocation74_spill] sm:$0xff] %v3493_v33  ;;  %vm1793_vm2 = vcmask 850944  }
  0x6a   : > { %5465 = vst [vmem:[#allocation73_spill] sm:$0xff] %v3486_v12 }
  0x6b   : > { %689 = vrot.lane.b32.xlu1 %v3403_v1, %s2892_s20 }
  0x6c   : > { %687 = vrot.lane.b32.xlu0 %v3412_v60, %s2892_s20 }
  0x6f   : > { %693 = vrot.lane.b32.xlu1 %v3421_v10, %s2892_s20 }
  0x70   : > { %691 = vrot.lane.b32.xlu0 %v3426_v27, %s2892_s20 }
  0x73   : > { %697 = vrot.lane.b32.xlu1 %v3435_v8, %s2892_s20 }
  0x74   : > { %695 = vrot.lane.b32.xlu0 %v3441_v28, %s2892_s20 }
  0x77   : > { %701 = vrot.lane.b32.xlu1 %v3448_v63, %s2892_s20 }
  0x78   : > { %699 = vrot.lane.b32.xlu0 %v3459_v35, %s2892_s20 }
  0x7b   : > { %705 = vrot.lane.b32.xlu1 %v3462_v55, %s2892_s20 }
  0x7c   : > { %703 = vrot.lane.b32.xlu0 %v3473_v56, %s2892_s20 }
  0x7f   : > { %709 = vrot.lane.b32.xlu1 %v3476_v61, %s2892_s20 }
  0x80   : > { %707 = vrot.lane.b32.xlu0 %v3483_v26, %s2892_s20  ;;  %v5484_v26 = vld [vmem:[#allocation9_spill] sm:$0xff] }
  0x83   : > { %713 = vrot.lane.b32.xlu1 %v3486_v12, %s2892_s20 }
  0x84   : > { %711 = vrot.lane.b32.xlu0 %v3493_v33, %s2892_s20 }
  0x87   : > { %717 = vrot.lane.b32.xlu1 %v5467_v48, %s2893_s21  ;;  %v5476_v48 = vld [vmem:[#allocation41_spill] sm:$0xff] }
  0x88   : > { %715 = vrot.lane.b32.xlu0 %v5468_v18, %s2893_s21  ;;  %v5477_v18 = vld [vmem:[#allocation42_spill] sm:$0xff] }
  0x8b   : > { %721 = vrot.lane.b32.xlu1 %v5469_v30, %s2893_s21 }
  0x8c   : > { %719 = vrot.lane.b32.xlu0 %v5470_v40, %s2893_s21 }
  0x8d   : > { %v469_v9 = vpop.permute.xlu1 %468 }
  0x8e   : > { %v3507_v22 = vpop.permute.xlu0 %464  ;;  %v1355_v47 = vsel %vm1349_vm3, %v2946_v2, %v469_v9 }
  0x8f   : > { %725 = vrot.lane.b32.xlu1 %v5471_v42, %s2893_s21  ;;  %5472 = vst [vmem:[#allocation24_spill] sm:$0xff] %v3507_v22  ;;  %v5478_v42 = vld [vmem:[#allocation45_spill] sm:$0xff]  ;;  %v5498_v22 = vld [vmem:[#allocation38_spill] sm:$0xff] }
  0x90   : > { %723 = vrot.lane.b32.xlu0 %v5473_v39, %s2893_s21 }
  0x91   : > { %v471_v4 = vpop.permute.xlu1 %470 }
  0x92   : > { %v3513_v43 = vpop.permute.xlu0 %466 }
  0x93   : > { %729 = vrot.lane.b32.xlu1 %v5474_v24, %s2893_s21  ;;  %5475 = vst [vmem:[#allocation21_spill] sm:$0xff] %v3513_v43  ;;  %v5480_v24 = vld [vmem:[#allocation50_spill] sm:$0xff] }
  0x94   : > { %727 = vrot.lane.b32.xlu0 %v5476_v48, %s2893_s21 }
  0x95   : > { %v475_v34 = vpop.permute.xlu1 %474 }
  0x96   : > { %v473_v30 = vpop.permute.xlu0 %472 }
  0x97   : > { %733 = vrot.lane.b32.xlu1 %v5477_v18, %s2893_s21  ;;  %v5481_v18 = vld [vmem:[#allocation52_spill] sm:$0xff] }
  0x98   : > { %731 = vrot.lane.b32.xlu0 %v5478_v42, %s2893_s21 }
  0x99   : > { %v479_v40 = vpop.permute.xlu1 %478 }
  0x9a   : > { %v477_v39 = vpop.permute.xlu0 %476 }
  0x9b   : > { %737 = vrot.lane.b32.xlu1 %v5479_v62, %s2893_s21 }
  0x9c   : > { %735 = vrot.lane.b32.xlu0 %v5480_v24, %s2893_s21 }
  0x9d   : > { %v483_v46 = vpop.permute.xlu1 %482 }
  0x9e   : > { %v481_v48 = vpop.permute.xlu0 %480 }
  0x9f   : > { %741 = vrot.lane.b32.xlu1 %v3191_v37, %s2893_s21 }
  0xa0   : > { %739 = vrot.lane.b32.xlu0 %v5481_v18, %s2893_s21 }
  0xa1   : > { %v487_v12 = vpop.permute.xlu1 %486 }
  0xa2   : > { %v485_v42 = vpop.permute.xlu0 %484 }
  0xa3   : > { %745 = vrot.lane.b32.xlu1 %v3210_v38, %s2893_s21 }
  0xa4   : > { %743 = vrot.lane.b32.xlu0 %v3221_v49, %s2893_s21 }
  0xa5   : > { %v491_v33 = vpop.permute.xlu1 %490 }
  0xa6   : > { %v489_v62 = vpop.permute.xlu0 %488 }
  0xa7   : > { %749 = vrot.lane.b32.xlu1 %v3230_v36, %s2893_s21 }
  0xa8   : > { %747 = vrot.lane.b32.xlu0 %v3239_v19, %s2893_s21  ;;  %v1357_v19 = vsel %vm1349_vm3, %v2949_v3, %v471_v4 }
  0xa9   : > { %v3535_v24 = vpop.permute.xlu1 %494 }
  0xaa   : > { %v3541_v37 = vpop.permute.xlu0 %492 }
  0xab   : > { %762 = vrot.lane.b32.xlu1 %v3289_v15, %s2894_s22 }
  0xac   : > { %760 = vrot.lane.b32.xlu0 %v3304_v52, %s2894_s22 }
  0xad   : > { %v3543_v38 = vpop.permute.xlu1 %498 }
  0xae   : > { %v3549_v49 = vpop.permute.xlu0 %496 }
  0xaf   : > { %766 = vrot.lane.b32.xlu1 %v3264_v53, %s2894_s22 }
  0xb0   : > { %764 = vrot.lane.b32.xlu0 %v3243_v11, %s2894_s22 }
  0xb1   : > { %v3551_v36 = vpop.permute.xlu1 %551 }
  0xb2   : > { %5482 = vst [vmem:[#allocation16_spill] sm:$0xff] %v3551_v36  ;;  %v3557_v15 = vpop.permute.xlu0 %549  ;;  %v1361_v36 = vsel %vm1349_vm3, %v5484_v26, %v475_v34  ;;  %v5487_v34 = vld [vmem:[#allocation10_spill] sm:$0xff] }
  0xb3   : > { %770 = vrot.lane.b32.xlu1 %v3277_v59, %s2894_s22  ;;  %5483 = vst [vmem:[#allocation14_spill] sm:$0xff] %v3557_v15  ;;  %v5486_v15 = vld [vmem:[#allocation13_spill] sm:$0xff] }
  0xb4   : > { %768 = vrot.lane.b32.xlu0 %v3255_v41, %s2894_s22  ;;  %v1365_v26 = vsel %vm1349_vm3, %v5486_v15, %v479_v40 }
  0xb5   : > { %v556_v52 = vpop.permute.xlu1 %555 }
  0xb6   : > { %v3564_v18 = vsel %vm1386_vm4, %v1357_v19, %v556_v52  ;;  %v554_v61 = vpop.permute.xlu0 %553  ;;  %v5485_v52 = vld [vmem:[#allocation6_spill] sm:$0xff] }
  0xb7   : > { %774 = vrot.lane.b32.xlu1 %v3294_v16, %s2894_s22  ;;  %v3573_v4 = vsel %vm1386_vm4, %v1355_v47, %v554_v61  ;;  %v1359_v9 = vsel %vm1349_vm3, %v5485_v52, %v473_v30  ;;  %v1363_v30 = vsel %vm1349_vm3, %v5487_v34, %v477_v39 }
  0xb8   : > { %772 = vrot.lane.b32.xlu0 %v3267_v7, %s2894_s22 }
  0xb9   : > { %v560_v43 = vpop.permute.xlu1 %559 }
  0xba   : > { %v3578_v19 = vsel %vm1386_vm4, %v1361_v36, %v560_v43  ;;  %v558_v16 = vpop.permute.xlu0 %557 }
  0xbb   : > { %778 = vrot.lane.b32.xlu1 %v3314_v44, %s2894_s22  ;;  %v3587_v47 = vsel %vm1386_vm4, %v1359_v9, %v558_v16  ;;  %v5488_v44 = vld [vmem:[#allocation20_spill] sm:$0xff] }
  0xbc   : > { %776 = vrot.lane.b32.xlu0 %v3280_v45, %s2894_s22  ;;  %v1369_v40 = vsel %vm1349_vm3, %v5488_v44, %v483_v46  ;;  %v5491_v45 = vld [vmem:[#allocation26_spill] sm:$0xff] }
  0xbd   : > { %v564_v61 = vpop.permute.xlu1 %563  ;;  %v1373_v46 = vsel %vm1349_vm3, %v5491_v45, %v487_v12 }
  0xbe   : > { %v3592_v43 = vsel %vm1386_vm4, %v1365_v26, %v564_v61  ;;  %v562_v36 = vpop.permute.xlu0 %561  ;;  %v5489_v26 = vld [vmem:[#allocation63_spill] sm:$0xff]  ;;  %v5490_v61 = vld [vmem:[#allocation17_spill] sm:$0xff] }
  0xbf   : > { %782 = vrot.lane.b32.xlu1 %v3326_v13, %s2894_s22  ;;  %v3601_v16 = vsel %vm1386_vm4, %v1363_v30, %v562_v36  ;;  %v1367_v39 = vsel %vm1349_vm3, %v5490_v61, %v481_v48  ;;  %v5492_v36 = vld [vmem:[#allocation60_spill] sm:$0xff] }
  0xc0   : > { %780 = vrot.lane.b32.xlu0 %v3299_v5, %s2894_s22  ;;  %v5494_v5 = vld [vmem:[#allocation32_spill] sm:$0xff] }
  0xc1   : > { %v568_v15 = vpop.permute.xlu1 %567  ;;  %v1377_v45 = vsel %vm1349_vm3, %v5494_v5, %v491_v33  ;;  %v1381_v5 = vsel %vm1349_vm3, %v5498_v22, %v3535_v24  ;;  %v5500_v22 = vld [vmem:[#allocation44_spill] sm:$0xff] }
  0xc2   : > { %v3606_v9 = vsel %vm1386_vm4, %v1369_v40, %v568_v15  ;;  %v566_v34 = vpop.permute.xlu0 %565  ;;  %v5493_v15 = vld [vmem:[#allocation23_spill] sm:$0xff]  ;;  %v1385_v24 = vsel %vm1349_vm3, %v5500_v22, %v3543_v38 }
  0xc3   : > { %786 = vrot.lane.b32.xlu1 %v5489_v26, %s2894_s22  ;;  %v3615_v44 = vsel %vm1386_vm4, %v1367_v39, %v566_v34  ;;  %v1371_v48 = vsel %vm1349_vm3, %v5493_v15, %v485_v42  ;;  %v5495_v34 = vld [vmem:[#allocation62_spill] sm:$0xff] }
  0xc4   : > { %784 = vrot.lane.b32.xlu0 %v5492_v36, %s2894_s22 }
  0xc5   : > { %v572_v30 = vpop.permute.xlu1 %571 }
  0xc6   : > { %v3620_v40 = vsel %vm1386_vm4, %v1373_v46, %v572_v30  ;;  %v570_v61 = vpop.permute.xlu0 %569  ;;  %v5496_v30 = vld [vmem:[#allocation58_spill] sm:$0xff] }
  0xc7   : > { %790 = vrot.lane.b32.xlu1 %v3354_v29, %s2894_s22  ;;  %v3629_v12 = vsel %vm1386_vm4, %v1371_v48, %v570_v61  ;;  %v5497_v29 = vld [vmem:[#allocation30_spill] sm:$0xff] }
  0xc8   : > { %788 = vrot.lane.b32.xlu0 %v5495_v34, %s2894_s22  ;;  %v1375_v42 = vsel %vm1349_vm3, %v5497_v29, %v489_v62  ;;  %v5499_v29 = vld [vmem:[#allocation34_spill] sm:$0xff] }
  0xc9   : > { %v576_v39 = vpop.permute.xlu1 %575  ;;  %v1379_v62 = vsel %vm1349_vm3, %v5499_v29, %v3541_v37  ;;  %v5501_v37 = vld [vmem:[#allocation40_spill] sm:$0xff] }
  0xca   : > { %v3634_v46 = vsel %vm1386_vm4, %v1377_v45, %v576_v39  ;;  %v574_v15 = vpop.permute.xlu0 %573 }
  0xcb   : > { %794 = vrot.lane.b32.xlu1 %v5496_v30, %s2894_s22  ;;  %v3644_v33 = vsel %vm1386_vm4, %v1375_v42, %v574_v15  ;;  %v1383_v15 = vsel %vm1349_vm3, %v5501_v37, %v3549_v49  ;;  %v215_v37 = vld [vmem:[%s2939_s17 + $0x8] sm:$0xc] }
  0xcc   : > { %792 = vrot.lane.b32.xlu0 %v3347_v17, %s2894_s22  ;;  %v1050_v17 = vrot.slane %v3006_v32, 2 }
  0xcd   : > { %v580_v48 = vpop.permute.xlu1 %579 }
  0xce   : > { %v3649_v61 = vsel %vm1386_vm4, %v1381_v5, %v580_v48  ;;  %v578_v45 = vpop.permute.xlu0 %577 }
  0xcf   : > { %798 = vrot.lane.b32.xlu1 %v3378_v25, %s2895_s23  ;;  %v3660_v39 = vsel %vm1386_vm4, %v1379_v62, %v578_v45 }
  0xd0   : > { %796 = vrot.lane.b32.xlu0 %v3386_v50, %s2895_s23 }
  0xd1   : > { %v584_v30 = vpop.permute.xlu1 %583 }
  0xd2   : > { %v3665_v42 = vsel %vm1386_vm4, %v1385_v24, %v584_v30  ;;  %v582_v5 = vpop.permute.xlu0 %581 }
  0xd3   : > { %802 = vrot.lane.b32.xlu1 %v3391_v14, %s2895_s23  ;;  %v3673_v38 = vsel %vm1386_vm4, %v1383_v15, %v582_v5 }
  0xd4   : > { %800 = vrot.lane.b32.xlu0 %v3400_v20, %s2895_s23 }
  0xd5   : > { %v3675_v48 = vpop.permute.xlu1 %681 }
  0xd6   : > { %5502 = vst [vmem:[#allocation29_spill] sm:$0xff] %v3675_v48  ;;  %v3681_v29 = vpop.permute.xlu0 %679  ;;  %v5508_v48 = vld [vmem:[#allocation54_spill] sm:$0xff] }
  0xd7   : > { %806 = vrot.lane.b32.xlu1 %v3403_v1, %s2895_s23  ;;  %5503 = vst [vmem:[#allocation33_spill] sm:$0xff] %v3681_v29 }
  0xd8   : > { %804 = vrot.lane.b32.xlu0 %v3412_v60, %s2895_s23 }
  0xd9   : > { %v686_v62 = vpop.permute.xlu1 %685 }
  0xda   : > { %v3687_v49 = vsel %vm1423_vm5, %v3564_v18, %v686_v62  ;;  %v684_v45 = vpop.permute.xlu0 %683 }
  0xdb   : > { %810 = vrot.lane.b32.xlu1 %v3421_v10, %s2895_s23  ;;  %v3693_v22 = vsel %vm1423_vm5, %v3573_v4, %v684_v45  ;;  %v5507_v10 = vld [vmem:[#allocation4_spill] sm:$0xff] }
  0xdc   : > { %808 = vrot.lane.b32.xlu0 %v3426_v27, %s2895_s23  ;;  %v1047_v27 = vrot.slane %v5507_v10, 3 }
  0xdd   : > { %v690_v24 = vpop.permute.xlu1 %689 }
  0xde   : > { %v3699_v30 = vsel %vm1423_vm5, %v3578_v19, %v690_v24  ;;  %v688_v18 = vpop.permute.xlu0 %687  ;;  %v5504_v19 = vld [vmem:[#allocation3_spill] sm:$0xff]  ;;  %v837_v24 = vrot.slane %v2946_v2, 2 }
  0xdf   : > { %814 = vrot.lane.b32.xlu1 %v3435_v8, %s2895_s23  ;;  %v3706_v15 = vsel %vm1423_vm5, %v3587_v47, %v688_v18  ;;  %v2509_v62 = vcombine.low %v215_v37, %v5504_v19  ;;  %v3719_v47 = vrot.slane %v2949_v3, 2 }
  0xe0   : > { %812 = vrot.lane.b32.xlu0 %v3441_v28, %s2895_s23 }
  0xe1   : > { %v694_v5 = vpop.permute.xlu1 %693  ;;  %v836_v2 = vrot.slane %v2509_v62, 2  ;;  %v3735_v3 = vsel %vm835_vm6, %v837_v24, %v3719_v47  ;;  %v5505_v62 = vld [vmem:[#allocation2_spill] sm:$0xff] }
  0xe2   : > { %v3712_v4 = vsel %vm1423_vm5, %v3592_v43, %v694_v5  ;;  %v692_v45 = vpop.permute.xlu0 %691 }
  0xe3   : > { %818 = vrot.lane.b32.xlu1 %v3448_v63, %s2895_s23  ;;  %v3723_v18 = vsel %vm1423_vm5, %v3601_v16, %v692_v45  ;;  %v216_v16 = vld [vmem:[%s2939_s17 + $0x10] sm:$0xc] }
  0xe4   : > { %816 = vrot.lane.b32.xlu0 %v3459_v35, %s2895_s23  ;;  %v2510_v45 = vcombine.low %v216_v16, %v5505_v62 }
  0xe5   : > { %v698_v8 = vpop.permute.xlu1 %697 }
  0xe6   : > { %v3729_v43 = vsel %vm1423_vm5, %v3606_v9, %v698_v8  ;;  %v696_v37 = vpop.permute.xlu0 %695  ;;  %v3751_v9 = vsel %vm835_vm6, %v836_v2, %v837_v24  ;;  %v1039_v2 = vshrl.u32 %v2510_v45, 16  ;;  %v1042_v16 = vshll.u32 %v2510_v45, 16 }
  0xe7   : > { %822 = vrot.lane.b32.xlu1 %v3462_v55, %s2895_s23  ;;  %v3740_v5 = vsel %vm1423_vm5, %v3615_v44, %v696_v37  ;;  %v2708_v44 = vld [vmem:[%s5262_s1 + $0x38] sm:$0xff]  }
  0xe8   : > { %820 = vrot.lane.b32.xlu0 %v3473_v56, %s2895_s23  ;;  %2588 = vmatprep.subr.bf16.mxu0 %v2708_v44  ;;  %v1041_v32 = vrot.slane %v1039_v2, 2 }
  0xe9   : > { %v702_v19 = vpop.permute.xlu1 %701  ;;  %2589 = vmatpush3.bf16.msra.mxu0 %v2708_v44  ;;  %2640 = vmatprep.subr.bf16.mxu1 %v2708_v44 }
  0xea   : > { %v3746_v8 = vsel %vm1423_vm5, %v3620_v40, %v702_v19  ;;  %v700_v28 = vpop.permute.xlu0 %699  ;;  %2648 = vmatpush3.bf16.msra.mxu1 %v2708_v44 }
  0xeb   : > { %875 = vrot.lane.b32.xlu1 %v3735_v3, %s2896_s24  ;;  %v3759_v37 = vsel %vm1423_vm5, %v3629_v12, %v700_v28  ;;  %v5506_v12 = vld [vmem:[#allocation8_spill] sm:$0xff] }
  0xec   : > { %873 = vrot.lane.b32.xlu0 %v3751_v9, %s2896_s24  ;;  %v1046_v62 = vrot.slane %v5506_v12, 2  ;;  %v1044_v12 = vrot.slane %v1042_v16, 3 }
  0xed   : > { %v706_v40 = vpop.permute.xlu1 %705 }
  0xee   : > { %v3765_v19 = vsel %vm1423_vm5, %v3634_v46, %v706_v40  ;;  %v704_v28 = vpop.permute.xlu0 %703  ;;  %v1051_v46 = vrot.slane %v2986_v21, 3  ;;  %v2709_v40 = vld [vmem:[%s5262_s1 + $0x30] sm:$0xff]   ;;  %v992_v21 = vrot.slane %v2510_v45, 2 }
  0xef   : > { %911 = vrot.lane.b32.xlu1 %v3243_v11, %s2897_s27  ;;  %v3779_v11 = vsel %vm1423_vm5, %v3644_v33, %v704_v28  ;;  %2590 = vmatprep.subr.bf16.mxu0 %v2709_v40  ;;  %v5509_v28 = vrot.slane %v5485_v52, 2 }
  0xf0   : > { %909 = vrot.lane.b32.xlu0 %v5508_v48, %s2897_s27  ;;  %2591 = vmatpush3.bf16.msra.mxu0 %v2709_v40  ;;  %v1048_v48 = vor.u32 %v1047_v27, %v1046_v62  ;;  %v3795_v29 = vor.u32 %v1051_v46, %v1050_v17  ;;  %v993_v17 = vsel %vm835_vm6, %v992_v21, %v3719_v47 }
  0xf1   : > { %v710_v24 = vpop.permute.xlu1 %709  ;;  %v3793_v44 = vsel %vm835_vm6, %v3719_v47, %v5509_v28  ;;  %2641 = vmatprep.subr.bf16.mxu1 %v2709_v40 }
  0xf2   : > { %v3785_v10 = vsel %vm1423_vm5, %v3649_v61, %v710_v24  ;;  %v708_v33 = vpop.permute.xlu0 %707  ;;  %v2710_v61 = vld [vmem:[%s5262_s1 + $0x28] sm:$0xff]   ;;  %2649 = vmatpush3.bf16.msra.mxu1 %v2709_v40  ;;  %v3816_v16 = vsel %vm1037_vm7, %v1048_v48, %v3795_v29 }
  0xf3   : > { %947 = vrot.lane.b32.xlu1 %v3378_v25, %s2898_s30  ;;  %v3802_v45 = vsel %vm1423_vm5, %v3660_v39, %v708_v33  ;;  %2592 = vmatprep.subr.bf16.mxu0 %v2710_v61  ;;  %v1045_v39 = vor.u32 %v1044_v12, %v1041_v32  ;;  %v2713_v33 = vld [vmem:[%s5262_s1 + $0x10] sm:$0xff]  }
  0xf4   : > { %945 = vrot.lane.b32.xlu0 %v3386_v50, %s2898_s30  ;;  %2593 = vmatpush3.bf16.msra.mxu0 %v2710_v61 }
  0xf5   : > { %v714_v24 = vpop.permute.xlu1 %713  ;;  %2642 = vmatprep.subr.bf16.mxu1 %v2710_v61  ;;  %v1049_v47 = vsel %vm1037_vm7, %v1045_v39, %v1048_v48  ;;  %v3879_v39 = vld [vmem:[%s2939_s17 + $0x60] sm:$0xff]  }
  0xf6   : > { %v3808_v27 = vsel %vm1423_vm5, %v3665_v42, %v714_v24  ;;  %v712_v2 = vpop.permute.xlu0 %711  ;;  %v2711_v42 = vld [vmem:[%s5262_s1 + $0x20] sm:$0xff]   ;;  %2650 = vmatpush3.bf16.msra.mxu1 %v2710_v61  ;;  %v2714_v61 = vld [vmem:[%s5262_s1 + $0x8] sm:$0xff]   ;;  %v3875_v24 = vld [vmem:[%s2939_s17 + $0x58] sm:$0xff]   ;;  %5511 = vst [vmem:[#allocation41_spill] sm:$0xff] %v3879_v39 }
  0xf7   : > { %1000 = vrot.lane.b32.xlu1 %v3793_v44, %s2899_s6  ;;  %v3823_v62 = vsel %vm1423_vm5, %v3673_v38, %v712_v2  ;;  %2594 = vmatprep.subr.bf16.mxu0 %v2711_v42  ;;  %v2712_v38 = vld [vmem:[%s5262_s1 + $0x18] sm:$0xff]   ;;  %5510 = vst [vmem:[#allocation36_spill] sm:$0xff] %v3875_v24  ;;  %v2865_v2 = vld [vmem:[%s2939_s17 + $0x14] sm:$0xf] }
  0xf8   : > { %998 = vrot.lane.b32.xlu0 %v993_v17, %s2899_s6  ;;  %2595 = vmatpush3.bf16.msra.mxu0 %v2711_v42  ;;  %v5359_v17 = vrot.slane %v3875_v24, 2  ;;  %v5581_v24 = vld [vmem:[#allocation25_spill] sm:$0xff] }
  0xf9   : > { %v3825_v46 = vpop.permute.xlu1 %717  ;;  %2643 = vmatprep.subr.bf16.mxu1 %v2711_v42  ;;  %2596 = vmatprep.subr.bf16.mxu0 %v2712_v38 }
  0xfa   : > { %v3831_v40 = vpop.permute.xlu0 %715  ;;  %2651 = vmatpush3.bf16.msra.mxu1 %v2711_v42 }
  0xfb   : > { %1130 = vrot.lane.b32.xlu1 %v3816_v16, %s2900_s9  ;;  %2644 = vmatprep.subr.bf16.mxu1 %v2712_v38 }
  0xfc   : > { %1128 = vrot.lane.b32.xlu0 %v1049_v47, %s2900_s9  ;;  %2597 = vmatpush3.bf16.msra.mxu0 %v2712_v38 }
  0xfd   : > { %v722_v21 = vpop.permute.xlu1 %721  ;;  %2598 = vmatprep.subr.bf16.mxu0 %v2713_v33 }
  0xfe   : > { %v3839_v32 = vsel %vm1460_vm8, %v3687_v49, %v722_v21  ;;  %v720_v12 = vpop.permute.xlu0 %719  ;;  %2652 = vmatpush3.bf16.msra.mxu1 %v2712_v38  ;;  %v3884_v38 = vld [vmem:[%s2939_s17 + $0x28] sm:$0xff]   ;;  %v2715_v21 = vld [vmem:[%s5262_s1] sm:$0xff]  }
  0xff   : > { %1166 = vrot.lane.b32.xlu1 %v3378_v25, %s2901_s14  ;;  %v3848_v28 = vsel %vm1460_vm8, %v3693_v22, %v720_v12  ;;  %v221_v22 = vld [vmem:[%s2939_s17 + $0x10] sm:$0x8]  ;;  %2645 = vmatprep.subr.bf16.mxu1 %v2713_v33 }
 0x100   : > { %1164 = vrot.lane.b32.xlu0 %v3386_v50, %s2901_s14  ;;  %2599 = vmatpush3.bf16.msra.mxu0 %v2713_v33  ;;  %v2514_v42 = vcombine.low %v221_v22, %v2865_v2  ;;  %v2867_v22 = vld [vmem:[%s2939_s17 + $0x18] sm:$0xff]  }
 0x101   : > { %v726_v48 = vpop.permute.xlu1 %725  ;;  %2600 = vmatprep.subr.bf16.mxu0 %v2714_v61 }
 0x102   : > { %v3854_v49 = vsel %vm1460_vm8, %v3699_v30, %v726_v48  ;;  %v724_v25 = vpop.permute.xlu0 %723  ;;  %2653 = vmatpush3.bf16.msra.mxu1 %v2713_v33 }
 0x103   : > { %1202 = vrot.lane.b32.xlu1 %v3735_v3, %s2902_s18  ;;  %v3864_v50 = vsel %vm1460_vm8, %v3706_v15, %v724_v25  ;;  %v857_v15 = vrot.slane %v3879_v39, 2  ;;  %2646 = vmatprep.subr.bf16.mxu1 %v2714_v61 }
 0x104   : > { %1200 = vrot.lane.b32.xlu0 %v3751_v9, %s2902_s18  ;;  %2601 = vmatpush3.bf16.msra.mxu0 %v2714_v61 }
 0x105   : > { %v730_v30 = vpop.permute.xlu1 %729  ;;  %2602 = vmatprep.subr.bf16.mxu0 %v2715_v21  ;;  %v3904_v25 = vsel %vm835_vm6, %v5359_v17, %v857_v15 }
 0x106   : > { %v3870_v3 = vsel %vm1460_vm8, %v3712_v4, %v730_v30  ;;  %v728_v9 = vpop.permute.xlu0 %727  ;;  %v5361_v4 = vrot.slane %v3884_v38, 2  ;;  %2654 = vmatpush3.bf16.msra.mxu1 %v2714_v61  ;;  %5512 = vst [vmem:[#allocation42_spill] sm:$0xff] %v3904_v25  ;;  %v1277_v61 = vrot.slane %v2867_v22, 3  ;;  %v3932_v22 = vld [vmem:[%s2939_s17 + $0x20] sm:$0xff]  }
 0x107   : > { %877 = vrot.lane.b32.xlu1 %v3793_v44, %s2896_s24  ;;  %v3892_v12 = vsel %vm1460_vm8, %v3723_v18, %v728_v9  ;;  %v1276_v18 = vrot.slane %v2514_v42, 3  ;;  %2647 = vmatprep.subr.bf16.mxu1 %v2715_v21  ;;  %v3928_v9 = vld [vmem:[%s2939_s17 + $0x68] sm:$0xff]  }
 0x108   : > { %1236 = vrot.lane.b32.xlu0 %v1049_v47, %s2903_s25  ;;  %2603 = vmatpush3.bf16.msra.mxu0 %v2715_v21 }
 0x109   : > { %v734_v33 = vpop.permute.xlu1 %733 }
 0x10a   : > { %v3897_v48 = vsel %vm1460_vm8, %v3729_v43, %v734_v33  ;;  %v732_v47 = vpop.permute.xlu0 %731  ;;  %v5513_v43 = vrot.slane %v5485_v52, 2  ;;  %2655 = vmatpush3.bf16.msra.mxu1 %v2715_v21  ;;  %v1278_v52 = vsel %vm1275_vm9, %v1276_v18, %v1277_v61  ;;  %v859_v33 = vrot.slane %v3928_v9, 2 }
 0x10b   : > { %1238 = vrot.lane.b32.xlu1 %v3816_v16, %s2903_s25  ;;  %v3916_v16 = vsel %vm1460_vm8, %v3740_v5, %v732_v47  ;;  %v5360_v21 = vrot.slane %v3932_v22, 3 }
 0x10c   : > { %v3912_v30 = vsel %vm835_vm6, %v5513_v43, %v5361_v4  ;;  %893 = vrot.lane.b32.xlu0 %v3904_v25, %s2896_s24  ;;  %v3947_v43 = vsel %vm835_vm6, %v857_v15, %v859_v33 }
 0x10d   : > { %v738_v2 = vpop.permute.xlu1 %737 }
 0x10e   : > { %v3922_v42 = vsel %vm1460_vm8, %v3746_v8, %v738_v2  ;;  %v736_v5 = vpop.permute.xlu0 %735 }
 0x10f   : > { %879 = vrot.lane.b32.xlu1 %v3912_v30, %s2896_s24  ;;  %v3937_v47 = vsel %vm1460_vm8, %v3759_v37, %v736_v5  ;;  %v1280_v37 = vsel %vm1275_vm9, %v1277_v61, %v5360_v21 }
 0x110   : > { %1313 = vrot.lane.b32.xlu0 %v1278_v52, %s2904_s26 }
 0x111   : > { %v742_v8 = vpop.permute.xlu1 %741 }
 0x112   : > { %v3942_v18 = vsel %vm1460_vm8, %v3765_v19, %v742_v8  ;;  %v740_v2 = vpop.permute.xlu0 %739 }
 0x113   : > { %913 = vrot.lane.b32.xlu1 %v3264_v53, %s2897_s27  ;;  %v3954_v5 = vsel %vm1460_vm8, %v3779_v11, %v740_v2 }
 0x114   : > { %895 = vrot.lane.b32.xlu0 %v3947_v43, %s2896_s24 }
 0x115   : > { %v746_v52 = vpop.permute.xlu1 %745 }
 0x116   : > { %v3960_v19 = vsel %vm1460_vm8, %v3785_v10, %v746_v52  ;;  %v744_v53 = vpop.permute.xlu0 %743  ;;  %v1083_v52 = vrot.slane %v3088_v0, 3 }
 0x117   : > { %1315 = vrot.lane.b32.xlu1 %v1280_v37, %s2904_s26  ;;  %v3965_v15 = vsel %vm1460_vm8, %v3802_v45, %v744_v53  ;;  %v1082_v37 = vrot.slane %v3151_v6, 2  ;;  %v1086_v53 = vrot.slane %v3138_v58, 2  ;;  %v5515_v6 = vld [vmem:[#allocation12_spill] sm:$0xff] }
 0x118   : > { %929 = vrot.lane.b32.xlu0 %v3326_v13, %s2897_s27 }
 0x119   : > { %v750_v61 = vpop.permute.xlu1 %749  ;;  %v4026_v4 = vor.u32 %v1083_v52, %v1082_v37  ;;  %v5521_v37 = vld [vmem:[#allocation15_spill] sm:$0xff] }
 0x11a   : > { %v3971_v11 = vsel %vm1460_vm8, %v3808_v27, %v750_v61  ;;  %v748_v10 = vpop.permute.xlu0 %747  ;;  %v3996_v27 = vld [vmem:[%s2939_s17 + $0x70] sm:$0xff]   ;;  %v1087_v61 = vrot.slane %v3109_v23, 3  ;;  %v1059_v52 = vrot.slane %v5521_v37, 3 }
 0x11b   : > { %931 = vrot.lane.b32.xlu1 %v5492_v36, %s2897_s27  ;;  %v3977_v8 = vsel %vm1460_vm8, %v3823_v62, %v748_v10  ;;  %v4021_v23 = vld [vmem:[%s2939_s17 + $0x30] sm:$0xff]   ;;  %5517 = vst [vmem:[#allocation48_spill] sm:$0xff] %v4026_v4 }
 0x11c   : > { %915 = vrot.lane.b32.xlu0 %v3255_v41, %s2897_s27  ;;  %v5362_v41 = vrot.slane %v3996_v27, 2  ;;  %v845_v58 = vrot.slane %v4021_v23, 2 }
 0x11d   : > { %v3979_v2 = vpop.permute.xlu1 %762 }
 0x11e   : > { %v3985_v13 = vpop.permute.xlu0 %760  ;;  %v4018_v0 = vsel %vm835_vm6, %v859_v33, %v5362_v41 }
 0x11f   : > { %965 = vrot.lane.b32.xlu1 %v3459_v35, %s2898_s30 }
 0x120   : > { %949 = vrot.lane.b32.xlu0 %v3400_v20, %s2898_s30 }
 0x121   : > { %v767_v45 = vpop.permute.xlu1 %766 }
 0x122   : > { %v3991_v36 = vsel %vm1497_vm10, %v3839_v32, %v767_v45  ;;  %v765_v62 = vpop.permute.xlu0 %764 }
 0x123   : > { %967 = vrot.lane.b32.xlu1 %v3448_v63, %s2898_s30  ;;  %v4005_v32 = vsel %vm1497_vm10, %v3848_v28, %v765_v62  ;;  %v1054_v28 = vrot.slane %v5515_v6, 2  ;;  %v5516_v62 = vld [vmem:[#allocation11_spill] sm:$0xff] }
 0x124   : > { %951 = vrot.lane.b32.xlu0 %v3391_v14, %s2898_s30  ;;  %v1055_v17 = vrot.slane %v5516_v62, 3 }
 0x125   : > { %v771_v10 = vpop.permute.xlu1 %770 }
 0x126   : > { %v4011_v45 = vsel %vm1497_vm10, %v3854_v49, %v771_v10  ;;  %v769_v21 = vpop.permute.xlu0 %768  ;;  %v1088_v49 = vor.u32 %v1087_v61, %v1086_v53  ;;  %v1090_v10 = vrot.slane %v3185_v57, 2  ;;  %v5520_v57 = vrot.slane %v3884_v38, 2 }
 0x127   : > { %5514 = vst [vmem:[#allocation45_spill] sm:$0xff] %v4011_v45  ;;  %1018 = vrot.lane.b32.xlu1 %v3947_v43, %s2899_s6  ;;  %v1091_v45 = vrot.slane %v3121_v31, 3  ;;  %v4032_v33 = vsel %vm1497_vm10, %v3864_v50, %v769_v21  ;;  %v1056_v50 = vor.u32 %v1055_v17, %v1054_v28  ;;  %v1058_v21 = vrot.slane %v3060_v54, 2 }
 0x128   : > { %5518 = vst [vmem:[#allocation50_spill] sm:$0xff] %v4032_v33  ;;  %1002 = vrot.lane.b32.xlu0 %v3912_v30, %s2899_s6  ;;  %v4047_v31 = vsel %vm835_vm6, %v5520_v57, %v845_v58 }
 0x129   : > { %v775_v41 = vpop.permute.xlu1 %774  ;;  %v1057_v54 = vsel %vm1037_vm7, %v3795_v29, %v1056_v50  ;;  %v4068_v28 = vor.u32 %v1059_v52, %v1058_v21 }
 0x12a   : > { %v4038_v6 = vsel %vm1497_vm10, %v3870_v3, %v775_v41  ;;  %v773_v53 = vpop.permute.xlu0 %772  ;;  %v1089_v3 = vsel %vm1037_vm7, %v4026_v4, %v1088_v49  ;;  %v4053_v41 = vor.u32 %v1091_v45, %v1090_v10 }
 0x12b   : > { %5519 = vst [vmem:[#allocation52_spill] sm:$0xff] %v4038_v6  ;;  %1020 = vrot.lane.b32.xlu1 %v4018_v0, %s2899_s6  ;;  %v4057_v61 = vsel %vm1497_vm10, %v3892_v12, %v773_v53  ;;  %v1061_v29 = vsel %vm1037_vm7, %v1056_v50, %v4068_v28 }
 0x12c   : > { %5522 = vst [vmem:[#allocation9_spill] sm:$0xff] %v4057_v61  ;;  %1004 = vrot.lane.b32.xlu0 %v4047_v31, %s2899_s6  ;;  %v1093_v12 = vsel %vm1037_vm7, %v1088_v49, %v4053_v41 }
 0x12d   : > { %v779_v62 = vpop.permute.xlu1 %778 }
 0x12e   : > { %v4063_v17 = vsel %vm1497_vm10, %v3897_v48, %v779_v62  ;;  %v777_v45 = vpop.permute.xlu0 %776  ;;  %v1297_v62 = vrot.slane %v3928_v9, 3 }
 0x12f   : > { %5523 = vst [vmem:[#allocation6_spill] sm:$0xff] %v4063_v17  ;;  %1148 = vrot.lane.b32.xlu1 %v1089_v3, %s2900_s9  ;;  %v4074_v10 = vsel %vm1497_vm10, %v3916_v16, %v777_v45 }
 0x130   : > { %5524 = vst [vmem:[#allocation13_spill] sm:$0xff] %v4074_v10  ;;  %1132 = vrot.lane.b32.xlu0 %v1057_v54, %s2900_s9 }
 0x131   : > { %v783_v57 = vpop.permute.xlu1 %782 }
 0x132   : > { %v4079_v48 = vsel %vm1497_vm10, %v3922_v42, %v783_v57  ;;  %v781_v21 = vpop.permute.xlu0 %780  ;;  %v4159_v57 = vld [vmem:[%s2939_s17 + $0x78] sm:$0xff]  }
 0x133   : > { %1150 = vrot.lane.b32.xlu1 %v1093_v12, %s2900_s9  ;;  %v4086_v49 = vsel %vm1497_vm10, %v3937_v47, %v781_v21  ;;  %v863_v21 = vrot.slane %v4159_v57, 2 }
 0x134   : > { %1134 = vrot.lane.b32.xlu0 %v1061_v29, %s2900_s9 }
 0x135   : > { %v787_v37 = vpop.permute.xlu1 %786 }
 0x136   : > { %v4091_v16 = vsel %vm1497_vm10, %v3942_v18, %v787_v37  ;;  %v785_v42 = vpop.permute.xlu0 %784  ;;  %v4170_v37 = vld [vmem:[%s2939_s17 + $0x38] sm:$0xff]  }
 0x137   : > { %5525 = vst [vmem:[#allocation10_spill] sm:$0xff] %v4091_v16  ;;  %1184 = vrot.lane.b32.xlu1 %v3459_v35, %s2901_s14  ;;  %v4097_v52 = vsel %vm1497_vm10, %v3954_v5, %v785_v42  ;;  %v847_v42 = vrot.slane %v4170_v37, 2 }
 0x138   : > { %5526 = vst [vmem:[#allocation20_spill] sm:$0xff] %v4097_v52  ;;  %1168 = vrot.lane.b32.xlu0 %v3400_v20, %s2901_s14  ;;  %v5553_v52 = vld [vmem:[#allocation24_spill] sm:$0xff] }
 0x139   : > { %v791_v50 = vpop.permute.xlu1 %790 }
 0x13a   : > { %v4103_v47 = vsel %vm1497_vm10, %v3960_v19, %v791_v50  ;;  %v789_v18 = vpop.permute.xlu0 %788 }
 0x13b   : > { %5527 = vst [vmem:[#allocation63_spill] sm:$0xff] %v4103_v47  ;;  %1186 = vrot.lane.b32.xlu1 %v3448_v63, %s2901_s14  ;;  %v4109_v35 = vsel %vm1497_vm10, %v3965_v15, %v789_v18  ;;  %v5538_v18 = vrot.slane %v3996_v27, 2 }
 0x13c   : > { %5528 = vst [vmem:[#allocation17_spill] sm:$0xff] %v4109_v35  ;;  %1170 = vrot.lane.b32.xlu0 %v3391_v14, %s2901_s14 }
 0x13d   : > { %v795_v53 = vpop.permute.xlu1 %794 }
 0x13e   : > { %v4115_v5 = vsel %vm1497_vm10, %v3971_v11, %v795_v53  ;;  %v793_v20 = vpop.permute.xlu0 %792  ;;  %v4178_v53 = vsel %vm835_vm6, %v5538_v18, %v863_v21 }
 0x13f   : > { %5529 = vst [vmem:[#allocation26_spill] sm:$0xff] %v4115_v5  ;;  %1220 = vrot.lane.b32.xlu1 %v3904_v25, %s2902_s18  ;;  %v4121_v63 = vsel %vm1497_vm10, %v3977_v8, %v793_v20  ;;  %v4251_v5 = vld [vmem:[%s2939_s17 + $0x40] sm:$0xff]   ;;  %v5549_v25 = vld [vmem:[#allocation47_spill] sm:$0xff] }
 0x140   : > { %5530 = vst [vmem:[#allocation60_spill] sm:$0xff] %v4121_v63  ;;  %1204 = vrot.lane.b32.xlu0 %v3793_v44, %s2902_s18  ;;  %5543 = vst [vmem:[#allocation3_spill] sm:$0xff] %v4251_v5  ;;  %v5369_v63 = vrot.slane %v4251_v5, 2  ;;  %v1099_v61 = vrot.slane %v5549_v25, 3 }
 0x141   : > { %v4123_v19 = vpop.permute.xlu1 %798 }
 0x142   : > { %v4129_v14 = vpop.permute.xlu0 %796 }
 0x143   : > { %1222 = vrot.lane.b32.xlu1 %v3947_v43, %s2902_s18  ;;  %v5363_v43 = vrot.slane %v3879_v39, 3  ;;  %v5544_v39 = vld [vmem:[#allocation19_spill] sm:$0xff] }
 0x144   : > { %1206 = vrot.lane.b32.xlu0 %v3912_v30, %s2902_s18  ;;  %v1281_v30 = vrot.slane %v3884_v38, 3  ;;  %v1062_v6 = vrot.slane %v5544_v39, 2  ;;  %v4272_v39 = vsel %vm835_vm6, %v847_v42, %v5369_v63  ;;  %v5560_v63 = vld [vmem:[#allocation29_spill] sm:$0xff] }
 0x145   : > { %v4131_v15 = vpop.permute.xlu1 %802  ;;  %5550 = vst [vmem:[#allocation8_spill] sm:$0xff] %v4272_v39 }
 0x146   : > { %v4136_v11 = vpop.permute.xlu0 %800 }
 0x147   : > { %1256 = vrot.lane.b32.xlu1 %v1089_v3, %s2903_s25 }
 0x148   : > { %1240 = vrot.lane.b32.xlu0 %v1057_v54, %s2903_s25  ;;  %v1298_v54 = vsel %vm1275_vm9, %v5363_v43, %v1297_v62 }
 0x149   : > { %v4138_v8 = vpop.permute.xlu1 %806 }
 0x14a   : > { %5531 = vst [vmem:[#allocation23_spill] sm:$0xff] %v4138_v8  ;;  %v4143_v44 = vpop.permute.xlu0 %804 }
 0x14b   : > { %897 = vrot.lane.b32.xlu1 %v4018_v0, %s2896_s24  ;;  %5532 = vst [vmem:[#allocation32_spill] sm:$0xff] %v4143_v44 }
 0x14c   : > { %881 = vrot.lane.b32.xlu0 %v4047_v31, %s2896_s24 }
 0x14d   : > { %v4147_v45 = vpop.permute.xlu1 %810 }
 0x14e   : > { %5533 = vst [vmem:[#allocation62_spill] sm:$0xff] %v4147_v45  ;;  %v4153_v3 = vpop.permute.xlu0 %808  ;;  %v5545_v45 = vld [vmem:[#allocation18_spill] sm:$0xff] }
 0x14f   : > { %1258 = vrot.lane.b32.xlu1 %v1093_v12, %s2903_s25  ;;  %5534 = vst [vmem:[#allocation58_spill] sm:$0xff] %v4153_v3  ;;  %v5536_v12 = vrot.slane %v3932_v22, 3  ;;  %v4188_v22 = vsel %vm835_vm6, %v845_v58, %v847_v42 }
 0x150   : > { %1242 = vrot.lane.b32.xlu0 %v1061_v29, %s2903_s25 }
 0x151   : > { %v4162_v9 = vpop.permute.xlu1 %814  ;;  %v1282_v38 = vsel %vm1275_vm9, %v5536_v12, %v1281_v30 }
 0x152   : > { %5535 = vst [vmem:[#allocation30_spill] sm:$0xff] %v4162_v9  ;;  %v4173_v50 = vpop.permute.xlu0 %812 }
 0x153   : > { %1333 = vrot.lane.b32.xlu1 %v1298_v54, %s2904_s26  ;;  %5537 = vst [vmem:[#allocation38_spill] sm:$0xff] %v4173_v50  ;;  %v5365_v54 = vrot.slane %v3996_v27, 3 }
 0x154   : > { %1317 = vrot.lane.b32.xlu0 %v1282_v38, %s2904_s26  ;;  %v5364_v38 = vrot.slane %v4021_v23, 3 }
 0x155   : > { %v4180_v20 = vpop.permute.xlu1 %818  ;;  %v1300_v58 = vsel %vm1275_vm9, %v1297_v62, %v5365_v54  ;;  %v5542_v54 = vld [vmem:[#allocation43_spill] sm:$0xff] }
 0x156   : > { %v4190_v29 = vpop.permute.xlu0 %816  ;;  %v1095_v10 = vrot.slane %v5542_v54, 3 }
 0x157   : > { %899 = vrot.lane.b32.xlu1 %v4178_v53, %s2896_s24 }
 0x158   : > { %883 = vrot.lane.b32.xlu0 %v4188_v22, %s2896_s24 }
 0x159   : > { %v4193_v12 = vpop.permute.xlu1 %822 }
 0x15a   : > { %5539 = vst [vmem:[#allocation34_spill] sm:$0xff] %v4193_v12  ;;  %v4200_v18 = vpop.permute.xlu0 %820  ;;  %v5548_v12 = vld [vmem:[#allocation53_spill] sm:$0xff] }
 0x15b   : > { %933 = vrot.lane.b32.xlu1 %v5489_v26, %s2897_s27  ;;  %5540 = vst [vmem:[#allocation44_spill] sm:$0xff] %v4200_v18  ;;  %v1284_v26 = vsel %vm1275_vm9, %v1281_v30, %v5364_v38  ;;  %v1063_v38 = vrot.slane %v5545_v45, 3  ;;  %v1098_v4 = vrot.slane %v5548_v12, 2  ;;  %v5554_v18 = vld [vmem:[#allocation5_spill] sm:$0xff] }
 0x15c   : > { %917 = vrot.lane.b32.xlu0 %v3277_v59, %s2897_s27  ;;  %v1351_v42 = vsel %vm1349_vm3, %v5554_v18, %v5553_v52 }
 0x15d   : > { %v4205_v43 = vpop.permute.xlu1 %875  ;;  %v1064_v45 = vor.u32 %v1063_v38, %v1062_v6  ;;  %v4280_v33 = vor.u32 %v1099_v61, %v1098_v4 }
 0x15e   : > { %v4213_v17 = vpop.permute.xlu0 %873 }
 0x15f   : > { %1335 = vrot.lane.b32.xlu1 %v1300_v58, %s2904_s26  ;;  %v4291_v6 = vsel %vm1037_vm7, %v4068_v28, %v1064_v45 }
 0x160   : > { %1319 = vrot.lane.b32.xlu0 %v1284_v26, %s2904_s26  ;;  %v4239_v26 = vld [vmem:[%s2939_s17 + $0x80] sm:$0xff]  }
 0x161   : > { %v4215_v9 = vpop.permute.xlu1 %911  ;;  %5541 = vst [vmem:[#allocation40_spill] sm:$0xff] %v4239_v26 }
 0x162   : > { %v4220_v62 = vpop.permute.xlu0 %909 }
 0x163   : > { %935 = vrot.lane.b32.xlu1 %v5495_v34, %s2897_s27 }
 0x164   : > { %919 = vrot.lane.b32.xlu0 %v3267_v7, %s2897_s27  ;;  %v1094_v7 = vrot.slane %v5457_v51, 2  ;;  %v5546_v51 = vrot.slane %v4239_v26, 2 }
 0x165   : > { %v4222_v59 = vpop.permute.xlu1 %947 }
 0x166   : > { %v4228_v30 = vpop.permute.xlu0 %945  ;;  %v4259_v54 = vsel %vm835_vm6, %v863_v21, %v5546_v51  ;;  %v1096_v16 = vor.u32 %v1095_v10, %v1094_v7  ;;  %v5551_v21 = vld [vmem:[#allocation35_spill] sm:$0xff]  ;;  %v5552_v7 = vld [vmem:[#allocation22_spill] sm:$0xff] }
 0x167   : > { %969 = vrot.lane.b32.xlu1 %v3473_v56, %s2898_s30  ;;  %5547 = vst [vmem:[#allocation2_spill] sm:$0xff] %v4259_v54  ;;  %v1066_v10 = vrot.slane %v5551_v21, 2  ;;  %v1067_v12 = vrot.slane %v5552_v7, 3  ;;  %v5556_v7 = vld [vmem:[#allocation33_spill] sm:$0xff] }
 0x168   : > { %953 = vrot.lane.b32.xlu0 %v3412_v60, %s2898_s30  ;;  %v4278_v25 = vsel %vm1037_vm7, %v4053_v41, %v1096_v16  ;;  %v5555_v41 = vld [vmem:[#allocation14_spill] sm:$0xff]  ;;  %v4299_v21 = vsel %vm1037_vm7, %v1096_v16, %v4280_v33 }
 0x169   : > { %v4230_v58 = vpop.permute.xlu1 %1000  ;;  %v4293_v38 = vor.u32 %v1067_v12, %v1066_v10  ;;  %v1388_v4 = vsel %vm1386_vm4, %v1351_v42, %v5555_v41  ;;  %v5557_v12 = vld [vmem:[#allocation21_spill] sm:$0xff]  ;;  %v5558_v42 = vld [vmem:[#allocation7_spill] sm:$0xff] }
 0x16a   : > { %v4236_v34 = vpop.permute.xlu0 %998  ;;  %v1425_v52 = vsel %vm1423_vm5, %v1388_v4, %v5556_v7  ;;  %v1353_v41 = vsel %vm1349_vm3, %v5558_v42, %v5557_v12  ;;  %v5559_v7 = vld [vmem:[#allocation16_spill] sm:$0xff]  ;;  %vm1830_vm3 = vcmask 916480  }
 0x16b   : > { %971 = vrot.lane.b32.xlu1 %v3462_v55, %s2898_s30  ;;  %v1462_v28 = vsel %vm1460_vm8, %v1425_v52, %v3831_v40  ;;  %v4315_v16 = vsel %vm1037_vm7, %v1064_v45, %v4293_v38 }
 0x16c   : > { %955 = vrot.lane.b32.xlu0 %v3403_v1, %s2898_s30  ;;  %v1499_v10 = vsel %vm1497_vm10, %v1462_v28, %v3985_v13  ;;  %v1390_v13 = vsel %vm1386_vm4, %v1353_v41, %v5559_v7  ;;  %vm1867_vm4 = vcmask 982016   ;;  %v1301_v7 = vrot.slane %v4159_v57, 3 }
 0x16d   : > { %v4244_v50 = vpop.permute.xlu1 %1130  ;;  %v1536_v40 = vsel %vm1534_vm11, %v1499_v10, %v4129_v14  ;;  %v1427_v45 = vsel %vm1423_vm5, %v1390_v13, %v5560_v63  ;;  %vm2386_vm5 = vcmask 31744  }
 0x16e   : > { %v1129_v8 = vpop.permute.xlu0 %1128  ;;  %v1573_v52 = vsel %vm1571_vm12, %v1536_v40, %v4213_v17  ;;  %v1464_v14 = vsel %vm1460_vm8, %v1427_v45, %v3825_v46  ;;  %v4424_v45 = vld [vmem:[%s2939_s17 + $0x88] sm:$0xff]  }
 0x16f   : > { %1022 = vrot.lane.b32.xlu1 %v4178_v53, %s2899_s6  ;;  %v1610_v47 = vsel %vm1608_vm13, %v1573_v52, %v4220_v62  ;;  %v1501_v17 = vsel %vm1497_vm10, %v1464_v14, %v3979_v2  ;;  %5564 = vst [vmem:[#allocation4_spill] sm:$0xff] %v4424_v45  ;;  %v867_v57 = vrot.slane %v4424_v45, 2 }
 0x170   : > { %1006 = vrot.lane.b32.xlu0 %v4188_v22, %s2899_s6  ;;  %v1647_v10 = vsel %vm1645_vm14, %v1610_v47, %v4228_v30  ;;  %v1538_v12 = vsel %vm1534_vm11, %v1501_v17, %v4123_v19 }
 0x171   : > { %v4263_v3 = vpop.permute.xlu1 %1166  ;;  %v1684_v63 = vsel %vm1682_vm15, %v1647_v10, %v4236_v34  ;;  %v4436_v10 = vld [vmem:[%s2939_s17 + $0x48] sm:$0xff]  }
 0x172   : > { %v1165_v51 = vpop.permute.xlu0 %1164  ;;  %v1721_v46 = vsel %vm1719_vm0, %v1684_v63, %v1129_v8  ;;  %5566 = vst [vmem:[#allocation54_spill] sm:$0xff] %v4436_v10  ;;  %v5567_v63 = vrot.slane %v4239_v26, 2 }
 0x173   : > { %1024 = vrot.lane.b32.xlu1 %v4259_v54, %s2899_s6  ;;  %v1758_v30 = vsel %vm1756_vm1, %v1721_v46, %v1165_v51 }
 0x174   : > { %1008 = vrot.lane.b32.xlu0 %v4272_v39, %s2899_s6 }
 0x175   : > { %v1203_v44 = vpop.permute.xlu1 %1202 }
 0x176   : > { %v1201_v61 = vpop.permute.xlu0 %1200 }
 0x177   : > { %1152 = vrot.lane.b32.xlu1 %v4278_v25, %s2900_s9  ;;  %v1795_v34 = vsel %vm1793_vm2, %v1758_v30, %v1201_v61  ;;  %v5371_v30 = vrot.slane %v4239_v26, 3  ;;  %v5582_v26 = vld [vmem:[#allocation61_spill] sm:$0xff] }
 0x178   : > { %1136 = vrot.lane.b32.xlu0 %v4291_v6, %s2900_s9 }
 0x179   : > { %v4303_v18 = vpop.permute.xlu1 %877 }
 0x17a   : > { %v1237_v4 = vpop.permute.xlu0 %1236 }
 0x17b   : > { %1154 = vrot.lane.b32.xlu1 %v4299_v21, %s2900_s9  ;;  %v1832_v8 = vsel %vm1830_vm3, %v1795_v34, %v1237_v4  ;;  %v5570_v34 = vld [vmem:[#allocation65_spill] sm:$0xff] }
 0x17c   : > { %1138 = vrot.lane.b32.xlu0 %v4315_v16, %s2900_s9 }
 0x17d   : > { %v1239_v28 = vpop.permute.xlu1 %1238 }
 0x17e   : > { %v4342_v62 = vpop.permute.xlu0 %893 }
 0x17f   : > { %1188 = vrot.lane.b32.xlu1 %v3473_v56, %s2901_s14  ;;  %v1575_v56 = vsel %vm1571_vm12, %v1538_v12, %v4205_v43  ;;  %v4444_v12 = vsel %vm835_vm6, %v5567_v63, %v867_v57 }
 0x180   : > { %1172 = vrot.lane.b32.xlu0 %v3412_v60, %s2901_s14  ;;  %v1612_v2 = vsel %vm1608_vm13, %v1575_v56, %v4215_v9  ;;  %5568 = vst [vmem:[#allocation12_spill] sm:$0xff] %v4444_v12 }
 0x181   : > { %v4347_v47 = vpop.permute.xlu1 %879  ;;  %v1649_v19 = vsel %vm1645_vm14, %v1612_v2, %v4222_v59 }
 0x182   : > { %v1314_v43 = vpop.permute.xlu0 %1313  ;;  %v1686_v51 = vsel %vm1682_vm15, %v1649_v19, %v4230_v58  ;;  %v5370_v19 = vrot.slane %v4251_v5, 3 }
 0x183   : > { %1190 = vrot.lane.b32.xlu1 %v3462_v55, %s2901_s14  ;;  %v1869_v60 = vsel %vm1867_vm4, %v1832_v8, %v1314_v43  ;;  %v1723_v9 = vsel %vm1719_vm0, %v1686_v51, %v4244_v50  ;;  %v1304_v43 = vsel %vm1275_vm9, %v1301_v7, %v5371_v30  ;;  %v5580_v30 = vld [vmem:[#allocation27_spill] sm:$0xff] }
 0x184   : > { %1174 = vrot.lane.b32.xlu0 %v3403_v1, %s2901_s14  ;;  %2604 = vmatprep.mubr.bf16.mxu0 %v1869_v60  ;;  %v1760_v55 = vsel %vm1756_vm1, %v1723_v9, %v4263_v3  ;;  %v5571_v60 = vld [vmem:[#allocation56_spill] sm:$0xff]  ;;  %v1070_v35 = vrot.slane %v5580_v30, 2 }
 0x185   : > { %v4365_v42 = vpop.permute.xlu1 %913  ;;  %v1797_v59 = vsel %vm1793_vm2, %v1760_v55, %v1203_v44 }
 0x186   : > { %v4376_v58 = vpop.permute.xlu0 %895  ;;  %v1834_v61 = vsel %vm1830_vm3, %v1797_v59, %v1239_v28 }
 0x187   : > { %1224 = vrot.lane.b32.xlu1 %v4018_v0, %s2902_s18  ;;  %v5561_v0 = vld [vmem:[#allocation72_spill] sm:$0xff] }
 0x188   : > { %1208 = vrot.lane.b32.xlu0 %v4047_v31, %s2902_s18 }
 0x189   : > { %v1316_v41 = vpop.permute.xlu1 %1315 }
 0x18a   : > { %v1872_v50 = vsel %vm1867_vm4, %v1834_v61, %v1316_v41  ;;  %v4384_v1 = vpop.permute.xlu0 %929  ;;  %v5572_v61 = vld [vmem:[#allocation64_spill] sm:$0xff] }
 0x18b   : > { %1210 = vrot.lane.b32.xlu1 %v4188_v22, %s2902_s18  ;;  %2605 = vmatmul.mubr.bf16.vlgmr.msra.gmra.mxu0 %v1872_v50  ;;  %v5562_v22 = vld [vmem:[#allocation71_spill] sm:$0xff] }
 0x18c   : > { %824 = vrot.lane.b32.xlu0 %v5561_v0, %s2895_s23 }
 0x18d   : > { %v4386_v3 = vpop.permute.xlu1 %931 }
 0x18e   : > { %v4392_v44 = vpop.permute.xlu0 %915 }
 0x18f   : > { %1244 = vrot.lane.b32.xlu1 %v4291_v6, %s2903_s25 }
 0x190   : > { %1226 = vrot.lane.b32.xlu0 %v4178_v53, %s2902_s18  ;;  %v1285_v53 = vrot.slane %v4170_v37, 3 }
 0x191   : > { %v4394_v31 = vpop.permute.xlu1 %965 }
 0x192   : > { %v4400_v40 = vpop.permute.xlu0 %949  ;;  %v1288_v9 = vsel %vm1275_vm9, %v1285_v53, %v5370_v19  ;;  %v1556_v19 = vsel %vm1534_vm11, %v4086_v49, %v4190_v29  ;;  %v5586_v29 = vld [vmem:[#allocation39_spill] sm:$0xff] }
 0x193   : > { %826 = vrot.lane.b32.xlu1 %v5562_v22, %s2895_s23 }
 0x194   : > { %1260 = vrot.lane.b32.xlu0 %v4278_v25, %s2903_s25  ;;  %v5563_v25 = vrot.slane %v3996_v27, 3  ;;  %v851_v27 = vrot.slane %v4436_v10, 2  ;;  %v5583_v10 = vshrl.u32 %v5582_v26, 16 }
 0x195   : > { %v4402_v4 = vpop.permute.xlu1 %967 }
 0x196   : > { %v4408_v6 = vpop.permute.xlu0 %951  ;;  %v1302_v28 = vsel %vm1275_vm9, %v5563_v25, %v1301_v7  ;;  %v5573_v7 = vld [vmem:[#allocation55_spill] sm:$0xff]  ;;  %v1106_v45 = vrot.slane %v5583_v10, 2  ;;  %v5587_v10 = vld [vmem:[#allocation28_spill] sm:$0xff] }
 0x197   : > { %901 = vrot.lane.b32.xlu1 %v4259_v54, %s2896_s24 }
 0x198   : > { %885 = vrot.lane.b32.xlu0 %v4272_v39, %s2896_s24  ;;  %v5584_v39 = vshll.u32 %v5582_v26, 16 }
 0x199   : > { %v4411_v13 = vpop.permute.xlu1 %1018 }
 0x19a   : > { %v4418_v52 = vpop.permute.xlu0 %1002  ;;  %v1107_v54 = vrot.slane %v5584_v39, 3  ;;  %v1074_v39 = vrot.slane %v5586_v29, 2 }
 0x19b   : > { %1262 = vrot.lane.b32.xlu1 %v4299_v21, %s2903_s25  ;;  %v5565_v21 = vrot.slane %v4021_v23, 3  ;;  %v5569_v23 = vrot.slane %v4251_v5, 2 }
 0x19c   : > { %1246 = vrot.lane.b32.xlu0 %v4315_v16, %s2903_s25 }
 0x19d   : > { %v4427_v14 = vpop.permute.xlu1 %1020  ;;  %v1286_v37 = vsel %vm1275_vm9, %v5565_v21, %v1285_v53  ;;  %v4454_v16 = vsel %vm835_vm6, %v5569_v23, %v851_v27  ;;  %v5576_v23 = vld [vmem:[#allocation51_spill] sm:$0xff] }
 0x19e   : > { %v4439_v17 = vpop.permute.xlu0 %1004 }
 0x19f   : > { %1337 = vrot.lane.b32.xlu1 %v1302_v28, %s2904_s26  ;;  %v5574_v28 = vld [vmem:[#allocation69_spill] sm:$0xff] }
 0x1a0   : > { %1321 = vrot.lane.b32.xlu0 %v1286_v37, %s2904_s26  ;;  %v4499_v37 = vld [vmem:[%s2939_s17 + $0x90] sm:$0xff]  }
 0x1a1   : > { %v4446_v46 = vpop.permute.xlu1 %1148  ;;  %5575 = vst [vmem:[#allocation11_spill] sm:$0xff] %v4499_v37  ;;  %v4502_v63 = vrot.slane %v4499_v37, 2  ;;  %v1071_v37 = vrot.slane %v5581_v24, 3  ;;  %v1593_v24 = vsel %vm1571_vm12, %v1556_v19, %v4342_v62  ;;  %v1540_v62 = vsel %vm1534_vm11, %v4005_v32, %v4136_v11 }
 0x1a2   : > { %v4456_v56 = vpop.permute.xlu0 %1132  ;;  %v1630_v26 = vsel %vm1608_vm13, %v1593_v24, %v4384_v1 }
 0x1a3   : > { %903 = vrot.lane.b32.xlu1 %v4444_v12, %s2896_s24  ;;  %v1072_v49 = vor.u32 %v1071_v37, %v1070_v35  ;;  %v1667_v19 = vsel %vm1645_vm14, %v1630_v26, %v4394_v31  ;;  %v1577_v35 = vsel %vm1571_vm12, %v1540_v62, %v4303_v18 }
 0x1a4   : > { %887 = vrot.lane.b32.xlu0 %v4454_v16, %s2896_s24  ;;  %v1704_v37 = vsel %vm1682_vm15, %v1667_v19, %v4411_v13  ;;  %v1614_v32 = vsel %vm1608_vm13, %v1577_v35, %v4365_v42  ;;  %v5590_v19 = vld [vmem:[#allocation74_spill] sm:$0xff] }
 0x1a5   : > { %v4459_v2 = vpop.permute.xlu1 %1150  ;;  %v1741_v11 = vsel %vm1719_vm0, %v1704_v37, %v4446_v46  ;;  %v1073_v18 = vsel %vm1037_vm7, %v4293_v38, %v1072_v49 }
 0x1a6   : > { %v4466_v8 = vpop.permute.xlu0 %1134 }
 0x1a7   : > { %937 = vrot.lane.b32.xlu1 %v5570_v34, %s2897_s27  ;;  %v1102_v34 = vrot.slane %v5576_v23, 2  ;;  %v4518_v23 = vsel %vm835_vm6, %v867_v57, %v4502_v63 }
 0x1a8   : > { %921 = vrot.lane.b32.xlu0 %v5571_v60, %s2897_s27 }
 0x1a9   : > { %v1185_v51 = vpop.permute.xlu1 %1184 }
 0x1aa   : > { %v4477_v55 = vpop.permute.xlu0 %1168 }
 0x1ab   : > { %1339 = vrot.lane.b32.xlu1 %v1304_v43, %s2904_s26  ;;  %v5577_v43 = vld [vmem:[#allocation49_spill] sm:$0xff] }
 0x1ac   : > { %1323 = vrot.lane.b32.xlu0 %v1288_v9, %s2904_s26  ;;  %v1103_v60 = vrot.slane %v5577_v43, 3 }
 0x1ad   : > { %v4479_v59 = vpop.permute.xlu1 %1186 }
 0x1ae   : > { %v4484_v41 = vpop.permute.xlu0 %1170  ;;  %v1104_v43 = vor.u32 %v1103_v60, %v1102_v34  ;;  %v1075_v34 = vrot.slane %v5587_v10, 3  ;;  %v4555_v60 = vor.u32 %v1107_v54, %v1106_v45  ;;  %v1778_v54 = vsel %vm1756_vm1, %v1741_v11, %v1185_v51 }
 0x1af   : > { %939 = vrot.lane.b32.xlu1 %v5572_v61, %s2897_s27  ;;  %v5578_v61 = vld [vmem:[#allocation68_spill] sm:$0xff] }
 0x1b0   : > { %923 = vrot.lane.b32.xlu0 %v5573_v7, %s2897_s27  ;;  %v4509_v7 = vld [vmem:[%s2939_s17 + $0x50] sm:$0xff]   ;;  %v4553_v1 = vsel %vm1037_vm7, %v4280_v33, %v1104_v43  ;;  %v1651_v33 = vsel %vm1645_vm14, %v1614_v32, %v4400_v40  ;;  %v4574_v31 = vor.u32 %v1075_v34, %v1074_v39  ;;  %v4581_v46 = vsel %vm1037_vm7, %v1104_v43, %v4555_v60  ;;  %v5592_v32 = vld [vmem:[#allocation73_spill] sm:$0xff] }
 0x1b1   : > { %v1221_v50 = vpop.permute.xlu1 %1220  ;;  %5579 = vst [vmem:[#allocation15_spill] sm:$0xff] %v4509_v7  ;;  %v5585_v57 = vrot.slane %v4509_v7, 2  ;;  %v1688_v42 = vsel %vm1682_vm15, %v1651_v33, %v4418_v52 }
 0x1b2   : > { %v1205_v53 = vpop.permute.xlu0 %1204  ;;  %v1815_v13 = vsel %vm1793_vm2, %v1778_v54, %v1221_v50  ;;  %v1725_v40 = vsel %vm1719_vm0, %v1688_v42, %v4456_v56  ;;  %v4595_v43 = vsel %vm1037_vm7, %v1072_v49, %v4574_v31  ;;  %v5593_v54 = vld [vmem:[#allocation4_spill] sm:$0xff] }
 0x1b3   : > { %973 = vrot.lane.b32.xlu1 %v5561_v0, %s2898_s30  ;;  %v4536_v30 = vsel %vm835_vm6, %v851_v27, %v5585_v57  ;;  %v1762_v38 = vsel %vm1756_vm1, %v1725_v40, %v4477_v55  ;;  %v1558_v55 = vsel %vm1534_vm11, %v4079_v48, %v4180_v20  ;;  %v1542_v48 = vsel %vm1534_vm11, %v3991_v36, %v4131_v15 }
 0x1b4   : > { %957 = vrot.lane.b32.xlu0 %v5574_v28, %s2898_s30  ;;  %v1799_v50 = vsel %vm1793_vm2, %v1762_v38, %v1205_v53  ;;  %v1595_v53 = vsel %vm1571_vm12, %v1558_v55, %v4376_v58  ;;  %v1579_v58 = vsel %vm1571_vm12, %v1542_v48, %v4347_v47  ;;  %v2880_v38 = vld [vmem:[%s2939_s17 + $0x98] ss:$0 sps:$4 sm:$0x33]   ;;  %v5601_v48 = vrot.slane %v4509_v7, 2 }
 0x1b5   : > { %v4490_v25 = vpop.permute.xlu1 %1222  ;;  %v1632_v49 = vsel %vm1608_vm13, %v1595_v53, %v4386_v3  ;;  %v1616_v3 = vsel %vm1608_vm13, %v1579_v58, %v4392_v44 }
 0x1b6   : > { %v4496_v21 = vpop.permute.xlu0 %1206  ;;  %v1653_v36 = vsel %vm1645_vm14, %v1616_v3, %v4408_v6 }
 0x1b7   : > { %975 = vrot.lane.b32.xlu1 %v5562_v22, %s2898_s30  ;;  %v1690_v47 = vsel %vm1682_vm15, %v1653_v36, %v4439_v17  ;;  %v5603_v36 = vld [vmem:[#allocation67_spill] sm:$0xff] }
 0x1b8   : > { %959 = vrot.lane.b32.xlu0 %v5578_v61, %s2898_s30 }
 0x1b9   : > { %v1257_v9 = vpop.permute.xlu1 %1256 }
 0x1ba   : > { %v1241_v5 = vpop.permute.xlu0 %1240  ;;  %v1852_v51 = vsel %vm1830_vm3, %v1815_v13, %v1257_v9  ;;  %v5594_v13 = vld [vmem:[#allocation54_spill] sm:$0xff] }
 0x1bb   : > { %1026 = vrot.lane.b32.xlu1 %v4444_v12, %s2899_s6  ;;  %v1836_v56 = vsel %vm1830_vm3, %v1799_v50, %v1241_v5  ;;  %v1669_v5 = vsel %vm1645_vm14, %v1632_v49, %v4402_v4 }
 0x1bc   : > { %1010 = vrot.lane.b32.xlu0 %v4454_v16, %s2899_s6  ;;  %v1706_v39 = vsel %vm1682_vm15, %v1669_v5, %v4427_v14  ;;  %v1727_v14 = vsel %vm1719_vm0, %v1690_v47, %v4466_v8 }
 0x1bd   : > { %v4527_v12 = vpop.permute.xlu1 %897 }
 0x1be   : > { %v4549_v27 = vpop.permute.xlu0 %881 }
 0x1bf   : > { %1028 = vrot.lane.b32.xlu1 %v4518_v23, %s2899_s6 }
 0x1c0   : > { %1012 = vrot.lane.b32.xlu0 %v4536_v30, %s2899_s6 }
 0x1c1   : > { %v1259_v24 = vpop.permute.xlu1 %1258 }
 0x1c2   : > { %v1243_v45 = vpop.permute.xlu0 %1242 }
 0x1c3   : > { %1156 = vrot.lane.b32.xlu1 %v4553_v1, %s2900_s9 }
 0x1c4   : > { %1140 = vrot.lane.b32.xlu0 %v1073_v18, %s2900_s9 }
 0x1c5   : > { %v1334_v57 = vpop.permute.xlu1 %1333 }
 0x1c6   : > { %v1899_v52 = vsel %vm1867_vm4, %v1852_v51, %v1334_v57  ;;  %v1318_v9 = vpop.permute.xlu0 %1317 }
 0x1c7   : > { %1158 = vrot.lane.b32.xlu1 %v4581_v46, %s2900_s9  ;;  %2624 = vmatprep.mubr.bf16.mxu1 %v1899_v52  ;;  %v1875_v26 = vsel %vm1867_vm4, %v1836_v56, %v1318_v9  ;;  %v871_v52 = vrot.slane %v2880_v38, 2  ;;  %v5597_v56 = vld [vmem:[#allocation3_spill] sm:$0xff]  ;;  %v5609_v38 = vld [vmem:[#allocation70_spill] sm:$0xff] }
 0x1c8   : > { %1142 = vrot.lane.b32.xlu0 %v4595_v43, %s2900_s9  ;;  %2608 = vmatprep.mubr.bf16.mxu0 %v1875_v26  ;;  %v5598_v9 = vrot.slane %v5597_v56, 3 }
 0x1c9   : > { %v4602_v29 = vpop.permute.xlu1 %899  ;;  %v4714_v26 = vsel %vm835_vm6, %v4502_v63, %v871_v52 }
 0x1ca   : > { %v4617_v20 = vpop.permute.xlu0 %883 }
 0x1cb   : > { %1192 = vrot.lane.b32.xlu1 %v5561_v0, %s2901_s14  ;;  %v1743_v0 = vsel %vm1719_vm0, %v1706_v39, %v4459_v2  ;;  %v5602_v39 = vld [vmem:[#allocation11_spill] sm:$0xff] }
 0x1cc   : > { %1176 = vrot.lane.b32.xlu0 %v5574_v28, %s2901_s14  ;;  %v1780_v15 = vsel %vm1756_vm1, %v1743_v0, %v4479_v59  ;;  %v1764_v59 = vsel %vm1756_vm1, %v1727_v14, %v4484_v41  ;;  %v5589_v41 = vld [vmem:[#allocation8_spill] sm:$0xff]  ;;  %v5383_v3 = vrot.slane %v5602_v39, 3 }
 0x1cd   : > { %v4623_v10 = vpop.permute.xlu1 %933  ;;  %v1817_v44 = vsel %vm1793_vm2, %v1780_v15, %v4490_v25  ;;  %v1801_v17 = vsel %vm1793_vm2, %v1764_v59, %v4496_v21  ;;  %v5588_v25 = vld [vmem:[#allocation2_spill] sm:$0xff]  ;;  %v5382_v15 = vrot.slane %v4509_v7, 3  ;;  %v5615_v7 = vld [vmem:[#allocation20_spill] sm:$0xff] }
 0x1ce   : > { %v4641_v4 = vpop.permute.xlu0 %917  ;;  %v1854_v2 = vsel %vm1830_vm3, %v1817_v44, %v1259_v24  ;;  %v1838_v8 = vsel %vm1830_vm3, %v1801_v17, %v1243_v45  ;;  %v5591_v24 = vld [vmem:[#allocation12_spill] sm:$0xff]  ;;  %v1289_v45 = vrot.slane %v5594_v13, 3  ;;  %v5605_v17 = vld [vmem:[#allocation66_spill] sm:$0xff] }
 0x1cf   : > { %1194 = vrot.lane.b32.xlu1 %v5562_v22, %s2901_s14 }
 0x1d0   : > { %1178 = vrot.lane.b32.xlu0 %v5578_v61, %s2901_s14 }
 0x1d1   : > { %v1336_v6 = vpop.permute.xlu1 %1335 }
 0x1d2   : > { %v1902_v22 = vsel %vm1867_vm4, %v1854_v2, %v1336_v6  ;;  %v1320_v28 = vpop.permute.xlu0 %1319  ;;  %v5604_v2 = vld [vmem:[#allocation59_spill] sm:$0xff]  ;;  %v1292_v6 = vsel %vm1275_vm9, %v1289_v45, %v5382_v15 }
 0x1d3   : > { %1228 = vrot.lane.b32.xlu1 %v5588_v25, %s2902_s18  ;;  %2625 = vmatmul.mubr.bf16.vlgmr.msra.gmra.mxu1 %v1902_v22  ;;  %v1878_v34 = vsel %vm1867_vm4, %v1838_v8, %v1320_v28  ;;  %v4759_v25 = vld [vmem:[%s2939_s17 + $0x98] sm:$0xff]  }
 0x1d4   : > { %1212 = vrot.lane.b32.xlu0 %v5589_v41, %s2902_s18  ;;  %2609 = vmatmul.mubr.bf16.gmra.mxu0 %v1878_v34  ;;  %v5606_v34 = vld [vmem:[#allocation57_spill] sm:$0xff]  ;;  %v994_v41 = vrot.slane %v4759_v25, 2  ;;  %v1114_v13 = vshll.u32 %v4759_v25, 16 }
 0x1d5   : > { %v4657_v62 = vpop.permute.xlu1 %935 }
 0x1d6   : > { %v4663_v61 = vpop.permute.xlu0 %919  ;;  %v995_v52 = vsel %vm835_vm6, %v4502_v63, %v994_v41 }
 0x1d7   : > { %1214 = vrot.lane.b32.xlu1 %v4454_v16, %s2902_s18 }
 0x1d8   : > { %828 = vrot.lane.b32.xlu0 %v5590_v19, %s2895_s23 }
 0x1d9   : > { %v4665_v21 = vpop.permute.xlu1 %969 }
 0x1da   : > { %v4670_v35 = vpop.permute.xlu0 %953 }
 0x1db   : > { %1248 = vrot.lane.b32.xlu1 %v1073_v18, %s2903_s25  ;;  %v1305_v18 = vrot.slane %v5593_v54, 3 }
 0x1dc   : > { %1230 = vrot.lane.b32.xlu0 %v5591_v24, %s2902_s18  ;;  %v2717_v24 = vld [vmem:[%s2939_s17 + $0xa0] ss:$0 sps:$4 sm:$0x33]  }
 0x1dd   : > { %v4672_v37 = vpop.permute.xlu1 %971  ;;  %v1308_v44 = vsel %vm1275_vm9, %v1305_v18, %v5383_v3  ;;  %v996_v56 = vrot.slane %v2717_v24, 2  ;;  %v5614_v3 = vld [vmem:[#allocation44_spill] sm:$0xff] }
 0x1de   : > { %v4678_v16 = vpop.permute.xlu0 %955 }
 0x1df   : > { %830 = vrot.lane.b32.xlu1 %v5592_v32, %s2895_s23 }
 0x1e0   : > { %1264 = vrot.lane.b32.xlu0 %v4553_v1, %s2903_s25  ;;  %v5595_v1 = vld [vmem:[#allocation40_spill] sm:$0xff] }
 0x1e1   : > { %v4680_v11 = vpop.permute.xlu1 %1022  ;;  %v5596_v51 = vrot.slane %v5595_v1, 3  ;;  %v5608_v1 = vld [vmem:[#allocation17_spill] sm:$0xff] }
 0x1e2   : > { %v4686_v33 = vpop.permute.xlu0 %1006 }
 0x1e3   : > { %905 = vrot.lane.b32.xlu1 %v4518_v23, %s2896_s24  ;;  %v1306_v57 = vsel %vm1275_vm9, %v5596_v51, %v1305_v18  ;;  %v1111_v18 = vshrl.u32 %v4759_v25, 16 }
 0x1e4   : > { %889 = vrot.lane.b32.xlu0 %v4536_v30, %s2896_s24 }
 0x1e5   : > { %v4689_v42 = vpop.permute.xlu1 %1024 }
 0x1e6   : > { %v4696_v40 = vpop.permute.xlu0 %1008 }
 0x1e7   : > { %1266 = vrot.lane.b32.xlu1 %v4581_v46, %s2903_s25  ;;  %v1290_v46 = vsel %vm1275_vm9, %v5598_v9, %v1289_v45  ;;  %v4774_v45 = vld [vmem:[%s2939_s17 + $0xa0] ss:$0 sps:$4 sm:$0x77]  }
 0x1e8   : > { %1250 = vrot.lane.b32.xlu0 %v4595_v43, %s2903_s25  ;;  %v5599_v43 = vld [vmem:[#allocation36_spill] sm:$0xff]  ;;  %5607 = vst [vmem:[#allocation43_spill] sm:$0xff] %v4774_v45 }
 0x1e9   : > { %v4702_v50 = vpop.permute.xlu1 %1152  ;;  %v5600_v49 = vrot.slane %v5599_v43, 2  ;;  %v1116_v43 = vrot.slane %v1114_v13, 3 }
 0x1ea   : > { %v4710_v55 = vpop.permute.xlu0 %1136 }
 0x1eb   : > { %1341 = vrot.lane.b32.xlu1 %v1306_v57, %s2904_s26  ;;  %v4726_v5 = vsel %vm835_vm6, %v5601_v48, %v5600_v49  ;;  %v1120_v49 = vshrl.u32 %v4774_v45, 16  ;;  %v1123_v48 = vshll.u32 %v4774_v45, 16  ;;  %v1560_v45 = vsel %vm1534_vm11, %v5615_v7, %v5614_v3  ;;  %v5618_v3 = vld [vmem:[#allocation58_spill] sm:$0xff] }
 0x1ec   : > { %1325 = vrot.lane.b32.xlu0 %v1290_v46, %s2904_s26  ;;  %v1113_v46 = vrot.slane %v1111_v18, 2  ;;  %v997_v18 = vsel %vm835_vm6, %v994_v41, %v996_v56 }
 0x1ed   : > { %v4716_v53 = vpop.permute.xlu1 %1154  ;;  %v1125_v15 = vrot.slane %v1123_v48, 3 }
 0x1ee   : > { %v4728_v58 = vpop.permute.xlu0 %1138  ;;  %v1117_v13 = vor.u32 %v1116_v43, %v1113_v46  ;;  %v5619_v46 = vld [vmem:[#allocation9_spill] sm:$0xff] }
 0x1ef   : > { %907 = vrot.lane.b32.xlu1 %v4714_v26, %s2896_s24 }
 0x1f0   : > { %891 = vrot.lane.b32.xlu0 %v4726_v5, %s2896_s24  ;;  %s2657_s24 = smul.u32 288, %s5642_s13 }
 0x1f1   : > { %v4731_v0 = vpop.permute.xlu1 %1188 }
 0x1f2   : > { %v4738_v47 = vpop.permute.xlu0 %1172  ;;  %s5064_s28 = scalar_lea.vmem %s5264_s3, %s2657_s24 }
 0x1f3   : > { %941 = vrot.lane.b32.xlu1 %v5603_v36, %s2897_s27 }
 0x1f4   : > { %925 = vrot.lane.b32.xlu0 %v5604_v2, %s2897_s27  ;;  %v5611_v2 = vld [vmem:[#allocation63_spill] sm:$0xff] }
 0x1f5   : > { %v4743_v14 = vpop.permute.xlu1 %1190 }
 0x1f6   : > { %v4751_v59 = vpop.permute.xlu0 %1174 }
 0x1f7   : > { %1343 = vrot.lane.b32.xlu1 %v1308_v44, %s2904_s26  ;;  %v5610_v44 = vld [vmem:[#allocation46_spill] sm:$0xff] }
 0x1f8   : > { %1327 = vrot.lane.b32.xlu0 %v1292_v6, %s2904_s26 }
 0x1f9   : > { %v4753_v22 = vpop.permute.xlu1 %1224 }
 0x1fa   : > { %v4761_v8 = vpop.permute.xlu0 %1208 }
 0x1fb   : > { %943 = vrot.lane.b32.xlu1 %v5605_v17, %s2897_s27  ;;  %v5612_v17 = vld [vmem:[#allocation37_spill] sm:$0xff] }
 0x1fc   : > { %927 = vrot.lane.b32.xlu0 %v5606_v34, %s2897_s27  ;;  %v1078_v63 = vrot.slane %v5612_v17, 2  ;;  %v5613_v34 = vld [vmem:[#allocation31_spill] sm:$0xff]  ;;  %v5617_v17 = vld [vmem:[#allocation50_spill] sm:$0xff] }
 0x1fd   : > { %v4763_v28 = vpop.permute.xlu1 %1210  ;;  %v1079_v24 = vrot.slane %v5613_v34, 3 }
 0x1fe   : > { %v825_v54 = vpop.permute.xlu0 %824 }
 0x1ff   : > { %977 = vrot.lane.b32.xlu1 %v5590_v19, %s2898_s30  ;;  %v1564_v51 = vsel %vm1534_vm11, %v5608_v1, %v825_v54  ;;  %v1122_v1 = vrot.slane %v1120_v49, 2  ;;  %v1080_v7 = vor.u32 %v1079_v24, %v1078_v63 }
 0x200   : > { %961 = vrot.lane.b32.xlu0 %v5609_v38, %s2898_s30 }
 0x201   : > { %v1245_v57 = vpop.permute.xlu1 %1244 }
 0x202   : > { %v4784_v9 = vpop.permute.xlu0 %1226 }
 0x203   : > { %979 = vrot.lane.b32.xlu1 %v5592_v32, %s2898_s30 }
 0x204   : > { %963 = vrot.lane.b32.xlu0 %v5610_v44, %s2898_s30 }
 0x205   : > { %v827_v36 = vpop.permute.xlu1 %826 }
 0x206   : > { %v1566_v6 = vsel %vm1534_vm11, %v5611_v2, %v827_v36  ;;  %v1261_v54 = vpop.permute.xlu0 %1260  ;;  %v1597_v36 = vsel %vm1571_vm12, %v1560_v45, %v4527_v12  ;;  %v5616_v2 = vld [vmem:[#allocation32_spill] sm:$0xff]  ;;  %v1548_v12 = vsel %vm1534_vm11, %v5619_v46, %v5618_v3  ;;  %v5625_v46 = vld [vmem:[#allocation45_spill] sm:$0xff] }
 0x207   : > { %1030 = vrot.lane.b32.xlu1 %v995_v52, %s2899_s6  ;;  %v1544_v41 = vsel %vm1534_vm11, %v5617_v17, %v5616_v2  ;;  %v1634_v56 = vsel %vm1608_vm13, %v1597_v36, %v4623_v10  ;;  %v5622_v2 = vld [vmem:[#allocation34_spill] sm:$0xff] }
 0x208   : > { %1014 = vrot.lane.b32.xlu0 %v4726_v5, %s2899_s6  ;;  %v1671_v45 = vsel %vm1645_vm14, %v1634_v56, %v4665_v21  ;;  %v1581_v49 = vsel %vm1571_vm12, %v1544_v41, %v4549_v27 }
 0x209   : > { %v902_v39 = vpop.permute.xlu1 %901  ;;  %v1708_v10 = vsel %vm1682_vm15, %v1671_v45, %v4680_v11  ;;  %v1618_v34 = vsel %vm1608_vm13, %v1581_v49, %v4641_v4  ;;  %v4842_v11 = vsel %vm1037_vm7, %v4574_v31, %v1080_v7  ;;  %v5626_v45 = vld [vmem:[#allocation62_spill] sm:$0xff] }
 0x20a   : > { %v4804_v52 = vsel %vm1571_vm12, %v1564_v51, %v902_v39  ;;  %v886_v43 = vpop.permute.xlu0 %885  ;;  %v4819_v39 = vsel %vm1037_vm7, %v4555_v60, %v1117_v13  ;;  %v1126_v51 = vor.u32 %v1125_v15, %v1122_v1  ;;  %v1745_v21 = vsel %vm1719_vm0, %v1708_v10, %v4702_v50  ;;  %v5620_v60 = vld [vmem:[#allocation42_spill] sm:$0xff] }
 0x20b   : > { %1032 = vrot.lane.b32.xlu1 %v997_v18, %s2899_s6  ;;  %v4826_v48 = vsel %vm1571_vm12, %v1548_v12, %v886_v43  ;;  %v1655_v15 = vsel %vm1645_vm14, %v1618_v34, %v4670_v35  ;;  %v1782_v27 = vsel %vm1756_vm1, %v1745_v21, %v4731_v0  ;;  %v5627_v43 = vld [vmem:[#allocation52_spill] sm:$0xff] }
 0x20c   : > { %1016 = vrot.lane.b32.xlu0 %v5620_v60, %s2899_s6  ;;  %v1692_v4 = vsel %vm1682_vm15, %v1655_v15, %v4686_v33  ;;  %v1819_v50 = vsel %vm1793_vm2, %v1782_v27, %v4753_v22  ;;  %v4849_v18 = vsel %vm1037_vm7, %v1117_v13, %v1126_v51  ;;  %v5621_v13 = vld [vmem:[#allocation48_spill] sm:$0xff]  ;;  %v1550_v51 = vsel %vm1534_vm11, %v5627_v43, %v5626_v45  ;;  %v4986_v43 = vld [vmem:[%s5263_s2] ss:$0 sm:$0xff] }
 0x20d   : > { %v1263_v63 = vpop.permute.xlu1 %1262  ;;  %v1729_v35 = vsel %vm1719_vm0, %v1692_v4, %v4710_v55  ;;  %v1856_v0 = vsel %vm1830_vm3, %v1819_v50, %v1261_v54  ;;  %v1085_v55 = vsel %vm1037_vm7, %v1080_v7, %v5621_v13  ;;  %v1309_v27 = vrot.slane %v4759_v25, 3  ;;  %v5631_v25 = vld [vmem:[#allocation15_spill] sm:$0xff] }
 0x20e   : > { %v1247_v24 = vpop.permute.xlu0 %1246  ;;  %v1766_v31 = vsel %vm1756_vm1, %v1729_v35, %v4738_v47  ;;  %v5623_v47 = vld [vmem:[#allocation10_spill] sm:$0xff] }
 0x20f   : > { %1160 = vrot.lane.b32.xlu1 %v4819_v39, %s2900_s9  ;;  %v1803_v22 = vsel %vm1793_vm2, %v1766_v31, %v4761_v8  ;;  %v1562_v17 = vsel %vm1534_vm11, %v5623_v47, %v5622_v2 }
 0x210   : > { %1144 = vrot.lane.b32.xlu0 %v4842_v11, %s2900_s9  ;;  %v1840_v54 = vsel %vm1830_vm3, %v1803_v22, %v1245_v57  ;;  %v1599_v8 = vsel %vm1571_vm12, %v1562_v17, %v4602_v29  ;;  %v5624_v57 = vld [vmem:[#allocation23_spill] sm:$0xff] }
 0x211   : > { %v1338_v1 = vpop.permute.xlu1 %1337  ;;  %v1636_v7 = vsel %vm1608_vm13, %v1599_v8, %v4657_v62  ;;  %v1546_v12 = vsel %vm1534_vm11, %v5625_v46, %v5624_v57 }
 0x212   : > { %v1905_v33 = vsel %vm1867_vm4, %v1856_v0, %v1338_v1  ;;  %v1322_v36 = vpop.permute.xlu0 %1321  ;;  %v1673_v29 = vsel %vm1645_vm14, %v1636_v7, %v4672_v37  ;;  %v5630_v0 = vld [vmem:[#allocation43_spill] sm:$0xff] }
 0x213   : > { %1162 = vrot.lane.b32.xlu1 %v4849_v18, %s2900_s9  ;;  %2628 = vmatprep.mubr.bf16.mxu1 %v1905_v33  ;;  %v1881_v41 = vsel %vm1867_vm4, %v1840_v54, %v1322_v36  ;;  %v1710_v62 = vsel %vm1682_vm15, %v1673_v29, %v4689_v42  ;;  %v1311_v1 = vrot.slane %v5630_v0, 3  ;;  %v5633_v54 = vld [vmem:[#allocation41_spill] sm:$0xff] }
 0x214   : > { %1146 = vrot.lane.b32.xlu0 %v1085_v55, %s2900_s9  ;;  %2612 = vmatprep.mubr.bf16.mxu0 %v1881_v41  ;;  %v1747_v21 = vsel %vm1719_vm0, %v1710_v62, %v4716_v53  ;;  %v5634_v36 = vrot.slane %v5633_v54, 3 }
 0x215   : > { %v904_v56 = vpop.permute.xlu1 %903  ;;  %v1312_v22 = vsel %vm1275_vm9, %v1309_v27, %v1311_v1 }
 0x216   : > { %v1603_v3 = vsel %vm1571_vm12, %v1566_v6, %v904_v56  ;;  %v888_v49 = vpop.permute.xlu0 %887  ;;  %v1583_v6 = vsel %vm1571_vm12, %v1546_v12, %v4617_v20  ;;  %v1784_v20 = vsel %vm1756_vm1, %v1747_v21, %v4743_v14 }
 0x217   : > { %1196 = vrot.lane.b32.xlu1 %v5590_v19, %s2901_s14  ;;  %v1587_v19 = vsel %vm1571_vm12, %v1550_v51, %v888_v49  ;;  %v1620_v34 = vsel %vm1608_vm13, %v1583_v6, %v4663_v61  ;;  %v1821_v61 = vsel %vm1793_vm2, %v1784_v20, %v4784_v9  ;;  %v5635_v6 = vld [vmem:[#allocation60_spill] sm:$0xff] }
 0x218   : > { %1180 = vrot.lane.b32.xlu0 %v5609_v38, %s2901_s14  ;;  %v1657_v37 = vsel %vm1645_vm14, %v1620_v34, %v4678_v16  ;;  %v1858_v38 = vsel %vm1830_vm3, %v1821_v61, %v1263_v63 }
 0x219   : > { %v4891_v10 = vpop.permute.xlu1 %937  ;;  %v1694_v42 = vsel %vm1682_vm15, %v1657_v37, %v4696_v40 }
 0x21a   : > { %v4909_v60 = vpop.permute.xlu0 %921  ;;  %v1731_v53 = vsel %vm1719_vm0, %v1694_v42, %v4728_v58 }
 0x21b   : > { %1198 = vrot.lane.b32.xlu1 %v5592_v32, %s2901_s14  ;;  %v1768_v14 = vsel %vm1756_vm1, %v1731_v53, %v4751_v59 }
 0x21c   : > { %1182 = vrot.lane.b32.xlu0 %v5610_v44, %s2901_s14  ;;  %v1805_v40 = vsel %vm1793_vm2, %v1768_v14, %v4763_v28 }
 0x21d   : > { %v1340_v16 = vpop.permute.xlu1 %1339  ;;  %v1842_v58 = vsel %vm1830_vm3, %v1805_v40, %v1247_v24 }
 0x21e   : > { %v1908_v32 = vsel %vm1867_vm4, %v1858_v38, %v1340_v16  ;;  %v1324_v9 = vpop.permute.xlu0 %1323 }
 0x21f   : > { %1232 = vrot.lane.b32.xlu1 %v4518_v23, %s2902_s18  ;;  %2629 = vmatmul.mubr.bf16.gmra.mxu1 %v1908_v32  ;;  %v1884_v63 = vsel %vm1867_vm4, %v1842_v58, %v1324_v9  ;;  %v5636_v32 = vld [vmem:[#allocation26_spill] sm:$0xff] }
 0x220   : > { %1216 = vrot.lane.b32.xlu0 %v4536_v30, %s2902_s18  ;;  %2613 = vmatmul.mubr.bf16.gmra.mxu0 %v1884_v63 }
 0x221   : > { %v940_v15 = vpop.permute.xlu1 %939 }
 0x222   : > { %v4928_v59 = vsel %vm1608_vm13, %v1603_v3, %v940_v15  ;;  %v924_v28 = vpop.permute.xlu0 %923 }
 0x223   : > { %1234 = vrot.lane.b32.xlu1 %v4714_v26, %s2902_s18  ;;  %v4933_v23 = vsel %vm1608_vm13, %v1587_v19, %v924_v28  ;;  %v2881_v26 = vld [vmem:[%s2939_s17 + $0x58] sm:$0xff]  }
 0x224   : > { %1218 = vrot.lane.b32.xlu0 %v4726_v5, %s2902_s18  ;;  %v1293_v50 = vrot.slane %v2881_v26, 3  ;;  %v5628_v5 = vld [vmem:[#allocation11_spill] sm:$0xff]  ;;  %v5637_v26 = vld [vmem:[#allocation38_spill] sm:$0xff] }
 0x225   : > { %v4935_v44 = vpop.permute.xlu1 %973  ;;  %v5629_v35 = vrot.slane %v5628_v5, 3 }
 0x226   : > { %v4941_v30 = vpop.permute.xlu0 %957  ;;  %v1296_v2 = vsel %vm1275_vm9, %v1293_v50, %v5634_v36 }
 0x227   : > { %1268 = vrot.lane.b32.xlu1 %v4819_v39, %s2903_s25  ;;  %v1310_v39 = vsel %vm1275_vm9, %v5629_v35, %v1309_v27  ;;  %v1638_v27 = vsel %vm1608_vm13, %v4804_v52, %v4891_v10 }
 0x228   : > { %1252 = vrot.lane.b32.xlu0 %v4842_v11, %s2903_s25  ;;  %v5632_v11 = vrot.slane %v5631_v25, 3  ;;  %v1675_v35 = vsel %vm1645_vm14, %v1638_v27, %v4935_v44 }
 0x229   : > { %v4944_v4 = vpop.permute.xlu1 %975 }
 0x22a   : > { %v4951_v24 = vpop.permute.xlu0 %959  ;;  %v1294_v33 = vsel %vm1275_vm9, %v5632_v11, %v1293_v50  ;;  %v5638_v50 = vld [vmem:[#allocation13_spill] sm:$0xff]  ;;  %v1622_v11 = vsel %vm1608_vm13, %v4826_v48, %v4909_v60 }
 0x22b   : > { %1270 = vrot.lane.b32.xlu1 %v4849_v18, %s2903_s25  ;;  %v1552_v5 = vsel %vm1534_vm11, %v5638_v50, %v5637_v26  ;;  %v1659_v10 = vsel %vm1645_vm14, %v1622_v11, %v4941_v30 }
 0x22c   : > { %1254 = vrot.lane.b32.xlu0 %v1085_v55, %s2903_s25 }
 0x22d   : > { %v1027_v31 = vpop.permute.xlu1 %1026 }
 0x22e   : > { %v1011_v18 = vpop.permute.xlu0 %1010  ;;  %v1712_v0 = vsel %vm1682_vm15, %v1675_v35, %v1027_v31 }
 0x22f   : > { %1345 = vrot.lane.b32.xlu1 %v1310_v39, %s2904_s26  ;;  %v1696_v44 = vsel %vm1682_vm15, %v1659_v10, %v1011_v18 }
 0x230   : > { %1329 = vrot.lane.b32.xlu0 %v1294_v33, %s2904_s26 }
 0x231   : > { %v4963_v13 = vpop.permute.xlu1 %1028 }
 0x232   : > { %v4970_v55 = vpop.permute.xlu0 %1012 }
 0x233   : > { %1347 = vrot.lane.b32.xlu1 %v1312_v22, %s2904_s26 }
 0x234   : > { %1331 = vrot.lane.b32.xlu0 %v1296_v2, %s2904_s26 }
 0x235   : > { %v1157_v47 = vpop.permute.xlu1 %1156 }
 0x236   : > { %v1141_v17 = vpop.permute.xlu0 %1140  ;;  %v1749_v52 = vsel %vm1719_vm0, %v1712_v0, %v1157_v47 }
 0x237   : > { %v1733_v36 = vsel %vm1719_vm0, %v1696_v44, %v1141_v17 }
 0x239   : > { %v4973_v41 = vpop.permute.xlu1 %1158 }
 0x23a   : > { %v4975_v56 = vpop.permute.xlu0 %1142 }
 0x23d   : > { %v1193_v8 = vpop.permute.xlu1 %1192 }
 0x23e   : > { %v1177_v3 = vpop.permute.xlu0 %1176  ;;  %v1786_v33 = vsel %vm1756_vm1, %v1749_v52, %v1193_v8 }
 0x23f   : > { %v1770_v48 = vsel %vm1756_vm1, %v1733_v36, %v1177_v3 }
 0x241   : > { %v4977_v7 = vpop.permute.xlu1 %1194 }
 0x242   : > { %v4979_v57 = vpop.permute.xlu0 %1178 }
 0x245   : > { %v1229_v46 = vpop.permute.xlu1 %1228 }
 0x246   : > { %v1213_v12 = vpop.permute.xlu0 %1212  ;;  %v1823_v22 = vsel %vm1793_vm2, %v1786_v33, %v1229_v46 }
 0x247   : > { %v1807_v30 = vsel %vm1793_vm2, %v1770_v48, %v1213_v12  ;;  %v1677_v12 = vsel %vm1645_vm14, %v4928_v59, %v4944_v4 }
 0x249   : > { %v4981_v45 = vpop.permute.xlu1 %1214 }
 0x24a   : > { %v829_v29 = vpop.permute.xlu0 %828 }
 0x24b   : > { %v2606_v51 = vpop.f32.mrf.mxu0  ;;  %v1568_v62 = vsel %vm1534_vm11, %v5635_v6, %v829_v29 }
 0x24c   : > { %v2036_v49 = vadd.f32 %v2606_v51, %v4986_v43 }
 0x24d   : > { %v1249_v19 = vpop.permute.xlu1 %1248  ;;  %v2027_v34 = vpop.f32.mrf.mxu0 }
 0x24e   : > { %v2526_v21 = vmul.f32 -1.442695, %v2036_v49  ;;  %v2028_v37 = vadd.f32 %v4986_v43, %v2027_v34  ;;  %v1231_v61 = vpop.permute.xlu0 %1230  ;;  %v1844_v18 = vsel %vm1830_vm3, %v1807_v30, %v1249_v19  ;;  %v1714_v19 = vsel %vm1682_vm15, %v1677_v12, %v4963_v13 }
 0x24f   : > { %v2607_v20 = vpop.f32.mrf.mxu0 }
 0x250   : > { %2719 = vpow2.f32 %v2526_v21  ;;  %v2524_v42 = vmul.f32 -1.442695, %v2028_v37  ;;  %v2039_v53 = vadd.f32 %v2607_v20, %v4986_v43  ;;  %v1751_v20 = vsel %vm1719_vm0, %v1714_v19, %v4973_v41  ;;  %v5639_v19 = vld [vmem:[#allocation30_spill] sm:$0xff] }
 0x251   : > { %v831_v38 = vpop.permute.xlu1 %830  ;;  %v2030_v16 = vpop.f32.mrf.mxu0  ;;  %v1788_v59 = vsel %vm1756_vm1, %v1751_v20, %v4977_v7  ;;  %v5640_v20 = vld [vmem:[#allocation6_spill] sm:$0xff] }
 0x252   : > { %2721 = vpow2.f32 %v2524_v42  ;;  %v2527_v14 = vmul.f32 -1.442695, %v2039_v53  ;;  %v4995_v40 = vsel %vm1534_vm11, %v5636_v32, %v831_v38  ;;  %v2031_v58 = vadd.f32 %v4986_v43, %v2030_v16  ;;  %v1265_v63 = vpop.permute.xlu0 %1264 }
 0x253   : > { %v1860_v2 = vsel %vm1830_vm3, %v1823_v22, %v1265_v63  ;;  %v1661_v42 = vsel %vm1645_vm14, %v4933_v23, %v4951_v24  ;;  %v1825_v53 = vsel %vm1793_vm2, %v1788_v59, %v1231_v61 }
 0x254   : > { %2723 = vpow2.f32 %v2527_v14  ;;  %v2525_v9 = vmul.f32 -1.442695, %v2031_v58  ;;  %v1698_v4 = vsel %vm1682_vm15, %v1661_v42, %v4970_v55  ;;  %v1554_v42 = vsel %vm1534_vm11, %v5640_v20, %v5639_v19 }
 0x255   : > { %v906_v15 = vpop.permute.xlu1 %905  ;;  %v1735_v38 = vsel %vm1719_vm0, %v1698_v4, %v4975_v56 }
 0x256   : > { %2725 = vpow2.f32 %v2525_v9  ;;  %v4999_v28 = vsel %vm1571_vm12, %v1568_v62, %v906_v15  ;;  %v890_v39 = vpop.permute.xlu0 %889  ;;  %v1772_v23 = vsel %vm1756_vm1, %v1735_v38, %v4979_v57 }
 0x257   : > { %v5011_v1 = vsel %vm1571_vm12, %v1552_v5, %v890_v39  ;;  %v1809_v7 = vsel %vm1793_vm2, %v1772_v23, %v4981_v45 }
 0x259   : > { %v1267_v25 = vpop.permute.xlu1 %1266 }
 0x25a   : > { %v1251_v31 = vpop.permute.xlu0 %1250  ;;  %v1862_v41 = vsel %vm1830_vm3, %v1825_v53, %v1267_v25 }
 0x25b   : > { %v1846_v55 = vsel %vm1830_vm3, %v1809_v7, %v1251_v31 }
 0x25d   : > { %v2720_v54 = vpop.eup %2719  ;;  %v1342_v51 = vpop.permute.xlu1 %1341 }
 0x25e   : > { %v2280_v60 = vadd.f32 1.0, %v2720_v54  ;;  %v1911_v47 = vsel %vm1867_vm4, %v1860_v2, %v1342_v51  ;;  %v1326_v46 = vpop.permute.xlu0 %1325 }
 0x25f   : > { %v2722_v29 = vpop.eup %2721  ;;  %2632 = vmatprep.mubr.bf16.mxu1 %v1911_v47  ;;  %v1887_v17 = vsel %vm1867_vm4, %v1844_v18, %v1326_v46 }
 0x260   : > { %2727 = vrcp.f32 %v2280_v60  ;;  %v2278_v8 = vadd.f32 1.0, %v2722_v29  ;;  %2616 = vmatprep.mubr.bf16.mxu0 %v1887_v17 }
 0x261   : > { %v2724_v49 = vpop.eup %2723  ;;  %v5029_v6 = vpop.permute.xlu1 %907 }
 0x262   : > { %2729 = vrcp.f32 %v2278_v8  ;;  %v2281_v3 = vadd.f32 1.0, %v2724_v49  ;;  %v5034_v21 = vpop.permute.xlu0 %891  ;;  %v1607_v23 = vsel %vm1571_vm12, %v4995_v40, %v5029_v6 }
 0x263   : > { %v2726_v62 = vpop.eup %2725 }
 0x264   : > { %2731 = vrcp.f32 %v2281_v3  ;;  %v2279_v34 = vadd.f32 1.0, %v2726_v62 }
 0x265   : > { %v5038_v37 = vpop.permute.xlu1 %941 }
 0x266   : > { %2733 = vrcp.f32 %v2279_v34  ;;  %v5051_v13 = vpop.permute.xlu0 %925  ;;  %v1642_v38 = vsel %vm1608_vm13, %v4999_v28, %v5038_v37 }
 0x269   : > { %v1344_v16 = vpop.permute.xlu1 %1343 }
 0x26a   : > { %v1914_v24 = vsel %vm1867_vm4, %v1862_v41, %v1344_v16  ;;  %v1328_v56 = vpop.permute.xlu0 %1327 }
 0x26b   : > { %2633 = vmatmul.mubr.bf16.gmra.mxu1 %v1914_v24  ;;  %v1890_v61 = vsel %vm1867_vm4, %v1846_v55, %v1328_v56 }
 0x26c   : > { %2617 = vmatmul.mubr.bf16.gmra.mxu0 %v1890_v61 }
 0x26d   : > { %v2728_v57 = vpop.eup %2727  ;;  %v5068_v14 = vpop.permute.xlu1 %943 }
 0x26e   : > { %2389 = vst.msk [vmem:[%s5064_s28 + $0x10] sm:$0xff] %vm2386_vm5, %v2728_v57  ;;  %v5074_v32 = vpop.permute.xlu0 %927  ;;  %v1644_v40 = vsel %vm1608_vm13, %v1607_v23, %v5068_v14 }
 0x26f   : > { %v2730_v45 = vpop.eup %2729 }
 0x270   : > { %2387 = vst.msk [vmem:[%s5064_s28] sm:$0xff] %vm2386_vm5, %v2730_v45  ;;  %v1626_v45 = vsel %vm1608_vm13, %v5011_v1, %v5051_v13 }
 0x271   : > { %v2732_v58 = vpop.eup %2731  ;;  %v978_v9 = vpop.permute.xlu1 %977 }
 0x272   : > { %2390 = vst.msk [vmem:[%s5064_s28 + $0x18] sm:$0xff] %vm2386_vm5, %v2732_v58  ;;  %v962_v15 = vpop.permute.xlu0 %961  ;;  %v1679_v24 = vsel %vm1645_vm14, %v1642_v38, %v978_v9 }
 0x273   : > { %v2734_v63 = vpop.eup %2733  ;;  %v1663_v58 = vsel %vm1645_vm14, %v1626_v45, %v962_v15 }
 0x274   : > { %2388 = vst.msk [vmem:[%s5064_s28 + $0x8] sm:$0xff] %vm2386_vm5, %v2734_v63 }
 0x275   : > { %v5080_v27 = vpop.permute.xlu1 %979 }
 0x276   : > { %v5082_v26 = vpop.permute.xlu0 %963 }
 0x279   : > { %v1031_v50 = vpop.permute.xlu1 %1030 }
 0x27a   : > { %v1015_v5 = vpop.permute.xlu0 %1014  ;;  %v1716_v57 = vsel %vm1682_vm15, %v1679_v24, %v1031_v50  ;;  %v1591_v50 = vsel %vm1571_vm12, %v1554_v42, %v5034_v21 }
 0x27b   : > { %v1700_v1 = vsel %vm1682_vm15, %v1663_v58, %v1015_v5  ;;  %v1628_v21 = vsel %vm1608_vm13, %v1591_v50, %v5074_v32 }
 0x27d   : > { %v5084_v35 = vpop.permute.xlu1 %1032 }
 0x27e   : > { %v5086_v39 = vpop.permute.xlu0 %1016 }
 0x281   : > { %v1161_v0 = vpop.permute.xlu1 %1160 }
 0x282   : > { %v1145_v25 = vpop.permute.xlu0 %1144  ;;  %v1753_v6 = vsel %vm1719_vm0, %v1716_v57, %v1161_v0 }
 0x283   : > { %v1737_v15 = vsel %vm1719_vm0, %v1700_v1, %v1145_v25 }
 0x285   : > { %v5088_v11 = vpop.permute.xlu1 %1162 }
 0x286   : > { %v5090_v52 = vpop.permute.xlu0 %1146 }
 0x289   : > { %v1197_v10 = vpop.permute.xlu1 %1196 }
 0x28a   : > { %v5092_v33 = vpop.permute.xlu0 %1180  ;;  %v1790_v9 = vsel %vm1756_vm1, %v1753_v6, %v1197_v10 }
 0x28b   : > { %v1774_v5 = vsel %vm1756_vm1, %v1737_v15, %v5092_v33 }
 0x28d   : > { %v5094_v44 = vpop.permute.xlu1 %1198 }
 0x28e   : > { %v5096_v22 = vpop.permute.xlu0 %1182 }
 0x291   : > { %v1233_v31 = vpop.permute.xlu1 %1232 }
 0x292   : > { %v5098_v36 = vpop.permute.xlu0 %1216  ;;  %v1827_v13 = vsel %vm1793_vm2, %v1790_v9, %v1233_v31 }
 0x293   : > { %v2626_v54 = vpop.f32.mrf.mxu1 }
 0x294   : > { %v2116_v2 = vadd.f32 %v2626_v54, %v4986_v43  ;;  %v2610_v60 = vpop.f32.mrf.mxu0  ;;  %v1681_v54 = vsel %vm1645_vm14, %v1644_v40, %v5080_v27 }
 0x295   : > { %v5101_v51 = vpop.permute.xlu1 %1234  ;;  %v2107_v48 = vpop.f32.mrf.mxu1  ;;  %v2052_v30 = vadd.f32 %v2610_v60, %v4986_v43  ;;  %v1718_v0 = vsel %vm1682_vm15, %v1681_v54, %v5084_v35  ;;  %v1665_v35 = vsel %vm1645_vm14, %v1628_v21, %v5082_v26 }
 0x296   : > { %v2546_v47 = vmul.f32 -1.442695, %v2116_v2  ;;  %v2108_v29 = vadd.f32 %v4986_v43, %v2107_v48  ;;  %v2043_v8 = vpop.f32.mrf.mxu0  ;;  %v5105_v49 = vpop.permute.xlu0 %1218  ;;  %v1755_v27 = vsel %vm1719_vm0, %v1718_v0, %v5088_v11  ;;  %v1811_v48 = vsel %vm1793_vm2, %v1774_v5, %v5098_v36 }
 0x297   : > { %v2627_v18 = vpop.f32.mrf.mxu1  ;;  %v2530_v3 = vmul.f32 -1.442695, %v2052_v30  ;;  %v2044_v62 = vadd.f32 %v4986_v43, %v2043_v8  ;;  %v1792_v25 = vsel %vm1756_vm1, %v1755_v27, %v5094_v44  ;;  %v1702_v32 = vsel %vm1682_vm15, %v1665_v35, %v5086_v39 }
 0x298   : > { %2735 = vpow2.f32 %v2546_v47  ;;  %v2544_v46 = vmul.f32 -1.442695, %v2108_v29  ;;  %v2119_v17 = vadd.f32 %v2627_v18, %v4986_v43  ;;  %v2611_v59 = vpop.f32.mrf.mxu0  ;;  %v1829_v11 = vsel %vm1793_vm2, %v1792_v25, %v5101_v51 }
 0x299   : > { %v1269_v12 = vpop.permute.xlu1 %1268  ;;  %v2110_v34 = vpop.f32.mrf.mxu1  ;;  %v2528_v41 = vmul.f32 -1.442695, %v2044_v62  ;;  %v2055_v16 = vadd.f32 %v2611_v59, %v4986_v43  ;;  %v1739_v26 = vsel %vm1719_vm0, %v1702_v32, %v5090_v52 }
 0x29a   : > { %2737 = vpow2.f32 %v2544_v46  ;;  %v2547_v4 = vmul.f32 -1.442695, %v2119_v17  ;;  %v2111_v53 = vadd.f32 %v4986_v43, %v2110_v34  ;;  %v2046_v7 = vpop.f32.mrf.mxu0  ;;  %v1253_v56 = vpop.permute.xlu0 %1252  ;;  %v1864_v10 = vsel %vm1830_vm3, %v1827_v13, %v1269_v12 }
 0x29b   : > { %2739 = vpow2.f32 %v2530_v3  ;;  %v2531_v61 = vmul.f32 -1.442695, %v2055_v16  ;;  %v2047_v28 = vadd.f32 %v4986_v43, %v2046_v7  ;;  %v1848_v33 = vsel %vm1830_vm3, %v1811_v48, %v1253_v56 }
 0x29c   : > { %2741 = vpow2.f32 %v2547_v4  ;;  %v2545_v55 = vmul.f32 -1.442695, %v2111_v53  ;;  %v1776_v36 = vsel %vm1756_vm1, %v1739_v26, %v5096_v22 }
 0x29d   : > { %2743 = vpow2.f32 %v2528_v41  ;;  %v1271_v37 = vpop.permute.xlu1 %1270  ;;  %v2529_v63 = vmul.f32 -1.442695, %v2047_v28  ;;  %v1813_v8 = vsel %vm1793_vm2, %v1776_v36, %v5105_v49 }
 0x29e   : > { %2745 = vpow2.f32 %v2545_v55  ;;  %v1255_v14 = vpop.permute.xlu0 %1254  ;;  %v1866_v29 = vsel %vm1830_vm3, %v1829_v11, %v1271_v37 }
 0x29f   : > { %2747 = vpow2.f32 %v2531_v61  ;;  %v1850_v17 = vsel %vm1830_vm3, %v1813_v8, %v1255_v14 }
 0x2a0   : > { %2749 = vpow2.f32 %v2529_v63 }
 0x2a1   : > { %v1346_v2 = vpop.permute.xlu1 %1345 }
 0x2a2   : > { %v1917_v31 = vsel %vm1867_vm4, %v1864_v10, %v1346_v2  ;;  %v1330_v60 = vpop.permute.xlu0 %1329 }
 0x2a3   : > { %2636 = vmatprep.mubr.bf16.mxu1 %v1917_v31  ;;  %v1893_v44 = vsel %vm1867_vm4, %v1848_v33, %v1330_v60 }
 0x2a4   : > { %2620 = vmatprep.mubr.bf16.mxu0 %v1893_v44 }
 0x2a5   : > { %v2736_v47 = vpop.eup %2735  ;;  %v1348_v30 = vpop.permute.xlu1 %1347 }
 0x2a6   : > { %v2300_v18 = vadd.f32 1.0, %v2736_v47  ;;  %v1920_v39 = vsel %vm1867_vm4, %v1866_v29, %v1348_v30  ;;  %v1332_v3 = vpop.permute.xlu0 %1331 }
 0x2a7   : > { %v2738_v51 = vpop.eup %2737  ;;  %2637 = vmatmul.mubr.bf16.gmra.mxu1 %v1920_v39  ;;  %v1896_v34 = vsel %vm1867_vm4, %v1850_v17, %v1332_v3 }
 0x2a8   : > { %v2740_v46 = vpop.eup %2739  ;;  %2751 = vrcp.f32 %v2300_v18  ;;  %v2298_v52 = vadd.f32 1.0, %v2738_v51  ;;  %2621 = vmatmul.mubr.bf16.gmra.mxu0 %v1896_v34 }
 0x2a9   : > { %v2742_v62 = vpop.eup %2741  ;;  %v2284_v12 = vadd.f32 1.0, %v2740_v46 }
 0x2aa   : > { %v2744_v22 = vpop.eup %2743  ;;  %2753 = vrcp.f32 %v2298_v52  ;;  %v2301_v19 = vadd.f32 1.0, %v2742_v62 }
 0x2ab   : > { %v2746_v20 = vpop.eup %2745  ;;  %2755 = vrcp.f32 %v2284_v12  ;;  %v2282_v49 = vadd.f32 1.0, %v2744_v22 }
 0x2ac   : > { %v2748_v42 = vpop.eup %2747  ;;  %2757 = vrcp.f32 %v2301_v19  ;;  %v2299_v59 = vadd.f32 1.0, %v2746_v20 }
 0x2ad   : > { %2759 = vrcp.f32 %v2282_v49  ;;  %v2285_v4 = vadd.f32 1.0, %v2748_v42  ;;  %v2750_v53 = vpop.eup %2749 }
 0x2ae   : > { %2761 = vrcp.f32 %v2299_v59  ;;  %v2283_v38 = vadd.f32 1.0, %v2750_v53 }
 0x2af   : > { %2763 = vrcp.f32 %v2285_v4 }
 0x2b0   : > { %2765 = vrcp.f32 %v2283_v38 }
 0x2b5   : > { %v2752_v41 = vpop.eup %2751 }
 0x2b6   : > { %2409 = vst.msk [vmem:[%s5064_s28 + $0xb0] sm:$0xff] %vm2386_vm5, %v2752_v41 }
 0x2b7   : > { %v2754_v16 = vpop.eup %2753 }
 0x2b8   : > { %v2756_v23 = vpop.eup %2755  ;;  %2407 = vst.msk [vmem:[%s5064_s28 + $0xa0] sm:$0xff] %vm2386_vm5, %v2754_v16 }
 0x2b9   : > { %v2758_v24 = vpop.eup %2757  ;;  %2393 = vst.msk [vmem:[%s5064_s28 + $0x30] sm:$0xff] %vm2386_vm5, %v2756_v23 }
 0x2ba   : > { %v2760_v7 = vpop.eup %2759  ;;  %2410 = vst.msk [vmem:[%s5064_s28 + $0xb8] sm:$0xff] %vm2386_vm5, %v2758_v24 }
 0x2bb   : > { %v2762_v55 = vpop.eup %2761  ;;  %2391 = vst.msk [vmem:[%s5064_s28 + $0x20] sm:$0xff] %vm2386_vm5, %v2760_v7 }
 0x2bc   : > { %v2764_v56 = vpop.eup %2763  ;;  %2408 = vst.msk [vmem:[%s5064_s28 + $0xa8] sm:$0xff] %vm2386_vm5, %v2762_v55 }
 0x2bd   : > { %2394 = vst.msk [vmem:[%s5064_s28 + $0x38] sm:$0xff] %vm2386_vm5, %v2764_v56  ;;  %v2766_v57 = vpop.eup %2765 }
 0x2be   : > { %2392 = vst.msk [vmem:[%s5064_s28 + $0x28] sm:$0xff] %vm2386_vm5, %v2766_v57 }
 0x2df   : > { %v2630_v61 = vpop.f32.mrf.mxu1 }
 0x2e0   : > { %v2132_v28 = vadd.f32 %v2630_v61, %v4986_v43  ;;  %v2614_v45 = vpop.f32.mrf.mxu0 }
 0x2e1   : > { %v2123_v37 = vpop.f32.mrf.mxu1  ;;  %v2068_v58 = vadd.f32 %v2614_v45, %v4986_v43 }
 0x2e2   : > { %v2550_v40 = vmul.f32 -1.442695, %v2132_v28  ;;  %v2124_v6 = vadd.f32 %v4986_v43, %v2123_v37  ;;  %v2059_v63 = vpop.f32.mrf.mxu0 }
 0x2e3   : > { %v2631_v9 = vpop.f32.mrf.mxu1  ;;  %v2534_v1 = vmul.f32 -1.442695, %v2068_v58  ;;  %v2060_v13 = vadd.f32 %v4986_v43, %v2059_v63 }
 0x2e4   : > { %2767 = vpow2.f32 %v2550_v40  ;;  %v2548_v50 = vmul.f32 -1.442695, %v2124_v6  ;;  %v2135_v54 = vadd.f32 %v2631_v9, %v4986_v43  ;;  %v2615_v0 = vpop.f32.mrf.mxu0 }
 0x2e5   : > { %v2126_v14 = vpop.f32.mrf.mxu1  ;;  %v2532_v2 = vmul.f32 -1.442695, %v2060_v13  ;;  %v2071_v21 = vadd.f32 %v2615_v0, %v4986_v43 }
 0x2e6   : > { %2769 = vpow2.f32 %v2548_v50  ;;  %v2551_v15 = vmul.f32 -1.442695, %v2135_v54  ;;  %v2127_v10 = vadd.f32 %v4986_v43, %v2126_v14  ;;  %v2062_v27 = vpop.f32.mrf.mxu0 }
 0x2e7   : > { %2771 = vpow2.f32 %v2534_v1  ;;  %v2535_v31 = vmul.f32 -1.442695, %v2071_v21  ;;  %v2063_v35 = vadd.f32 %v4986_v43, %v2062_v27 }
 0x2e8   : > { %2773 = vpow2.f32 %v2551_v15  ;;  %v2549_v5 = vmul.f32 -1.442695, %v2127_v10 }
 0x2e9   : > { %2775 = vpow2.f32 %v2532_v2  ;;  %v2533_v25 = vmul.f32 -1.442695, %v2063_v35 }
 0x2ea   : > { %2777 = vpow2.f32 %v2549_v5 }
 0x2eb   : > { %2779 = vpow2.f32 %v2535_v31 }
 0x2ec   : > { %2781 = vpow2.f32 %v2533_v25 }
 0x2f1   : > { %v2768_v48 = vpop.eup %2767 }
 0x2f2   : > { %v2304_v32 = vadd.f32 1.0, %v2768_v48 }
 0x2f3   : > { %v2770_v11 = vpop.eup %2769 }
 0x2f4   : > { %v2772_v33 = vpop.eup %2771  ;;  %2783 = vrcp.f32 %v2304_v32  ;;  %v2302_v60 = vadd.f32 1.0, %v2770_v11 }
 0x2f5   : > { %v2774_v47 = vpop.eup %2773  ;;  %v2288_v26 = vadd.f32 1.0, %v2772_v33 }
 0x2f6   : > { %v2776_v29 = vpop.eup %2775  ;;  %2785 = vrcp.f32 %v2302_v60  ;;  %v2305_v44 = vadd.f32 1.0, %v2774_v47 }
 0x2f7   : > { %v2778_v30 = vpop.eup %2777  ;;  %2787 = vrcp.f32 %v2288_v26  ;;  %v2286_v36 = vadd.f32 1.0, %v2776_v29 }
 0x2f8   : > { %v2780_v18 = vpop.eup %2779  ;;  %2789 = vrcp.f32 %v2305_v44  ;;  %v2303_v39 = vadd.f32 1.0, %v2778_v30 }
 0x2f9   : > { %2791 = vrcp.f32 %v2286_v36  ;;  %v2289_v51 = vadd.f32 1.0, %v2780_v18  ;;  %v2782_v8 = vpop.eup %2781 }
 0x2fa   : > { %2793 = vrcp.f32 %v2303_v39  ;;  %v2287_v46 = vadd.f32 1.0, %v2782_v8 }
 0x2fb   : > { %2795 = vrcp.f32 %v2289_v51 }
 0x2fc   : > { %2797 = vrcp.f32 %v2287_v46 }
 0x301   : > { %v2784_v52 = vpop.eup %2783 }
 0x302   : > { %2413 = vst.msk [vmem:[%s5064_s28 + $0xd0] sm:$0xff] %vm2386_vm5, %v2784_v52 }
 0x303   : > { %v2786_v17 = vpop.eup %2785 }
 0x304   : > { %v2788_v3 = vpop.eup %2787  ;;  %2411 = vst.msk [vmem:[%s5064_s28 + $0xc0] sm:$0xff] %vm2386_vm5, %v2786_v17 }
 0x305   : > { %v2790_v62 = vpop.eup %2789  ;;  %2397 = vst.msk [vmem:[%s5064_s28 + $0x50] sm:$0xff] %vm2386_vm5, %v2788_v3 }
 0x306   : > { %v2792_v12 = vpop.eup %2791  ;;  %2414 = vst.msk [vmem:[%s5064_s28 + $0xd8] sm:$0xff] %vm2386_vm5, %v2790_v62 }
 0x307   : > { %v2794_v34 = vpop.eup %2793  ;;  %2395 = vst.msk [vmem:[%s5064_s28 + $0x40] sm:$0xff] %vm2386_vm5, %v2792_v12 }
 0x308   : > { %v2796_v22 = vpop.eup %2795  ;;  %2412 = vst.msk [vmem:[%s5064_s28 + $0xc8] sm:$0xff] %vm2386_vm5, %v2794_v34 }
 0x309   : > { %2398 = vst.msk [vmem:[%s5064_s28 + $0x58] sm:$0xff] %vm2386_vm5, %v2796_v22  ;;  %v2798_v19 = vpop.eup %2797 }
 0x30a   : > { %2396 = vst.msk [vmem:[%s5064_s28 + $0x48] sm:$0xff] %vm2386_vm5, %v2798_v19 }
 0x32b   : > { %v2634_v20 = vpop.f32.mrf.mxu1 }
 0x32c   : > { %v2148_v49 = vadd.f32 %v2634_v20, %v4986_v43  ;;  %v2618_v59 = vpop.f32.mrf.mxu0 }
 0x32d   : > { %v2139_v42 = vpop.f32.mrf.mxu1  ;;  %v2084_v38 = vadd.f32 %v2618_v59, %v4986_v43 }
 0x32e   : > { %v2554_v4 = vmul.f32 -1.442695, %v2148_v49  ;;  %v2140_v53 = vadd.f32 %v4986_v43, %v2139_v42  ;;  %v2075_v16 = vpop.f32.mrf.mxu0 }
 0x32f   : > { %v2635_v41 = vpop.f32.mrf.mxu1  ;;  %v2538_v7 = vmul.f32 -1.442695, %v2084_v38  ;;  %v2076_v55 = vadd.f32 %v4986_v43, %v2075_v16 }
 0x330   : > { %2799 = vpow2.f32 %v2554_v4  ;;  %v2552_v23 = vmul.f32 -1.442695, %v2140_v53  ;;  %v2151_v24 = vadd.f32 %v2635_v41, %v4986_v43  ;;  %v2619_v57 = vpop.f32.mrf.mxu0 }
 0x331   : > { %v2142_v56 = vpop.f32.mrf.mxu1  ;;  %v2536_v37 = vmul.f32 -1.442695, %v2076_v55  ;;  %v2087_v45 = vadd.f32 %v2619_v57, %v4986_v43 }
 0x332   : > { %2801 = vpow2.f32 %v2552_v23  ;;  %v2555_v61 = vmul.f32 -1.442695, %v2151_v24  ;;  %v2143_v28 = vadd.f32 %v4986_v43, %v2142_v56  ;;  %v2078_v40 = vpop.f32.mrf.mxu0 }
 0x333   : > { %2803 = vpow2.f32 %v2538_v7  ;;  %v2539_v58 = vmul.f32 -1.442695, %v2087_v45  ;;  %v2079_v9 = vadd.f32 %v4986_v43, %v2078_v40 }
 0x334   : > { %2805 = vpow2.f32 %v2555_v61  ;;  %v2553_v6 = vmul.f32 -1.442695, %v2143_v28 }
 0x335   : > { %2807 = vpow2.f32 %v2536_v37  ;;  %v2537_v63 = vmul.f32 -1.442695, %v2079_v9 }
 0x336   : > { %2809 = vpow2.f32 %v2553_v6 }
 0x337   : > { %2811 = vpow2.f32 %v2539_v58 }
 0x338   : > { %2813 = vpow2.f32 %v2537_v63 }
 0x33d   : > { %v2800_v50 = vpop.eup %2799 }
 0x33e   : > { %v2308_v54 = vadd.f32 1.0, %v2800_v50 }
 0x33f   : > { %v2802_v1 = vpop.eup %2801 }
 0x340   : > { %v2804_v13 = vpop.eup %2803  ;;  %2815 = vrcp.f32 %v2308_v54  ;;  %v2306_v14 = vadd.f32 1.0, %v2802_v1 }
 0x341   : > { %v2806_v0 = vpop.eup %2805  ;;  %v2292_v15 = vadd.f32 1.0, %v2804_v13 }
 0x342   : > { %v2808_v10 = vpop.eup %2807  ;;  %2817 = vrcp.f32 %v2306_v14  ;;  %v2309_v2 = vadd.f32 1.0, %v2806_v0 }
 0x343   : > { %v2810_v21 = vpop.eup %2809  ;;  %2819 = vrcp.f32 %v2292_v15  ;;  %v2290_v27 = vadd.f32 1.0, %v2808_v10 }
 0x344   : > { %v2812_v5 = vpop.eup %2811  ;;  %2821 = vrcp.f32 %v2309_v2  ;;  %v2307_v31 = vadd.f32 1.0, %v2810_v21 }
 0x345   : > { %2823 = vrcp.f32 %v2290_v27  ;;  %v2293_v35 = vadd.f32 1.0, %v2812_v5  ;;  %v2814_v25 = vpop.eup %2813 }
 0x346   : > { %2825 = vrcp.f32 %v2307_v31  ;;  %v2291_v48 = vadd.f32 1.0, %v2814_v25 }
 0x347   : > { %2827 = vrcp.f32 %v2293_v35 }
 0x348   : > { %2829 = vrcp.f32 %v2291_v48 }
 0x34d   : > { %v2816_v32 = vpop.eup %2815 }
 0x34e   : > { %2417 = vst.msk [vmem:[%s5064_s28 + $0xf0] sm:$0xff] %vm2386_vm5, %v2816_v32 }
 0x34f   : > { %v2818_v11 = vpop.eup %2817 }
 0x350   : > { %v2820_v33 = vpop.eup %2819  ;;  %2415 = vst.msk [vmem:[%s5064_s28 + $0xe0] sm:$0xff] %vm2386_vm5, %v2818_v11 }
 0x351   : > { %v2822_v60 = vpop.eup %2821  ;;  %2401 = vst.msk [vmem:[%s5064_s28 + $0x70] sm:$0xff] %vm2386_vm5, %v2820_v33 }
 0x352   : > { %v2824_v47 = vpop.eup %2823  ;;  %2418 = vst.msk [vmem:[%s5064_s28 + $0xf8] sm:$0xff] %vm2386_vm5, %v2822_v60 }
 0x353   : > { %v2826_v26 = vpop.eup %2825  ;;  %2399 = vst.msk [vmem:[%s5064_s28 + $0x60] sm:$0xff] %vm2386_vm5, %v2824_v47 }
 0x354   : > { %v2828_v29 = vpop.eup %2827  ;;  %2416 = vst.msk [vmem:[%s5064_s28 + $0xe8] sm:$0xff] %vm2386_vm5, %v2826_v26 }
 0x355   : > { %2402 = vst.msk [vmem:[%s5064_s28 + $0x78] sm:$0xff] %vm2386_vm5, %v2828_v29  ;;  %v2830_v44 = vpop.eup %2829 }
 0x356   : > { %2400 = vst.msk [vmem:[%s5064_s28 + $0x68] sm:$0xff] %vm2386_vm5, %v2830_v44 }
 0x367   : > { %v2638_v30 = vpop.f32.mrf.mxu1 }
 0x368   : > { %v2164_v36 = vadd.f32 %v2638_v30, %v4986_v43  ;;  %v2622_v39 = vpop.f32.mrf.mxu0 }
 0x369   : > { %v2155_v18 = vpop.f32.mrf.mxu1  ;;  %v2100_v46 = vadd.f32 %v2622_v39, %v4986_v43 }
 0x36a   : > { %v2558_v51 = vmul.f32 -1.442695, %v2164_v36  ;;  %v2156_v8 = vadd.f32 %v4986_v43, %v2155_v18  ;;  %v2091_v17 = vpop.f32.mrf.mxu0 }
 0x36b   : > { %v2639_v52 = vpop.f32.mrf.mxu1  ;;  %v2542_v12 = vmul.f32 -1.442695, %v2100_v46  ;;  %v2092_v34 = vadd.f32 %v4986_v43, %v2091_v17 }
 0x36c   : > { %2831 = vpow2.f32 %v2558_v51  ;;  %v2556_v3 = vmul.f32 -1.442695, %v2156_v8  ;;  %v2167_v62 = vadd.f32 %v2639_v52, %v4986_v43  ;;  %v2623_v19 = vpop.f32.mrf.mxu0 }
 0x36d   : > { %v2158_v22 = vpop.f32.mrf.mxu1  ;;  %v2540_v42 = vmul.f32 -1.442695, %v2092_v34  ;;  %v2103_v59 = vadd.f32 %v2623_v19, %v4986_v43 }
 0x36e   : > { %2833 = vpow2.f32 %v2556_v3  ;;  %v2559_v20 = vmul.f32 -1.442695, %v2167_v62  ;;  %v2159_v49 = vadd.f32 %v4986_v43, %v2158_v22  ;;  %v2094_v4 = vpop.f32.mrf.mxu0 }
 0x36f   : > { %2835 = vpow2.f32 %v2542_v12  ;;  %v2543_v38 = vmul.f32 -1.442695, %v2103_v59  ;;  %v2095_v41 = vadd.f32 %v4986_v43, %v2094_v4 }
 0x370   : > { %2837 = vpow2.f32 %v2559_v20  ;;  %v2557_v53 = vmul.f32 -1.442695, %v2159_v49 }
 0x371   : > { %2839 = vpow2.f32 %v2540_v42  ;;  %v2541_v16 = vmul.f32 -1.442695, %v2095_v41 }
 0x372   : > { %2841 = vpow2.f32 %v2557_v53 }
 0x373   : > { %2843 = vpow2.f32 %v2543_v38 }
 0x374   : > { %2845 = vpow2.f32 %v2541_v16 }
 0x379   : > { %v2832_v23 = vpop.eup %2831 }
 0x37a   : > { %v2312_v24 = vadd.f32 1.0, %v2832_v23 }
 0x37b   : > { %v2834_v7 = vpop.eup %2833 }
 0x37c   : > { %v2836_v55 = vpop.eup %2835  ;;  %2847 = vrcp.f32 %v2312_v24  ;;  %v2310_v56 = vadd.f32 1.0, %v2834_v7 }
 0x37d   : > { %v2838_v57 = vpop.eup %2837  ;;  %v2296_v61 = vadd.f32 1.0, %v2836_v55 }
 0x37e   : > { %v2840_v28 = vpop.eup %2839  ;;  %2849 = vrcp.f32 %v2310_v56  ;;  %v2313_v37 = vadd.f32 1.0, %v2838_v57 }
 0x37f   : > { %v2842_v45 = vpop.eup %2841  ;;  %2851 = vrcp.f32 %v2296_v61  ;;  %v2294_v43 = vadd.f32 1.0, %v2840_v28 }
 0x380   : > { %v2844_v40 = vpop.eup %2843  ;;  %2853 = vrcp.f32 %v2313_v37  ;;  %v2311_v6 = vadd.f32 1.0, %v2842_v45 }
 0x381   : > { %2855 = vrcp.f32 %v2294_v43  ;;  %v2297_v58 = vadd.f32 1.0, %v2844_v40  ;;  %v2846_v9 = vpop.eup %2845 }
 0x382   : > { %2857 = vrcp.f32 %v2311_v6  ;;  %v2295_v63 = vadd.f32 1.0, %v2846_v9 }
 0x383   : > { %2859 = vrcp.f32 %v2297_v58 }
 0x384   : > { %2861 = vrcp.f32 %v2295_v63 }
 0x389   : > { %v2848_v50 = vpop.eup %2847 }
 0x38a   : > { %2421 = vst.msk [vmem:[%s5064_s28 + $0x110] sm:$0xff] %vm2386_vm5, %v2848_v50 }
 0x38b   : > { %v2850_v54 = vpop.eup %2849 }
 0x38c   : > { %v2852_v1 = vpop.eup %2851  ;;  %2419 = vst.msk [vmem:[%s5064_s28 + $0x100] sm:$0xff] %vm2386_vm5, %v2850_v54 }
 0x38d   : > { %v2854_v13 = vpop.eup %2853  ;;  %2405 = vst.msk [vmem:[%s5064_s28 + $0x90] sm:$0xff] %vm2386_vm5, %v2852_v1 }
 0x38e   : > { %v2856_v14 = vpop.eup %2855  ;;  %2422 = vst.msk [vmem:[%s5064_s28 + $0x118] sm:$0xff] %vm2386_vm5, %v2854_v13 }
 0x38f   : > { %v2858_v0 = vpop.eup %2857  ;;  %2403 = vst.msk [vmem:[%s5064_s28 + $0x80] sm:$0xff] %vm2386_vm5, %v2856_v14 }
 0x390   : > { %v2860_v15 = vpop.eup %2859  ;;  %2420 = vst.msk [vmem:[%s5064_s28 + $0x108] sm:$0xff] %vm2386_vm5, %v2858_v0 }
 0x391   : > { %2406 = vst.msk [vmem:[%s5064_s28 + $0x98] sm:$0xff] %vm2386_vm5, %v2860_v15  ;;  %v2862_v10 = vpop.eup %2861 }
 0x392   : > { %2404 = vst.msk [vmem:[%s5064_s28 + $0x88] sm:$0xff] %vm2386_vm5, %v2862_v10 }
 0x393 PF: > { %s13_s12 = sadd.s32 1, %s2888_s12  }
 0x394   : > { %p10_p4 = scmp.ge.s32.totalorder %s13_s12, 4  }
 0x396   :  { %12 = sbr.rel (!%p10_p4) target bundleno = 1 (0x1), region = 62 }

</bundles_post_ra>
